<compile_context>
chip_gen: v5e
topology: v5e:2x2
jax: 0.10.0
libtpu: 0.0.40
codegen_flags: <defaults>
</compile_context>

<pallas_src>
import functools
import math

import jax
import jax.numpy as jnp
from jax.experimental import pallas as pl
from jax.experimental.pallas import tpu as pltpu


def _round_up(x, m):
    return ((x + m - 1) // m) * m


def _vmem_limit(nbytes):
    # Right-sized per-kernel VMEM budget (footprint + headroom) instead of a
    # blanket large limit; stays small for these kernels, scales only if needed.
    return int(min(max(nbytes + (2 << 20), 4 << 20), 64 << 20))


def _pick_tile_m(M, max_tile_m):
    """Pick an M-tile.  Prefers an exact divisor of M (avoids a wrapper-side
    jnp.pad HBM copy) and, among divisors, an even grid count (balances the two
    TensorCores on v7x).  Falls back to padding M up to a multiple of the tile."""
    if M % 8 == 0:
        cap = min(max_tile_m, M)
        cap -= cap % 8
        best = None
        for t in range(cap, 0, -8):
            if best is not None and 2 * t < best:
                break
            if M % t:
                continue
            if best is None:
                best = t
            if (M // t) % 2 == 0:
                return t, M                      # exact divisor, even grid count
        if best is not None:
            return best, M                       # exact divisor
    tile = min(max_tile_m, _round_up(M, 8))
    return tile, _round_up(M, tile)              # pad fallback


# ----------------------------------------------------------------------------
# Tiled linear (+bias, optional ReLU) kernel — used for the two conv matmuls
# ----------------------------------------------------------------------------
def _linear_kernel(x_ref, w_ref, b_ref, o_ref, *, relu):
    y = jnp.dot(x_ref[...], w_ref[...], preferred_element_type=jnp.float32)
    y = y + b_ref[...]
    if relu:
        y = jnp.maximum(y, 0.0)
    o_ref[...] = y.astype(o_ref.dtype)


def pallas_linear(x, w_t, b2, relu=False, out_dtype=jnp.float32, max_tile_m=1024):
    """y = relu?(x @ w_t + b2).  x: [M, K]; w_t: [K, N] (N lane-dense); b2: [1, N]."""
    M, K = x.shape
    N = w_t.shape[1]
    tile_m, Mp = _pick_tile_m(M, max_tile_m)
    if Mp != M:
        x = jnp.pad(x, ((0, Mp - M), (0, 0)))
    fp = 2 * (tile_m * K * x.dtype.itemsize + K * N * w_t.dtype.itemsize
              + N * 4 + tile_m * N * jnp.dtype(out_dtype).itemsize)
    out = pl.pallas_call(
        functools.partial(_linear_kernel, relu=relu),
        out_shape=jax.ShapeDtypeStruct((Mp, N), out_dtype),
        grid=(Mp // tile_m,),
        in_specs=[
            pl.BlockSpec((tile_m, K), lambda i: (i, 0)),
            pl.BlockSpec((K, N), lambda i: (0, 0)),
            pl.BlockSpec((1, N), lambda i: (0, 0)),
        ],
        out_specs=pl.BlockSpec((tile_m, N), lambda i: (i, 0)),
        compiler_params=pltpu.CompilerParams(
            dimension_semantics=("parallel",),
            vmem_limit_bytes=_vmem_limit(fp)),
    )(x, w_t, b2)
    return out[:M] if Mp != M else out


# ----------------------------------------------------------------------------
# Fused conv_merge (Linear+ReLU) + LSTM input projection kernel
#   gates = relu(flat @ Wm + bm) @ Wih_feat + ra * Wih_ra + (b_ih + b_hh)
# ----------------------------------------------------------------------------
def _merge_gates_kernel(flat_ref, ra_ref, wm_ref, bm_ref, wf_ref, wr_ref, bl_ref,
                        o_ref):
    feats = jnp.dot(flat_ref[...], wm_ref[...], preferred_element_type=jnp.float32)
    feats = jnp.maximum(feats + bm_ref[...], 0.0)
    g = jnp.dot(feats.astype(wf_ref.dtype), wf_ref[...],
                preferred_element_type=jnp.float32)
    ra = ra_ref[...]                     # [tile_m, R] f32, R = num_actions + 1
    wr = wr_ref[...]                     # [R, 4H] f32
    for r in range(ra.shape[1]):         # tiny K: unrolled broadcast-MACs (VPU)
        g = g + ra[:, r:r + 1] * wr[r:r + 1, :]
    o_ref[...] = g + bl_ref[...]


def merge_gates(flat, ra, w_merge, b_merge, w_ih_feat, w_ih_ra, b_lstm,
                max_tile_m=256):
    M, Kf = flat.shape
    R = ra.shape[1]
    H = w_merge.shape[1]
    G = w_ih_feat.shape[1]
    tile_m, Mp = _pick_tile_m(M, max_tile_m)
    if Mp != M:
        flat = jnp.pad(flat, ((0, Mp - M), (0, 0)))
        ra = jnp.pad(ra, ((0, Mp - M), (0, 0)))
    fp = (2 * (tile_m * Kf * 2 + tile_m * R * 4 + Kf * H * 2 + H * 4
               + H * G * 2 + R * G * 4 + G * 4 + tile_m * G * 4)
          + tile_m * H * 4 + tile_m * G * 4)
    out = pl.pallas_call(
        _merge_gates_kernel,
        out_shape=jax.ShapeDtypeStruct((Mp, G), jnp.float32),
        grid=(Mp // tile_m,),
        in_specs=[
            pl.BlockSpec((tile_m, Kf), lambda i: (i, 0)),
            pl.BlockSpec((tile_m, R), lambda i: (i, 0)),
            pl.BlockSpec((Kf, H), lambda i: (0, 0)),
            pl.BlockSpec((1, H), lambda i: (0, 0)),
            pl.BlockSpec((H, G), lambda i: (0, 0)),
            pl.BlockSpec((R, G), lambda i: (0, 0)),
            pl.BlockSpec((1, G), lambda i: (0, 0)),
        ],
        out_specs=pl.BlockSpec((tile_m, G), lambda i: (i, 0)),
        compiler_params=pltpu.CompilerParams(
            dimension_semantics=("parallel",),
            vmem_limit_bytes=_vmem_limit(fp)),
    )(flat, ra, w_merge, b_merge, w_ih_feat, w_ih_ra, b_lstm)
    return out[:M] if Mp != M else out


# ----------------------------------------------------------------------------
# Masked LSTM recurrence with fused policy/critic head epilogue.
# Consumes batch-major gates [B, T, 4H] (no wrapper transpose / batch padding).
# ----------------------------------------------------------------------------
def _lstm_head_kernel(gx_ref, m_ref, h0_ref, c0_ref, whh_ref, whd_ref, bhd_ref,
                      head_ref, hN_ref, cN_ref, h_s, c_s, *, tb, t_total, hidden):
    t = pl.program_id(0)

    @pl.when(t == 0)
    def _():
        h_s[...] = h0_ref[...]
        c_s[...] = c0_ref[...]

    H = hidden
    whh = whh_ref[...]                   # [H, 4H] bf16, VMEM-resident
    whd = whd_ref[...]                   # [H, 128] bf16 fused policy|critic head
    bhd = bhd_ref[...]                   # [1, 128] f32

    def step(j):
        m = m_ref[:, j]                  # [B, 1] reset mask
        h = h_s[...] * m
        c = c_s[...] * m
        gates = gx_ref[:, j] + jnp.dot(h.astype(whh.dtype), whh,
                                       preferred_element_type=jnp.float32)
        # PyTorch LSTM gate order: i, f, g, o
        i = jax.nn.sigmoid(gates[:, 0:H])
        f = jax.nn.sigmoid(gates[:, H:2 * H])
        g = jnp.tanh(gates[:, 2 * H:3 * H])
        o = jax.nn.sigmoid(gates[:, 3 * H:4 * H])
        c_new = f * c + i * g
        h_new = o * jnp.tanh(c_new)
        h_s[...] = h_new
        c_s[...] = c_new
        head_ref[:, j] = (jnp.dot(h_new.astype(whd.dtype), whd,
                                  preferred_element_type=jnp.float32) + bhd)

    exact = (t_total % tb == 0)
    for j in range(tb):                  # statically unrolled time block
        if exact:
            step(j)
        else:
            pl.when(t * tb + j < t_total)(functools.partial(step, j))

    hN_ref[...] = h_s[...]
    cN_ref[...] = c_s[...]


def masked_lstm_head(gates, m, h0, c0, w_hh_t, w_head, b_head, time_block=8):
    """gates: [B, T, 4H] (x@W_ih + b precomputed), m: [B, T, 1] reset masks."""
    B, T, G = gates.shape
    H = h0.shape[-1]
    Nh = w_head.shape[-1]
    TB = min(T, time_block)
    nt = -(-T // TB)
    fp = (2 * (B * TB * G * 4 + B * TB * 4 + B * TB * Nh * 4)
          + 2 * (2 * B * H * 4 + H * G * 2 + H * Nh * 2 + Nh * 4)
          + 2 * B * H * 4)
    kernel = functools.partial(_lstm_head_kernel, tb=TB, t_total=T, hidden=H)
    head, hN, cN = pl.pallas_call(
        kernel,
        out_shape=(jax.ShapeDtypeStruct((B, T, Nh), jnp.float32),
                   jax.ShapeDtypeStruct((B, H), jnp.float32),
                   jax.ShapeDtypeStruct((B, H), jnp.float32)),
        grid=(nt,),
        in_specs=[
            pl.BlockSpec((B, TB, G), lambda t: (0, t, 0)),
            pl.BlockSpec((B, TB, 1), lambda t: (0, t, 0)),
            pl.BlockSpec((B, H), lambda t: (0, 0)),
            pl.BlockSpec((B, H), lambda t: (0, 0)),
            pl.BlockSpec((H, G), lambda t: (0, 0)),
            pl.BlockSpec((H, Nh), lambda t: (0, 0)),
            pl.BlockSpec((1, Nh), lambda t: (0, 0)),
        ],
        out_specs=(pl.BlockSpec((B, TB, Nh), lambda t: (0, t, 0)),
                   pl.BlockSpec((B, H), lambda t: (0, 0)),
                   pl.BlockSpec((B, H), lambda t: (0, 0))),
        scratch_shapes=[pltpu.VMEM((B, H), jnp.float32),
                        pltpu.VMEM((B, H), jnp.float32)],
        compiler_params=pltpu.CompilerParams(
            dimension_semantics=("arbitrary",),
            vmem_limit_bytes=_vmem_limit(fp)),
    )(gates, m, h0, c0, w_hh_t, w_head, b_head)
    return head, hN, cN


# ----------------------------------------------------------------------------
# Conv-as-matmul glue: NHWC im2col (pure slicing) + lane-dense Pallas matmul
# ----------------------------------------------------------------------------
def _im2col_nhwc(x, k, s):
    """x: [N, H, W, C] -> ([N, OH, OW, k*k*C], OH, OW), feature order (kh, kw, c)."""
    N, H, W, C = x.shape
    OH = (H - k) // s + 1
    OW = (W - k) // s + 1
    patches = []
    for kh in range(k):
        for kw in range(k):
            patches.append(x[:, kh:kh + s * OH:s, kw:kw + s * OW:s, :])  # [N,OH,OW,C]
    cols = jnp.concatenate(patches, axis=-1)          # [N, OH, OW, k*k*C]
    return cols, OH, OW


def conv2d_relu_nhwc(x_nhwc, w_t_pad, b_pad, oc, k, stride):
    """VALID Conv2d + ReLU on NHWC input using a 128-lane padded weight matrix."""
    N = x_nhwc.shape[0]
    cols, OH, OW = _im2col_nhwc(x_nhwc, k, stride)
    K = cols.shape[-1]
    y = pallas_linear(cols.reshape(N * OH * OW, K), w_t_pad, b_pad,
                      relu=True, out_dtype=jnp.bfloat16)
    return y[:, :oc].reshape(N, OH, OW, oc)           # stay NHWC, bf16


# ----------------------------------------------------------------------------
# Parameters (deterministic, synthetic) + one-time device-layout preparation
# ----------------------------------------------------------------------------
def _uniform_fan_in(key, shape, fan_in):
    d = 1.0 / math.sqrt(fan_in)
    return jax.random.uniform(key, shape, jnp.float32, -d, d)


def init_params(key, num_inputs, num_outputs):
    H = 256
    Din = 256 + num_outputs + 1
    ks = jax.random.split(key, 8)
    # TODO(synk): LSTM weight_hh uses xavier-style uniform instead of true orthogonal init.
    xav_ih = math.sqrt(6.0 / (Din + 4 * H))
    xav_hh = math.sqrt(6.0 / (H + 4 * H))
    return dict(
        conv1_w=_uniform_fan_in(ks[0], (16, num_inputs, 8, 8), num_inputs * 8 * 8),
        conv1_b=jnp.zeros((16,), jnp.float32),
        conv2_w=_uniform_fan_in(ks[1], (32, 16, 4, 4), 16 * 4 * 4),
        conv2_b=jnp.zeros((32,), jnp.float32),
        merge_w=_uniform_fan_in(ks[2], (256, 9 * 9 * 32), 9 * 9 * 32),
        merge_b=jnp.zeros((256,), jnp.float32),
        policy_w=_uniform_fan_in(ks[3], (num_outputs, 256), 256),
        policy_b=jnp.zeros((num_outputs,), jnp.float32),
        critic_w=_uniform_fan_in(ks[4], (1, 256), 256),
        critic_b=jnp.zeros((1,), jnp.float32),
        lstm_w_ih=jax.random.uniform(ks[5], (4 * H, Din), jnp.float32, -xav_ih, xav_ih),
        lstm_w_hh=jax.random.uniform(ks[6], (4 * H, H), jnp.float32, -xav_hh, xav_hh),
        lstm_b_ih=jnp.zeros((4 * H,), jnp.float32),
        lstm_b_hh=jnp.zeros((4 * H,), jnp.float32),
    )


def _prep_conv(w, b, oc_pad=128):
    """PyTorch [OC, IC, k, k] -> (kh,kw,c)-ordered [k*k*IC, 128] bf16 + [1,128] f32."""
    OC, IC, k, _ = w.shape
    w_t = jnp.transpose(w, (2, 3, 1, 0)).reshape(k * k * IC, OC)
    w_t = jnp.pad(w_t, ((0, 0), (0, oc_pad - OC))).astype(jnp.bfloat16)
    b_p = jnp.pad(b, (0, oc_pad - OC)).reshape(1, oc_pad).astype(jnp.float32)
    return w_t, b_p


def prepare_params(params):
    """One-time weight layout / cast work hoisted out of the per-call forward."""
    H = 256
    A = params["policy_w"].shape[0]
    w1_t, b1 = _prep_conv(params["conv1_w"], params["conv1_b"])
    w2_t, b2 = _prep_conv(params["conv2_w"], params["conv2_b"])
    # merge weight: permute columns so the NHWC (h,w,c) flatten matches PyTorch's
    # NCHW (c,h,w) Flatten semantics.
    w_merge = jnp.transpose(params["merge_w"].reshape(H, 32, 9, 9),
                            (2, 3, 1, 0)).reshape(9 * 9 * 32, H).astype(jnp.bfloat16)
    b_merge = params["merge_b"].reshape(1, H).astype(jnp.float32)
    w_ih_t = params["lstm_w_ih"].T                       # [Din, 4H]
    w_ih_feat = w_ih_t[:H].astype(jnp.bfloat16)          # conv-feature rows
    w_ih_ra = w_ih_t[H:].astype(jnp.float32)             # reward/action rows (tiny)
    b_lstm = (params["lstm_b_ih"] + params["lstm_b_hh"]).reshape(1, 4 * H).astype(jnp.float32)
    w_hh_t = params["lstm_w_hh"].T.astype(jnp.bfloat16)  # [H, 4H]
    # fused lane-dense policy|critic head
    Nh = _round_up(A + 1, 128)
    w_head = jnp.zeros((H, Nh), jnp.float32)
    w_head = w_head.at[:, :A].set(params["policy_w"].T)
    w_head = w_head.at[:, A].set(params["critic_w"][0])
    b_head = jnp.zeros((1, Nh), jnp.float32)
    b_head = b_head.at[0, :A].set(params["policy_b"])
    b_head = b_head.at[0, A].set(params["critic_b"][0])
    return dict(w1_t=w1_t, b1=b1, w2_t=w2_t, b2=b2,
                w_merge=w_merge, b_merge=b_merge,
                w_ih_feat=w_ih_feat, w_ih_ra=w_ih_ra, b_lstm=b_lstm,
                w_hh_t=w_hh_t, w_head=w_head.astype(jnp.bfloat16), b_head=b_head)


# ----------------------------------------------------------------------------
# UnrealModel.forward
# ----------------------------------------------------------------------------
def unreal_forward(prep, observations, last_reward_action, masks, states):
    """Returns (policy_logits [B,T,A], critic [B,T,1], (h [B,1,256], c [B,1,256]))."""
    B, T, C, Hh, Ww = observations.shape
    N = B * T
    A = last_reward_action.shape[-1] - 1
    HL = 256

    # conv_base: Conv(C->16, 8x8, s4)+ReLU, Conv(16->32, 4x4, s2)+ReLU  (NHWC, bf16)
    x = jnp.transpose(observations.reshape(N, C, Hh, Ww).astype(jnp.bfloat16),
                      (0, 2, 3, 1))                                    # [N,84,84,C]
    x = conv2d_relu_nhwc(x, prep["w1_t"], prep["b1"], 16, 8, 4)        # [N,20,20,16]
    x = conv2d_relu_nhwc(x, prep["w2_t"], prep["b2"], 32, 4, 2)        # [N, 9, 9,32]

    # fused conv_merge (Flatten + Linear + ReLU) + LSTM input projection
    flat = x.reshape(N, 9 * 9 * 32)                                    # bf16
    ra = last_reward_action.reshape(N, A + 1).astype(jnp.float32)
    gates = merge_gates(flat, ra, prep["w_merge"], prep["b_merge"],
                        prep["w_ih_feat"], prep["w_ih_ra"], prep["b_lstm"])
    gates = gates.reshape(B, T, 4 * HL)                                # batch-major

    # masked LSTM recurrence with fused policy/critic head epilogue
    m = masks.astype(jnp.float32).reshape(B, T, 1)
    h0 = states[0].reshape(B, HL)
    c0 = states[1].reshape(B, HL)
    head, hN, cN = masked_lstm_head(gates, m, h0, c0,
                                    prep["w_hh_t"], prep["w_head"], prep["b_head"])

    policy = head[..., :A]                                             # [B,T,A]
    critic = head[..., A:A + 1]                                        # [B,T,1]
    out_states = (hN.reshape(B, 1, HL), cN.reshape(B, 1, HL))
    return policy, critic, out_states


# ----------------------------------------------------------------------------
if __name__ == "__main__":
    num_inputs = 4      # observation channels
    num_outputs = 6     # action space size
    B, T = 2, 3
    key = jax.random.PRNGKey(0)
    k_obs, k_ra, k_params = jax.random.split(key, 3)

    observations = jax.random.uniform(k_obs, (B, T, num_inputs, 84, 84), jnp.float32)
    last_reward_action = jax.random.uniform(k_ra, (B, T, num_outputs + 1), jnp.float32)
    masks = jnp.ones((B, T), jnp.float32).at[0, 1].set(0.0)   # exercise state reset
    states = (jnp.zeros((B, 1, 256), jnp.float32),            # initial_states(B)
              jnp.zeros((B, 1, 256), jnp.float32))

    params = init_params(k_params, num_inputs, num_outputs)
    prep = prepare_params(params)       # one-time weight layout / casts (hoisted)

    fwd = jax.jit(unreal_forward)
    policy_logits, critic, out_states = fwd(prep, observations, last_reward_action,
                                            masks, states)
    jax.block_until_ready((policy_logits, critic, out_states))

    assert policy_logits.shape == (B, T, num_outputs)
    assert critic.shape == (B, T, 1)
    assert out_states[0].shape == (B, 1, 256) and out_states[1].shape == (B, 1, 256)
    assert bool(jnp.all(jnp.isfinite(policy_logits))) and bool(jnp.all(jnp.isfinite(critic)))
    print("KERNEL_OK")
</pallas_src>

<mosaic_0001>
module attributes {stable_mosaic.version = 11 : i64} {
  func.func @_linear_kernel(%arg0: i32, %arg1: memref<600x256xbf16, #tpu.memory_space<vmem>>, %arg2: memref<256x128xbf16, #tpu.memory_space<vmem>>, %arg3: memref<1x128xf32, #tpu.memory_space<vmem>>, %arg4: memref<600x128xbf16, #tpu.memory_space<vmem>>) attributes {dimension_semantics = [#tpu.dimension_semantics<parallel>], iteration_bounds = array<i64: 4>, scalar_prefetch = 0 : i64, scratch_operands = 0 : i64, tpu.core_type = #tpu.core_type<tc>, window_params = [{transform_indices = @transform_0, window_bounds = array<i64: 600, 256>}, {pipeline_mode = #tpu.pipeline_mode<synchronous>, transform_indices = @transform_1, window_bounds = array<i64: 256, 128>}, {pipeline_mode = #tpu.pipeline_mode<synchronous>, transform_indices = @transform_2, window_bounds = array<i64: 1, 128>}, {transform_indices = @transform_3, window_bounds = array<i64: 600, 128>}]} {
    %c0 = arith.constant 0 : index
    %c0_0 = arith.constant 0 : index
    %0 = vector.load %arg1[%c0, %c0_0] : memref<600x256xbf16, #tpu.memory_space<vmem>>, vector<600x256xbf16>
    %c0_1 = arith.constant 0 : index
    %c0_2 = arith.constant 0 : index
    %1 = vector.load %arg2[%c0_1, %c0_2] : memref<256x128xbf16, #tpu.memory_space<vmem>>, vector<256x128xbf16>
    %cst = arith.constant dense<0.000000e+00> : vector<600x128xf32>
    %2 = tpu.matmul %0, %1, %cst {dimension_numbers = #tpu.dot_dimension_numbers<[1], [0], [0], [1], [0, 0, 1, 1], [], []>} : vector<600x256xbf16>, vector<256x128xbf16>, vector<600x128xf32> -> vector<600x128xf32>
    %c0_3 = arith.constant 0 : index
    %c0_4 = arith.constant 0 : index
    %3 = vector.load %arg3[%c0_3, %c0_4] : memref<1x128xf32, #tpu.memory_space<vmem>>, vector<1x128xf32>
    %4 = vector.broadcast %3 : vector<1x128xf32> to vector<600x128xf32>
    %5 = arith.addf %2, %4 : vector<600x128xf32>
    %cst_5 = arith.constant 0.000000e+00 : f32
    %6 = vector.broadcast %cst_5 : f32 to vector<600x128xf32>
    %7 = arith.maximumf %5, %6 : vector<600x128xf32>
    %8 = arith.truncf %7 : vector<600x128xf32> to vector<600x128xbf16>
    %c0_6 = arith.constant 0 : index
    %c0_7 = arith.constant 0 : index
    %9 = vector.load %arg4[%c0_6, %c0_7] : memref<600x128xbf16, #tpu.memory_space<vmem>>, vector<600x128xbf16>
    tpu.vector_store %arg4[%c0_6, %c0_7], %8 {strides = array<i32>} : memref<600x128xbf16, #tpu.memory_space<vmem>>, vector<600x128xbf16>,
    return
  }
  func.func @transform_0(%arg0: i32) -> (i32, i32) {
    %c0_i32 = arith.constant 0 : i32
    %c0_i32_0 = arith.constant 0 : i32
    return %arg0, %c0_i32 : i32, i32
  }
  func.func @transform_1(%arg0: i32) -> (i32, i32) {
    %c0_i32 = arith.constant 0 : i32
    %c0_i32_0 = arith.constant 0 : i32
    %c0_i32_1 = arith.constant 0 : i32
    return %c0_i32, %c0_i32_0 : i32, i32
  }
  func.func @transform_2(%arg0: i32) -> (i32, i32) {
    %c0_i32 = arith.constant 0 : i32
    %c0_i32_0 = arith.constant 0 : i32
    %c0_i32_1 = arith.constant 0 : i32
    return %c0_i32, %c0_i32_0 : i32, i32
  }
  func.func @transform_3(%arg0: i32) -> (i32, i32) {
    %c0_i32 = arith.constant 0 : i32
    %c0_i32_0 = arith.constant 0 : i32
    return %arg0, %c0_i32 : i32, i32
  }
}

module attributes {stable_mosaic.version = 11 : i64} {
  func.func @_linear_kernel(%arg0: i32, %arg1: memref<488x256xbf16, #tpu.memory_space<vmem>>, %arg2: memref<256x128xbf16, #tpu.memory_space<vmem>>, %arg3: memref<1x128xf32, #tpu.memory_space<vmem>>, %arg4: memref<488x128xbf16, #tpu.memory_space<vmem>>) attributes {dimension_semantics = [#tpu.dimension_semantics<parallel>], iteration_bounds = array<i64: 1>, scalar_prefetch = 0 : i64, scratch_operands = 0 : i64, tpu.core_type = #tpu.core_type<tc>, window_params = [{transform_indices = @transform_0, window_bounds = array<i64: 488, 256>}, {pipeline_mode = #tpu.pipeline_mode<synchronous>, transform_indices = @transform_1, window_bounds = array<i64: 256, 128>}, {pipeline_mode = #tpu.pipeline_mode<synchronous>, transform_indices = @transform_2, window_bounds = array<i64: 1, 128>}, {transform_indices = @transform_3, window_bounds = array<i64: 488, 128>}]} {
    %c0 = arith.constant 0 : index
    %c0_0 = arith.constant 0 : index
    %0 = vector.load %arg1[%c0, %c0_0] : memref<488x256xbf16, #tpu.memory_space<vmem>>, vector<488x256xbf16>
    %c0_1 = arith.constant 0 : index
    %c0_2 = arith.constant 0 : index
    %1 = vector.load %arg2[%c0_1, %c0_2] : memref<256x128xbf16, #tpu.memory_space<vmem>>, vector<256x128xbf16>
    %cst = arith.constant dense<0.000000e+00> : vector<488x128xf32>
    %2 = tpu.matmul %0, %1, %cst {dimension_numbers = #tpu.dot_dimension_numbers<[1], [0], [0], [1], [0, 0, 1, 1], [], []>} : vector<488x256xbf16>, vector<256x128xbf16>, vector<488x128xf32> -> vector<488x128xf32>
    %c0_3 = arith.constant 0 : index
    %c0_4 = arith.constant 0 : index
    %3 = vector.load %arg3[%c0_3, %c0_4] : memref<1x128xf32, #tpu.memory_space<vmem>>, vector<1x128xf32>
    %4 = vector.broadcast %3 : vector<1x128xf32> to vector<488x128xf32>
    %5 = arith.addf %2, %4 : vector<488x128xf32>
    %cst_5 = arith.constant 0.000000e+00 : f32
    %6 = vector.broadcast %cst_5 : f32 to vector<488x128xf32>
    %7 = arith.maximumf %5, %6 : vector<488x128xf32>
    %8 = arith.truncf %7 : vector<488x128xf32> to vector<488x128xbf16>
    %c0_6 = arith.constant 0 : index
    %c0_7 = arith.constant 0 : index
    %9 = vector.load %arg4[%c0_6, %c0_7] : memref<488x128xbf16, #tpu.memory_space<vmem>>, vector<488x128xbf16>
    tpu.vector_store %arg4[%c0_6, %c0_7], %8 {strides = array<i32>} : memref<488x128xbf16, #tpu.memory_space<vmem>>, vector<488x128xbf16>,
    return
  }
  func.func @transform_0(%arg0: i32) -> (i32, i32) {
    %c0_i32 = arith.constant 0 : i32
    %c0_i32_0 = arith.constant 0 : i32
    return %arg0, %c0_i32 : i32, i32
  }
  func.func @transform_1(%arg0: i32) -> (i32, i32) {
    %c0_i32 = arith.constant 0 : i32
    %c0_i32_0 = arith.constant 0 : i32
    %c0_i32_1 = arith.constant 0 : i32
    return %c0_i32, %c0_i32_0 : i32, i32
  }
  func.func @transform_2(%arg0: i32) -> (i32, i32) {
    %c0_i32 = arith.constant 0 : i32
    %c0_i32_0 = arith.constant 0 : i32
    %c0_i32_1 = arith.constant 0 : i32
    return %c0_i32, %c0_i32_0 : i32, i32
  }
  func.func @transform_3(%arg0: i32) -> (i32, i32) {
    %c0_i32 = arith.constant 0 : i32
    %c0_i32_0 = arith.constant 0 : i32
    return %arg0, %c0_i32 : i32, i32
  }
}

module attributes {stable_mosaic.version = 11 : i64} {
  func.func @_merge_gates_kernel(%arg0: i32, %arg1: memref<8x2592xbf16, #tpu.memory_space<vmem>>, %arg2: memref<8x7xf32, #tpu.memory_space<vmem>>, %arg3: memref<2592x256xbf16, #tpu.memory_space<vmem>>, %arg4: memref<1x256xf32, #tpu.memory_space<vmem>>, %arg5: memref<256x1024xbf16, #tpu.memory_space<vmem>>, %arg6: memref<7x1024xf32, #tpu.memory_space<vmem>>, %arg7: memref<1x1024xf32, #tpu.memory_space<vmem>>, %arg8: memref<8x1024xf32, #tpu.memory_space<vmem>>) attributes {dimension_semantics = [#tpu.dimension_semantics<parallel>], iteration_bounds = array<i64: 1>, scalar_prefetch = 0 : i64, scratch_operands = 0 : i64, tpu.core_type = #tpu.core_type<tc>, window_params = [{transform_indices = @transform_0, window_bounds = array<i64: 8, 2592>}, {transform_indices = @transform_1, window_bounds = array<i64: 8, 7>}, {pipeline_mode = #tpu.pipeline_mode<synchronous>, transform_indices = @transform_2, window_bounds = array<i64: 2592, 256>}, {pipeline_mode = #tpu.pipeline_mode<synchronous>, transform_indices = @transform_3, window_bounds = array<i64: 1, 256>}, {pipeline_mode = #tpu.pipeline_mode<synchronous>, transform_indices = @transform_4, window_bounds = array<i64: 256, 1024>}, {pipeline_mode = #tpu.pipeline_mode<synchronous>, transform_indices = @transform_5, window_bounds = array<i64: 7, 1024>}, {pipeline_mode = #tpu.pipeline_mode<synchronous>, transform_indices = @transform_6, window_bounds = array<i64: 1, 1024>}, {transform_indices = @transform_7, window_bounds = array<i64: 8, 1024>}]} {
    %c0 = arith.constant 0 : index
    %c0_0 = arith.constant 0 : index
    %0 = vector.load %arg1[%c0, %c0_0] : memref<8x2592xbf16, #tpu.memory_space<vmem>>, vector<8x2592xbf16>
    %c0_1 = arith.constant 0 : index
    %c0_2 = arith.constant 0 : index
    %1 = vector.load %arg3[%c0_1, %c0_2] : memref<2592x256xbf16, #tpu.memory_space<vmem>>, vector<2592x256xbf16>
    %cst = arith.constant dense<0.000000e+00> : vector<8x256xf32>
    %2 = tpu.matmul %0, %1, %cst {dimension_numbers = #tpu.dot_dimension_numbers<[1], [0], [0], [1], [0, 0, 1, 1], [], []>} : vector<8x2592xbf16>, vector<2592x256xbf16>, vector<8x256xf32> -> vector<8x256xf32>
    %c0_3 = arith.constant 0 : index
    %c0_4 = arith.constant 0 : index
    %3 = vector.load %arg4[%c0_3, %c0_4] : memref<1x256xf32, #tpu.memory_space<vmem>>, vector<1x256xf32>
    %4 = vector.broadcast %3 : vector<1x256xf32> to vector<8x256xf32>
    %5 = arith.addf %2, %4 : vector<8x256xf32>
    %cst_5 = arith.constant 0.000000e+00 : f32
    %6 = vector.broadcast %cst_5 : f32 to vector<8x256xf32>
    %7 = arith.maximumf %5, %6 : vector<8x256xf32>
    %8 = arith.truncf %7 : vector<8x256xf32> to vector<8x256xbf16>
    %c0_6 = arith.constant 0 : index
    %c0_7 = arith.constant 0 : index
    %9 = vector.load %arg5[%c0_6, %c0_7] : memref<256x1024xbf16, #tpu.memory_space<vmem>>, vector<256x1024xbf16>
    %cst_8 = arith.constant dense<0.000000e+00> : vector<8x1024xf32>
    %10 = tpu.matmul %8, %9, %cst_8 {dimension_numbers = #tpu.dot_dimension_numbers<[1], [0], [0], [1], [0, 0, 1, 1], [], []>} : vector<8x256xbf16>, vector<256x1024xbf16>, vector<8x1024xf32> -> vector<8x1024xf32>
    %c0_9 = arith.constant 0 : index
    %c0_10 = arith.constant 0 : index
    %11 = vector.load %arg2[%c0_9, %c0_10] : memref<8x7xf32, #tpu.memory_space<vmem>>, vector<8x7xf32>
    %c0_11 = arith.constant 0 : index
    %c0_12 = arith.constant 0 : index
    %12 = vector.load %arg6[%c0_11, %c0_12] : memref<7x1024xf32, #tpu.memory_space<vmem>>, vector<7x1024xf32>
    %13 = vector.extract_strided_slice %11 {offsets = [0, 0], sizes = [8, 1], strides = [1, 1]} : vector<8x7xf32> to vector<8x1xf32>
    %14 = vector.extract_strided_slice %12 {offsets = [0, 0], sizes = [1, 1024], strides = [1, 1]} : vector<7x1024xf32> to vector<1x1024xf32>
    %15 = vector.broadcast %13 : vector<8x1xf32> to vector<8x1024xf32>
    %16 = vector.broadcast %14 : vector<1x1024xf32> to vector<8x1024xf32>
    %17 = arith.mulf %15, %16 : vector<8x1024xf32>
    %18 = arith.addf %10, %17 : vector<8x1024xf32>
    %19 = vector.extract_strided_slice %11 {offsets = [0, 1], sizes = [8, 1], strides = [1, 1]} : vector<8x7xf32> to vector<8x1xf32>
    %20 = vector.extract_strided_slice %12 {offsets = [1, 0], sizes = [1, 1024], strides = [1, 1]} : vector<7x1024xf32> to vector<1x1024xf32>
    %21 = vector.broadcast %19 : vector<8x1xf32> to vector<8x1024xf32>
    %22 = vector.broadcast %20 : vector<1x1024xf32> to vector<8x1024xf32>
    %23 = arith.mulf %21, %22 : vector<8x1024xf32>
    %24 = arith.addf %18, %23 : vector<8x1024xf32>
    %25 = vector.extract_strided_slice %11 {offsets = [0, 2], sizes = [8, 1], strides = [1, 1]} : vector<8x7xf32> to vector<8x1xf32>
    %26 = vector.extract_strided_slice %12 {offsets = [2, 0], sizes = [1, 1024], strides = [1, 1]} : vector<7x1024xf32> to vector<1x1024xf32>
    %27 = vector.broadcast %25 : vector<8x1xf32> to vector<8x1024xf32>
    %28 = vector.broadcast %26 : vector<1x1024xf32> to vector<8x1024xf32>
    %29 = arith.mulf %27, %28 : vector<8x1024xf32>
    %30 = arith.addf %24, %29 : vector<8x1024xf32>
    %31 = vector.extract_strided_slice %11 {offsets = [0, 3], sizes = [8, 1], strides = [1, 1]} : vector<8x7xf32> to vector<8x1xf32>
    %32 = vector.extract_strided_slice %12 {offsets = [3, 0], sizes = [1, 1024], strides = [1, 1]} : vector<7x1024xf32> to vector<1x1024xf32>
    %33 = vector.broadcast %31 : vector<8x1xf32> to vector<8x1024xf32>
    %34 = vector.broadcast %32 : vector<1x1024xf32> to vector<8x1024xf32>
    %35 = arith.mulf %33, %34 : vector<8x1024xf32>
    %36 = arith.addf %30, %35 : vector<8x1024xf32>
    %37 = vector.extract_strided_slice %11 {offsets = [0, 4], sizes = [8, 1], strides = [1, 1]} : vector<8x7xf32> to vector<8x1xf32>
    %38 = vector.extract_strided_slice %12 {offsets = [4, 0], sizes = [1, 1024], strides = [1, 1]} : vector<7x1024xf32> to vector<1x1024xf32>
    %39 = vector.broadcast %37 : vector<8x1xf32> to vector<8x1024xf32>
    %40 = vector.broadcast %38 : vector<1x1024xf32> to vector<8x1024xf32>
    %41 = arith.mulf %39, %40 : vector<8x1024xf32>
    %42 = arith.addf %36, %41 : vector<8x1024xf32>
    %43 = vector.extract_strided_slice %11 {offsets = [0, 5], sizes = [8, 1], strides = [1, 1]} : vector<8x7xf32> to vector<8x1xf32>
    %44 = vector.extract_strided_slice %12 {offsets = [5, 0], sizes = [1, 1024], strides = [1, 1]} : vector<7x1024xf32> to vector<1x1024xf32>
    %45 = vector.broadcast %43 : vector<8x1xf32> to vector<8x1024xf32>
    %46 = vector.broadcast %44 : vector<1x1024xf32> to vector<8x1024xf32>
    %47 = arith.mulf %45, %46 : vector<8x1024xf32>
    %48 = arith.addf %42, %47 : vector<8x1024xf32>
    %49 = vector.extract_strided_slice %11 {offsets = [0, 6], sizes = [8, 1], strides = [1, 1]} : vector<8x7xf32> to vector<8x1xf32>
    %50 = vector.extract_strided_slice %12 {offsets = [6, 0], sizes = [1, 1024], strides = [1, 1]} : vector<7x1024xf32> to vector<1x1024xf32>
    %51 = vector.broadcast %49 : vector<8x1xf32> to vector<8x1024xf32>
    %52 = vector.broadcast %50 : vector<1x1024xf32> to vector<8x1024xf32>
    %53 = arith.mulf %51, %52 : vector<8x1024xf32>
    %54 = arith.addf %48, %53 : vector<8x1024xf32>
    %c0_13 = arith.constant 0 : index
    %c0_14 = arith.constant 0 : index
    %55 = vector.load %arg7[%c0_13, %c0_14] : memref<1x1024xf32, #tpu.memory_space<vmem>>, vector<1x1024xf32>
    %56 = vector.broadcast %55 : vector<1x1024xf32> to vector<8x1024xf32>
    %57 = arith.addf %54, %56 : vector<8x1024xf32>
    %c0_15 = arith.constant 0 : index
    %c0_16 = arith.constant 0 : index
    %58 = vector.load %arg8[%c0_15, %c0_16] : memref<8x1024xf32, #tpu.memory_space<vmem>>, vector<8x1024xf32>
    tpu.vector_store %arg8[%c0_15, %c0_16], %57 {strides = array<i32>} : memref<8x1024xf32, #tpu.memory_space<vmem>>, vector<8x1024xf32>,
    return
  }
  func.func @transform_0(%arg0: i32) -> (i32, i32) {
    %c0_i32 = arith.constant 0 : i32
    %c0_i32_0 = arith.constant 0 : i32
    return %arg0, %c0_i32 : i32, i32
  }
  func.func @transform_1(%arg0: i32) -> (i32, i32) {
    %c0_i32 = arith.constant 0 : i32
    %c0_i32_0 = arith.constant 0 : i32
    return %arg0, %c0_i32 : i32, i32
  }
  func.func @transform_2(%arg0: i32) -> (i32, i32) {
    %c0_i32 = arith.constant 0 : i32
    %c0_i32_0 = arith.constant 0 : i32
    %c0_i32_1 = arith.constant 0 : i32
    return %c0_i32, %c0_i32_0 : i32, i32
  }
  func.func @transform_3(%arg0: i32) -> (i32, i32) {
    %c0_i32 = arith.constant 0 : i32
    %c0_i32_0 = arith.constant 0 : i32
    %c0_i32_1 = arith.constant 0 : i32
    return %c0_i32, %c0_i32_0 : i32, i32
  }
  func.func @transform_4(%arg0: i32) -> (i32, i32) {
    %c0_i32 = arith.constant 0 : i32
    %c0_i32_0 = arith.constant 0 : i32
    %c0_i32_1 = arith.constant 0 : i32
    return %c0_i32, %c0_i32_0 : i32, i32
  }
  func.func @transform_5(%arg0: i32) -> (i32, i32) {
    %c0_i32 = arith.constant 0 : i32
    %c0_i32_0 = arith.constant 0 : i32
    %c0_i32_1 = arith.constant 0 : i32
    return %c0_i32, %c0_i32_0 : i32, i32
  }
  func.func @transform_6(%arg0: i32) -> (i32, i32) {
    %c0_i32 = arith.constant 0 : i32
    %c0_i32_0 = arith.constant 0 : i32
    %c0_i32_1 = arith.constant 0 : i32
    return %c0_i32, %c0_i32_0 : i32, i32
  }
  func.func @transform_7(%arg0: i32) -> (i32, i32) {
    %c0_i32 = arith.constant 0 : i32
    %c0_i32_0 = arith.constant 0 : i32
    return %arg0, %c0_i32 : i32, i32
  }
}

module attributes {stable_mosaic.version = 11 : i64} {
  func.func @_lstm_head_kernel(%arg0: i32, %arg1: memref<2x3x1024xf32, #tpu.memory_space<vmem>>, %arg2: memref<2x3x1xf32, #tpu.memory_space<vmem>>, %arg3: memref<2x256xf32, #tpu.memory_space<vmem>>, %arg4: memref<2x256xf32, #tpu.memory_space<vmem>>, %arg5: memref<256x1024xbf16, #tpu.memory_space<vmem>>, %arg6: memref<256x128xbf16, #tpu.memory_space<vmem>>, %arg7: memref<1x128xf32, #tpu.memory_space<vmem>>, %arg8: memref<2x3x128xf32, #tpu.memory_space<vmem>>, %arg9: memref<2x256xf32, #tpu.memory_space<vmem>>, %arg10: memref<2x256xf32, #tpu.memory_space<vmem>>, %arg11: memref<2x256xf32, #tpu.memory_space<vmem>>, %arg12: memref<2x256xf32, #tpu.memory_space<vmem>>) attributes {dimension_semantics = [#tpu.dimension_semantics<arbitrary>], iteration_bounds = array<i64: 1>, scalar_prefetch = 0 : i64, scratch_operands = 2 : i64, tpu.core_type = #tpu.core_type<tc>, window_params = [{transform_indices = @transform_0, window_bounds = array<i64: 2, 3, 1024>}, {transform_indices = @transform_1, window_bounds = array<i64: 2, 3, 1>}, {pipeline_mode = #tpu.pipeline_mode<synchronous>, transform_indices = @transform_2, window_bounds = array<i64: 2, 256>}, {pipeline_mode = #tpu.pipeline_mode<synchronous>, transform_indices = @transform_3, window_bounds = array<i64: 2, 256>}, {pipeline_mode = #tpu.pipeline_mode<synchronous>, transform_indices = @transform_4, window_bounds = array<i64: 256, 1024>}, {pipeline_mode = #tpu.pipeline_mode<synchronous>, transform_indices = @transform_5, window_bounds = array<i64: 256, 128>}, {pipeline_mode = #tpu.pipeline_mode<synchronous>, transform_indices = @transform_6, window_bounds = array<i64: 1, 128>}, {transform_indices = @transform_7, window_bounds = array<i64: 2, 3, 128>}, {pipeline_mode = #tpu.pipeline_mode<synchronous>, transform_indices = @transform_8, window_bounds = array<i64: 2, 256>}, {pipeline_mode = #tpu.pipeline_mode<synchronous>, transform_indices = @transform_9, window_bounds = array<i64: 2, 256>}]} {
    %c0_i32 = arith.constant 0 : i32
    %0 = arith.cmpi eq, %arg0, %c0_i32 : i32
    %1 = arith.extui %0 : i1 to i32
    %c0_i32_0 = arith.constant 0 : i32
    %2 = arith.cmpi ne, %1, %c0_i32_0 : i32
    scf.if %2 {
      %c0_77 = arith.constant 0 : index
      %c0_78 = arith.constant 0 : index
      %151 = vector.load %arg3[%c0_77, %c0_78] : memref<2x256xf32, #tpu.memory_space<vmem>>, vector<2x256xf32>
      %c0_79 = arith.constant 0 : index
      %c0_80 = arith.constant 0 : index
      %152 = vector.load %arg11[%c0_79, %c0_80] : memref<2x256xf32, #tpu.memory_space<vmem>>, vector<2x256xf32>
      tpu.vector_store %arg11[%c0_79, %c0_80], %151 {strides = array<i32>} : memref<2x256xf32, #tpu.memory_space<vmem>>, vector<2x256xf32>,
      %c0_81 = arith.constant 0 : index
      %c0_82 = arith.constant 0 : index
      %153 = vector.load %arg4[%c0_81, %c0_82] : memref<2x256xf32, #tpu.memory_space<vmem>>, vector<2x256xf32>
      %c0_83 = arith.constant 0 : index
      %c0_84 = arith.constant 0 : index
      %154 = vector.load %arg12[%c0_83, %c0_84] : memref<2x256xf32, #tpu.memory_space<vmem>>, vector<2x256xf32>
      tpu.vector_store %arg12[%c0_83, %c0_84], %153 {strides = array<i32>} : memref<2x256xf32, #tpu.memory_space<vmem>>, vector<2x256xf32>,
    } else {
    }
    %c0 = arith.constant 0 : index
    %c0_1 = arith.constant 0 : index
    %3 = vector.load %arg5[%c0, %c0_1] : memref<256x1024xbf16, #tpu.memory_space<vmem>>, vector<256x1024xbf16>
    %c0_2 = arith.constant 0 : index
    %c0_3 = arith.constant 0 : index
    %4 = vector.load %arg6[%c0_2, %c0_3] : memref<256x128xbf16, #tpu.memory_space<vmem>>, vector<256x128xbf16>
    %c0_4 = arith.constant 0 : index
    %c0_5 = arith.constant 0 : index
    %5 = vector.load %arg7[%c0_4, %c0_5] : memref<1x128xf32, #tpu.memory_space<vmem>>, vector<1x128xf32>
    %c0_6 = arith.constant 0 : index
    %c0_7 = arith.constant 0 : index
    %c0_8 = arith.constant 0 : index
    %6 = vector.load %arg2[%c0_6, %c0_7, %c0_8] : memref<2x3x1xf32, #tpu.memory_space<vmem>>, vector<2x1x1xf32>
    %7 = vector.shape_cast %6 : vector<2x1x1xf32> to vector<2x1xf32>
    %c0_9 = arith.constant 0 : index
    %c0_10 = arith.constant 0 : index
    %8 = vector.load %arg11[%c0_9, %c0_10] : memref<2x256xf32, #tpu.memory_space<vmem>>, vector<2x256xf32>
    %9 = vector.broadcast %7 : vector<2x1xf32> to vector<2x256xf32>
    %10 = arith.mulf %8, %9 : vector<2x256xf32>
    %c0_11 = arith.constant 0 : index
    %c0_12 = arith.constant 0 : index
    %11 = vector.load %arg12[%c0_11, %c0_12] : memref<2x256xf32, #tpu.memory_space<vmem>>, vector<2x256xf32>
    %12 = vector.broadcast %7 : vector<2x1xf32> to vector<2x256xf32>
    %13 = arith.mulf %11, %12 : vector<2x256xf32>
    %c0_13 = arith.constant 0 : index
    %c0_14 = arith.constant 0 : index
    %c0_15 = arith.constant 0 : index
    %14 = vector.load %arg1[%c0_13, %c0_14, %c0_15] : memref<2x3x1024xf32, #tpu.memory_space<vmem>>, vector<2x1x1024xf32>
    %15 = vector.shape_cast %14 : vector<2x1x1024xf32> to vector<2x1024xf32>
    %16 = arith.truncf %10 : vector<2x256xf32> to vector<2x256xbf16>
    %cst = arith.constant dense<0.000000e+00> : vector<2x1024xf32>
    %17 = tpu.matmul %16, %3, %cst {dimension_numbers = #tpu.dot_dimension_numbers<[1], [0], [0], [1], [0, 0, 1, 1], [], []>} : vector<2x256xbf16>, vector<256x1024xbf16>, vector<2x1024xf32> -> vector<2x1024xf32>
    %18 = arith.addf %15, %17 : vector<2x1024xf32>
    %19 = vector.extract_strided_slice %18 {offsets = [0, 0], sizes = [2, 256], strides = [1, 1]} : vector<2x1024xf32> to vector<2x256xf32>
    %20 = arith.negf %19 : vector<2x256xf32>
    %21 = math.exp %20 : vector<2x256xf32>
    %cst_16 = arith.constant 1.000000e+00 : f32
    %22 = vector.broadcast %cst_16 : f32 to vector<2x256xf32>
    %23 = arith.addf %22, %21 : vector<2x256xf32>
    %24 = arith.divf %22, %23 : vector<2x256xf32>
    %25 = vector.extract_strided_slice %18 {offsets = [0, 256], sizes = [2, 256], strides = [1, 1]} : vector<2x1024xf32> to vector<2x256xf32>
    %26 = arith.negf %25 : vector<2x256xf32>
    %27 = math.exp %26 : vector<2x256xf32>
    %cst_17 = arith.constant 1.000000e+00 : f32
    %28 = vector.broadcast %cst_17 : f32 to vector<2x256xf32>
    %29 = arith.addf %28, %27 : vector<2x256xf32>
    %30 = arith.divf %28, %29 : vector<2x256xf32>
    %31 = vector.extract_strided_slice %18 {offsets = [0, 512], sizes = [2, 256], strides = [1, 1]} : vector<2x1024xf32> to vector<2x256xf32>
    %32 = math.tanh %31 : vector<2x256xf32>
    %33 = vector.extract_strided_slice %18 {offsets = [0, 768], sizes = [2, 256], strides = [1, 1]} : vector<2x1024xf32> to vector<2x256xf32>
    %34 = arith.negf %33 : vector<2x256xf32>
    %35 = math.exp %34 : vector<2x256xf32>
    %cst_18 = arith.constant 1.000000e+00 : f32
    %36 = vector.broadcast %cst_18 : f32 to vector<2x256xf32>
    %37 = arith.addf %36, %35 : vector<2x256xf32>
    %38 = arith.divf %36, %37 : vector<2x256xf32>
    %39 = arith.mulf %30, %13 : vector<2x256xf32>
    %40 = arith.mulf %24, %32 : vector<2x256xf32>
    %41 = arith.addf %39, %40 : vector<2x256xf32>
    %42 = math.tanh %41 : vector<2x256xf32>
    %43 = arith.mulf %38, %42 : vector<2x256xf32>
    %c0_19 = arith.constant 0 : index
    %c0_20 = arith.constant 0 : index
    %44 = vector.load %arg11[%c0_19, %c0_20] : memref<2x256xf32, #tpu.memory_space<vmem>>, vector<2x256xf32>
    tpu.vector_store %arg11[%c0_19, %c0_20], %43 {strides = array<i32>} : memref<2x256xf32, #tpu.memory_space<vmem>>, vector<2x256xf32>,
    %c0_21 = arith.constant 0 : index
    %c0_22 = arith.constant 0 : index
    %45 = vector.load %arg12[%c0_21, %c0_22] : memref<2x256xf32, #tpu.memory_space<vmem>>, vector<2x256xf32>
    tpu.vector_store %arg12[%c0_21, %c0_22], %41 {strides = array<i32>} : memref<2x256xf32, #tpu.memory_space<vmem>>, vector<2x256xf32>,
    %46 = arith.truncf %43 : vector<2x256xf32> to vector<2x256xbf16>
    %cst_23 = arith.constant dense<0.000000e+00> : vector<2x128xf32>
    %47 = tpu.matmul %46, %4, %cst_23 {dimension_numbers = #tpu.dot_dimension_numbers<[1], [0], [0], [1], [0, 0, 1, 1], [], []>} : vector<2x256xbf16>, vector<256x128xbf16>, vector<2x128xf32> -> vector<2x128xf32>
    %48 = vector.broadcast %5 : vector<1x128xf32> to vector<2x128xf32>
    %49 = arith.addf %47, %48 : vector<2x128xf32>
    %c0_24 = arith.constant 0 : index
    %c0_25 = arith.constant 0 : index
    %c0_26 = arith.constant 0 : index
    %50 = vector.load %arg8[%c0_24, %c0_25, %c0_26] : memref<2x3x128xf32, #tpu.memory_space<vmem>>, vector<2x1x128xf32>
    %51 = vector.shape_cast %50 : vector<2x1x128xf32> to vector<2x128xf32>
    %52 = vector.shape_cast %49 : vector<2x128xf32> to vector<2x1x128xf32>
    tpu.vector_store %arg8[%c0_24, %c0_25, %c0_26], %52 {strides = array<i32>} : memref<2x3x128xf32, #tpu.memory_space<vmem>>, vector<2x1x128xf32>,
    %c0_27 = arith.constant 0 : index
    %c1 = arith.constant 1 : index
    %c0_28 = arith.constant 0 : index
    %53 = vector.load %arg2[%c0_27, %c1, %c0_28] : memref<2x3x1xf32, #tpu.memory_space<vmem>>, vector<2x1x1xf32>
    %54 = vector.shape_cast %53 : vector<2x1x1xf32> to vector<2x1xf32>
    %c0_29 = arith.constant 0 : index
    %c0_30 = arith.constant 0 : index
    %55 = vector.load %arg11[%c0_29, %c0_30] : memref<2x256xf32, #tpu.memory_space<vmem>>, vector<2x256xf32>
    %56 = vector.broadcast %54 : vector<2x1xf32> to vector<2x256xf32>
    %57 = arith.mulf %55, %56 : vector<2x256xf32>
    %c0_31 = arith.constant 0 : index
    %c0_32 = arith.constant 0 : index
    %58 = vector.load %arg12[%c0_31, %c0_32] : memref<2x256xf32, #tpu.memory_space<vmem>>, vector<2x256xf32>
    %59 = vector.broadcast %54 : vector<2x1xf32> to vector<2x256xf32>
    %60 = arith.mulf %58, %59 : vector<2x256xf32>
    %c0_33 = arith.constant 0 : index
    %c1_34 = arith.constant 1 : index
    %c0_35 = arith.constant 0 : index
    %61 = vector.load %arg1[%c0_33, %c1_34, %c0_35] : memref<2x3x1024xf32, #tpu.memory_space<vmem>>, vector<2x1x1024xf32>
    %62 = vector.shape_cast %61 : vector<2x1x1024xf32> to vector<2x1024xf32>
    %63 = arith.truncf %57 : vector<2x256xf32> to vector<2x256xbf16>
    %cst_36 = arith.constant dense<0.000000e+00> : vector<2x1024xf32>
    %64 = tpu.matmul %63, %3, %cst_36 {dimension_numbers = #tpu.dot_dimension_numbers<[1], [0], [0], [1], [0, 0, 1, 1], [], []>} : vector<2x256xbf16>, vector<256x1024xbf16>, vector<2x1024xf32> -> vector<2x1024xf32>
    %65 = arith.addf %62, %64 : vector<2x1024xf32>
    %66 = vector.extract_strided_slice %65 {offsets = [0, 0], sizes = [2, 256], strides = [1, 1]} : vector<2x1024xf32> to vector<2x256xf32>
    %67 = arith.negf %66 : vector<2x256xf32>
    %68 = math.exp %67 : vector<2x256xf32>
    %cst_37 = arith.constant 1.000000e+00 : f32
    %69 = vector.broadcast %cst_37 : f32 to vector<2x256xf32>
    %70 = arith.addf %69, %68 : vector<2x256xf32>
    %71 = arith.divf %69, %70 : vector<2x256xf32>
    %72 = vector.extract_strided_slice %65 {offsets = [0, 256], sizes = [2, 256], strides = [1, 1]} : vector<2x1024xf32> to vector<2x256xf32>
    %73 = arith.negf %72 : vector<2x256xf32>
    %74 = math.exp %73 : vector<2x256xf32>
    %cst_38 = arith.constant 1.000000e+00 : f32
    %75 = vector.broadcast %cst_38 : f32 to vector<2x256xf32>
    %76 = arith.addf %75, %74 : vector<2x256xf32>
    %77 = arith.divf %75, %76 : vector<2x256xf32>
    %78 = vector.extract_strided_slice %65 {offsets = [0, 512], sizes = [2, 256], strides = [1, 1]} : vector<2x1024xf32> to vector<2x256xf32>
    %79 = math.tanh %78 : vector<2x256xf32>
    %80 = vector.extract_strided_slice %65 {offsets = [0, 768], sizes = [2, 256], strides = [1, 1]} : vector<2x1024xf32> to vector<2x256xf32>
    %81 = arith.negf %80 : vector<2x256xf32>
    %82 = math.exp %81 : vector<2x256xf32>
    %cst_39 = arith.constant 1.000000e+00 : f32
    %83 = vector.broadcast %cst_39 : f32 to vector<2x256xf32>
    %84 = arith.addf %83, %82 : vector<2x256xf32>
    %85 = arith.divf %83, %84 : vector<2x256xf32>
    %86 = arith.mulf %77, %60 : vector<2x256xf32>
    %87 = arith.mulf %71, %79 : vector<2x256xf32>
    %88 = arith.addf %86, %87 : vector<2x256xf32>
    %89 = math.tanh %88 : vector<2x256xf32>
    %90 = arith.mulf %85, %89 : vector<2x256xf32>
    %c0_40 = arith.constant 0 : index
    %c0_41 = arith.constant 0 : index
    %91 = vector.load %arg11[%c0_40, %c0_41] : memref<2x256xf32, #tpu.memory_space<vmem>>, vector<2x256xf32>
    tpu.vector_store %arg11[%c0_40, %c0_41], %90 {strides = array<i32>} : memref<2x256xf32, #tpu.memory_space<vmem>>, vector<2x256xf32>,
    %c0_42 = arith.constant 0 : index
    %c0_43 = arith.constant 0 : index
    %92 = vector.load %arg12[%c0_42, %c0_43] : memref<2x256xf32, #tpu.memory_space<vmem>>, vector<2x256xf32>
    tpu.vector_store %arg12[%c0_42, %c0_43], %88 {strides = array<i32>} : memref<2x256xf32, #tpu.memory_space<vmem>>, vector<2x256xf32>,
    %93 = arith.truncf %90 : vector<2x256xf32> to vector<2x256xbf16>
    %cst_44 = arith.constant dense<0.000000e+00> : vector<2x128xf32>
    %94 = tpu.matmul %93, %4, %cst_44 {dimension_numbers = #tpu.dot_dimension_numbers<[1], [0], [0], [1], [0, 0, 1, 1], [], []>} : vector<2x256xbf16>, vector<256x128xbf16>, vector<2x128xf32> -> vector<2x128xf32>
    %95 = vector.broadcast %5 : vector<1x128xf32> to vector<2x128xf32>
    %96 = arith.addf %94, %95 : vector<2x128xf32>
    %c0_45 = arith.constant 0 : index
    %c1_46 = arith.constant 1 : index
    %c0_47 = arith.constant 0 : index
    %97 = vector.load %arg8[%c0_45, %c1_46, %c0_47] : memref<2x3x128xf32, #tpu.memory_space<vmem>>, vector<2x1x128xf32>
    %98 = vector.shape_cast %97 : vector<2x1x128xf32> to vector<2x128xf32>
    %99 = vector.shape_cast %96 : vector<2x128xf32> to vector<2x1x128xf32>
    tpu.vector_store %arg8[%c0_45, %c1_46, %c0_47], %99 {strides = array<i32>} : memref<2x3x128xf32, #tpu.memory_space<vmem>>, vector<2x1x128xf32>,
    %c0_48 = arith.constant 0 : index
    %c2 = arith.constant 2 : index
    %c0_49 = arith.constant 0 : index
    %100 = vector.load %arg2[%c0_48, %c2, %c0_49] : memref<2x3x1xf32, #tpu.memory_space<vmem>>, vector<2x1x1xf32>
    %101 = vector.shape_cast %100 : vector<2x1x1xf32> to vector<2x1xf32>
    %c0_50 = arith.constant 0 : index
    %c0_51 = arith.constant 0 : index
    %102 = vector.load %arg11[%c0_50, %c0_51] : memref<2x256xf32, #tpu.memory_space<vmem>>, vector<2x256xf32>
    %103 = vector.broadcast %101 : vector<2x1xf32> to vector<2x256xf32>
    %104 = arith.mulf %102, %103 : vector<2x256xf32>
    %c0_52 = arith.constant 0 : index
    %c0_53 = arith.constant 0 : index
    %105 = vector.load %arg12[%c0_52, %c0_53] : memref<2x256xf32, #tpu.memory_space<vmem>>, vector<2x256xf32>
    %106 = vector.broadcast %101 : vector<2x1xf32> to vector<2x256xf32>
    %107 = arith.mulf %105, %106 : vector<2x256xf32>
    %c0_54 = arith.constant 0 : index
    %c2_55 = arith.constant 2 : index
    %c0_56 = arith.constant 0 : index
    %108 = vector.load %arg1[%c0_54, %c2_55, %c0_56] : memref<2x3x1024xf32, #tpu.memory_space<vmem>>, vector<2x1x1024xf32>
    %109 = vector.shape_cast %108 : vector<2x1x1024xf32> to vector<2x1024xf32>
    %110 = arith.truncf %104 : vector<2x256xf32> to vector<2x256xbf16>
    %cst_57 = arith.constant dense<0.000000e+00> : vector<2x1024xf32>
    %111 = tpu.matmul %110, %3, %cst_57 {dimension_numbers = #tpu.dot_dimension_numbers<[1], [0], [0], [1], [0, 0, 1, 1], [], []>} : vector<2x256xbf16>, vector<256x1024xbf16>, vector<2x1024xf32> -> vector<2x1024xf32>
    %112 = arith.addf %109, %111 : vector<2x1024xf32>
    %113 = vector.extract_strided_slice %112 {offsets = [0, 0], sizes = [2, 256], strides = [1, 1]} : vector<2x1024xf32> to vector<2x256xf32>
    %114 = arith.negf %113 : vector<2x256xf32>
    %115 = math.exp %114 : vector<2x256xf32>
    %cst_58 = arith.constant 1.000000e+00 : f32
    %116 = vector.broadcast %cst_58 : f32 to vector<2x256xf32>
    %117 = arith.addf %116, %115 : vector<2x256xf32>
    %118 = arith.divf %116, %117 : vector<2x256xf32>
    %119 = vector.extract_strided_slice %112 {offsets = [0, 256], sizes = [2, 256], strides = [1, 1]} : vector<2x1024xf32> to vector<2x256xf32>
    %120 = arith.negf %119 : vector<2x256xf32>
    %121 = math.exp %120 : vector<2x256xf32>
    %cst_59 = arith.constant 1.000000e+00 : f32
    %122 = vector.broadcast %cst_59 : f32 to vector<2x256xf32>
    %123 = arith.addf %122, %121 : vector<2x256xf32>
    %124 = arith.divf %122, %123 : vector<2x256xf32>
    %125 = vector.extract_strided_slice %112 {offsets = [0, 512], sizes = [2, 256], strides = [1, 1]} : vector<2x1024xf32> to vector<2x256xf32>
    %126 = math.tanh %125 : vector<2x256xf32>
    %127 = vector.extract_strided_slice %112 {offsets = [0, 768], sizes = [2, 256], strides = [1, 1]} : vector<2x1024xf32> to vector<2x256xf32>
    %128 = arith.negf %127 : vector<2x256xf32>
    %129 = math.exp %128 : vector<2x256xf32>
    %cst_60 = arith.constant 1.000000e+00 : f32
    %130 = vector.broadcast %cst_60 : f32 to vector<2x256xf32>
    %131 = arith.addf %130, %129 : vector<2x256xf32>
    %132 = arith.divf %130, %131 : vector<2x256xf32>
    %133 = arith.mulf %124, %107 : vector<2x256xf32>
    %134 = arith.mulf %118, %126 : vector<2x256xf32>
    %135 = arith.addf %133, %134 : vector<2x256xf32>
    %136 = math.tanh %135 : vector<2x256xf32>
    %137 = arith.mulf %132, %136 : vector<2x256xf32>
    %c0_61 = arith.constant 0 : index
    %c0_62 = arith.constant 0 : index
    %138 = vector.load %arg11[%c0_61, %c0_62] : memref<2x256xf32, #tpu.memory_space<vmem>>, vector<2x256xf32>
    tpu.vector_store %arg11[%c0_61, %c0_62], %137 {strides = array<i32>} : memref<2x256xf32, #tpu.memory_space<vmem>>, vector<2x256xf32>,
    %c0_63 = arith.constant 0 : index
    %c0_64 = arith.constant 0 : index
    %139 = vector.load %arg12[%c0_63, %c0_64] : memref<2x256xf32, #tpu.memory_space<vmem>>, vector<2x256xf32>
    tpu.vector_store %arg12[%c0_63, %c0_64], %135 {strides = array<i32>} : memref<2x256xf32, #tpu.memory_space<vmem>>, vector<2x256xf32>,
    %140 = arith.truncf %137 : vector<2x256xf32> to vector<2x256xbf16>
    %cst_65 = arith.constant dense<0.000000e+00> : vector<2x128xf32>
    %141 = tpu.matmul %140, %4, %cst_65 {dimension_numbers = #tpu.dot_dimension_numbers<[1], [0], [0], [1], [0, 0, 1, 1], [], []>} : vector<2x256xbf16>, vector<256x128xbf16>, vector<2x128xf32> -> vector<2x128xf32>
    %142 = vector.broadcast %5 : vector<1x128xf32> to vector<2x128xf32>
    %143 = arith.addf %141, %142 : vector<2x128xf32>
    %c0_66 = arith.constant 0 : index
    %c2_67 = arith.constant 2 : index
    %c0_68 = arith.constant 0 : index
    %144 = vector.load %arg8[%c0_66, %c2_67, %c0_68] : memref<2x3x128xf32, #tpu.memory_space<vmem>>, vector<2x1x128xf32>
    %145 = vector.shape_cast %144 : vector<2x1x128xf32> to vector<2x128xf32>
    %146 = vector.shape_cast %143 : vector<2x128xf32> to vector<2x1x128xf32>
    tpu.vector_store %arg8[%c0_66, %c2_67, %c0_68], %146 {strides = array<i32>} : memref<2x3x128xf32, #tpu.memory_space<vmem>>, vector<2x1x128xf32>,
    %c0_69 = arith.constant 0 : index
    %c0_70 = arith.constant 0 : index
    %147 = vector.load %arg11[%c0_69, %c0_70] : memref<2x256xf32, #tpu.memory_space<vmem>>, vector<2x256xf32>
    %c0_71 = arith.constant 0 : index
    %c0_72 = arith.constant 0 : index
    %148 = vector.load %arg9[%c0_71, %c0_72] : memref<2x256xf32, #tpu.memory_space<vmem>>, vector<2x256xf32>
    tpu.vector_store %arg9[%c0_71, %c0_72], %147 {strides = array<i32>} : memref<2x256xf32, #tpu.memory_space<vmem>>, vector<2x256xf32>,
    %c0_73 = arith.constant 0 : index
    %c0_74 = arith.constant 0 : index
    %149 = vector.load %arg12[%c0_73, %c0_74] : memref<2x256xf32, #tpu.memory_space<vmem>>, vector<2x256xf32>
    %c0_75 = arith.constant 0 : index
    %c0_76 = arith.constant 0 : index
    %150 = vector.load %arg10[%c0_75, %c0_76] : memref<2x256xf32, #tpu.memory_space<vmem>>, vector<2x256xf32>
    tpu.vector_store %arg10[%c0_75, %c0_76], %149 {strides = array<i32>} : memref<2x256xf32, #tpu.memory_space<vmem>>, vector<2x256xf32>,
    return
  }
  func.func @transform_0(%arg0: i32) -> (i32, i32, i32) {
    %c0_i32 = arith.constant 0 : i32
    %c0_i32_0 = arith.constant 0 : i32
    %c0_i32_1 = arith.constant 0 : i32
    return %c0_i32, %arg0, %c0_i32_0 : i32, i32, i32
  }
  func.func @transform_1(%arg0: i32) -> (i32, i32, i32) {
    %c0_i32 = arith.constant 0 : i32
    %c0_i32_0 = arith.constant 0 : i32
    %c0_i32_1 = arith.constant 0 : i32
    return %c0_i32, %arg0, %c0_i32_0 : i32, i32, i32
  }
  func.func @transform_2(%arg0: i32) -> (i32, i32) {
    %c0_i32 = arith.constant 0 : i32
    %c0_i32_0 = arith.constant 0 : i32
    %c0_i32_1 = arith.constant 0 : i32
    return %c0_i32, %c0_i32_0 : i32, i32
  }
  func.func @transform_3(%arg0: i32) -> (i32, i32) {
    %c0_i32 = arith.constant 0 : i32
    %c0_i32_0 = arith.constant 0 : i32
    %c0_i32_1 = arith.constant 0 : i32
    return %c0_i32, %c0_i32_0 : i32, i32
  }
  func.func @transform_4(%arg0: i32) -> (i32, i32) {
    %c0_i32 = arith.constant 0 : i32
    %c0_i32_0 = arith.constant 0 : i32
    %c0_i32_1 = arith.constant 0 : i32
    return %c0_i32, %c0_i32_0 : i32, i32
  }
  func.func @transform_5(%arg0: i32) -> (i32, i32) {
    %c0_i32 = arith.constant 0 : i32
    %c0_i32_0 = arith.constant 0 : i32
    %c0_i32_1 = arith.constant 0 : i32
    return %c0_i32, %c0_i32_0 : i32, i32
  }
  func.func @transform_6(%arg0: i32) -> (i32, i32) {
    %c0_i32 = arith.constant 0 : i32
    %c0_i32_0 = arith.constant 0 : i32
    %c0_i32_1 = arith.constant 0 : i32
    return %c0_i32, %c0_i32_0 : i32, i32
  }
  func.func @transform_7(%arg0: i32) -> (i32, i32, i32) {
    %c0_i32 = arith.constant 0 : i32
    %c0_i32_0 = arith.constant 0 : i32
    %c0_i32_1 = arith.constant 0 : i32
    return %c0_i32, %arg0, %c0_i32_0 : i32, i32, i32
  }
  func.func @transform_8(%arg0: i32) -> (i32, i32) {
    %c0_i32 = arith.constant 0 : i32
    %c0_i32_0 = arith.constant 0 : i32
    %c0_i32_1 = arith.constant 0 : i32
    return %c0_i32, %c0_i32_0 : i32, i32
  }
  func.func @transform_9(%arg0: i32) -> (i32, i32) {
    %c0_i32 = arith.constant 0 : i32
    %c0_i32_0 = arith.constant 0 : i32
    %c0_i32_1 = arith.constant 0 : i32
    return %c0_i32, %c0_i32_0 : i32, i32
  }
}

</mosaic_0001>

<bundles_post_ra>
// kernel: unreal_forward.4
= control target key start
LH: loop header
LB: loop body
LE: loop exit
PB: predicated region body
PF: predicated region fallthrough
CT: control target
= control target key end

     0   :  { %s2174_s12 = smov 0   ;;  %s2519_s0 = inlined_call_operand.vmem [shape: bf16[2400,256], index: 0, kind: input, shape index: {}]   ;;  %s2520_s1 = inlined_call_operand.vmem [shape: bf16[256,128], index: 1, kind: input, shape index: {}]   ;;  %s2521_s2 = inlined_call_operand.vmem [shape: f32[1,128], index: 2, kind: input, shape index: {}]   ;;  %s2522_s3 = inlined_call_operand.vmem [shape: bf16[2400,128], index: 3, kind: output, shape index: {}]  }
   0x1 LB: > { %s1438_s13 = sadd.s32 4294967295, %s2152_s12   ;;  %p1442_p0 = scmp.ge.s32.totalorder %s2152_s12, 1  ;;  %s2152_s12 = sphi %s2174_s12, %s13_s12  }
   0x2   : > { %p139_p1 = scmp.lt.s32.totalorder %s2152_s12, 5 }
   0x4   : > { %p140_p2 = pnand %p1442_p0, %p139_p1 }
   0x5   : > { %s164_s26 = smul.u32 (!%p140_p2), 75, %s1438_s13 }
   0x6   : > { %143 = sbr.rel (%p140_p2) target bundleno = 474 (0x1da), region = 32 }
   0x7   : > { %p165_p3 = scmp.lt.s32.totalorder (!%p140_p2), %s164_s26, 299 }
   0xb   : > { %v1890_v0 = vld [vmem:[%s2520_s1 + $0x38] sm:$0xff]  ;;  %v1889_v2 = vld [vmem:[%s2520_s1 + $0x30] sm:$0xff]  ;;  %v1888_v4 = vld [vmem:[%s2520_s1 + $0x28] sm:$0xff]  ;;  %s2524_s26 = smov (!%p165_p3, %s164_s26), 299 }
   0xc   : > { %v1898_v1 = vld [vmem:[%s2520_s1 + $0x78] sm:$0xff]  ;;  %761 = vmatpush.bf16.msra.mxu0 %v1890_v0  ;;  %2120 = vmatpush.bf16.msra.mxu2 %v1890_v0  ;;  %v1897_v3 = vld [vmem:[%s2520_s1 + $0x70] sm:$0xff]  ;;  %v1896_v5 = vld [vmem:[%s2520_s1 + $0x68] sm:$0xff]  ;;  %s1808_s13 = sshll.u32 %s2524_s26, 3  ;;  %s1445_s28 = sshll.u32 %s2524_s26, 2 }
   0xd   : > { %959 = vmatpush.bf16.msra.mxu1 %v1898_v1  ;;  %2128 = vmatpush.bf16.msra.mxu3 %v1898_v1  ;;  %v1887_v6 = vld [vmem:[%s2520_s1 + $0x20] sm:$0xff]  ;;  %v1886_v8 = vld [vmem:[%s2520_s1 + $0x18] sm:$0xff]  ;;  %v1885_v10 = vld [vmem:[%s2520_s1 + $0x10] sm:$0xff]  ;;  %s2227_s18 = scalar_lea.vmem %s2519_s0, %s1808_s13  ;;  %s2330_s4 = scalar_lea.vmem %s2522_s3, %s1445_s28 }
   0xe   : > { %v1895_v7 = vld [vmem:[%s2520_s1 + $0x60] sm:$0xff]  ;;  %v1894_v9 = vld [vmem:[%s2520_s1 + $0x58] sm:$0xff]  ;;  %v1893_v11 = vld [vmem:[%s2520_s1 + $0x50] sm:$0xff] }
   0xf   : > { %v1884_v12 = vld [vmem:[%s2520_s1 + $0x8] sm:$0xff]  ;;  %v1883_v14 = vld [vmem:[%s2520_s1] sm:$0xff]  ;;  %v1600_v18 = vld [vmem:[%s2227_s18 + $0x130] sm:$0xf] }
  0x10   : > { %762 = vmatpush.bf16.msra.mxu0 %v1889_v2  ;;  %2121 = vmatpush.bf16.msra.mxu2 %v1889_v2  ;;  %v1892_v13 = vld [vmem:[%s2520_s1 + $0x48] sm:$0xff]  ;;  %v1891_v15 = vld [vmem:[%s2520_s1 + $0x40] sm:$0xff]  ;;  %v1848_v19 = vld [vmem:[%s2227_s18 + $0x134] sm:$0xf0] }
  0x11   : > { %960 = vmatpush.bf16.msra.mxu1 %v1897_v3  ;;  %2129 = vmatpush.bf16.msra.mxu3 %v1897_v3  ;;  %v1448_v16 = vld [vmem:[%s2227_s18] sm:$0xf]  ;;  %v1810_v17 = vld [vmem:[%s2227_s18 + $0x4] sm:$0xf0]  ;;  %v1809_v20 = vld [vmem:[%s2227_s18 + $0x4] sm:$0xf]  ;;  %v1601_v25 = vor.u32 %v1848_v19, %v1600_v18 }
  0x12   : > { %v1450_v21 = vld [vmem:[%s2227_s18 + $0x8] sm:$0xf0]  ;;  %v1847_v22 = vld [vmem:[%s2227_s18 + $0x134] sm:$0xf]  ;;  %v1602_v23 = vld [vmem:[%s2227_s18 + $0x138] sm:$0xf0]  ;;  %v1449_v24 = vor.u32 %v1810_v17, %v1448_v16 }
  0x13   : > { %v1453_v26 = vor.u32 %v1809_v20, %v1450_v21  ;;  %v1605_v27 = vor.u32 %v1847_v22, %v1602_v23  ;;  %v1456_v28 = vld [vmem:[%s2227_s18 + $0x10] sm:$0xf]  ;;  %v1812_v29 = vld [vmem:[%s2227_s18 + $0x14] sm:$0xf0]  ;;  %v1608_v30 = vld [vmem:[%s2227_s18 + $0x140] sm:$0xf] }
  0x14   : > { %763 = vmatpush.bf16.msra.mxu0 %v1888_v4  ;;  %2122 = vmatpush.bf16.msra.mxu2 %v1888_v4  ;;  %v1850_v31 = vld [vmem:[%s2227_s18 + $0x144] sm:$0xf0]  ;;  %v1811_v32 = vld [vmem:[%s2227_s18 + $0x14] sm:$0xf]  ;;  %v1458_v33 = vld [vmem:[%s2227_s18 + $0x18] sm:$0xf0]  ;;  %v1457_v36 = vor.u32 %v1812_v29, %v1456_v28 }
  0x15   : > { %961 = vmatpush.bf16.msra.mxu1 %v1896_v5  ;;  %2130 = vmatpush.bf16.msra.mxu3 %v1896_v5  ;;  %v1849_v34 = vld [vmem:[%s2227_s18 + $0x144] sm:$0xf]  ;;  %v1610_v35 = vld [vmem:[%s2227_s18 + $0x148] sm:$0xf0]  ;;  %v1609_v37 = vor.u32 %v1850_v31, %v1608_v30  ;;  %v1461_v38 = vor.u32 %v1811_v32, %v1458_v33  ;;  %v1464_v40 = vld [vmem:[%s2227_s18 + $0x20] sm:$0xf] }
  0x16   : > { %v1613_v39 = vor.u32 %v1849_v34, %v1610_v35  ;;  %v1814_v41 = vld [vmem:[%s2227_s18 + $0x24] sm:$0xf0]  ;;  %v1616_v42 = vld [vmem:[%s2227_s18 + $0x150] sm:$0xf]  ;;  %v1852_v43 = vld [vmem:[%s2227_s18 + $0x154] sm:$0xf0] }
  0x17   : > { %v1813_v44 = vld [vmem:[%s2227_s18 + $0x24] sm:$0xf]  ;;  %v1466_v45 = vld [vmem:[%s2227_s18 + $0x28] sm:$0xf0]  ;;  %v1851_v46 = vld [vmem:[%s2227_s18 + $0x154] sm:$0xf]  ;;  %v1465_v48 = vor.u32 %v1814_v41, %v1464_v40  ;;  %v1617_v49 = vor.u32 %v1852_v43, %v1616_v42 }
  0x18   : > { %764 = vmatpush.bf16.msra.mxu0 %v1887_v6  ;;  %2123 = vmatpush.bf16.msra.mxu2 %v1887_v6  ;;  %v1618_v47 = vld [vmem:[%s2227_s18 + $0x158] sm:$0xf0]  ;;  %v1469_v50 = vor.u32 %v1813_v44, %v1466_v45  ;;  %v1472_v52 = vld [vmem:[%s2227_s18 + $0x30] sm:$0xf]  ;;  %v1816_v53 = vld [vmem:[%s2227_s18 + $0x34] sm:$0xf0] }
  0x19   : > { %962 = vmatpush.bf16.msra.mxu1 %v1895_v7  ;;  %2131 = vmatpush.bf16.msra.mxu3 %v1895_v7  ;;  %v1621_v51 = vor.u32 %v1851_v46, %v1618_v47  ;;  %v1624_v54 = vld [vmem:[%s2227_s18 + $0x160] sm:$0xf]  ;;  %v1854_v55 = vld [vmem:[%s2227_s18 + $0x164] sm:$0xf0]  ;;  %v1815_v56 = vld [vmem:[%s2227_s18 + $0x34] sm:$0xf]  ;;  %v1473_v60 = vor.u32 %v1816_v53, %v1472_v52 }
  0x1a   : > { %v1474_v57 = vld [vmem:[%s2227_s18 + $0x38] sm:$0xf0]  ;;  %v1853_v58 = vld [vmem:[%s2227_s18 + $0x164] sm:$0xf]  ;;  %v1626_v59 = vld [vmem:[%s2227_s18 + $0x168] sm:$0xf0]  ;;  %v1625_v61 = vor.u32 %v1854_v55, %v1624_v54 }
  0x1b   : > { %v1477_v62 = vor.u32 %v1815_v56, %v1474_v57  ;;  %v1629_v63 = vor.u32 %v1853_v58, %v1626_v59  ;;  %v1480_v0 = vld [vmem:[%s2227_s18 + $0x40] sm:$0xf]  ;;  %v1818_v1 = vld [vmem:[%s2227_s18 + $0x44] sm:$0xf0]  ;;  %v1632_v2 = vld [vmem:[%s2227_s18 + $0x170] sm:$0xf] }
  0x1c   : > { %765 = vmatpush.bf16.msra.mxu0 %v1886_v8  ;;  %2124 = vmatpush.bf16.msra.mxu2 %v1886_v8  ;;  %v1856_v3 = vld [vmem:[%s2227_s18 + $0x174] sm:$0xf0]  ;;  %v1817_v4 = vld [vmem:[%s2227_s18 + $0x44] sm:$0xf]  ;;  %v1482_v5 = vld [vmem:[%s2227_s18 + $0x48] sm:$0xf0]  ;;  %v1481_v8 = vor.u32 %v1818_v1, %v1480_v0 }
  0x1d   : > { %963 = vmatpush.bf16.msra.mxu1 %v1894_v9  ;;  %2132 = vmatpush.bf16.msra.mxu3 %v1894_v9  ;;  %v1855_v6 = vld [vmem:[%s2227_s18 + $0x174] sm:$0xf]  ;;  %v1634_v7 = vld [vmem:[%s2227_s18 + $0x178] sm:$0xf0]  ;;  %v1633_v9 = vor.u32 %v1856_v3, %v1632_v2  ;;  %v1857_v18 = vld [vmem:[%s2227_s18 + $0x184] sm:$0xf] }
  0x1e   : > { %v1819_v16 = vld [vmem:[%s2227_s18 + $0x54] sm:$0xf]  ;;  %v1490_v17 = vld [vmem:[%s2227_s18 + $0x58] sm:$0xf0]  ;;  %v1642_v19 = vld [vmem:[%s2227_s18 + $0x188] sm:$0xf0] }
  0x1f   : > { %v1493_v22 = vor.u32 %v1819_v16, %v1490_v17  ;;  %v1645_v23 = vor.u32 %v1857_v18, %v1642_v19  ;;  %v1821_v28 = vld [vmem:[%s2227_s18 + $0x64] sm:$0xf]  ;;  %v1498_v29 = vld [vmem:[%s2227_s18 + $0x68] sm:$0xf0]  ;;  %v1859_v30 = vld [vmem:[%s2227_s18 + $0x194] sm:$0xf] }
  0x20   : > { %766 = vmatpush.bf16.msra.mxu0 %v1885_v10  ;;  %2125 = vmatpush.bf16.msra.mxu2 %v1885_v10  ;;  %v1485_v10 = vor.u32 %v1817_v4, %v1482_v5  ;;  %v1650_v31 = vld [vmem:[%s2227_s18 + $0x198] sm:$0xf0]  ;;  %v1501_v34 = vor.u32 %v1821_v28, %v1498_v29  ;;  %v1823_v40 = vld [vmem:[%s2227_s18 + $0x74] sm:$0xf]  ;;  %v1861_v42 = vld [vmem:[%s2227_s18 + $0x1a4] sm:$0xf] }
  0x21   : > { %964 = vmatpush.bf16.msra.mxu1 %v1893_v11  ;;  %2133 = vmatpush.bf16.msra.mxu3 %v1893_v11  ;;  %v1637_v11 = vor.u32 %v1855_v6, %v1634_v7  ;;  %v1653_v35 = vor.u32 %v1859_v30, %v1650_v31  ;;  %v1506_v41 = vld [vmem:[%s2227_s18 + $0x78] sm:$0xf0]  ;;  %v1658_v43 = vld [vmem:[%s2227_s18 + $0x1a8] sm:$0xf0]  ;;  %v1825_v52 = vld [vmem:[%s2227_s18 + $0x84] sm:$0xf] }
  0x22   : > { %v1509_v46 = vor.u32 %v1823_v40, %v1506_v41  ;;  %v1661_v47 = vor.u32 %v1861_v42, %v1658_v43  ;;  %v1514_v53 = vld [vmem:[%s2227_s18 + $0x88] sm:$0xf0]  ;;  %v1863_v54 = vld [vmem:[%s2227_s18 + $0x1b4] sm:$0xf]  ;;  %v1666_v55 = vld [vmem:[%s2227_s18 + $0x1b8] sm:$0xf0] }
  0x23   : > { %v1517_v59 = vor.u32 %v1825_v52, %v1514_v53  ;;  %v1865_v16 = vld [vmem:[%s2227_s18 + $0x1c4] sm:$0xf]  ;;  %v1674_v17 = vld [vmem:[%s2227_s18 + $0x1c8] sm:$0xf0]  ;;  %v1528_v42 = vld [vmem:[%s2227_s18 + $0xa0] sm:$0xf] }
  0x24   : > { %767 = vmatpush.bf16.msra.mxu0 %v1884_v12  ;;  %2126 = vmatpush.bf16.msra.mxu2 %v1884_v12  ;;  %v1488_v12 = vld [vmem:[%s2227_s18 + $0x50] sm:$0xf]  ;;  %v1830_v43 = vld [vmem:[%s2227_s18 + $0xa4] sm:$0xf0] }
  0x25   : > { %965 = vmatpush.bf16.msra.mxu1 %v1892_v13  ;;  %2134 = vmatpush.bf16.msra.mxu3 %v1892_v13  ;;  %v1820_v13 = vld [vmem:[%s2227_s18 + $0x54] sm:$0xf0]  ;;  %v1529_v53 = vor.u32 %v1830_v43, %v1528_v42 }
  0x26   : > { %v1489_v20 = vor.u32 %v1820_v13, %v1488_v12  ;;  %v1827_v12 = vld [vmem:[%s2227_s18 + $0x94] sm:$0xf]  ;;  %v1522_v13 = vld [vmem:[%s2227_s18 + $0x98] sm:$0xf0] }
  0x28   : > { %768 = vmatpush.bf16.msra.mxu0 %v1883_v14  ;;  %2127 = vmatpush.bf16.msra.mxu2 %v1883_v14  ;;  %v1640_v14 = vld [vmem:[%s2227_s18 + $0x180] sm:$0xf] }
  0x29   : > { %966 = vmatpush.bf16.msra.mxu1 %v1891_v15  ;;  %2135 = vmatpush.bf16.msra.mxu3 %v1891_v15  ;;  %v1858_v15 = vld [vmem:[%s2227_s18 + $0x184] sm:$0xf0] }
  0x2a   : > { %v1641_v21 = vor.u32 %v1858_v15, %v1640_v14 }
  0x2b   : > { %769 = vmatmul.bf16.vlgmr.msra.gmra.mxu0 %v1449_v24  ;;  %864 = vmatmul.bf16.vlgmr.msra.gmra.mxu2 %v1601_v25  ;;  %v1496_v24 = vld [vmem:[%s2227_s18 + $0x60] sm:$0xf]  ;;  %v1822_v25 = vld [vmem:[%s2227_s18 + $0x64] sm:$0xf0] }
  0x2c   : > { %967 = vmatmul.bf16.vlgmr.msra.gmra.mxu1 %v1453_v26  ;;  %1062 = vmatmul.bf16.vlgmr.msra.gmra.mxu3 %v1605_v27  ;;  %v1648_v26 = vld [vmem:[%s2227_s18 + $0x190] sm:$0xf]  ;;  %v1860_v27 = vld [vmem:[%s2227_s18 + $0x194] sm:$0xf0]  ;;  %v1497_v32 = vor.u32 %v1822_v25, %v1496_v24 }
  0x2d   : > { %v1649_v33 = vor.u32 %v1860_v27, %v1648_v26  ;;  %v1525_v26 = vor.u32 %v1827_v12, %v1522_v13  ;;  %v1677_v27 = vor.u32 %v1865_v16, %v1674_v17  ;;  %v1536_v13 = vld [vmem:[%s2227_s18 + $0xb0] sm:$0xf]  ;;  %v1870_v16 = vld [vmem:[%s2227_s18 + $0x1e4] sm:$0xf0]  ;;  %v1831_v17 = vld [vmem:[%s2227_s18 + $0xb4] sm:$0xf] }
  0x3b   : > { %774 = vmatmul.bf16.gmra.mxu0 %v1457_v36  ;;  %869 = vmatmul.bf16.gmra.mxu2 %v1609_v37  ;;  %v1504_v36 = vld [vmem:[%s2227_s18 + $0x70] sm:$0xf]  ;;  %v1824_v37 = vld [vmem:[%s2227_s18 + $0x74] sm:$0xf0] }
  0x3c   : > { %972 = vmatmul.bf16.gmra.mxu1 %v1461_v38  ;;  %1067 = vmatmul.bf16.gmra.mxu3 %v1613_v39  ;;  %v1656_v38 = vld [vmem:[%s2227_s18 + $0x1a0] sm:$0xf]  ;;  %v1862_v39 = vld [vmem:[%s2227_s18 + $0x1a4] sm:$0xf0]  ;;  %v1505_v44 = vor.u32 %v1824_v37, %v1504_v36 }
  0x3d   : > { %v1657_v45 = vor.u32 %v1862_v39, %v1656_v38 }
  0x4b   : > { %779 = vmatmul.bf16.gmra.mxu0 %v1465_v48  ;;  %874 = vmatmul.bf16.gmra.mxu2 %v1617_v49  ;;  %v1512_v48 = vld [vmem:[%s2227_s18 + $0x80] sm:$0xf]  ;;  %v1826_v49 = vld [vmem:[%s2227_s18 + $0x84] sm:$0xf0] }
  0x4c   : > { %977 = vmatmul.bf16.gmra.mxu1 %v1469_v50  ;;  %1072 = vmatmul.bf16.gmra.mxu3 %v1621_v51  ;;  %v1664_v50 = vld [vmem:[%s2227_s18 + $0x1b0] sm:$0xf]  ;;  %v1864_v51 = vld [vmem:[%s2227_s18 + $0x1b4] sm:$0xf0]  ;;  %v1513_v56 = vor.u32 %v1826_v49, %v1512_v48 }
  0x4d   : > { %v1665_v57 = vor.u32 %v1864_v51, %v1664_v50  ;;  %v1867_v50 = vld [vmem:[%s2227_s18 + $0x1d4] sm:$0xf]  ;;  %v1682_v51 = vld [vmem:[%s2227_s18 + $0x1d8] sm:$0xf0] }
  0x5b   : > { %784 = vmatmul.bf16.gmra.mxu0 %v1473_v60  ;;  %879 = vmatmul.bf16.gmra.mxu2 %v1625_v61  ;;  %v1669_v60 = vor.u32 %v1863_v54, %v1666_v55  ;;  %v2313_v61 = vld [vmem:[%s2521_s2] ss:$0 sm:$0xff] }
  0x5c   : > { %982 = vmatmul.bf16.gmra.mxu1 %v1477_v62  ;;  %1077 = vmatmul.bf16.gmra.mxu3 %v1629_v63 }
  0x6b   : > { %789 = vmatmul.bf16.gmra.mxu0 %v1481_v8  ;;  %884 = vmatmul.bf16.gmra.mxu2 %v1633_v9  ;;  %v1520_v8 = vld [vmem:[%s2227_s18 + $0x90] sm:$0xf]  ;;  %v1828_v9 = vld [vmem:[%s2227_s18 + $0x94] sm:$0xf0] }
  0x6c   : > { %987 = vmatmul.bf16.gmra.mxu1 %v1485_v10  ;;  %1082 = vmatmul.bf16.gmra.mxu3 %v1637_v11  ;;  %v1672_v10 = vld [vmem:[%s2227_s18 + $0x1c0] sm:$0xf]  ;;  %v1866_v11 = vld [vmem:[%s2227_s18 + $0x1c4] sm:$0xf0]  ;;  %v1521_v19 = vor.u32 %v1828_v9, %v1520_v8 }
  0x6d   : > { %v1673_v24 = vor.u32 %v1866_v11, %v1672_v10 }
  0x7b   : > { %794 = vmatmul.bf16.gmra.mxu0 %v1489_v20  ;;  %889 = vmatmul.bf16.gmra.mxu2 %v1641_v21 }
  0x7c   : > { %992 = vmatmul.bf16.gmra.mxu1 %v1493_v22  ;;  %1087 = vmatmul.bf16.gmra.mxu3 %v1645_v23 }
  0x8b   : > { %799 = vmatmul.bf16.gmra.mxu0 %v1497_v32  ;;  %894 = vmatmul.bf16.gmra.mxu2 %v1649_v33 }
  0x8c   : > { %997 = vmatmul.bf16.gmra.mxu1 %v1501_v34  ;;  %1092 = vmatmul.bf16.gmra.mxu3 %v1653_v35 }
  0x9b   : > { %804 = vmatmul.bf16.gmra.mxu0 %v1505_v44  ;;  %899 = vmatmul.bf16.gmra.mxu2 %v1657_v45  ;;  %v1680_v44 = vld [vmem:[%s2227_s18 + $0x1d0] sm:$0xf]  ;;  %v1868_v45 = vld [vmem:[%s2227_s18 + $0x1d4] sm:$0xf0] }
  0x9c   : > { %1002 = vmatmul.bf16.gmra.mxu1 %v1509_v46  ;;  %1097 = vmatmul.bf16.gmra.mxu3 %v1661_v47  ;;  %v1829_v46 = vld [vmem:[%s2227_s18 + $0xa4] sm:$0xf]  ;;  %v1530_v47 = vld [vmem:[%s2227_s18 + $0xa8] sm:$0xf0] }
  0xa8   : > { %v770_v58 = vpop.f32.mrf.mxu0 }
  0xa9   : > { %v968_v62 = vpop.f32.mrf.mxu1  ;;  %v771_v63 = vadd.f32 %v2313_v61, %v770_v58  ;;  %v1681_v58 = vor.u32 %v1868_v45, %v1680_v44 }
  0xab   : > { %809 = vmatmul.bf16.gmra.mxu0 %v1513_v56  ;;  %904 = vmatmul.bf16.gmra.mxu2 %v1665_v57  ;;  %v969_v3 = vadd.f32 %v968_v62, %v771_v63  ;;  %v1685_v62 = vor.u32 %v1867_v50, %v1682_v51  ;;  %v1872_v50 = vld [vmem:[%s2227_s18 + $0x1f4] sm:$0xf0]  ;;  %v1833_v51 = vld [vmem:[%s2227_s18 + $0xc4] sm:$0xf] }
  0xac   : > { %1007 = vmatmul.bf16.gmra.mxu1 %v1517_v59  ;;  %1102 = vmatmul.bf16.gmra.mxu3 %v1669_v60  ;;  %v1533_v60 = vor.u32 %v1829_v46, %v1530_v47  ;;  %v1544_v47 = vld [vmem:[%s2227_s18 + $0xc0] sm:$0xf] }
  0xad   : > { %v1157_v14 = vmax.f32 %v969_v3, 0.0 }
  0xae   : > { %v865_v0 = vpop.f32.mrf.mxu2 }
  0xaf   : > { %v1063_v1 = vpop.f32.mrf.mxu3  ;;  %v866_v6 = vadd.f32 %v2313_v61, %v865_v0 }
  0xb0   : > { %v772_v2 = vpop.f32.mrf.mxu0 }
  0xb1   : > { %v773_v4 = vadd.f32 %v2313_v61, %v772_v2  ;;  %v970_v5 = vpop.f32.mrf.mxu1  ;;  %v1064_v20 = vadd.f32 %v1063_v1, %v866_v6 }
  0xb3   : > { %v971_v7 = vadd.f32 %v970_v5, %v773_v4  ;;  %v1195_v30 = vmax.f32 %v1064_v20, 0.0 }
  0xb5   : > { %v1158_v15 = vmax.f32 %v971_v7, 0.0 }
  0xb6   : > { %v867_v18 = vpop.f32.mrf.mxu2 }
  0xb7   : > { %v1902_v21 = vpack.c.bf16 %v1158_v15, %v1157_v14  ;;  %v868_v22 = vadd.f32 %v2313_v61, %v867_v18  ;;  %v1065_v23 = vpop.f32.mrf.mxu3  ;;  %v1832_v14 = vld [vmem:[%s2227_s18 + $0xb4] sm:$0xf0]  ;;  %v1688_v15 = vld [vmem:[%s2227_s18 + $0x1e0] sm:$0xf]  ;;  %v1538_v18 = vld [vmem:[%s2227_s18 + $0xb8] sm:$0xf0] }
  0xb8   : > { %v775_v25 = vpop.f32.mrf.mxu0 }
  0xb9   : > { %1903 = vst [vmem:[%s2330_s4] sm:$0xff] %v1902_v21   ;;  %v1066_v28 = vadd.f32 %v1065_v23, %v868_v22  ;;  %v973_v29 = vpop.f32.mrf.mxu1  ;;  %v776_v33 = vadd.f32 %v2313_v61, %v775_v25  ;;  %v1869_v21 = vld [vmem:[%s2227_s18 + $0x1e4] sm:$0xf]  ;;  %v1690_v22 = vld [vmem:[%s2227_s18 + $0x1e8] sm:$0xf0] }
  0xbb   : > { %v1196_v31 = vmax.f32 %v1066_v28, 0.0  ;;  %814 = vmatmul.bf16.gmra.mxu0 %v1521_v19  ;;  %909 = vmatmul.bf16.gmra.mxu2 %v1673_v24  ;;  %v974_v37 = vadd.f32 %v973_v29, %v776_v33  ;;  %v1537_v24 = vor.u32 %v1832_v14, %v1536_v13  ;;  %v1689_v29 = vor.u32 %v1870_v16, %v1688_v15 }
  0xbc   : > { %1012 = vmatmul.bf16.gmra.mxu1 %v1525_v26  ;;  %1107 = vmatmul.bf16.gmra.mxu3 %v1677_v27 }
  0xbd   : > { %v1997_v32 = vpack.c.bf16 %v1196_v31, %v1195_v30  ;;  %v1159_v48 = vmax.f32 %v974_v37, 0.0  ;;  %v1541_v31 = vor.u32 %v1831_v17, %v1538_v18  ;;  %v1552_v18 = vld [vmem:[%s2227_s18 + $0xd0] sm:$0xf] }
  0xbe   : > { %v870_v34 = vpop.f32.mrf.mxu2 }
  0xbf   : > { %2102 = vst [vmem:[%s2330_s4 + $0x98] sm:$0xff] %v1997_v32   ;;  %v1068_v35 = vpop.f32.mrf.mxu3  ;;  %v871_v40 = vadd.f32 %v2313_v61, %v870_v34  ;;  %v1693_v32 = vor.u32 %v1869_v21, %v1690_v22  ;;  %v1874_v21 = vld [vmem:[%s2227_s18 + $0x204] sm:$0xf0]  ;;  %v1835_v22 = vld [vmem:[%s2227_s18 + $0xd4] sm:$0xf] }
  0xc0   : > { %v777_v36 = vpop.f32.mrf.mxu0 }
  0xc1   : > { %v778_v38 = vadd.f32 %v2313_v61, %v777_v36  ;;  %v975_v39 = vpop.f32.mrf.mxu1  ;;  %v1069_v54 = vadd.f32 %v1068_v35, %v871_v40 }
  0xc3   : > { %v976_v41 = vadd.f32 %v975_v39, %v778_v38  ;;  %v1197_v1 = vmax.f32 %v1069_v54, 0.0 }
  0xc5   : > { %v1160_v49 = vmax.f32 %v976_v41, 0.0 }
  0xc6   : > { %v872_v52 = vpop.f32.mrf.mxu2 }
  0xc7   : > { %v1907_v55 = vpack.c.bf16 %v1160_v49, %v1159_v48  ;;  %v873_v56 = vadd.f32 %v2313_v61, %v872_v52  ;;  %v1070_v57 = vpop.f32.mrf.mxu3  ;;  %v1834_v48 = vld [vmem:[%s2227_s18 + $0xc4] sm:$0xf0]  ;;  %v1696_v49 = vld [vmem:[%s2227_s18 + $0x1f0] sm:$0xf]  ;;  %v1546_v52 = vld [vmem:[%s2227_s18 + $0xc8] sm:$0xf0] }
  0xc8   : > { %v780_v59 = vpop.f32.mrf.mxu0 }
  0xc9   : > { %2084 = vst [vmem:[%s2330_s4 + $0x8] sm:$0xff] %v1907_v55   ;;  %v1071_v63 = vadd.f32 %v1070_v57, %v873_v56  ;;  %v978_v0 = vpop.f32.mrf.mxu1  ;;  %v781_v4 = vadd.f32 %v2313_v61, %v780_v59  ;;  %v1871_v55 = vld [vmem:[%s2227_s18 + $0x1f4] sm:$0xf]  ;;  %v1698_v56 = vld [vmem:[%s2227_s18 + $0x1f8] sm:$0xf0] }
  0xcb   : > { %v1198_v2 = vmax.f32 %v1071_v63, 0.0  ;;  %819 = vmatmul.bf16.gmra.mxu0 %v1529_v53  ;;  %914 = vmatmul.bf16.gmra.mxu2 %v1681_v58  ;;  %v979_v8 = vadd.f32 %v978_v0, %v781_v4  ;;  %v1545_v58 = vor.u32 %v1834_v48, %v1544_v47  ;;  %v1697_v0 = vor.u32 %v1872_v50, %v1696_v49 }
  0xcc   : > { %1017 = vmatmul.bf16.gmra.mxu1 %v1533_v60  ;;  %1112 = vmatmul.bf16.gmra.mxu3 %v1685_v62 }
  0xcd   : > { %v2002_v3 = vpack.c.bf16 %v1198_v2, %v1197_v1  ;;  %v1161_v19 = vmax.f32 %v979_v8, 0.0  ;;  %v1549_v2 = vor.u32 %v1833_v51, %v1546_v52  ;;  %v1560_v52 = vld [vmem:[%s2227_s18 + $0xe0] sm:$0xf] }
  0xce   : > { %v875_v5 = vpop.f32.mrf.mxu2 }
  0xcf   : > { %2103 = vst [vmem:[%s2330_s4 + $0xa0] sm:$0xff] %v2002_v3   ;;  %v1073_v6 = vpop.f32.mrf.mxu3  ;;  %v876_v11 = vadd.f32 %v2313_v61, %v875_v5  ;;  %v1701_v3 = vor.u32 %v1871_v55, %v1698_v56  ;;  %v1876_v55 = vld [vmem:[%s2227_s18 + $0x214] sm:$0xf0]  ;;  %v1837_v56 = vld [vmem:[%s2227_s18 + $0xe4] sm:$0xf] }
  0xd0   : > { %v782_v7 = vpop.f32.mrf.mxu0 }
  0xd1   : > { %v783_v9 = vadd.f32 %v2313_v61, %v782_v7  ;;  %v980_v10 = vpop.f32.mrf.mxu1  ;;  %v1074_v25 = vadd.f32 %v1073_v6, %v876_v11 }
  0xd3   : > { %v981_v12 = vadd.f32 %v980_v10, %v783_v9  ;;  %v1199_v35 = vmax.f32 %v1074_v25, 0.0 }
  0xd5   : > { %v1162_v20 = vmax.f32 %v981_v12, 0.0 }
  0xd6   : > { %v877_v23 = vpop.f32.mrf.mxu2 }
  0xd7   : > { %v1912_v26 = vpack.c.bf16 %v1162_v20, %v1161_v19  ;;  %v878_v27 = vadd.f32 %v2313_v61, %v877_v23  ;;  %v1075_v28 = vpop.f32.mrf.mxu3  ;;  %v1836_v19 = vld [vmem:[%s2227_s18 + $0xd4] sm:$0xf0]  ;;  %v1704_v20 = vld [vmem:[%s2227_s18 + $0x200] sm:$0xf]  ;;  %v1554_v23 = vld [vmem:[%s2227_s18 + $0xd8] sm:$0xf0] }
  0xd8   : > { %v785_v30 = vpop.f32.mrf.mxu0 }
  0xd9   : > { %2085 = vst [vmem:[%s2330_s4 + $0x10] sm:$0xff] %v1912_v26   ;;  %v1076_v33 = vadd.f32 %v1075_v28, %v878_v27  ;;  %v983_v34 = vpop.f32.mrf.mxu1  ;;  %v786_v38 = vadd.f32 %v2313_v61, %v785_v30  ;;  %v1873_v26 = vld [vmem:[%s2227_s18 + $0x204] sm:$0xf]  ;;  %v1706_v27 = vld [vmem:[%s2227_s18 + $0x208] sm:$0xf0] }
  0xdb   : > { %v1200_v36 = vmax.f32 %v1076_v33, 0.0  ;;  %824 = vmatmul.bf16.gmra.mxu0 %v1537_v24  ;;  %919 = vmatmul.bf16.gmra.mxu2 %v1689_v29  ;;  %v984_v42 = vadd.f32 %v983_v34, %v786_v38  ;;  %v1553_v29 = vor.u32 %v1836_v19, %v1552_v18  ;;  %v1705_v34 = vor.u32 %v1874_v21, %v1704_v20 }
  0xdc   : > { %1022 = vmatmul.bf16.gmra.mxu1 %v1541_v31  ;;  %1117 = vmatmul.bf16.gmra.mxu3 %v1693_v32 }
  0xdd   : > { %v2007_v37 = vpack.c.bf16 %v1200_v36, %v1199_v35  ;;  %v1163_v53 = vmax.f32 %v984_v42, 0.0  ;;  %v1557_v36 = vor.u32 %v1835_v22, %v1554_v23  ;;  %v1568_v23 = vld [vmem:[%s2227_s18 + $0xf0] sm:$0xf] }
  0xde   : > { %v880_v39 = vpop.f32.mrf.mxu2 }
  0xdf   : > { %2104 = vst [vmem:[%s2330_s4 + $0xa8] sm:$0xff] %v2007_v37   ;;  %v1078_v40 = vpop.f32.mrf.mxu3  ;;  %v881_v45 = vadd.f32 %v2313_v61, %v880_v39  ;;  %v1709_v37 = vor.u32 %v1873_v26, %v1706_v27  ;;  %v1878_v26 = vld [vmem:[%s2227_s18 + $0x224] sm:$0xf0]  ;;  %v1839_v27 = vld [vmem:[%s2227_s18 + $0xf4] sm:$0xf] }
  0xe0   : > { %v787_v41 = vpop.f32.mrf.mxu0 }
  0xe1   : > { %v788_v43 = vadd.f32 %v2313_v61, %v787_v41  ;;  %v985_v44 = vpop.f32.mrf.mxu1  ;;  %v1079_v59 = vadd.f32 %v1078_v40, %v881_v45 }
  0xe3   : > { %v986_v46 = vadd.f32 %v985_v44, %v788_v43  ;;  %v1201_v6 = vmax.f32 %v1079_v59, 0.0 }
  0xe5   : > { %v1164_v54 = vmax.f32 %v986_v46, 0.0 }
  0xe6   : > { %v882_v57 = vpop.f32.mrf.mxu2 }
  0xe7   : > { %v1917_v60 = vpack.c.bf16 %v1164_v54, %v1163_v53  ;;  %v883_v62 = vadd.f32 %v2313_v61, %v882_v57  ;;  %v1080_v63 = vpop.f32.mrf.mxu3  ;;  %v1838_v53 = vld [vmem:[%s2227_s18 + $0xe4] sm:$0xf0]  ;;  %v1712_v54 = vld [vmem:[%s2227_s18 + $0x210] sm:$0xf]  ;;  %v1562_v57 = vld [vmem:[%s2227_s18 + $0xe8] sm:$0xf0] }
  0xe8   : > { %v790_v1 = vpop.f32.mrf.mxu0 }
  0xe9   : > { %2086 = vst [vmem:[%s2330_s4 + $0x18] sm:$0xff] %v1917_v60   ;;  %v1081_v4 = vadd.f32 %v1080_v63, %v883_v62  ;;  %v988_v5 = vpop.f32.mrf.mxu1  ;;  %v791_v9 = vadd.f32 %v2313_v61, %v790_v1  ;;  %v1875_v60 = vld [vmem:[%s2227_s18 + $0x214] sm:$0xf]  ;;  %v1714_v62 = vld [vmem:[%s2227_s18 + $0x218] sm:$0xf0] }
  0xeb   : > { %v1202_v7 = vmax.f32 %v1081_v4, 0.0  ;;  %829 = vmatmul.bf16.gmra.mxu0 %v1545_v58  ;;  %924 = vmatmul.bf16.gmra.mxu2 %v1697_v0  ;;  %v989_v13 = vadd.f32 %v988_v5, %v791_v9  ;;  %v1561_v0 = vor.u32 %v1838_v53, %v1560_v52  ;;  %v1713_v5 = vor.u32 %v1876_v55, %v1712_v54 }
  0xec   : > { %1027 = vmatmul.bf16.gmra.mxu1 %v1549_v2  ;;  %1122 = vmatmul.bf16.gmra.mxu3 %v1701_v3 }
  0xed   : > { %v2012_v8 = vpack.c.bf16 %v1202_v7, %v1201_v6  ;;  %v1165_v24 = vmax.f32 %v989_v13, 0.0  ;;  %v1565_v7 = vor.u32 %v1837_v56, %v1562_v57  ;;  %v1576_v57 = vld [vmem:[%s2227_s18 + $0x100] sm:$0xf] }
  0xee   : > { %v885_v10 = vpop.f32.mrf.mxu2 }
  0xef   : > { %2105 = vst [vmem:[%s2330_s4 + $0xb0] sm:$0xff] %v2012_v8   ;;  %v1083_v11 = vpop.f32.mrf.mxu3  ;;  %v886_v16 = vadd.f32 %v2313_v61, %v885_v10  ;;  %v1717_v8 = vor.u32 %v1875_v60, %v1714_v62  ;;  %v1880_v60 = vld [vmem:[%s2227_s18 + $0x234] sm:$0xf0]  ;;  %v1841_v62 = vld [vmem:[%s2227_s18 + $0x104] sm:$0xf] }
  0xf0   : > { %v792_v12 = vpop.f32.mrf.mxu0 }
  0xf1   : > { %v793_v14 = vadd.f32 %v2313_v61, %v792_v12  ;;  %v990_v15 = vpop.f32.mrf.mxu1  ;;  %v1084_v30 = vadd.f32 %v1083_v11, %v886_v16 }
  0xf3   : > { %v991_v17 = vadd.f32 %v990_v15, %v793_v14  ;;  %v1203_v40 = vmax.f32 %v1084_v30, 0.0 }
  0xf5   : > { %v1166_v25 = vmax.f32 %v991_v17, 0.0 }
  0xf6   : > { %v887_v28 = vpop.f32.mrf.mxu2 }
  0xf7   : > { %v1922_v31 = vpack.c.bf16 %v1166_v25, %v1165_v24  ;;  %v888_v32 = vadd.f32 %v2313_v61, %v887_v28  ;;  %v1085_v33 = vpop.f32.mrf.mxu3  ;;  %v1840_v24 = vld [vmem:[%s2227_s18 + $0xf4] sm:$0xf0]  ;;  %v1720_v25 = vld [vmem:[%s2227_s18 + $0x220] sm:$0xf]  ;;  %v1570_v28 = vld [vmem:[%s2227_s18 + $0xf8] sm:$0xf0] }
  0xf8   : > { %v795_v35 = vpop.f32.mrf.mxu0 }
  0xf9   : > { %2087 = vst [vmem:[%s2330_s4 + $0x20] sm:$0xff] %v1922_v31   ;;  %v1086_v38 = vadd.f32 %v1085_v33, %v888_v32  ;;  %v993_v39 = vpop.f32.mrf.mxu1  ;;  %v796_v43 = vadd.f32 %v2313_v61, %v795_v35  ;;  %v1877_v31 = vld [vmem:[%s2227_s18 + $0x224] sm:$0xf]  ;;  %v1722_v32 = vld [vmem:[%s2227_s18 + $0x228] sm:$0xf0] }
  0xfb   : > { %v1204_v41 = vmax.f32 %v1086_v38, 0.0  ;;  %834 = vmatmul.bf16.gmra.mxu0 %v1553_v29  ;;  %929 = vmatmul.bf16.gmra.mxu2 %v1705_v34  ;;  %v994_v47 = vadd.f32 %v993_v39, %v796_v43  ;;  %v1569_v34 = vor.u32 %v1840_v24, %v1568_v23  ;;  %v1721_v39 = vor.u32 %v1878_v26, %v1720_v25 }
  0xfc   : > { %1032 = vmatmul.bf16.gmra.mxu1 %v1557_v36  ;;  %1127 = vmatmul.bf16.gmra.mxu3 %v1709_v37 }
  0xfd   : > { %v2017_v42 = vpack.c.bf16 %v1204_v41, %v1203_v40  ;;  %v1167_v58 = vmax.f32 %v994_v47, 0.0  ;;  %v1573_v41 = vor.u32 %v1839_v27, %v1570_v28  ;;  %v1584_v28 = vld [vmem:[%s2227_s18 + $0x110] sm:$0xf] }
  0xfe   : > { %v890_v44 = vpop.f32.mrf.mxu2 }
  0xff   : > { %2106 = vst [vmem:[%s2330_s4 + $0xb8] sm:$0xff] %v2017_v42   ;;  %v1088_v45 = vpop.f32.mrf.mxu3  ;;  %v891_v50 = vadd.f32 %v2313_v61, %v890_v44  ;;  %v1725_v42 = vor.u32 %v1877_v31, %v1722_v32  ;;  %v1882_v31 = vld [vmem:[%s2227_s18 + $0x244] sm:$0xf0]  ;;  %v1843_v32 = vld [vmem:[%s2227_s18 + $0x114] sm:$0xf] }
 0x100   : > { %v797_v46 = vpop.f32.mrf.mxu0 }
 0x101   : > { %v798_v48 = vadd.f32 %v2313_v61, %v797_v46  ;;  %v995_v49 = vpop.f32.mrf.mxu1  ;;  %v1089_v1 = vadd.f32 %v1088_v45, %v891_v50 }
 0x103   : > { %v996_v51 = vadd.f32 %v995_v49, %v798_v48  ;;  %v1205_v11 = vmax.f32 %v1089_v1, 0.0 }
 0x105   : > { %v1168_v59 = vmax.f32 %v996_v51, 0.0 }
 0x106   : > { %v892_v63 = vpop.f32.mrf.mxu2 }
 0x107   : > { %v1927_v2 = vpack.c.bf16 %v1168_v59, %v1167_v58  ;;  %v893_v3 = vadd.f32 %v2313_v61, %v892_v63  ;;  %v1090_v4 = vpop.f32.mrf.mxu3  ;;  %v1842_v58 = vld [vmem:[%s2227_s18 + $0x104] sm:$0xf0]  ;;  %v1728_v59 = vld [vmem:[%s2227_s18 + $0x230] sm:$0xf]  ;;  %v1578_v63 = vld [vmem:[%s2227_s18 + $0x108] sm:$0xf0] }
 0x108   : > { %v800_v6 = vpop.f32.mrf.mxu0 }
 0x109   : > { %2088 = vst [vmem:[%s2330_s4 + $0x28] sm:$0xff] %v1927_v2   ;;  %v1091_v9 = vadd.f32 %v1090_v4, %v893_v3  ;;  %v998_v10 = vpop.f32.mrf.mxu1  ;;  %v801_v14 = vadd.f32 %v2313_v61, %v800_v6  ;;  %v1879_v2 = vld [vmem:[%s2227_s18 + $0x234] sm:$0xf]  ;;  %v1730_v3 = vld [vmem:[%s2227_s18 + $0x238] sm:$0xf0] }
 0x10b   : > { %v1206_v12 = vmax.f32 %v1091_v9, 0.0  ;;  %839 = vmatmul.bf16.gmra.mxu0 %v1561_v0  ;;  %934 = vmatmul.bf16.gmra.mxu2 %v1713_v5  ;;  %v999_v18 = vadd.f32 %v998_v10, %v801_v14  ;;  %v1577_v5 = vor.u32 %v1842_v58, %v1576_v57  ;;  %v1729_v10 = vor.u32 %v1880_v60, %v1728_v59  ;;  %v251_v57 = vld [vmem:[%s2227_s18 + $0x250] sm:$0xff] }
 0x10c   : > { %1037 = vmatmul.bf16.gmra.mxu1 %v1565_v7  ;;  %1132 = vmatmul.bf16.gmra.mxu3 %v1717_v8 }
 0x10d   : > { %v2022_v13 = vpack.c.bf16 %v1206_v12, %v1205_v11  ;;  %v1169_v29 = vmax.f32 %v999_v18, 0.0  ;;  %v1581_v12 = vor.u32 %v1841_v62, %v1578_v63 }
 0x10e   : > { %v895_v15 = vpop.f32.mrf.mxu2 }
 0x10f   : > { %2107 = vst [vmem:[%s2330_s4 + $0xc0] sm:$0xff] %v2022_v13   ;;  %v1093_v16 = vpop.f32.mrf.mxu3  ;;  %v896_v21 = vadd.f32 %v2313_v61, %v895_v15  ;;  %v1733_v13 = vor.u32 %v1879_v2, %v1730_v3  ;;  %v511_v2 = vunpack.c.l.b16 %v251_v57  ;;  %v512_v3 = vunpack.c.h.b16 %v251_v57 }
 0x110   : > { %v802_v17 = vpop.f32.mrf.mxu0 }
 0x111   : > { %v803_v19 = vadd.f32 %v2313_v61, %v802_v17  ;;  %v1000_v20 = vpop.f32.mrf.mxu1  ;;  %v1094_v35 = vadd.f32 %v1093_v16, %v896_v21 }
 0x113   : > { %v1001_v22 = vadd.f32 %v1000_v20, %v803_v19  ;;  %v1207_v45 = vmax.f32 %v1094_v35, 0.0 }
 0x115   : > { %v1170_v30 = vmax.f32 %v1001_v22, 0.0 }
 0x116   : > { %v897_v33 = vpop.f32.mrf.mxu2 }
 0x117   : > { %v1932_v36 = vpack.c.bf16 %v1170_v30, %v1169_v29  ;;  %v898_v37 = vadd.f32 %v2313_v61, %v897_v33  ;;  %v1095_v38 = vpop.f32.mrf.mxu3  ;;  %v1844_v29 = vld [vmem:[%s2227_s18 + $0x114] sm:$0xf0]  ;;  %v1736_v30 = vld [vmem:[%s2227_s18 + $0x240] sm:$0xf]  ;;  %v1586_v33 = vld [vmem:[%s2227_s18 + $0x118] sm:$0xf0] }
 0x118   : > { %v805_v40 = vpop.f32.mrf.mxu0 }
 0x119   : > { %2089 = vst [vmem:[%s2330_s4 + $0x30] sm:$0xff] %v1932_v36   ;;  %v1096_v43 = vadd.f32 %v1095_v38, %v898_v37  ;;  %v1003_v44 = vpop.f32.mrf.mxu1  ;;  %v806_v48 = vadd.f32 %v2313_v61, %v805_v40  ;;  %v1881_v36 = vld [vmem:[%s2227_s18 + $0x244] sm:$0xf]  ;;  %v1738_v37 = vld [vmem:[%s2227_s18 + $0x248] sm:$0xf0] }
 0x11b   : > { %v1208_v46 = vmax.f32 %v1096_v43, 0.0  ;;  %844 = vmatmul.bf16.gmra.mxu0 %v1569_v34  ;;  %939 = vmatmul.bf16.gmra.mxu2 %v1721_v39  ;;  %v1004_v52 = vadd.f32 %v1003_v44, %v806_v48  ;;  %v1585_v39 = vor.u32 %v1844_v29, %v1584_v28  ;;  %v1737_v44 = vor.u32 %v1882_v31, %v1736_v30 }
 0x11c   : > { %1042 = vmatmul.bf16.gmra.mxu1 %v1573_v41  ;;  %1137 = vmatmul.bf16.gmra.mxu3 %v1725_v42 }
 0x11d   : > { %v2027_v47 = vpack.c.bf16 %v1208_v46, %v1207_v45  ;;  %v1171_v0 = vmax.f32 %v1004_v52, 0.0  ;;  %v1589_v46 = vor.u32 %v1843_v32, %v1586_v33 }
 0x11e   : > { %v900_v49 = vpop.f32.mrf.mxu2 }
 0x11f   : > { %2108 = vst [vmem:[%s2330_s4 + $0xc8] sm:$0xff] %v2027_v47   ;;  %v1098_v50 = vpop.f32.mrf.mxu3  ;;  %v901_v55 = vadd.f32 %v2313_v61, %v900_v49  ;;  %v1741_v47 = vor.u32 %v1881_v36, %v1738_v37 }
 0x120   : > { %v807_v51 = vpop.f32.mrf.mxu0 }
 0x121   : > { %v808_v53 = vadd.f32 %v2313_v61, %v807_v51  ;;  %v1005_v54 = vpop.f32.mrf.mxu1  ;;  %v1099_v6 = vadd.f32 %v1098_v50, %v901_v55 }
 0x123   : > { %v1006_v56 = vadd.f32 %v1005_v54, %v808_v53  ;;  %v1209_v16 = vmax.f32 %v1099_v6, 0.0  ;;  %v1845_v6 = vld [vmem:[%s2227_s18 + $0x124] sm:$0xf] }
 0x125   : > { %v1172_v1 = vmax.f32 %v1006_v56, 0.0 }
 0x126   : > { %v902_v4 = vpop.f32.mrf.mxu2 }
 0x127   : > { %v1937_v7 = vpack.c.bf16 %v1172_v1, %v1171_v0  ;;  %v903_v8 = vadd.f32 %v2313_v61, %v902_v4  ;;  %v1100_v9 = vpop.f32.mrf.mxu3  ;;  %v1592_v0 = vld [vmem:[%s2227_s18 + $0x120] sm:$0xf]  ;;  %v1846_v1 = vld [vmem:[%s2227_s18 + $0x124] sm:$0xf0] }
 0x128   : > { %v810_v11 = vpop.f32.mrf.mxu0 }
 0x129   : > { %2090 = vst [vmem:[%s2330_s4 + $0x38] sm:$0xff] %v1937_v7   ;;  %v1101_v14 = vadd.f32 %v1100_v9, %v903_v8  ;;  %v1008_v15 = vpop.f32.mrf.mxu1  ;;  %v811_v19 = vadd.f32 %v2313_v61, %v810_v11  ;;  %v1594_v7 = vld [vmem:[%s2227_s18 + $0x128] sm:$0xf0]  ;;  %v1593_v9 = vor.u32 %v1846_v1, %v1592_v0 }
 0x12b   : > { %v1210_v17 = vmax.f32 %v1101_v14, 0.0  ;;  %849 = vmatmul.bf16.gmra.mxu0 %v1577_v5  ;;  %944 = vmatmul.bf16.gmra.mxu2 %v1729_v10  ;;  %v1009_v23 = vadd.f32 %v1008_v15, %v811_v19  ;;  %v587_v14 = vpack.c.b16 %v511_v2, %v511_v2 }
 0x12c   : > { %1047 = vmatmul.bf16.gmra.mxu1 %v1581_v12  ;;  %1142 = vmatmul.bf16.gmra.mxu3 %v1733_v13 }
 0x12d   : > { %v2032_v18 = vpack.c.bf16 %v1210_v17, %v1209_v16  ;;  %v1173_v34 = vmax.f32 %v1009_v23, 0.0  ;;  %v1597_v16 = vor.u32 %v1845_v6, %v1594_v7  ;;  %v588_v17 = vpack.c.b16 %v512_v3, %v512_v3 }
 0x12e   : > { %v905_v20 = vpop.f32.mrf.mxu2 }
 0x12f   : > { %2109 = vst [vmem:[%s2330_s4 + $0xd0] sm:$0xff] %v2032_v18   ;;  %v1103_v21 = vpop.f32.mrf.mxu3  ;;  %v906_v26 = vadd.f32 %v2313_v61, %v905_v20 }
 0x130   : > { %v812_v22 = vpop.f32.mrf.mxu0 }
 0x131   : > { %v813_v24 = vadd.f32 %v2313_v61, %v812_v22  ;;  %v1010_v25 = vpop.f32.mrf.mxu1  ;;  %v1104_v40 = vadd.f32 %v1103_v21, %v906_v26 }
 0x133   : > { %v1011_v27 = vadd.f32 %v1010_v25, %v813_v24  ;;  %v1211_v50 = vmax.f32 %v1104_v40, 0.0 }
 0x135   : > { %v1174_v35 = vmax.f32 %v1011_v27, 0.0 }
 0x136   : > { %v907_v38 = vpop.f32.mrf.mxu2 }
 0x137   : > { %v1942_v41 = vpack.c.bf16 %v1174_v35, %v1173_v34  ;;  %v908_v42 = vadd.f32 %v2313_v61, %v907_v38  ;;  %v1105_v43 = vpop.f32.mrf.mxu3 }
 0x138   : > { %v815_v45 = vpop.f32.mrf.mxu0 }
 0x139   : > { %2091 = vst [vmem:[%s2330_s4 + $0x40] sm:$0xff] %v1942_v41   ;;  %v1106_v48 = vadd.f32 %v1105_v43, %v908_v42  ;;  %v1013_v49 = vpop.f32.mrf.mxu1  ;;  %v816_v53 = vadd.f32 %v2313_v61, %v815_v45 }
 0x13b   : > { %v1212_v51 = vmax.f32 %v1106_v48, 0.0  ;;  %854 = vmatmul.bf16.gmra.mxu0 %v1585_v39  ;;  %949 = vmatmul.bf16.gmra.mxu2 %v1737_v44  ;;  %v1014_v58 = vadd.f32 %v1013_v49, %v816_v53 }
 0x13c   : > { %1052 = vmatmul.bf16.gmra.mxu1 %v1589_v46  ;;  %1147 = vmatmul.bf16.gmra.mxu3 %v1741_v47 }
 0x13d   : > { %v2037_v52 = vpack.c.bf16 %v1212_v51, %v1211_v50  ;;  %v1175_v4 = vmax.f32 %v1014_v58, 0.0 }
 0x13e   : > { %v910_v54 = vpop.f32.mrf.mxu2 }
 0x13f   : > { %2110 = vst [vmem:[%s2330_s4 + $0xd8] sm:$0xff] %v2037_v52   ;;  %v1108_v55 = vpop.f32.mrf.mxu3  ;;  %v911_v62 = vadd.f32 %v2313_v61, %v910_v54 }
 0x140   : > { %v817_v56 = vpop.f32.mrf.mxu0 }
 0x141   : > { %v818_v59 = vadd.f32 %v2313_v61, %v817_v56  ;;  %v1015_v60 = vpop.f32.mrf.mxu1  ;;  %v1109_v10 = vadd.f32 %v1108_v55, %v911_v62 }
 0x143   : > { %v1016_v63 = vadd.f32 %v1015_v60, %v818_v59  ;;  %v1213_v20 = vmax.f32 %v1109_v10, 0.0 }
 0x145   : > { %v1176_v5 = vmax.f32 %v1016_v63, 0.0 }
 0x146   : > { %v912_v8 = vpop.f32.mrf.mxu2 }
 0x147   : > { %v1947_v11 = vpack.c.bf16 %v1176_v5, %v1175_v4  ;;  %v913_v12 = vadd.f32 %v2313_v61, %v912_v8  ;;  %v1110_v13 = vpop.f32.mrf.mxu3 }
 0x148   : > { %v820_v15 = vpop.f32.mrf.mxu0 }
 0x149   : > { %2092 = vst [vmem:[%s2330_s4 + $0x48] sm:$0xff] %v1947_v11   ;;  %v1111_v18 = vadd.f32 %v1110_v13, %v913_v12  ;;  %v1018_v19 = vpop.f32.mrf.mxu1  ;;  %v821_v23 = vadd.f32 %v2313_v61, %v820_v15 }
 0x14b   : > { %v1214_v21 = vmax.f32 %v1111_v18, 0.0  ;;  %859 = vmatmul.bf16.gmra.mxu0 %v1593_v9  ;;  %954 = vmatmul.bf16.gmra.mxu2 %v587_v14  ;;  %v1019_v27 = vadd.f32 %v1018_v19, %v821_v23 }
 0x14c   : > { %1057 = vmatmul.bf16.gmra.mxu1 %v1597_v16  ;;  %1152 = vmatmul.bf16.gmra.mxu3 %v588_v17 }
 0x14d   : > { %v2042_v22 = vpack.c.bf16 %v1214_v21, %v1213_v20  ;;  %v1177_v32 = vmax.f32 %v1019_v27, 0.0 }
 0x14e   : > { %v915_v24 = vpop.f32.mrf.mxu2 }
 0x14f   : > { %2111 = vst [vmem:[%s2330_s4 + $0xe0] sm:$0xff] %v2042_v22   ;;  %v1113_v25 = vpop.f32.mrf.mxu3  ;;  %v916_v30 = vadd.f32 %v2313_v61, %v915_v24 }
 0x150   : > { %v822_v26 = vpop.f32.mrf.mxu0 }
 0x151   : > { %v823_v28 = vadd.f32 %v2313_v61, %v822_v26  ;;  %v1020_v29 = vpop.f32.mrf.mxu1  ;;  %v1114_v35 = vadd.f32 %v1113_v25, %v916_v30 }
 0x153   : > { %v1021_v31 = vadd.f32 %v1020_v29, %v823_v28  ;;  %v1215_v42 = vmax.f32 %v1114_v35, 0.0 }
 0x155   : > { %v1178_v33 = vmax.f32 %v1021_v31, 0.0 }
 0x156   : > { %v917_v34 = vpop.f32.mrf.mxu2 }
 0x157   : > { %v1952_v36 = vpack.c.bf16 %v1178_v33, %v1177_v32  ;;  %v918_v37 = vadd.f32 %v2313_v61, %v917_v34  ;;  %v1115_v38 = vpop.f32.mrf.mxu3 }
 0x158   : > { %v825_v39 = vpop.f32.mrf.mxu0 }
 0x159   : > { %2093 = vst [vmem:[%s2330_s4 + $0x50] sm:$0xff] %v1952_v36   ;;  %v1116_v40 = vadd.f32 %v1115_v38, %v918_v37  ;;  %v1023_v41 = vpop.f32.mrf.mxu1  ;;  %v826_v45 = vadd.f32 %v2313_v61, %v825_v39 }
 0x15b   : > { %v1216_v43 = vmax.f32 %v1116_v40, 0.0  ;;  %v1024_v49 = vadd.f32 %v1023_v41, %v826_v45 }
 0x15d   : > { %v2047_v44 = vpack.c.bf16 %v1216_v43, %v1215_v42  ;;  %v1179_v54 = vmax.f32 %v1024_v49, 0.0 }
 0x15e   : > { %v920_v46 = vpop.f32.mrf.mxu2 }
 0x15f   : > { %2112 = vst [vmem:[%s2330_s4 + $0xe8] sm:$0xff] %v2047_v44   ;;  %v1118_v47 = vpop.f32.mrf.mxu3  ;;  %v921_v52 = vadd.f32 %v2313_v61, %v920_v46 }
 0x160   : > { %v827_v48 = vpop.f32.mrf.mxu0 }
 0x161   : > { %v828_v50 = vadd.f32 %v2313_v61, %v827_v48  ;;  %v1025_v51 = vpop.f32.mrf.mxu1  ;;  %v1119_v57 = vadd.f32 %v1118_v47, %v921_v52 }
 0x163   : > { %v1026_v53 = vadd.f32 %v1025_v51, %v828_v50  ;;  %v1217_v1 = vmax.f32 %v1119_v57, 0.0 }
 0x165   : > { %v1180_v55 = vmax.f32 %v1026_v53, 0.0 }
 0x166   : > { %v922_v56 = vpop.f32.mrf.mxu2 }
 0x167   : > { %v1957_v58 = vpack.c.bf16 %v1180_v55, %v1179_v54  ;;  %v923_v59 = vadd.f32 %v2313_v61, %v922_v56  ;;  %v1120_v60 = vpop.f32.mrf.mxu3 }
 0x168   : > { %v830_v62 = vpop.f32.mrf.mxu0 }
 0x169   : > { %2094 = vst [vmem:[%s2330_s4 + $0x58] sm:$0xff] %v1957_v58   ;;  %v1121_v63 = vadd.f32 %v1120_v60, %v923_v59  ;;  %v1028_v0 = vpop.f32.mrf.mxu1  ;;  %v831_v4 = vadd.f32 %v2313_v61, %v830_v62 }
 0x16b   : > { %v1218_v2 = vmax.f32 %v1121_v63, 0.0  ;;  %v1029_v8 = vadd.f32 %v1028_v0, %v831_v4  ;;  %v2488_v63 = vld [vmem:[%s2521_s2] ss:$0 sm:$0xff] }
 0x16d   : > { %v2052_v3 = vpack.c.bf16 %v1218_v2, %v1217_v1  ;;  %v1181_v13 = vmax.f32 %v1029_v8, 0.0 }
 0x16e   : > { %v925_v5 = vpop.f32.mrf.mxu2 }
 0x16f   : > { %2113 = vst [vmem:[%s2330_s4 + $0xf0] sm:$0xff] %v2052_v3   ;;  %v1123_v6 = vpop.f32.mrf.mxu3  ;;  %v926_v11 = vadd.f32 %v2313_v61, %v925_v5 }
 0x170   : > { %v832_v7 = vpop.f32.mrf.mxu0 }
 0x171   : > { %v833_v9 = vadd.f32 %v2313_v61, %v832_v7  ;;  %v1030_v10 = vpop.f32.mrf.mxu1  ;;  %v1124_v16 = vadd.f32 %v1123_v6, %v926_v11 }
 0x173   : > { %v1031_v12 = vadd.f32 %v1030_v10, %v833_v9  ;;  %v1219_v23 = vmax.f32 %v1124_v16, 0.0 }
 0x175   : > { %v1182_v14 = vmax.f32 %v1031_v12, 0.0 }
 0x176   : > { %v927_v15 = vpop.f32.mrf.mxu2 }
 0x177   : > { %v1962_v17 = vpack.c.bf16 %v1182_v14, %v1181_v13  ;;  %v928_v18 = vadd.f32 %v2313_v61, %v927_v15  ;;  %v1125_v19 = vpop.f32.mrf.mxu3 }
 0x178   : > { %v835_v20 = vpop.f32.mrf.mxu0 }
 0x179   : > { %2095 = vst [vmem:[%s2330_s4 + $0x60] sm:$0xff] %v1962_v17   ;;  %v1126_v21 = vadd.f32 %v1125_v19, %v928_v18  ;;  %v1033_v22 = vpop.f32.mrf.mxu1  ;;  %v836_v26 = vadd.f32 %v2313_v61, %v835_v20 }
 0x17b   : > { %v1220_v24 = vmax.f32 %v1126_v21, 0.0  ;;  %v1034_v30 = vadd.f32 %v1033_v22, %v836_v26 }
 0x17d   : > { %v2057_v25 = vpack.c.bf16 %v1220_v24, %v1219_v23  ;;  %v1183_v35 = vmax.f32 %v1034_v30, 0.0 }
 0x17e   : > { %v930_v27 = vpop.f32.mrf.mxu2 }
 0x17f   : > { %2114 = vst [vmem:[%s2330_s4 + $0xf8] sm:$0xff] %v2057_v25   ;;  %v1128_v28 = vpop.f32.mrf.mxu3  ;;  %v931_v33 = vadd.f32 %v2313_v61, %v930_v27 }
 0x180   : > { %v837_v29 = vpop.f32.mrf.mxu0 }
 0x181   : > { %v838_v31 = vadd.f32 %v2313_v61, %v837_v29  ;;  %v1035_v32 = vpop.f32.mrf.mxu1  ;;  %v1129_v38 = vadd.f32 %v1128_v28, %v931_v33 }
 0x183   : > { %v1036_v34 = vadd.f32 %v1035_v32, %v838_v31  ;;  %v1221_v45 = vmax.f32 %v1129_v38, 0.0 }
 0x185   : > { %v1184_v36 = vmax.f32 %v1036_v34, 0.0 }
 0x186   : > { %v932_v37 = vpop.f32.mrf.mxu2 }
 0x187   : > { %v1967_v39 = vpack.c.bf16 %v1184_v36, %v1183_v35  ;;  %v933_v40 = vadd.f32 %v2313_v61, %v932_v37  ;;  %v1130_v41 = vpop.f32.mrf.mxu3 }
 0x188   : > { %v840_v42 = vpop.f32.mrf.mxu0 }
 0x189   : > { %2096 = vst [vmem:[%s2330_s4 + $0x68] sm:$0xff] %v1967_v39   ;;  %v1131_v43 = vadd.f32 %v1130_v41, %v933_v40  ;;  %v1038_v44 = vpop.f32.mrf.mxu1  ;;  %v841_v48 = vadd.f32 %v2313_v61, %v840_v42 }
 0x18b   : > { %v1222_v46 = vmax.f32 %v1131_v43, 0.0  ;;  %v1039_v52 = vadd.f32 %v1038_v44, %v841_v48 }
 0x18d   : > { %v2062_v47 = vpack.c.bf16 %v1222_v46, %v1221_v45  ;;  %v1185_v57 = vmax.f32 %v1039_v52, 0.0 }
 0x18e   : > { %v935_v49 = vpop.f32.mrf.mxu2 }
 0x18f   : > { %2115 = vst [vmem:[%s2330_s4 + $0x100] sm:$0xff] %v2062_v47   ;;  %v1133_v50 = vpop.f32.mrf.mxu3  ;;  %v936_v55 = vadd.f32 %v2313_v61, %v935_v49 }
 0x190   : > { %v842_v51 = vpop.f32.mrf.mxu0 }
 0x191   : > { %v843_v53 = vadd.f32 %v2313_v61, %v842_v51  ;;  %v1040_v54 = vpop.f32.mrf.mxu1  ;;  %v1134_v60 = vadd.f32 %v1133_v50, %v936_v55 }
 0x193   : > { %v1041_v56 = vadd.f32 %v1040_v54, %v843_v53  ;;  %v1223_v61 = vmax.f32 %v1134_v60, 0.0 }
 0x195   : > { %v1186_v58 = vmax.f32 %v1041_v56, 0.0 }
 0x196   : > { %v937_v59 = vpop.f32.mrf.mxu2 }
 0x197   : > { %v1972_v62 = vpack.c.bf16 %v1186_v58, %v1185_v57  ;;  %v938_v0 = vadd.f32 %v2488_v63, %v937_v59  ;;  %v1135_v1 = vpop.f32.mrf.mxu3 }
 0x198   : > { %v845_v2 = vpop.f32.mrf.mxu0 }
 0x199   : > { %2097 = vst [vmem:[%s2330_s4 + $0x70] sm:$0xff] %v1972_v62   ;;  %v1136_v3 = vadd.f32 %v1135_v1, %v938_v0  ;;  %v1043_v4 = vpop.f32.mrf.mxu1  ;;  %v846_v7 = vadd.f32 %v2488_v63, %v845_v2 }
 0x19b   : > { %v1224_v5 = vmax.f32 %v1136_v3, 0.0  ;;  %v1044_v11 = vadd.f32 %v1043_v4, %v846_v7 }
 0x19d   : > { %v2067_v6 = vpack.c.bf16 %v1224_v5, %v1223_v61  ;;  %v1187_v16 = vmax.f32 %v1044_v11, 0.0 }
 0x19e   : > { %v940_v8 = vpop.f32.mrf.mxu2 }
 0x19f   : > { %2116 = vst [vmem:[%s2330_s4 + $0x108] sm:$0xff] %v2067_v6   ;;  %v1138_v9 = vpop.f32.mrf.mxu3  ;;  %v941_v14 = vadd.f32 %v2488_v63, %v940_v8 }
 0x1a0   : > { %v847_v10 = vpop.f32.mrf.mxu0 }
 0x1a1   : > { %v848_v12 = vadd.f32 %v2488_v63, %v847_v10  ;;  %v1045_v13 = vpop.f32.mrf.mxu1  ;;  %v1139_v19 = vadd.f32 %v1138_v9, %v941_v14 }
 0x1a3   : > { %v1046_v15 = vadd.f32 %v1045_v13, %v848_v12  ;;  %v1225_v26 = vmax.f32 %v1139_v19, 0.0 }
 0x1a5   : > { %v1188_v17 = vmax.f32 %v1046_v15, 0.0 }
 0x1a6   : > { %v942_v18 = vpop.f32.mrf.mxu2 }
 0x1a7   : > { %v1977_v20 = vpack.c.bf16 %v1188_v17, %v1187_v16  ;;  %v943_v21 = vadd.f32 %v2488_v63, %v942_v18  ;;  %v1140_v22 = vpop.f32.mrf.mxu3 }
 0x1a8   : > { %v850_v23 = vpop.f32.mrf.mxu0 }
 0x1a9   : > { %2098 = vst [vmem:[%s2330_s4 + $0x78] sm:$0xff] %v1977_v20   ;;  %v1141_v24 = vadd.f32 %v1140_v22, %v943_v21  ;;  %v1048_v25 = vpop.f32.mrf.mxu1  ;;  %v851_v29 = vadd.f32 %v2488_v63, %v850_v23 }
 0x1ab   : > { %v1226_v27 = vmax.f32 %v1141_v24, 0.0  ;;  %v1049_v33 = vadd.f32 %v1048_v25, %v851_v29 }
 0x1ad   : > { %v2072_v28 = vpack.c.bf16 %v1226_v27, %v1225_v26  ;;  %v1189_v38 = vmax.f32 %v1049_v33, 0.0 }
 0x1ae   : > { %v945_v30 = vpop.f32.mrf.mxu2 }
 0x1af   : > { %2117 = vst [vmem:[%s2330_s4 + $0x110] sm:$0xff] %v2072_v28   ;;  %v1143_v31 = vpop.f32.mrf.mxu3  ;;  %v946_v36 = vadd.f32 %v2488_v63, %v945_v30 }
 0x1b0   : > { %v852_v32 = vpop.f32.mrf.mxu0 }
 0x1b1   : > { %v853_v34 = vadd.f32 %v2488_v63, %v852_v32  ;;  %v1050_v35 = vpop.f32.mrf.mxu1  ;;  %v1144_v41 = vadd.f32 %v1143_v31, %v946_v36 }
 0x1b3   : > { %v1051_v37 = vadd.f32 %v1050_v35, %v853_v34  ;;  %v1227_v48 = vmax.f32 %v1144_v41, 0.0 }
 0x1b5   : > { %v1190_v39 = vmax.f32 %v1051_v37, 0.0 }
 0x1b6   : > { %v947_v40 = vpop.f32.mrf.mxu2 }
 0x1b7   : > { %v1982_v42 = vpack.c.bf16 %v1190_v39, %v1189_v38  ;;  %v948_v43 = vadd.f32 %v2488_v63, %v947_v40  ;;  %v1145_v44 = vpop.f32.mrf.mxu3 }
 0x1b8   : > { %v855_v45 = vpop.f32.mrf.mxu0 }
 0x1b9   : > { %2099 = vst [vmem:[%s2330_s4 + $0x80] sm:$0xff] %v1982_v42   ;;  %v1146_v46 = vadd.f32 %v1145_v44, %v948_v43  ;;  %v1053_v47 = vpop.f32.mrf.mxu1  ;;  %v856_v51 = vadd.f32 %v2488_v63, %v855_v45 }
 0x1bb   : > { %v1228_v49 = vmax.f32 %v1146_v46, 0.0  ;;  %v1054_v55 = vadd.f32 %v1053_v47, %v856_v51 }
 0x1bd   : > { %v2077_v50 = vpack.c.bf16 %v1228_v49, %v1227_v48  ;;  %v1191_v60 = vmax.f32 %v1054_v55, 0.0 }
 0x1be   : > { %v950_v52 = vpop.f32.mrf.mxu2 }
 0x1bf   : > { %2118 = vst [vmem:[%s2330_s4 + $0x118] sm:$0xff] %v2077_v50   ;;  %v1148_v53 = vpop.f32.mrf.mxu3  ;;  %v951_v58 = vadd.f32 %v2488_v63, %v950_v52 }
 0x1c0   : > { %v857_v54 = vpop.f32.mrf.mxu0 }
 0x1c1   : > { %v858_v56 = vadd.f32 %v2488_v63, %v857_v54  ;;  %v1055_v57 = vpop.f32.mrf.mxu1  ;;  %v1149_v1 = vadd.f32 %v1148_v53, %v951_v58 }
 0x1c3   : > { %v1056_v59 = vadd.f32 %v1055_v57, %v858_v56  ;;  %v1229_v7 = vmax.f32 %v1149_v1, 0.0 }
 0x1c5   : > { %v1192_v62 = vmax.f32 %v1056_v59, 0.0 }
 0x1c6   : > { %v952_v0 = vpop.f32.mrf.mxu2 }
 0x1c7   : > { %v1987_v2 = vpack.c.bf16 %v1192_v62, %v1191_v60  ;;  %v953_v3 = vadd.f32 %v2488_v63, %v952_v0  ;;  %v1150_v4 = vpop.f32.mrf.mxu3 }
 0x1c8   : > { %v860_v61 = vpop.f32.mrf.mxu0 }
 0x1c9   : > { %2100 = vst [vmem:[%s2330_s4 + $0x88] sm:$0xff] %v1987_v2   ;;  %v1151_v5 = vadd.f32 %v1150_v4, %v953_v3  ;;  %v1058_v6 = vpop.f32.mrf.mxu1  ;;  %v861_v10 = vadd.f32 %v2488_v63, %v860_v61 }
 0x1cb   : > { %v1230_v8 = vmax.f32 %v1151_v5, 0.0  ;;  %v1059_v15 = vadd.f32 %v1058_v6, %v861_v10 }
 0x1cd   : > { %v2082_v9 = vpack.c.bf16 %v1230_v8, %v1229_v7  ;;  %v1193_v21 = vmax.f32 %v1059_v15, 0.0 }
 0x1ce   : > { %v955_v11 = vpop.f32.mrf.mxu2 }
 0x1cf   : > { %2119 = vst [vmem:[%s2330_s4 + $0x120] sm:$0xff] %v2082_v9   ;;  %v956_v12 = vadd.f32 %v2488_v63, %v955_v11  ;;  %v1153_v13 = vpop.f32.mrf.mxu3 }
 0x1d0   : > { %v862_v14 = vpop.f32.mrf.mxu0 }
 0x1d1   : > { %v1154_v16 = vadd.f32 %v1153_v13, %v956_v12  ;;  %v863_v17 = vadd.f32 %v2488_v63, %v862_v14  ;;  %v1060_v18 = vpop.f32.mrf.mxu1 }
 0x1d3   : > { %v1231_v19 = vmax.f32 %v1154_v16, 0.0  ;;  %v1061_v20 = vadd.f32 %v1060_v18, %v863_v17 }
 0x1d5   : > { %v1306_v22 = vpack.c.bf16 %v1231_v19, %v1231_v19  ;;  %v1194_v23 = vmax.f32 %v1061_v20, 0.0 }
 0x1d6   : > { %v957_v24 = vpop.f32.mrf.mxu2 }
 0x1d7   : > { %1381 = vst [vmem:[%s2330_s4 + $0x128] sm:$0xf] %v1306_v22  ;;  %v1992_v25 = vpack.c.bf16 %v1194_v23, %v1193_v21  ;;  %v1155_v26 = vpop.f32.mrf.mxu3 }
 0x1d9   : > { %2101 = vst [vmem:[%s2330_s4 + $0x90] sm:$0xff] %v1992_v25  }
 0x1da PF: > { %s13_s12 = sadd.s32 1, %s2152_s12  }
 0x1db   : > { %p10_p4 = scmp.ge.s32.totalorder %s13_s12, 6  }
 0x1dd   :  { %12 = sbr.rel (!%p10_p4) target bundleno = 1 (0x1), region = 62 }

// kernel: unreal_forward.5
= control target key start
LH: loop header
LB: loop body
LE: loop exit
PB: predicated region body
PF: predicated region fallthrough
CT: control target
= control target key end

     0   :  { %s2199_s1 = inlined_call_operand.vmem [shape: bf16[256,128], index: 1, kind: input, shape index: {}]   ;;  %s2200_s2 = inlined_call_operand.vmem [shape: f32[1,128], index: 2, kind: input, shape index: {}]   ;;  %s2201_s0 = inlined_call_operand.vmem [shape: bf16[488,256], index: 0, kind: input, shape index: {}]   ;;  %s2202_s3 = inlined_call_operand.vmem [shape: bf16[488,128], index: 3, kind: output, shape index: {}]  }
   0x1   :  { %v1398_v0 = vld [vmem:[%s2199_s1 + $0x38] sm:$0xff]  ;;  %v1397_v2 = vld [vmem:[%s2199_s1 + $0x30] sm:$0xff]  ;;  %v1396_v4 = vld [vmem:[%s2199_s1 + $0x28] sm:$0xff] }
   0x2   :  { %v1406_v1 = vld [vmem:[%s2199_s1 + $0x78] sm:$0xff]  ;;  %514 = vmatpush.bf16.msra.mxu0 %v1398_v0  ;;  %1586 = vmatpush.bf16.msra.mxu2 %v1398_v0  ;;  %v1405_v3 = vld [vmem:[%s2199_s1 + $0x70] sm:$0xff]  ;;  %v1404_v5 = vld [vmem:[%s2199_s1 + $0x68] sm:$0xff] }
   0x3   :  { %677 = vmatpush.bf16.msra.mxu1 %v1406_v1  ;;  %1594 = vmatpush.bf16.msra.mxu3 %v1406_v1  ;;  %v1395_v6 = vld [vmem:[%s2199_s1 + $0x20] sm:$0xff]  ;;  %v1394_v8 = vld [vmem:[%s2199_s1 + $0x18] sm:$0xff]  ;;  %v1393_v10 = vld [vmem:[%s2199_s1 + $0x10] sm:$0xff] }
   0x4   :  { %v1403_v7 = vld [vmem:[%s2199_s1 + $0x60] sm:$0xff]  ;;  %v1402_v9 = vld [vmem:[%s2199_s1 + $0x58] sm:$0xff]  ;;  %v1401_v11 = vld [vmem:[%s2199_s1 + $0x50] sm:$0xff] }
   0x5   :  { %v1392_v12 = vld [vmem:[%s2199_s1 + $0x8] sm:$0xff]  ;;  %v1391_v14 = vld [vmem:[%s2199_s1] sm:$0xff]  ;;  %v1149_v18 = vld [vmem:[%s2201_s0 + $0xf0] sm:$0xf] }
   0x6   :  { %515 = vmatpush.bf16.msra.mxu0 %v1397_v2  ;;  %1587 = vmatpush.bf16.msra.mxu2 %v1397_v2  ;;  %v1400_v13 = vld [vmem:[%s2199_s1 + $0x48] sm:$0xff]  ;;  %v1399_v15 = vld [vmem:[%s2199_s1 + $0x40] sm:$0xff]  ;;  %v1362_v19 = vld [vmem:[%s2201_s0 + $0xf4] sm:$0xf0] }
   0x7   :  { %678 = vmatpush.bf16.msra.mxu1 %v1405_v3  ;;  %1595 = vmatpush.bf16.msra.mxu3 %v1405_v3  ;;  %v1029_v16 = vld [vmem:[%s2201_s0] sm:$0xf]  ;;  %v1332_v17 = vld [vmem:[%s2201_s0 + $0x4] sm:$0xf0]  ;;  %v1331_v20 = vld [vmem:[%s2201_s0 + $0x4] sm:$0xf]  ;;  %v1150_v25 = vor.u32 %v1362_v19, %v1149_v18 }
   0x8   :  { %v1031_v21 = vld [vmem:[%s2201_s0 + $0x8] sm:$0xf0]  ;;  %v1363_v22 = vld [vmem:[%s2201_s0 + $0x104] sm:$0xf]  ;;  %v1030_v24 = vor.u32 %v1332_v17, %v1029_v16  ;;  %v1037_v28 = vld [vmem:[%s2201_s0 + $0x10] sm:$0xf] }
   0x9   :  { %v1159_v23 = vld [vmem:[%s2201_s0 + $0x108] sm:$0xf0]  ;;  %v1034_v26 = vor.u32 %v1331_v20, %v1031_v21  ;;  %v1334_v29 = vld [vmem:[%s2201_s0 + $0x14] sm:$0xf0]  ;;  %v1157_v30 = vld [vmem:[%s2201_s0 + $0x100] sm:$0xf] }
   0xa   :  { %516 = vmatpush.bf16.msra.mxu0 %v1396_v4  ;;  %1588 = vmatpush.bf16.msra.mxu2 %v1396_v4  ;;  %v1162_v27 = vor.u32 %v1363_v22, %v1159_v23  ;;  %v1364_v31 = vld [vmem:[%s2201_s0 + $0x104] sm:$0xf0]  ;;  %v1333_v32 = vld [vmem:[%s2201_s0 + $0x14] sm:$0xf]  ;;  %v1039_v33 = vld [vmem:[%s2201_s0 + $0x18] sm:$0xf0]  ;;  %v1038_v36 = vor.u32 %v1334_v29, %v1037_v28 }
   0xb   :  { %679 = vmatpush.bf16.msra.mxu1 %v1404_v5  ;;  %1596 = vmatpush.bf16.msra.mxu3 %v1404_v5  ;;  %v1365_v34 = vld [vmem:[%s2201_s0 + $0x114] sm:$0xf]  ;;  %v1167_v35 = vld [vmem:[%s2201_s0 + $0x118] sm:$0xf0]  ;;  %v1158_v37 = vor.u32 %v1364_v31, %v1157_v30  ;;  %v1042_v38 = vor.u32 %v1333_v32, %v1039_v33  ;;  %v1045_v40 = vld [vmem:[%s2201_s0 + $0x20] sm:$0xf] }
   0xc   :  { %v1170_v39 = vor.u32 %v1365_v34, %v1167_v35  ;;  %v1336_v41 = vld [vmem:[%s2201_s0 + $0x24] sm:$0xf0]  ;;  %v1165_v42 = vld [vmem:[%s2201_s0 + $0x110] sm:$0xf]  ;;  %v1366_v43 = vld [vmem:[%s2201_s0 + $0x114] sm:$0xf0] }
   0xd   :  { %v1335_v44 = vld [vmem:[%s2201_s0 + $0x24] sm:$0xf]  ;;  %v1047_v45 = vld [vmem:[%s2201_s0 + $0x28] sm:$0xf0]  ;;  %v1046_v48 = vor.u32 %v1336_v41, %v1045_v40  ;;  %v1166_v49 = vor.u32 %v1366_v43, %v1165_v42  ;;  %v1053_v52 = vld [vmem:[%s2201_s0 + $0x30] sm:$0xf] }
   0xe   :  { %517 = vmatpush.bf16.msra.mxu0 %v1395_v6  ;;  %1589 = vmatpush.bf16.msra.mxu2 %v1395_v6  ;;  %v1367_v46 = vld [vmem:[%s2201_s0 + $0x124] sm:$0xf]  ;;  %v1175_v47 = vld [vmem:[%s2201_s0 + $0x128] sm:$0xf0]  ;;  %v1050_v50 = vor.u32 %v1335_v44, %v1047_v45  ;;  %v1338_v53 = vld [vmem:[%s2201_s0 + $0x34] sm:$0xf0] }
   0xf   :  { %680 = vmatpush.bf16.msra.mxu1 %v1403_v7  ;;  %1597 = vmatpush.bf16.msra.mxu3 %v1403_v7  ;;  %v1178_v51 = vor.u32 %v1367_v46, %v1175_v47  ;;  %v1173_v54 = vld [vmem:[%s2201_s0 + $0x120] sm:$0xf]  ;;  %v1368_v55 = vld [vmem:[%s2201_s0 + $0x124] sm:$0xf0]  ;;  %v1337_v56 = vld [vmem:[%s2201_s0 + $0x34] sm:$0xf]  ;;  %v1054_v60 = vor.u32 %v1338_v53, %v1053_v52 }
  0x10   :  { %v1055_v57 = vld [vmem:[%s2201_s0 + $0x38] sm:$0xf0]  ;;  %v1369_v58 = vld [vmem:[%s2201_s0 + $0x134] sm:$0xf]  ;;  %v1174_v61 = vor.u32 %v1368_v55, %v1173_v54  ;;  %v1061_v0 = vld [vmem:[%s2201_s0 + $0x40] sm:$0xf] }
  0x11   :  { %v1183_v59 = vld [vmem:[%s2201_s0 + $0x138] sm:$0xf0]  ;;  %v1058_v62 = vor.u32 %v1337_v56, %v1055_v57  ;;  %v1340_v1 = vld [vmem:[%s2201_s0 + $0x44] sm:$0xf0]  ;;  %v1181_v2 = vld [vmem:[%s2201_s0 + $0x130] sm:$0xf] }
  0x12   :  { %518 = vmatpush.bf16.msra.mxu0 %v1394_v8  ;;  %1590 = vmatpush.bf16.msra.mxu2 %v1394_v8  ;;  %v1186_v63 = vor.u32 %v1369_v58, %v1183_v59  ;;  %v1370_v3 = vld [vmem:[%s2201_s0 + $0x134] sm:$0xf0]  ;;  %v1339_v4 = vld [vmem:[%s2201_s0 + $0x44] sm:$0xf]  ;;  %v1063_v5 = vld [vmem:[%s2201_s0 + $0x48] sm:$0xf0]  ;;  %v1062_v8 = vor.u32 %v1340_v1, %v1061_v0 }
  0x13   :  { %681 = vmatpush.bf16.msra.mxu1 %v1402_v9  ;;  %1598 = vmatpush.bf16.msra.mxu3 %v1402_v9  ;;  %v1371_v6 = vld [vmem:[%s2201_s0 + $0x144] sm:$0xf]  ;;  %v1191_v7 = vld [vmem:[%s2201_s0 + $0x148] sm:$0xf0]  ;;  %v1182_v9 = vor.u32 %v1370_v3, %v1181_v2  ;;  %v1341_v16 = vld [vmem:[%s2201_s0 + $0x54] sm:$0xf] }
  0x14   :  { %v1071_v17 = vld [vmem:[%s2201_s0 + $0x58] sm:$0xf0]  ;;  %v1373_v18 = vld [vmem:[%s2201_s0 + $0x154] sm:$0xf]  ;;  %v1343_v28 = vld [vmem:[%s2201_s0 + $0x64] sm:$0xf] }
  0x15   :  { %v1199_v19 = vld [vmem:[%s2201_s0 + $0x158] sm:$0xf0]  ;;  %v1074_v22 = vor.u32 %v1341_v16, %v1071_v17  ;;  %v1079_v29 = vld [vmem:[%s2201_s0 + $0x68] sm:$0xf0]  ;;  %v1375_v30 = vld [vmem:[%s2201_s0 + $0x164] sm:$0xf] }
  0x16   :  { %519 = vmatpush.bf16.msra.mxu0 %v1393_v10  ;;  %1591 = vmatpush.bf16.msra.mxu2 %v1393_v10  ;;  %v1066_v10 = vor.u32 %v1339_v4, %v1063_v5  ;;  %v1202_v23 = vor.u32 %v1373_v18, %v1199_v19  ;;  %v1207_v31 = vld [vmem:[%s2201_s0 + $0x168] sm:$0xf0]  ;;  %v1082_v34 = vor.u32 %v1343_v28, %v1079_v29  ;;  %v1345_v40 = vld [vmem:[%s2201_s0 + $0x74] sm:$0xf]  ;;  %v1087_v41 = vld [vmem:[%s2201_s0 + $0x78] sm:$0xf0] }
  0x17   :  { %682 = vmatpush.bf16.msra.mxu1 %v1401_v11  ;;  %1599 = vmatpush.bf16.msra.mxu3 %v1401_v11  ;;  %v1194_v11 = vor.u32 %v1371_v6, %v1191_v7  ;;  %v1210_v35 = vor.u32 %v1375_v30, %v1207_v31  ;;  %v1377_v42 = vld [vmem:[%s2201_s0 + $0x174] sm:$0xf]  ;;  %v1215_v43 = vld [vmem:[%s2201_s0 + $0x178] sm:$0xf0]  ;;  %v1090_v46 = vor.u32 %v1345_v40, %v1087_v41  ;;  %v1347_v52 = vld [vmem:[%s2201_s0 + $0x84] sm:$0xf] }
  0x18   :  { %v1218_v47 = vor.u32 %v1377_v42, %v1215_v43  ;;  %v1095_v53 = vld [vmem:[%s2201_s0 + $0x88] sm:$0xf0]  ;;  %v1379_v54 = vld [vmem:[%s2201_s0 + $0x184] sm:$0xf]  ;;  %v1101_v7 = vld [vmem:[%s2201_s0 + $0x90] sm:$0xf] }
  0x19   :  { %v1223_v55 = vld [vmem:[%s2201_s0 + $0x188] sm:$0xf0]  ;;  %v1098_v59 = vor.u32 %v1347_v52, %v1095_v53  ;;  %v1231_v16 = vld [vmem:[%s2201_s0 + $0x198] sm:$0xf0]  ;;  %v1383_v43 = vld [vmem:[%s2201_s0 + $0x1a4] sm:$0xf] }
  0x1a   :  { %520 = vmatpush.bf16.msra.mxu0 %v1392_v12  ;;  %1592 = vmatpush.bf16.msra.mxu2 %v1392_v12  ;;  %v1069_v12 = vld [vmem:[%s2201_s0 + $0x50] sm:$0xf]  ;;  %v1111_v40 = vld [vmem:[%s2201_s0 + $0xa8] sm:$0xf0] }
  0x1b   :  { %683 = vmatpush.bf16.msra.mxu1 %v1400_v13  ;;  %1600 = vmatpush.bf16.msra.mxu3 %v1400_v13  ;;  %v1342_v13 = vld [vmem:[%s2201_s0 + $0x54] sm:$0xf0] }
  0x1c   :  { %v1070_v20 = vor.u32 %v1342_v13, %v1069_v12  ;;  %v1103_v12 = vld [vmem:[%s2201_s0 + $0x98] sm:$0xf0] }
  0x1e   :  { %521 = vmatpush.bf16.msra.mxu0 %v1391_v14  ;;  %1593 = vmatpush.bf16.msra.mxu2 %v1391_v14  ;;  %v1189_v14 = vld [vmem:[%s2201_s0 + $0x140] sm:$0xf] }
  0x1f   :  { %684 = vmatpush.bf16.msra.mxu1 %v1399_v15  ;;  %1601 = vmatpush.bf16.msra.mxu3 %v1399_v15  ;;  %v1372_v15 = vld [vmem:[%s2201_s0 + $0x144] sm:$0xf0] }
  0x20   :  { %v1190_v21 = vor.u32 %v1372_v15, %v1189_v14  ;;  %v1381_v15 = vld [vmem:[%s2201_s0 + $0x194] sm:$0xf] }
  0x21   :  { %522 = vmatmul.bf16.vlgmr.msra.gmra.mxu0 %v1030_v24  ;;  %597 = vmatmul.bf16.vlgmr.msra.gmra.mxu2 %v1150_v25  ;;  %v1077_v24 = vld [vmem:[%s2201_s0 + $0x60] sm:$0xf]  ;;  %v1344_v25 = vld [vmem:[%s2201_s0 + $0x64] sm:$0xf0] }
  0x22   :  { %685 = vmatmul.bf16.vlgmr.msra.gmra.mxu1 %v1034_v26  ;;  %765 = vmatmul.bf16.vlgmr.msra.gmra.mxu3 %v1162_v27  ;;  %v1197_v26 = vld [vmem:[%s2201_s0 + $0x150] sm:$0xf]  ;;  %v1374_v27 = vld [vmem:[%s2201_s0 + $0x154] sm:$0xf0]  ;;  %v1078_v32 = vor.u32 %v1344_v25, %v1077_v24  ;;  %v1234_v24 = vor.u32 %v1381_v15, %v1231_v16  ;;  %v1385_v15 = vld [vmem:[%s2201_s0 + $0x1b4] sm:$0xf] }
  0x23   :  { %v1198_v33 = vor.u32 %v1374_v27, %v1197_v26  ;;  %v1247_v16 = vld [vmem:[%s2201_s0 + $0x1b8] sm:$0xf0] }
  0x31   :  { %527 = vmatmul.bf16.gmra.mxu0 %v1038_v36  ;;  %602 = vmatmul.bf16.gmra.mxu2 %v1158_v37  ;;  %v1085_v36 = vld [vmem:[%s2201_s0 + $0x70] sm:$0xf]  ;;  %v1346_v37 = vld [vmem:[%s2201_s0 + $0x74] sm:$0xf0] }
  0x32   :  { %690 = vmatmul.bf16.gmra.mxu1 %v1042_v38  ;;  %770 = vmatmul.bf16.gmra.mxu3 %v1170_v39  ;;  %v1205_v38 = vld [vmem:[%s2201_s0 + $0x160] sm:$0xf]  ;;  %v1376_v39 = vld [vmem:[%s2201_s0 + $0x164] sm:$0xf0]  ;;  %v1086_v44 = vor.u32 %v1346_v37, %v1085_v36  ;;  %v1229_v37 = vld [vmem:[%s2201_s0 + $0x190] sm:$0xf] }
  0x33   :  { %v1206_v45 = vor.u32 %v1376_v39, %v1205_v38  ;;  %v1352_v36 = vld [vmem:[%s2201_s0 + $0xa4] sm:$0xf0]  ;;  %v1382_v38 = vld [vmem:[%s2201_s0 + $0x194] sm:$0xf0]  ;;  %v1351_v39 = vld [vmem:[%s2201_s0 + $0xa4] sm:$0xf] }
  0x34   :  { %v1114_v53 = vor.u32 %v1351_v39, %v1111_v40 }
  0x41   :  { %532 = vmatmul.bf16.gmra.mxu0 %v1046_v48  ;;  %607 = vmatmul.bf16.gmra.mxu2 %v1166_v49  ;;  %v1093_v48 = vld [vmem:[%s2201_s0 + $0x80] sm:$0xf]  ;;  %v1348_v49 = vld [vmem:[%s2201_s0 + $0x84] sm:$0xf0] }
  0x42   :  { %695 = vmatmul.bf16.gmra.mxu1 %v1050_v50  ;;  %775 = vmatmul.bf16.gmra.mxu3 %v1178_v51  ;;  %v1213_v50 = vld [vmem:[%s2201_s0 + $0x170] sm:$0xf]  ;;  %v1378_v51 = vld [vmem:[%s2201_s0 + $0x174] sm:$0xf0]  ;;  %v1094_v56 = vor.u32 %v1348_v49, %v1093_v48 }
  0x43   :  { %v1214_v57 = vor.u32 %v1378_v51, %v1213_v50  ;;  %v1230_v50 = vor.u32 %v1382_v38, %v1229_v37 }
  0x51   :  { %537 = vmatmul.bf16.gmra.mxu0 %v1054_v60  ;;  %612 = vmatmul.bf16.gmra.mxu2 %v1174_v61  ;;  %v1226_v60 = vor.u32 %v1379_v54, %v1223_v55  ;;  %v1890_v61 = vld [vmem:[%s2200_s2] ss:$0 sm:$0xff] }
  0x52   :  { %700 = vmatmul.bf16.gmra.mxu1 %v1058_v62  ;;  %780 = vmatmul.bf16.gmra.mxu3 %v1186_v63 }
  0x61   :  { %542 = vmatmul.bf16.gmra.mxu0 %v1062_v8  ;;  %617 = vmatmul.bf16.gmra.mxu2 %v1182_v9  ;;  %v1350_v8 = vld [vmem:[%s2201_s0 + $0x94] sm:$0xf0]  ;;  %v1221_v9 = vld [vmem:[%s2201_s0 + $0x180] sm:$0xf] }
  0x62   :  { %705 = vmatmul.bf16.gmra.mxu1 %v1066_v10  ;;  %785 = vmatmul.bf16.gmra.mxu3 %v1194_v11  ;;  %v1380_v10 = vld [vmem:[%s2201_s0 + $0x184] sm:$0xf0]  ;;  %v1349_v11 = vld [vmem:[%s2201_s0 + $0x94] sm:$0xf]  ;;  %v1102_v19 = vor.u32 %v1350_v8, %v1101_v7  ;;  %v1117_v7 = vld [vmem:[%s2201_s0 + $0xb0] sm:$0xf] }
  0x63   :  { %v1354_v8 = vld [vmem:[%s2201_s0 + $0xb4] sm:$0xf0] }
  0x71   :  { %547 = vmatmul.bf16.gmra.mxu0 %v1070_v20  ;;  %622 = vmatmul.bf16.gmra.mxu2 %v1190_v21  ;;  %v1222_v20 = vor.u32 %v1380_v10, %v1221_v9  ;;  %v1237_v9 = vld [vmem:[%s2201_s0 + $0x1a0] sm:$0xf]  ;;  %v1384_v10 = vld [vmem:[%s2201_s0 + $0x1a4] sm:$0xf0] }
  0x72   :  { %710 = vmatmul.bf16.gmra.mxu1 %v1074_v22  ;;  %790 = vmatmul.bf16.gmra.mxu3 %v1202_v23  ;;  %v1106_v23 = vor.u32 %v1349_v11, %v1103_v12  ;;  %v1353_v11 = vld [vmem:[%s2201_s0 + $0xb4] sm:$0xf]  ;;  %v1119_v12 = vld [vmem:[%s2201_s0 + $0xb8] sm:$0xf0] }
  0x81   :  { %552 = vmatmul.bf16.gmra.mxu0 %v1078_v32  ;;  %627 = vmatmul.bf16.gmra.mxu2 %v1198_v33 }
  0x82   :  { %715 = vmatmul.bf16.gmra.mxu1 %v1082_v34  ;;  %795 = vmatmul.bf16.gmra.mxu3 %v1210_v35  ;;  %v1109_v35 = vld [vmem:[%s2201_s0 + $0xa0] sm:$0xf] }
  0x91   :  { %557 = vmatmul.bf16.gmra.mxu0 %v1086_v44  ;;  %632 = vmatmul.bf16.gmra.mxu2 %v1206_v45  ;;  %v1239_v44 = vld [vmem:[%s2201_s0 + $0x1a8] sm:$0xf0] }
  0x92   :  { %720 = vmatmul.bf16.gmra.mxu1 %v1090_v46  ;;  %800 = vmatmul.bf16.gmra.mxu3 %v1218_v47  ;;  %v1110_v46 = vor.u32 %v1352_v36, %v1109_v35  ;;  %v1242_v54 = vor.u32 %v1383_v43, %v1239_v44  ;;  %v1356_v43 = vld [vmem:[%s2201_s0 + $0xc4] sm:$0xf0]  ;;  %v1245_v44 = vld [vmem:[%s2201_s0 + $0x1b0] sm:$0xf] }
  0x9e   :  { %v523_v58 = vpop.f32.mrf.mxu0 }
  0x9f   :  { %v686_v62 = vpop.f32.mrf.mxu1  ;;  %v524_v63 = vadd.f32 %v1890_v61, %v523_v58 }
  0xa1   :  { %562 = vmatmul.bf16.gmra.mxu0 %v1094_v56  ;;  %637 = vmatmul.bf16.gmra.mxu2 %v1214_v57  ;;  %v687_v3 = vadd.f32 %v686_v62, %v524_v63 }
  0xa2   :  { %725 = vmatmul.bf16.gmra.mxu1 %v1098_v59  ;;  %805 = vmatmul.bf16.gmra.mxu3 %v1226_v60 }
  0xa3   :  { %v840_v13 = vmax.f32 %v687_v3, 0.0 }
  0xa4   :  { %v1893_v0 = vpop.f32.mrf.mxu2 }
  0xa5   :  { %v766_v1 = vpop.f32.mrf.mxu3 }
  0xa6   :  { %v525_v2 = vpop.f32.mrf.mxu0 }
  0xa7   :  { %v526_v4 = vadd.f32 %v1890_v61, %v525_v2  ;;  %v688_v5 = vpop.f32.mrf.mxu1 }
  0xa9   :  { %v689_v6 = vadd.f32 %v688_v5, %v526_v4 }
  0xab   :  { %v841_v14 = vmax.f32 %v689_v6, 0.0 }
  0xac   :  { %v1920_v17 = vpop.f32.mrf.mxu2 }
  0xad   :  { %v1410_v18 = vpack.c.bf16 %v841_v14, %v840_v13  ;;  %v768_v21 = vpop.f32.mrf.mxu3 }
  0xae   :  { %v528_v22 = vpop.f32.mrf.mxu0 }
  0xaf   :  { %1411 = vst [vmem:[%s2202_s3] sm:$0xff] %v1410_v18   ;;  %v691_v25 = vpop.f32.mrf.mxu1  ;;  %v529_v26 = vadd.f32 %v1890_v61, %v528_v22 }
  0xb1   :  { %567 = vmatmul.bf16.gmra.mxu0 %v1102_v19  ;;  %642 = vmatmul.bf16.gmra.mxu2 %v1222_v20  ;;  %v692_v30 = vadd.f32 %v691_v25, %v529_v26  ;;  %v1118_v19 = vor.u32 %v1354_v8, %v1117_v7  ;;  %v1122_v26 = vor.u32 %v1353_v11, %v1119_v12 }
  0xb2   :  { %730 = vmatmul.bf16.gmra.mxu1 %v1106_v23  ;;  %810 = vmatmul.bf16.gmra.mxu3 %v1234_v24  ;;  %v1238_v23 = vor.u32 %v1384_v10, %v1237_v9 }
  0xb3   :  { %v842_v41 = vmax.f32 %v692_v30, 0.0 }
  0xb4   :  { %v603_v27 = vpop.f32.mrf.mxu2 }
  0xb5   :  { %v771_v28 = vpop.f32.mrf.mxu3  ;;  %v604_v33 = vadd.f32 %v1890_v61, %v603_v27  ;;  %v1250_v27 = vor.u32 %v1385_v15, %v1247_v16  ;;  %v1358_v15 = vld [vmem:[%s2201_s0 + $0xd4] sm:$0xf0]  ;;  %v1253_v16 = vld [vmem:[%s2201_s0 + $0x1c0] sm:$0xf] }
  0xb6   :  { %v530_v29 = vpop.f32.mrf.mxu0 }
  0xb7   :  { %v531_v31 = vadd.f32 %v1890_v61, %v530_v29  ;;  %v693_v32 = vpop.f32.mrf.mxu1  ;;  %v767_v47 = vadd.f32 %v766_v1, %v604_v33 }
  0xb9   :  { %v694_v34 = vadd.f32 %v693_v32, %v531_v31  ;;  %v872_v57 = vmax.f32 %v767_v47, 0.0  ;;  %v1127_v47 = vld [vmem:[%s2201_s0 + $0xc8] sm:$0xf0] }
  0xbb   :  { %v843_v42 = vmax.f32 %v694_v34, 0.0 }
  0xbc   :  { %v605_v45 = vpop.f32.mrf.mxu2 }
  0xbd   :  { %v1415_v48 = vpack.c.bf16 %v843_v42, %v842_v41  ;;  %v606_v49 = vadd.f32 %v1890_v61, %v605_v45  ;;  %v773_v51 = vpop.f32.mrf.mxu3  ;;  %v1125_v42 = vld [vmem:[%s2201_s0 + $0xc0] sm:$0xf]  ;;  %v1386_v45 = vld [vmem:[%s2201_s0 + $0x1b4] sm:$0xf0] }
  0xbe   :  { %v533_v52 = vpop.f32.mrf.mxu0 }
  0xbf   :  { %1557 = vst [vmem:[%s2202_s3 + $0x8] sm:$0xff] %v1415_v48   ;;  %v769_v55 = vadd.f32 %v768_v21, %v606_v49  ;;  %v696_v56 = vpop.f32.mrf.mxu1  ;;  %v534_v60 = vadd.f32 %v1890_v61, %v533_v52 }
  0xc1   :  { %v873_v58 = vmax.f32 %v769_v55, 0.0  ;;  %572 = vmatmul.bf16.gmra.mxu0 %v1110_v46  ;;  %647 = vmatmul.bf16.gmra.mxu2 %v1230_v50  ;;  %v697_v2 = vadd.f32 %v696_v56, %v534_v60  ;;  %v1355_v46 = vld [vmem:[%s2201_s0 + $0xc4] sm:$0xf] }
  0xc2   :  { %735 = vmatmul.bf16.gmra.mxu1 %v1114_v53  ;;  %815 = vmatmul.bf16.gmra.mxu3 %v1242_v54  ;;  %v1387_v50 = vld [vmem:[%s2201_s0 + $0x1c4] sm:$0xf]  ;;  %v1126_v53 = vor.u32 %v1356_v43, %v1125_v42  ;;  %v1130_v60 = vor.u32 %v1355_v46, %v1127_v47 }
  0xc3   :  { %v1490_v59 = vpack.c.bf16 %v873_v58, %v872_v57  ;;  %v844_v13 = vmax.f32 %v697_v2, 0.0  ;;  %v1246_v57 = vor.u32 %v1386_v45, %v1245_v44  ;;  %v74_v47 = vld [vmem:[%s2201_s0 + $0x1e0] sm:$0xff] }
  0xc4   :  { %v608_v62 = vpop.f32.mrf.mxu2 }
  0xc5   :  { %1572 = vst [vmem:[%s2202_s3 + $0x80] sm:$0xff] %v1490_v59   ;;  %v776_v63 = vpop.f32.mrf.mxu3  ;;  %v609_v5 = vadd.f32 %v1890_v61, %v608_v62 }
  0xc6   :  { %v535_v1 = vpop.f32.mrf.mxu0 }
  0xc7   :  { %v536_v3 = vadd.f32 %v1890_v61, %v535_v1  ;;  %v698_v4 = vpop.f32.mrf.mxu1  ;;  %v772_v20 = vadd.f32 %v771_v28, %v609_v5 }
  0xc9   :  { %v699_v6 = vadd.f32 %v698_v4, %v536_v3  ;;  %v874_v31 = vmax.f32 %v772_v20, 0.0  ;;  %v1135_v20 = vld [vmem:[%s2201_s0 + $0xd8] sm:$0xf0] }
  0xcb   :  { %v845_v14 = vmax.f32 %v699_v6, 0.0 }
  0xcc   :  { %v610_v18 = vpop.f32.mrf.mxu2 }
  0xcd   :  { %v1420_v21 = vpack.c.bf16 %v845_v14, %v844_v13  ;;  %v611_v22 = vadd.f32 %v1890_v61, %v610_v18  ;;  %v778_v24 = vpop.f32.mrf.mxu3  ;;  %v1133_v14 = vld [vmem:[%s2201_s0 + $0xd0] sm:$0xf]  ;;  %v1388_v18 = vld [vmem:[%s2201_s0 + $0x1c4] sm:$0xf0] }
  0xce   :  { %v538_v25 = vpop.f32.mrf.mxu0 }
  0xcf   :  { %1558 = vst [vmem:[%s2202_s3 + $0x10] sm:$0xff] %v1420_v21   ;;  %v774_v29 = vadd.f32 %v773_v51, %v611_v22  ;;  %v701_v30 = vpop.f32.mrf.mxu1  ;;  %v539_v33 = vadd.f32 %v1890_v61, %v538_v25  ;;  %v1255_v51 = vld [vmem:[%s2201_s0 + $0x1c8] sm:$0xf0] }
  0xd0   :  { %v1258_v62 = vor.u32 %v1387_v50, %v1255_v51  ;;  %v1141_v50 = vld [vmem:[%s2201_s0 + $0xe0] sm:$0xf]  ;;  %v1360_v51 = vld [vmem:[%s2201_s0 + $0xe4] sm:$0xf0] }
  0xd1   :  { %v875_v32 = vmax.f32 %v774_v29, 0.0  ;;  %577 = vmatmul.bf16.gmra.mxu0 %v1118_v19  ;;  %652 = vmatmul.bf16.gmra.mxu2 %v1238_v23  ;;  %v702_v37 = vadd.f32 %v701_v30, %v539_v33  ;;  %v1357_v19 = vld [vmem:[%s2201_s0 + $0xd4] sm:$0xf] }
  0xd2   :  { %740 = vmatmul.bf16.gmra.mxu1 %v1122_v26  ;;  %820 = vmatmul.bf16.gmra.mxu3 %v1250_v27  ;;  %v1389_v23 = vld [vmem:[%s2201_s0 + $0x1d4] sm:$0xf]  ;;  %v1134_v26 = vor.u32 %v1358_v15, %v1133_v14  ;;  %v1138_v33 = vor.u32 %v1357_v19, %v1135_v20 }
  0xd3   :  { %v1495_v28 = vpack.c.bf16 %v875_v32, %v874_v31  ;;  %v846_v48 = vmax.f32 %v702_v37, 0.0  ;;  %v1254_v31 = vor.u32 %v1388_v18, %v1253_v16 }
  0xd4   :  { %v613_v34 = vpop.f32.mrf.mxu2 }
  0xd5   :  { %1573 = vst [vmem:[%s2202_s3 + $0x88] sm:$0xff] %v1495_v28   ;;  %v781_v35 = vpop.f32.mrf.mxu3  ;;  %v614_v40 = vadd.f32 %v1890_v61, %v613_v34 }
  0xd6   :  { %v540_v36 = vpop.f32.mrf.mxu0 }
  0xd7   :  { %v541_v38 = vadd.f32 %v1890_v61, %v540_v36  ;;  %v703_v39 = vpop.f32.mrf.mxu1  ;;  %v777_v54 = vadd.f32 %v776_v63, %v614_v40 }
  0xd9   :  { %v704_v41 = vadd.f32 %v703_v39, %v541_v38  ;;  %v876_v3 = vmax.f32 %v777_v54, 0.0  ;;  %v293_v54 = vunpack.c.h.b16 %v74_v47 }
  0xdb   :  { %v847_v49 = vmax.f32 %v704_v41, 0.0 }
  0xdc   :  { %v615_v52 = vpop.f32.mrf.mxu2 }
  0xdd   :  { %v1425_v55 = vpack.c.bf16 %v847_v49, %v846_v48  ;;  %v616_v56 = vadd.f32 %v1890_v61, %v615_v52  ;;  %v783_v58 = vpop.f32.mrf.mxu3  ;;  %v1261_v52 = vld [vmem:[%s2201_s0 + $0x1d0] sm:$0xf] }
  0xde   :  { %v543_v59 = vpop.f32.mrf.mxu0 }
  0xdf   :  { %1559 = vst [vmem:[%s2202_s3 + $0x18] sm:$0xff] %v1425_v55   ;;  %v779_v1 = vadd.f32 %v778_v24, %v616_v56  ;;  %v706_v2 = vpop.f32.mrf.mxu1  ;;  %v544_v5 = vadd.f32 %v1890_v61, %v543_v59  ;;  %v1263_v24 = vld [vmem:[%s2201_s0 + $0x1d8] sm:$0xf0] }
  0xe0   :  { %v1266_v34 = vor.u32 %v1389_v23, %v1263_v24 }
  0xe1   :  { %v877_v4 = vmax.f32 %v779_v1, 0.0  ;;  %582 = vmatmul.bf16.gmra.mxu0 %v1126_v53  ;;  %657 = vmatmul.bf16.gmra.mxu2 %v1246_v57  ;;  %v707_v9 = vadd.f32 %v706_v2, %v544_v5  ;;  %v1390_v53 = vld [vmem:[%s2201_s0 + $0x1d4] sm:$0xf0]  ;;  %v1359_v57 = vld [vmem:[%s2201_s0 + $0xe4] sm:$0xf] }
  0xe2   :  { %745 = vmatmul.bf16.gmra.mxu1 %v1130_v60  ;;  %825 = vmatmul.bf16.gmra.mxu3 %v1258_v62  ;;  %v1142_v60 = vor.u32 %v1360_v51, %v1141_v50 }
  0xe3   :  { %v1500_v63 = vpack.c.bf16 %v877_v4, %v876_v3  ;;  %v848_v21 = vmax.f32 %v707_v9, 0.0  ;;  %v1262_v3 = vor.u32 %v1390_v53, %v1261_v52 }
  0xe4   :  { %v618_v6 = vpop.f32.mrf.mxu2 }
  0xe5   :  { %1574 = vst [vmem:[%s2202_s3 + $0x90] sm:$0xff] %v1500_v63   ;;  %v786_v7 = vpop.f32.mrf.mxu3  ;;  %v619_v12 = vadd.f32 %v1890_v61, %v618_v6  ;;  %v355_v6 = vpack.c.b16 %v293_v54, %v293_v54 }
  0xe6   :  { %v545_v8 = vpop.f32.mrf.mxu0 }
  0xe7   :  { %v546_v10 = vadd.f32 %v1890_v61, %v545_v8  ;;  %v708_v11 = vpop.f32.mrf.mxu1  ;;  %v782_v27 = vadd.f32 %v781_v35, %v619_v12 }
  0xe9   :  { %v709_v13 = vadd.f32 %v708_v11, %v546_v10  ;;  %v878_v38 = vmax.f32 %v782_v27, 0.0 }
  0xeb   :  { %v849_v22 = vmax.f32 %v709_v13, 0.0 }
  0xec   :  { %v620_v25 = vpop.f32.mrf.mxu2 }
  0xed   :  { %v1430_v29 = vpack.c.bf16 %v849_v22, %v848_v21  ;;  %v621_v30 = vadd.f32 %v1890_v61, %v620_v25  ;;  %v788_v32 = vpop.f32.mrf.mxu3  ;;  %v292_v22 = vunpack.c.l.b16 %v74_v47  ;;  %v1361_v25 = vld [vmem:[%s2201_s0 + $0xf4] sm:$0xf] }
  0xee   :  { %v548_v28 = vpop.f32.mrf.mxu0 }
  0xef   :  { %1560 = vst [vmem:[%s2202_s3 + $0x20] sm:$0xff] %v1430_v29   ;;  %v784_v36 = vadd.f32 %v783_v58, %v621_v30  ;;  %v711_v37 = vpop.f32.mrf.mxu1  ;;  %v549_v40 = vadd.f32 %v1890_v61, %v548_v28  ;;  %v1143_v58 = vld [vmem:[%s2201_s0 + $0xe8] sm:$0xf0] }
  0xf0   :  { %v1146_v5 = vor.u32 %v1359_v57, %v1143_v58 }
  0xf1   :  { %v879_v39 = vmax.f32 %v784_v36, 0.0  ;;  %587 = vmatmul.bf16.gmra.mxu0 %v1134_v26  ;;  %662 = vmatmul.bf16.gmra.mxu2 %v1254_v31  ;;  %v712_v44 = vadd.f32 %v711_v37, %v549_v40  ;;  %v1151_v26 = vld [vmem:[%s2201_s0 + $0xf8] sm:$0xf0] }
  0xf2   :  { %750 = vmatmul.bf16.gmra.mxu1 %v1138_v33  ;;  %830 = vmatmul.bf16.gmra.mxu3 %v1266_v34  ;;  %v1154_v34 = vor.u32 %v1361_v25, %v1151_v26 }
  0xf3   :  { %v1505_v35 = vpack.c.bf16 %v879_v39, %v878_v38  ;;  %v850_v55 = vmax.f32 %v712_v44, 0.0 }
  0xf4   :  { %v623_v41 = vpop.f32.mrf.mxu2 }
  0xf5   :  { %1575 = vst [vmem:[%s2202_s3 + $0x98] sm:$0xff] %v1505_v35   ;;  %v791_v42 = vpop.f32.mrf.mxu3  ;;  %v624_v48 = vadd.f32 %v1890_v61, %v623_v41 }
  0xf6   :  { %v550_v43 = vpop.f32.mrf.mxu0 }
  0xf7   :  { %v551_v45 = vadd.f32 %v1890_v61, %v550_v43  ;;  %v713_v46 = vpop.f32.mrf.mxu1  ;;  %v787_v62 = vadd.f32 %v786_v7, %v624_v48 }
  0xf9   :  { %v714_v49 = vadd.f32 %v713_v46, %v551_v45  ;;  %v880_v10 = vmax.f32 %v787_v62, 0.0 }
  0xfb   :  { %v851_v56 = vmax.f32 %v714_v49, 0.0 }
  0xfc   :  { %v625_v59 = vpop.f32.mrf.mxu2 }
  0xfd   :  { %v1435_v1 = vpack.c.bf16 %v851_v56, %v850_v55  ;;  %v626_v2 = vadd.f32 %v1890_v61, %v625_v59  ;;  %v793_v4 = vpop.f32.mrf.mxu3 }
  0xfe   :  { %v553_v63 = vpop.f32.mrf.mxu0 }
  0xff   :  { %1561 = vst [vmem:[%s2202_s3 + $0x28] sm:$0xff] %v1435_v1   ;;  %v789_v8 = vadd.f32 %v788_v32, %v626_v2  ;;  %v716_v9 = vpop.f32.mrf.mxu1  ;;  %v554_v12 = vadd.f32 %v1890_v61, %v553_v63  ;;  %v354_v32 = vpack.c.b16 %v292_v22, %v292_v22 }
 0x101   :  { %v881_v11 = vmax.f32 %v789_v8, 0.0  ;;  %592 = vmatmul.bf16.gmra.mxu0 %v1142_v60  ;;  %667 = vmatmul.bf16.gmra.mxu2 %v1262_v3  ;;  %v717_v16 = vadd.f32 %v716_v9, %v554_v12 }
 0x102   :  { %755 = vmatmul.bf16.gmra.mxu1 %v1146_v5  ;;  %835 = vmatmul.bf16.gmra.mxu3 %v355_v6 }
 0x103   :  { %v1510_v7 = vpack.c.bf16 %v881_v11, %v880_v10  ;;  %v852_v23 = vmax.f32 %v717_v16, 0.0 }
 0x104   :  { %v628_v13 = vpop.f32.mrf.mxu2 }
 0x105   :  { %1576 = vst [vmem:[%s2202_s3 + $0xa0] sm:$0xff] %v1510_v7   ;;  %v796_v14 = vpop.f32.mrf.mxu3  ;;  %v629_v20 = vadd.f32 %v1890_v61, %v628_v13 }
 0x106   :  { %v555_v15 = vpop.f32.mrf.mxu0 }
 0x107   :  { %v556_v18 = vadd.f32 %v1890_v61, %v555_v15  ;;  %v718_v19 = vpop.f32.mrf.mxu1  ;;  %v792_v29 = vadd.f32 %v791_v42, %v629_v20 }
 0x109   :  { %v719_v21 = vadd.f32 %v718_v19, %v556_v18  ;;  %v882_v38 = vmax.f32 %v792_v29, 0.0 }
 0x10b   :  { %v853_v24 = vmax.f32 %v719_v21, 0.0 }
 0x10c   :  { %v630_v27 = vpop.f32.mrf.mxu2 }
 0x10d   :  { %v1440_v30 = vpack.c.bf16 %v853_v24, %v852_v23  ;;  %v631_v31 = vadd.f32 %v1890_v61, %v630_v27  ;;  %v798_v28 = vpop.f32.mrf.mxu3 }
 0x10e   :  { %v558_v33 = vpop.f32.mrf.mxu0 }
 0x10f   :  { %1562 = vst [vmem:[%s2202_s3 + $0x30] sm:$0xff] %v1440_v30   ;;  %v794_v36 = vadd.f32 %v793_v4, %v631_v31  ;;  %v721_v37 = vpop.f32.mrf.mxu1  ;;  %v559_v40 = vadd.f32 %v1890_v61, %v558_v33 }
 0x111   :  { %v883_v39 = vmax.f32 %v794_v36, 0.0  ;;  %672 = vmatmul.bf16.gmra.mxu2 %v354_v32  ;;  %v722_v44 = vadd.f32 %v721_v37, %v559_v40 }
 0x112   :  { %760 = vmatmul.bf16.gmra.mxu1 %v1154_v34 }
 0x113   :  { %v1515_v35 = vpack.c.bf16 %v883_v39, %v882_v38  ;;  %v854_v49 = vmax.f32 %v722_v44, 0.0 }
 0x114   :  { %v633_v41 = vpop.f32.mrf.mxu2 }
 0x115   :  { %1577 = vst [vmem:[%s2202_s3 + $0xa8] sm:$0xff] %v1515_v35   ;;  %v801_v42 = vpop.f32.mrf.mxu3  ;;  %v634_v47 = vadd.f32 %v1890_v61, %v633_v41 }
 0x116   :  { %v560_v43 = vpop.f32.mrf.mxu0 }
 0x117   :  { %v561_v45 = vadd.f32 %v1890_v61, %v560_v43  ;;  %v723_v46 = vpop.f32.mrf.mxu1  ;;  %v797_v52 = vadd.f32 %v796_v14, %v634_v47 }
 0x119   :  { %v724_v48 = vadd.f32 %v723_v46, %v561_v45  ;;  %v884_v59 = vmax.f32 %v797_v52, 0.0 }
 0x11b   :  { %v855_v50 = vmax.f32 %v724_v48, 0.0 }
 0x11c   :  { %v635_v51 = vpop.f32.mrf.mxu2 }
 0x11d   :  { %v1445_v53 = vpack.c.bf16 %v855_v50, %v854_v49  ;;  %v636_v54 = vadd.f32 %v1890_v61, %v635_v51  ;;  %v803_v55 = vpop.f32.mrf.mxu3 }
 0x11e   :  { %v563_v56 = vpop.f32.mrf.mxu0 }
 0x11f   :  { %1563 = vst [vmem:[%s2202_s3 + $0x38] sm:$0xff] %v1445_v53   ;;  %v799_v57 = vadd.f32 %v798_v28, %v636_v54  ;;  %v726_v58 = vpop.f32.mrf.mxu1  ;;  %v564_v1 = vadd.f32 %v1890_v61, %v563_v56 }
 0x121   :  { %v885_v60 = vmax.f32 %v799_v57, 0.0  ;;  %v727_v63 = vadd.f32 %v726_v58, %v564_v1 }
 0x123   :  { %v1520_v62 = vpack.c.bf16 %v885_v60, %v884_v59  ;;  %v856_v10 = vmax.f32 %v727_v63, 0.0 }
 0x124   :  { %v638_v2 = vpop.f32.mrf.mxu2 }
 0x125   :  { %1578 = vst [vmem:[%s2202_s3 + $0xb0] sm:$0xff] %v1520_v62   ;;  %v806_v3 = vpop.f32.mrf.mxu3  ;;  %v639_v8 = vadd.f32 %v1890_v61, %v638_v2 }
 0x126   :  { %v565_v4 = vpop.f32.mrf.mxu0 }
 0x127   :  { %v566_v5 = vadd.f32 %v1890_v61, %v565_v4  ;;  %v728_v6 = vpop.f32.mrf.mxu1  ;;  %v802_v12 = vadd.f32 %v801_v42, %v639_v8 }
 0x129   :  { %v729_v9 = vadd.f32 %v728_v6, %v566_v5  ;;  %v886_v20 = vmax.f32 %v802_v12, 0.0 }
 0x12b   :  { %v857_v11 = vmax.f32 %v729_v9, 0.0 }
 0x12c   :  { %v640_v7 = vpop.f32.mrf.mxu2 }
 0x12d   :  { %v1450_v13 = vpack.c.bf16 %v857_v11, %v856_v10  ;;  %v641_v14 = vadd.f32 %v1890_v61, %v640_v7  ;;  %v808_v15 = vpop.f32.mrf.mxu3 }
 0x12e   :  { %v568_v16 = vpop.f32.mrf.mxu0 }
 0x12f   :  { %1564 = vst [vmem:[%s2202_s3 + $0x40] sm:$0xff] %v1450_v13   ;;  %v804_v18 = vadd.f32 %v803_v55, %v641_v14  ;;  %v731_v19 = vpop.f32.mrf.mxu1  ;;  %v569_v23 = vadd.f32 %v1890_v61, %v568_v16 }
 0x131   :  { %v887_v21 = vmax.f32 %v804_v18, 0.0  ;;  %v732_v27 = vadd.f32 %v731_v19, %v569_v23 }
 0x133   :  { %v1525_v22 = vpack.c.bf16 %v887_v21, %v886_v20  ;;  %v858_v28 = vmax.f32 %v732_v27, 0.0 }
 0x134   :  { %v643_v24 = vpop.f32.mrf.mxu2 }
 0x135   :  { %1579 = vst [vmem:[%s2202_s3 + $0xb8] sm:$0xff] %v1525_v22   ;;  %v811_v25 = vpop.f32.mrf.mxu3  ;;  %v644_v31 = vadd.f32 %v1890_v61, %v643_v24 }
 0x136   :  { %v570_v26 = vpop.f32.mrf.mxu0 }
 0x137   :  { %v571_v29 = vadd.f32 %v1890_v61, %v570_v26  ;;  %v733_v30 = vpop.f32.mrf.mxu1  ;;  %v807_v36 = vadd.f32 %v806_v3, %v644_v31 }
 0x139   :  { %v734_v32 = vadd.f32 %v733_v30, %v571_v29  ;;  %v888_v42 = vmax.f32 %v807_v36, 0.0 }
 0x13b   :  { %v859_v33 = vmax.f32 %v734_v32, 0.0 }
 0x13c   :  { %v645_v34 = vpop.f32.mrf.mxu2 }
 0x13d   :  { %v1455_v37 = vpack.c.bf16 %v859_v33, %v858_v28  ;;  %v646_v38 = vadd.f32 %v1890_v61, %v645_v34  ;;  %v813_v39 = vpop.f32.mrf.mxu3 }
 0x13e   :  { %v573_v35 = vpop.f32.mrf.mxu0 }
 0x13f   :  { %1565 = vst [vmem:[%s2202_s3 + $0x48] sm:$0xff] %v1455_v37   ;;  %v809_v40 = vadd.f32 %v808_v15, %v646_v38  ;;  %v736_v41 = vpop.f32.mrf.mxu1  ;;  %v574_v45 = vadd.f32 %v1890_v61, %v573_v35 }
 0x141   :  { %v889_v43 = vmax.f32 %v809_v40, 0.0  ;;  %v737_v49 = vadd.f32 %v736_v41, %v574_v45 }
 0x143   :  { %v1530_v44 = vpack.c.bf16 %v889_v43, %v888_v42  ;;  %v860_v54 = vmax.f32 %v737_v49, 0.0 }
 0x144   :  { %v648_v46 = vpop.f32.mrf.mxu2 }
 0x145   :  { %1580 = vst [vmem:[%s2202_s3 + $0xc0] sm:$0xff] %v1530_v44   ;;  %v816_v47 = vpop.f32.mrf.mxu3  ;;  %v649_v52 = vadd.f32 %v1890_v61, %v648_v46 }
 0x146   :  { %v575_v48 = vpop.f32.mrf.mxu0 }
 0x147   :  { %v576_v50 = vadd.f32 %v1890_v61, %v575_v48  ;;  %v738_v51 = vpop.f32.mrf.mxu1  ;;  %v812_v57 = vadd.f32 %v811_v25, %v649_v52 }
 0x149   :  { %v739_v53 = vadd.f32 %v738_v51, %v576_v50  ;;  %v890_v3 = vmax.f32 %v812_v57, 0.0 }
 0x14b   :  { %v861_v55 = vmax.f32 %v739_v53, 0.0 }
 0x14c   :  { %v650_v56 = vpop.f32.mrf.mxu2 }
 0x14d   :  { %v1460_v58 = vpack.c.bf16 %v861_v55, %v860_v54  ;;  %v651_v59 = vadd.f32 %v1890_v61, %v650_v56  ;;  %v818_v60 = vpop.f32.mrf.mxu3 }
 0x14e   :  { %v578_v62 = vpop.f32.mrf.mxu0 }
 0x14f   :  { %1566 = vst [vmem:[%s2202_s3 + $0x50] sm:$0xff] %v1460_v58   ;;  %v814_v1 = vadd.f32 %v813_v39, %v651_v59  ;;  %v741_v2 = vpop.f32.mrf.mxu1  ;;  %v579_v5 = vadd.f32 %v1890_v61, %v578_v62 }
 0x151   :  { %v891_v4 = vmax.f32 %v814_v1, 0.0  ;;  %v742_v10 = vadd.f32 %v741_v2, %v579_v5 }
 0x153   :  { %v1535_v63 = vpack.c.bf16 %v891_v4, %v890_v3  ;;  %v862_v14 = vmax.f32 %v742_v10, 0.0 }
 0x154   :  { %v653_v6 = vpop.f32.mrf.mxu2 }
 0x155   :  { %1581 = vst [vmem:[%s2202_s3 + $0xc8] sm:$0xff] %v1535_v63   ;;  %v821_v8 = vpop.f32.mrf.mxu3  ;;  %v654_v12 = vadd.f32 %v1890_v61, %v653_v6 }
 0x156   :  { %v580_v9 = vpop.f32.mrf.mxu0 }
 0x157   :  { %v581_v11 = vadd.f32 %v1890_v61, %v580_v9  ;;  %v743_v7 = vpop.f32.mrf.mxu1  ;;  %v817_v18 = vadd.f32 %v816_v47, %v654_v12 }
 0x159   :  { %v744_v13 = vadd.f32 %v743_v7, %v581_v11  ;;  %v892_v25 = vmax.f32 %v817_v18, 0.0 }
 0x15b   :  { %v863_v15 = vmax.f32 %v744_v13, 0.0 }
 0x15c   :  { %v655_v16 = vpop.f32.mrf.mxu2 }
 0x15d   :  { %v1465_v19 = vpack.c.bf16 %v863_v15, %v862_v14  ;;  %v656_v20 = vadd.f32 %v1890_v61, %v655_v16  ;;  %v823_v21 = vpop.f32.mrf.mxu3 }
 0x15e   :  { %v583_v22 = vpop.f32.mrf.mxu0 }
 0x15f   :  { %1567 = vst [vmem:[%s2202_s3 + $0x58] sm:$0xff] %v1465_v19   ;;  %v819_v23 = vadd.f32 %v818_v60, %v656_v20  ;;  %v746_v24 = vpop.f32.mrf.mxu1  ;;  %v584_v29 = vadd.f32 %v1890_v61, %v583_v22 }
 0x161   :  { %v893_v26 = vmax.f32 %v819_v23, 0.0  ;;  %v747_v28 = vadd.f32 %v746_v24, %v584_v29 }
 0x163   :  { %v1540_v27 = vpack.c.bf16 %v893_v26, %v892_v25  ;;  %v864_v38 = vmax.f32 %v747_v28, 0.0  ;;  %v599_v28 = vadd.f32 %v1890_v61, %v1893_v0 }
 0x164   :  { %v658_v30 = vpop.f32.mrf.mxu2 }
 0x165   :  { %1582 = vst [vmem:[%s2202_s3 + $0xd0] sm:$0xff] %v1540_v27   ;;  %v826_v31 = vpop.f32.mrf.mxu3  ;;  %v659_v36 = vadd.f32 %v1890_v61, %v658_v30 }
 0x166   :  { %v585_v32 = vpop.f32.mrf.mxu0 }
 0x167   :  { %v586_v33 = vadd.f32 %v1890_v61, %v585_v32  ;;  %v748_v34 = vpop.f32.mrf.mxu1  ;;  %v822_v40 = vadd.f32 %v821_v8, %v659_v36  ;;  %v601_v36 = vadd.f32 %v1890_v61, %v1920_v17 }
 0x169   :  { %v749_v37 = vadd.f32 %v748_v34, %v586_v33  ;;  %v894_v47 = vmax.f32 %v822_v40, 0.0 }
 0x16b   :  { %v865_v39 = vmax.f32 %v749_v37, 0.0 }
 0x16c   :  { %v660_v35 = vpop.f32.mrf.mxu2 }
 0x16d   :  { %v1470_v41 = vpack.c.bf16 %v865_v39, %v864_v38  ;;  %v661_v42 = vadd.f32 %v1890_v61, %v660_v35  ;;  %v828_v43 = vpop.f32.mrf.mxu3 }
 0x16e   :  { %v588_v44 = vpop.f32.mrf.mxu0 }
 0x16f   :  { %1568 = vst [vmem:[%s2202_s3 + $0x60] sm:$0xff] %v1470_v41   ;;  %v824_v45 = vadd.f32 %v823_v21, %v661_v42  ;;  %v751_v46 = vpop.f32.mrf.mxu1  ;;  %v589_v50 = vadd.f32 %v1890_v61, %v588_v44 }
 0x171   :  { %v895_v48 = vmax.f32 %v824_v45, 0.0  ;;  %v752_v54 = vadd.f32 %v751_v46, %v589_v50 }
 0x173   :  { %v1545_v49 = vpack.c.bf16 %v895_v48, %v894_v47  ;;  %v866_v59 = vmax.f32 %v752_v54, 0.0 }
 0x174   :  { %v663_v51 = vpop.f32.mrf.mxu2 }
 0x175   :  { %1583 = vst [vmem:[%s2202_s3 + $0xd8] sm:$0xff] %v1545_v49   ;;  %v831_v52 = vpop.f32.mrf.mxu3  ;;  %v664_v57 = vadd.f32 %v1890_v61, %v663_v51 }
 0x176   :  { %v590_v53 = vpop.f32.mrf.mxu0 }
 0x177   :  { %v591_v55 = vadd.f32 %v1890_v61, %v590_v53  ;;  %v753_v56 = vpop.f32.mrf.mxu1  ;;  %v827_v1 = vadd.f32 %v826_v31, %v664_v57 }
 0x179   :  { %v754_v58 = vadd.f32 %v753_v56, %v591_v55  ;;  %v896_v8 = vmax.f32 %v827_v1, 0.0 }
 0x17b   :  { %v867_v60 = vmax.f32 %v754_v58, 0.0 }
 0x17c   :  { %v665_v62 = vpop.f32.mrf.mxu2 }
 0x17d   :  { %v1475_v2 = vpack.c.bf16 %v867_v60, %v866_v59  ;;  %v666_v3 = vadd.f32 %v1890_v61, %v665_v62  ;;  %v833_v4 = vpop.f32.mrf.mxu3 }
 0x17e   :  { %v593_v63 = vpop.f32.mrf.mxu0 }
 0x17f   :  { %1569 = vst [vmem:[%s2202_s3 + $0x68] sm:$0xff] %v1475_v2   ;;  %v829_v5 = vadd.f32 %v828_v43, %v666_v3  ;;  %v756_v6 = vpop.f32.mrf.mxu1  ;;  %v594_v11 = vadd.f32 %v1890_v61, %v593_v63 }
 0x181   :  { %v897_v9 = vmax.f32 %v829_v5, 0.0  ;;  %v757_v14 = vadd.f32 %v756_v6, %v594_v11 }
 0x183   :  { %v1550_v10 = vpack.c.bf16 %v897_v9, %v896_v8  ;;  %v868_v20 = vmax.f32 %v757_v14, 0.0 }
 0x184   :  { %v668_v7 = vpop.f32.mrf.mxu2 }
 0x185   :  { %1584 = vst [vmem:[%s2202_s3 + $0xe0] sm:$0xff] %v1550_v10   ;;  %v836_v12 = vpop.f32.mrf.mxu3  ;;  %v669_v18 = vadd.f32 %v1890_v61, %v668_v7 }
 0x186   :  { %v595_v13 = vpop.f32.mrf.mxu0 }
 0x187   :  { %v596_v15 = vadd.f32 %v1890_v61, %v595_v13  ;;  %v758_v16 = vpop.f32.mrf.mxu1  ;;  %v832_v23 = vadd.f32 %v831_v52, %v669_v18 }
 0x189   :  { %v759_v19 = vadd.f32 %v758_v16, %v596_v15  ;;  %v898_v30 = vmax.f32 %v832_v23, 0.0 }
 0x18b   :  { %v869_v21 = vmax.f32 %v759_v19, 0.0 }
 0x18c   :  { %v670_v22 = vpop.f32.mrf.mxu2 }
 0x18d   :  { %v1480_v24 = vpack.c.bf16 %v869_v21, %v868_v20  ;;  %v671_v25 = vadd.f32 %v1890_v61, %v670_v22  ;;  %v838_v26 = vpop.f32.mrf.mxu3 }
 0x18f   :  { %1570 = vst [vmem:[%s2202_s3 + $0x70] sm:$0xff] %v1480_v24   ;;  %v834_v27 = vadd.f32 %v833_v4, %v671_v25  ;;  %v761_v29 = vpop.f32.mrf.mxu1 }
 0x190   :  { %v762_v37 = vadd.f32 %v761_v29, %v599_v28 }
 0x191   :  { %v899_v31 = vmax.f32 %v834_v27, 0.0 }
 0x192   :  { %v870_v41 = vmax.f32 %v762_v37, 0.0 }
 0x193   :  { %v1555_v32 = vpack.c.bf16 %v899_v31, %v898_v30 }
 0x194   :  { %v673_v33 = vpop.f32.mrf.mxu2 }
 0x195   :  { %1585 = vst [vmem:[%s2202_s3 + $0xe8] sm:$0xff] %v1555_v32   ;;  %v674_v34 = vadd.f32 %v1890_v61, %v673_v33 }
 0x197   :  { %v837_v38 = vadd.f32 %v836_v12, %v674_v34  ;;  %v763_v39 = vpop.f32.mrf.mxu1 }
 0x198   :  { %v764_v35 = vadd.f32 %v763_v39, %v601_v36 }
 0x199   :  { %v900_v40 = vmax.f32 %v837_v38, 0.0 }
 0x19a   :  { %v871_v42 = vmax.f32 %v764_v35, 0.0 }
 0x19b   :  { %v961_v43 = vpack.c.bf16 %v900_v40, %v900_v40 }
 0x19c   :  { %v1485_v44 = vpack.c.bf16 %v871_v42, %v870_v41  ;;  %v675_v0 = vpop.f32.mrf.mxu2 }
 0x19d   :  { %1022 = vst [vmem:[%s2202_s3 + $0xf0] sm:$0xf] %v961_v43 }
 0x19e   :  { %1571 = vst [vmem:[%s2202_s3 + $0x78] sm:$0xff] %v1485_v44  }

// kernel: unreal_forward.7
= control target key start
LH: loop header
LB: loop body
LE: loop exit
PB: predicated region body
PF: predicated region fallthrough
CT: control target
= control target key end

     0   :  { %v3365_v0 = vmov 0   ;;  %vm223_vm0 = vcmask 1041409   ;;  %vm225_vm1 = vcmask 1043459   ;;  %vm227_vm2 = vcmask 1045509   ;;  %s5475_s1 = inlined_call_operand.vmem [shape: f32[2,3,1], index: 1, kind: input, shape index: {}]   ;;  %s5476_s4 = inlined_call_operand.vmem [shape: bf16[256,1024], index: 4, kind: input, shape index: {}]   ;;  %s5477_s2 = inlined_call_operand.vmem [shape: f32[2,256], index: 2, kind: input, shape index: {}]   ;;  %s5478_s3 = inlined_call_operand.vmem [shape: f32[2,256], index: 3, kind: input, shape index: {}]   ;;  %s5479_s5 = inlined_call_operand.vmem [shape: bf16[256,128], index: 5, kind: input, shape index: {}]   ;;  %s5480_s0 = inlined_call_operand.vmem [shape: f32[2,3,1024], index: 0, kind: input, shape index: {}]   ;;  %s5481_s6 = inlined_call_operand.vmem [shape: f32[1,128], index: 6, kind: input, shape index: {}]   ;;  %s5482_s7 = inlined_call_operand.vmem [shape: f32[2,3,128], index: 7, kind: output, shape index: {0}]   ;;  %s5483_s8 = inlined_call_operand.vmem [shape: f32[2,256], index: 8, kind: output, shape index: {1}]   ;;  %s5484_s9 = inlined_call_operand.vmem [shape: f32[2,256], index: 9, kind: output, shape index: {2}]  }
   0x1   :  { %3248 = vset.pattern.permute.xlu0 %v3365_v0  ;;  %v199_v1 = vld [vmem:[%s5475_s1 + $0x4] sm:$0x1]  ;;  %v2730_v2 = vld [vmem:[%s5476_s4 + $0x1c0] sm:$0xf]  ;;  %3249 = vset.pattern.permute.xlu1 %v3365_v0  ;;  %vm229_vm3 = vcmask 1047559   ;;  %vm1109_vm4 = vcmask 1040384  }
   0x2   :  { %207 = vperm.xlu0 %3248, %v199_v1   ;;  %v3162_v3 = vld [vmem:[%s5476_s4 + $0x1dc] sm:$0xf0]  ;;  %3250 = vset.pattern.permute.xlu2 %v3365_v0  ;;  %v3158_v8 = vld [vmem:[%s5476_s4 + $0x1c4] sm:$0xf]  ;;  %vm5702_vm5 = vcmask 1042434   ;;  %vm5678_vm6 = vcmask 1041408  }
   0x3   :  { %v2986_v4 = vld [vmem:[%s5476_s4 + $0x3c0] sm:$0xf]  ;;  %v3432_v6 = vor.u32 %v3162_v3, %v2730_v2  ;;  %v2732_v9 = vld [vmem:[%s5476_s4 + $0x1e0] sm:$0xf0]  ;;  %vm5681_vm7 = vcmask 1044484   ;;  %vm5680_vm8 = vcmask 1046534  }
   0x4   :  { %v3226_v5 = vld [vmem:[%s5476_s4 + $0x3dc] sm:$0xf0]  ;;  %v3222_v10 = vld [vmem:[%s5476_s4 + $0x3c4] sm:$0xf]  ;;  %v3445_v11 = vor.u32 %v3158_v8, %v2732_v9  ;;  %vm5679_vm9 = vcmask 1046528   ;;  %vm5668_vm10 = vcmask 1045508  }
   0x5   :  { %v3434_v7 = vor.u32 %v3226_v5, %v2986_v4  ;;  %v2988_v12 = vld [vmem:[%s5476_s4 + $0x3e0] sm:$0xf0]  ;;  %v2698_v13 = vld [vmem:[%s5476_s4 + $0x180] sm:$0xf]  ;;  %886 = vmatpush.bf16.msra.mxu0 %v3432_v6  ;;  %vm5667_vm11 = vcmask 1046533   ;;  %vm5669_vm12 = vcmask 1042433  }
   0x6   :  { %5703 = vst [vmem:[#allocation4_spill] sm:$0xff] %v3445_v11  ;;  %v3154_v14 = vld [vmem:[%s5476_s4 + $0x19c] sm:$0xf0]  ;;  %v3461_v16 = vor.u32 %v3222_v10, %v2988_v12  ;;  %v3150_v20 = vld [vmem:[%s5476_s4 + $0x184] sm:$0xf]  ;;  %912 = vmatpush.bf16.msra.mxu2 %v3445_v11  ;;  %vm5666_vm13 = vcmask 1043456  }
   0x7   :  { %v198_v15 = vld [vmem:[%s5475_s1] sm:$0x1]  ;;  %899 = vmatpush.bf16.msra.mxu1 %v3434_v7  ;;  %v3463_v17 = vor.u32 %v3154_v14, %v2698_v13  ;;  %v2700_v22 = vld [vmem:[%s5476_s4 + $0x1a0] sm:$0xf0]  ;;  %vm5665_vm14 = vcmask 1044481  }
   0x8   :  { %5704 = vst [vmem:[#allocation5_spill] sm:$0xff] %v3461_v16  ;;  %v2954_v18 = vld [vmem:[%s5476_s4 + $0x380] sm:$0xf]  ;;  %v3214_v23 = vld [vmem:[%s5476_s4 + $0x384] sm:$0xf]  ;;  %925 = vmatpush.bf16.msra.mxu3 %v3461_v16  ;;  %v3487_v25 = vor.u32 %v3150_v20, %v2700_v22 }
   0x9   :  { %v3218_v19 = vld [vmem:[%s5476_s4 + $0x39c] sm:$0xf0]  ;;  %v2956_v24 = vld [vmem:[%s5476_s4 + $0x3a0] sm:$0xf0]  ;;  %887 = vmatpush.bf16.msra.mxu0 %v3463_v17 }
   0xa   :  { %v3475_v21 = vor.u32 %v3218_v19, %v2954_v18  ;;  %5706 = vst [vmem:[#allocation7_spill] sm:$0xff] %v3487_v25  ;;  %v3489_v26 = vor.u32 %v3214_v23, %v2956_v24  ;;  %v2666_v27 = vld [vmem:[%s5476_s4 + $0x140] sm:$0xf]  ;;  %v3142_v31 = vld [vmem:[%s5476_s4 + $0x144] sm:$0xf]  ;;  %203 = vperm.xlu0 %3248, %v198_v15   ;;  %913 = vmatpush.bf16.msra.mxu2 %v3487_v25 }
   0xb   :  { %v3146_v28 = vld [vmem:[%s5476_s4 + $0x15c] sm:$0xf0]  ;;  %v2668_v32 = vld [vmem:[%s5476_s4 + $0x160] sm:$0xf0] }
   0xc   :  { %5705 = vst [vmem:[#allocation6_spill] sm:$0xff] %v3475_v21  ;;  %v2922_v29 = vld [vmem:[%s5476_s4 + $0x340] sm:$0xf]  ;;  %900 = vmatpush.bf16.msra.mxu1 %v3475_v21  ;;  %v3511_v33 = vor.u32 %v3146_v28, %v2666_v27  ;;  %v3206_v35 = vld [vmem:[%s5476_s4 + $0x344] sm:$0xf]  ;;  %v3525_v38 = vor.u32 %v3142_v31, %v2668_v32  ;;  %926 = vmatpush.bf16.msra.mxu3 %v3489_v26 }
   0xd   :  { %5707 = vst [vmem:[#allocation8_spill] sm:$0xff] %v3489_v26  ;;  %v3210_v30 = vld [vmem:[%s5476_s4 + $0x35c] sm:$0xf0]  ;;  %v2924_v36 = vld [vmem:[%s5476_s4 + $0x360] sm:$0xf0] }
   0xe   :  { %5708 = vst [vmem:[#allocation9_spill] sm:$0xff] %v3511_v33  ;;  %v3513_v34 = vor.u32 %v3210_v30, %v2922_v29  ;;  %v2634_v37 = vld [vmem:[%s5476_s4 + $0x100] sm:$0xf]  ;;  %v3537_v42 = vor.u32 %v3206_v35, %v2924_v36  ;;  %v3134_v43 = vld [vmem:[%s5476_s4 + $0x104] sm:$0xf]  ;;  %888 = vmatpush.bf16.msra.mxu0 %v3511_v33  ;;  %914 = vmatpush.bf16.msra.mxu2 %v3525_v38 }
   0xf   :  { %5710 = vst [vmem:[#allocation11_spill] sm:$0xff] %v3525_v38  ;;  %v3138_v39 = vld [vmem:[%s5476_s4 + $0x11c] sm:$0xf0]  ;;  %v2636_v44 = vld [vmem:[%s5476_s4 + $0x120] sm:$0xf0] }
  0x10   :  { %5709 = vst [vmem:[#allocation10_spill] sm:$0xff] %v3513_v34  ;;  %v2890_v40 = vld [vmem:[%s5476_s4 + $0x300] sm:$0xf]  ;;  %v3198_v45 = vld [vmem:[%s5476_s4 + $0x304] sm:$0xf]  ;;  %901 = vmatpush.bf16.msra.mxu1 %v3513_v34  ;;  %v3553_v47 = vor.u32 %v3138_v39, %v2634_v37  ;;  %v3561_v50 = vor.u32 %v3134_v43, %v2636_v44  ;;  %927 = vmatpush.bf16.msra.mxu3 %v3537_v42 }
  0x11   :  { %v3202_v41 = vld [vmem:[%s5476_s4 + $0x31c] sm:$0xf0]  ;;  %5711 = vst [vmem:[#allocation12_spill] sm:$0xff] %v3537_v42  ;;  %v2892_v46 = vld [vmem:[%s5476_s4 + $0x320] sm:$0xf0] }
  0x12   :  { %5712 = vst [vmem:[#allocation13_spill] sm:$0xff] %v3553_v47  ;;  %v3555_v48 = vor.u32 %v3202_v41, %v2890_v40  ;;  %v2602_v49 = vld [vmem:[%s5476_s4 + $0xc0] sm:$0xf]  ;;  %v3573_v54 = vor.u32 %v3198_v45, %v2892_v46  ;;  %v3126_v55 = vld [vmem:[%s5476_s4 + $0xc4] sm:$0xf]  ;;  %889 = vmatpush.bf16.msra.mxu0 %v3553_v47  ;;  %915 = vmatpush.bf16.msra.mxu2 %v3561_v50 }
  0x13   :  { %5714 = vst [vmem:[#allocation15_spill] sm:$0xff] %v3561_v50  ;;  %v3130_v51 = vld [vmem:[%s5476_s4 + $0xdc] sm:$0xf0]  ;;  %v2604_v56 = vld [vmem:[%s5476_s4 + $0xe0] sm:$0xf0] }
  0x14   :  { %5713 = vst [vmem:[#allocation14_spill] sm:$0xff] %v3555_v48  ;;  %v2858_v52 = vld [vmem:[%s5476_s4 + $0x2c0] sm:$0xf]  ;;  %v3190_v57 = vld [vmem:[%s5476_s4 + $0x2c4] sm:$0xf]  ;;  %902 = vmatpush.bf16.msra.mxu1 %v3555_v48  ;;  %v3589_v59 = vor.u32 %v3130_v51, %v2602_v49  ;;  %v3597_v62 = vor.u32 %v3126_v55, %v2604_v56  ;;  %928 = vmatpush.bf16.msra.mxu3 %v3573_v54 }
  0x15   :  { %v3194_v53 = vld [vmem:[%s5476_s4 + $0x2dc] sm:$0xf0]  ;;  %5715 = vst [vmem:[#allocation16_spill] sm:$0xff] %v3573_v54  ;;  %v2860_v58 = vld [vmem:[%s5476_s4 + $0x2e0] sm:$0xf0] }
  0x16   :  { %5716 = vst [vmem:[#allocation17_spill] sm:$0xff] %v3589_v59  ;;  %v3591_v60 = vor.u32 %v3194_v53, %v2858_v52  ;;  %v2570_v61 = vld [vmem:[%s5476_s4 + $0x80] sm:$0xf]  ;;  %v3609_v2 = vor.u32 %v3190_v57, %v2860_v58  ;;  %v3118_v3 = vld [vmem:[%s5476_s4 + $0x84] sm:$0xf]  ;;  %890 = vmatpush.bf16.msra.mxu0 %v3589_v59  ;;  %916 = vmatpush.bf16.msra.mxu2 %v3597_v62 }
  0x17   :  { %5718 = vst [vmem:[#allocation19_spill] sm:$0xff] %v3597_v62  ;;  %v3122_v63 = vld [vmem:[%s5476_s4 + $0x9c] sm:$0xf0]  ;;  %v2572_v4 = vld [vmem:[%s5476_s4 + $0xa0] sm:$0xf0] }
  0x18   :  { %5717 = vst [vmem:[#allocation18_spill] sm:$0xff] %v3591_v60  ;;  %v2826_v0 = vld [vmem:[%s5476_s4 + $0x280] sm:$0xf]  ;;  %v3182_v5 = vld [vmem:[%s5476_s4 + $0x284] sm:$0xf]  ;;  %903 = vmatpush.bf16.msra.mxu1 %v3591_v60  ;;  %v3625_v9 = vor.u32 %v3122_v63, %v2570_v61  ;;  %v3633_v13 = vor.u32 %v3118_v3, %v2572_v4  ;;  %929 = vmatpush.bf16.msra.mxu3 %v3609_v2 }
  0x19   :  { %v3186_v1 = vld [vmem:[%s5476_s4 + $0x29c] sm:$0xf0]  ;;  %5719 = vst [vmem:[#allocation20_spill] sm:$0xff] %v3609_v2  ;;  %v2828_v8 = vld [vmem:[%s5476_s4 + $0x2a0] sm:$0xf0] }
  0x1a   :  { %5720 = vst [vmem:[#allocation21_spill] sm:$0xff] %v3625_v9  ;;  %v3627_v10 = vor.u32 %v3186_v1, %v2826_v0  ;;  %v2538_v12 = vld [vmem:[%s5476_s4 + $0x40] sm:$0xf]  ;;  %v3645_v19 = vor.u32 %v3182_v5, %v2828_v8  ;;  %v3110_v20 = vld [vmem:[%s5476_s4 + $0x44] sm:$0xf]  ;;  %891 = vmatpush.bf16.msra.mxu0 %v3625_v9  ;;  %917 = vmatpush.bf16.msra.mxu2 %v3633_v13 }
  0x1b   :  { %5722 = vst [vmem:[#allocation23_spill] sm:$0xff] %v3633_v13  ;;  %v3114_v14 = vld [vmem:[%s5476_s4 + $0x5c] sm:$0xf0]  ;;  %v2540_v22 = vld [vmem:[%s5476_s4 + $0x60] sm:$0xf0] }
  0x1c   :  { %5721 = vst [vmem:[#allocation22_spill] sm:$0xff] %v3627_v10  ;;  %v2794_v15 = vld [vmem:[%s5476_s4 + $0x240] sm:$0xf]  ;;  %v3174_v23 = vld [vmem:[%s5476_s4 + $0x244] sm:$0xf]  ;;  %904 = vmatpush.bf16.msra.mxu1 %v3627_v10  ;;  %v3664_v28 = vor.u32 %v3114_v14, %v2538_v12  ;;  %v3678_v35 = vor.u32 %v3110_v20, %v2540_v22  ;;  %930 = vmatpush.bf16.msra.mxu3 %v3645_v19 }
  0x1d   :  { %v3178_v18 = vld [vmem:[%s5476_s4 + $0x25c] sm:$0xf0]  ;;  %5723 = vst [vmem:[#allocation24_spill] sm:$0xff] %v3645_v19  ;;  %v2796_v24 = vld [vmem:[%s5476_s4 + $0x260] sm:$0xf0] }
  0x1e   :  { %v2506_v27 = vld [vmem:[%s5476_s4] sm:$0xf]  ;;  %5724 = vst [vmem:[#allocation25_spill] sm:$0xff] %v3664_v28  ;;  %v3666_v29 = vor.u32 %v3178_v18, %v2794_v15  ;;  %v3102_v36 = vld [vmem:[%s5476_s4 + $0x4] sm:$0xf]  ;;  %v3690_v40 = vor.u32 %v3174_v23, %v2796_v24  ;;  %892 = vmatpush.bf16.msra.mxu0 %v3664_v28  ;;  %918 = vmatpush.bf16.msra.mxu2 %v3678_v35 }
  0x1f   :  { %v3106_v30 = vld [vmem:[%s5476_s4 + $0x1c] sm:$0xf0]  ;;  %5726 = vst [vmem:[#allocation27_spill] sm:$0xff] %v3678_v35  ;;  %v2508_v37 = vld [vmem:[%s5476_s4 + $0x20] sm:$0xf0] }
  0x20   :  { %5725 = vst [vmem:[#allocation26_spill] sm:$0xff] %v3666_v29  ;;  %v2762_v31 = vld [vmem:[%s5476_s4 + $0x200] sm:$0xf]  ;;  %v3166_v39 = vld [vmem:[%s5476_s4 + $0x204] sm:$0xf]  ;;  %905 = vmatpush.bf16.msra.mxu1 %v3666_v29  ;;  %v3712_v51 = vor.u32 %v3106_v30, %v2506_v27  ;;  %v3726_v57 = vor.u32 %v3102_v36, %v2508_v37  ;;  %931 = vmatpush.bf16.msra.mxu3 %v3690_v40 }
  0x21   :  { %v3170_v32 = vld [vmem:[%s5476_s4 + $0x21c] sm:$0xf0]  ;;  %5727 = vst [vmem:[#allocation28_spill] sm:$0xff] %v3690_v40  ;;  %v2764_v41 = vld [vmem:[%s5476_s4 + $0x220] sm:$0xf0] }
  0x22   :  { %v2738_v43 = vld [vmem:[%s5476_s4 + $0x1c8] sm:$0xf]  ;;  %v3159_v49 = vld [vmem:[%s5476_s4 + $0x1cc] sm:$0xf]  ;;  %5728 = vst [vmem:[#allocation29_spill] sm:$0xff] %v3712_v51  ;;  %v3714_v52 = vor.u32 %v3170_v32, %v2762_v31  ;;  %v3731_v61 = vor.u32 %v3166_v39, %v2764_v41  ;;  %893 = vmatpush.bf16.msra.mxu0 %v3712_v51  ;;  %919 = vmatpush.bf16.msra.mxu2 %v3726_v57 }
  0x23   :  { %v3163_v44 = vld [vmem:[%s5476_s4 + $0x1e4] sm:$0xf0]  ;;  %v2740_v53 = vld [vmem:[%s5476_s4 + $0x1e8] sm:$0xf0]  ;;  %5730 = vst [vmem:[#allocation31_spill] sm:$0xff] %v3726_v57 }
  0x24   :  { %v2994_v45 = vld [vmem:[%s5476_s4 + $0x3c8] sm:$0xf]  ;;  %5729 = vst [vmem:[#allocation30_spill] sm:$0xff] %v3714_v52  ;;  %v3223_v55 = vld [vmem:[%s5476_s4 + $0x3cc] sm:$0xf]  ;;  %v3728_v58 = vor.u32 %v3163_v44, %v2738_v43  ;;  %v3735_v0 = vor.u32 %v3159_v49, %v2740_v53  ;;  %906 = vmatpush.bf16.msra.mxu1 %v3714_v52  ;;  %932 = vmatpush.bf16.msra.mxu3 %v3731_v61 }
  0x25   :  { %v3227_v46 = vld [vmem:[%s5476_s4 + $0x3e4] sm:$0xf0]  ;;  %v2996_v56 = vld [vmem:[%s5476_s4 + $0x3e8] sm:$0xf0]  ;;  %5732 = vst [vmem:[#allocation33_spill] sm:$0xff] %v3731_v61 }
  0x26   :  { %5731 = vst [vmem:[#allocation32_spill] sm:$0xff] %v3728_v58  ;;  %v3733_v63 = vor.u32 %v3227_v46, %v2994_v45  ;;  %v3737_v1 = vor.u32 %v3223_v55, %v2996_v56  ;;  %938 = vmatpush.bf16.msrb.mxu0 %v3728_v58  ;;  %964 = vmatpush.bf16.msrb.mxu2 %v3735_v0  ;;  %v2706_v3 = vld [vmem:[%s5476_s4 + $0x188] sm:$0xf]  ;;  %v3151_v14 = vld [vmem:[%s5476_s4 + $0x18c] sm:$0xf] }
  0x27   :  { %5734 = vst [vmem:[#allocation35_spill] sm:$0xff] %v3735_v0  ;;  %v3155_v4 = vld [vmem:[%s5476_s4 + $0x1a4] sm:$0xf0]  ;;  %v2708_v15 = vld [vmem:[%s5476_s4 + $0x1a8] sm:$0xf0] }
  0x28   :  { %5733 = vst [vmem:[#allocation34_spill] sm:$0xff] %v3733_v63  ;;  %951 = vmatpush.bf16.msrb.mxu1 %v3733_v63  ;;  %977 = vmatpush.bf16.msrb.mxu3 %v3737_v1  ;;  %v2962_v5 = vld [vmem:[%s5476_s4 + $0x388] sm:$0xf]  ;;  %v3756_v8 = vor.u32 %v3155_v4, %v2706_v3  ;;  %v3769_v20 = vor.u32 %v3151_v14, %v2708_v15  ;;  %v3215_v22 = vld [vmem:[%s5476_s4 + $0x38c] sm:$0xf] }
  0x29   :  { %5735 = vst [vmem:[#allocation36_spill] sm:$0xff] %v3737_v1  ;;  %v3219_v12 = vld [vmem:[%s5476_s4 + $0x3a4] sm:$0xf0]  ;;  %v2964_v23 = vld [vmem:[%s5476_s4 + $0x3a8] sm:$0xf0] }
  0x2a   :  { %5736 = vst [vmem:[#allocation37_spill] sm:$0xff] %v3756_v8  ;;  %v3767_v18 = vor.u32 %v3219_v12, %v2962_v5  ;;  %939 = vmatpush.bf16.msrb.mxu0 %v3756_v8  ;;  %v3778_v24 = vor.u32 %v3215_v22, %v2964_v23  ;;  %965 = vmatpush.bf16.msrb.mxu2 %v3769_v20  ;;  %v2674_v27 = vld [vmem:[%s5476_s4 + $0x148] sm:$0xf]  ;;  %v3143_v37 = vld [vmem:[%s5476_s4 + $0x14c] sm:$0xf] }
  0x2b   :  { %5738 = vst [vmem:[#allocation39_spill] sm:$0xff] %v3769_v20  ;;  %v3147_v30 = vld [vmem:[%s5476_s4 + $0x164] sm:$0xf0]  ;;  %v2676_v39 = vld [vmem:[%s5476_s4 + $0x168] sm:$0xf0] }
  0x2c   :  { %5737 = vst [vmem:[#allocation38_spill] sm:$0xff] %v3767_v18  ;;  %952 = vmatpush.bf16.msrb.mxu1 %v3767_v18  ;;  %v2930_v31 = vld [vmem:[%s5476_s4 + $0x348] sm:$0xf]  ;;  %978 = vmatpush.bf16.msrb.mxu3 %v3778_v24  ;;  %v3792_v32 = vor.u32 %v3147_v30, %v2674_v27  ;;  %v3805_v43 = vor.u32 %v3143_v37, %v2676_v39  ;;  %v3207_v44 = vld [vmem:[%s5476_s4 + $0x34c] sm:$0xf] }
  0x2d   :  { %5739 = vst [vmem:[#allocation40_spill] sm:$0xff] %v3778_v24  ;;  %v3211_v36 = vld [vmem:[%s5476_s4 + $0x364] sm:$0xf0]  ;;  %v2932_v45 = vld [vmem:[%s5476_s4 + $0x368] sm:$0xf0] }
  0x2e   :  { %5740 = vst [vmem:[#allocation41_spill] sm:$0xff] %v3792_v32  ;;  %v3803_v41 = vor.u32 %v3211_v36, %v2930_v31  ;;  %v33_v46 = vld [vmem:[%s5477_s2] sm:$0xf]  ;;  %940 = vmatpush.bf16.msrb.mxu0 %v3792_v32  ;;  %v3817_v49 = vor.u32 %v3207_v44, %v2932_v45  ;;  %966 = vmatpush.bf16.msrb.mxu2 %v3805_v43  ;;  %v2642_v55 = vld [vmem:[%s5476_s4 + $0x108] sm:$0xf] }
  0x2f   :  { %5742 = vst [vmem:[#allocation43_spill] sm:$0xff] %v3805_v43  ;;  %v35_v53 = vld [vmem:[%s5478_s3] sm:$0xf]  ;;  %v3139_v56 = vld [vmem:[%s5476_s4 + $0x124] sm:$0xf0] }
  0x30   :  { %5741 = vst [vmem:[#allocation42_spill] sm:$0xff] %v3803_v41  ;;  %953 = vmatpush.bf16.msrb.mxu1 %v3803_v41  ;;  %979 = vmatpush.bf16.msrb.mxu3 %v3817_v49  ;;  %v2898_v3 = vld [vmem:[%s5476_s4 + $0x308] sm:$0xf]  ;;  %v3837_v5 = vor.u32 %v3139_v56, %v2642_v55  ;;  %v3135_v14 = vld [vmem:[%s5476_s4 + $0x10c] sm:$0xf] }
  0x31   :  { %5743 = vst [vmem:[#allocation44_spill] sm:$0xff] %v3817_v49  ;;  %v3203_v4 = vld [vmem:[%s5476_s4 + $0x324] sm:$0xf0]  ;;  %v2644_v15 = vld [vmem:[%s5476_s4 + $0x128] sm:$0xf0] }
  0x32   :  { %34 = vst [vmem:[#allocation2] sm:$0xf] %v33_v46  ;;  %v3839_v12 = vor.u32 %v3203_v4, %v2898_v3  ;;  %v3199_v22 = vld [vmem:[%s5476_s4 + $0x30c] sm:$0xf]  ;;  %v3850_v23 = vor.u32 %v3135_v14, %v2644_v15  ;;  %941 = vmatpush.bf16.msrb.mxu0 %v3837_v5  ;;  %v2610_v31 = vld [vmem:[%s5476_s4 + $0xc8] sm:$0xf] }
  0x33   :  { %36 = vst [vmem:[#allocation3] sm:$0xf] %v35_v53  ;;  %v2900_v27 = vld [vmem:[%s5476_s4 + $0x328] sm:$0xf0]  ;;  %v3131_v36 = vld [vmem:[%s5476_s4 + $0xe4] sm:$0xf0] }
  0x34   :  { %5744 = vst [vmem:[#allocation45_spill] sm:$0xff] %v3837_v5  ;;  %954 = vmatpush.bf16.msrb.mxu1 %v3839_v12  ;;  %v3857_v30 = vor.u32 %v3199_v22, %v2900_v27  ;;  %v2866_v37 = vld [vmem:[%s5476_s4 + $0x2c8] sm:$0xf]  ;;  %967 = vmatpush.bf16.msrb.mxu2 %v3850_v23  ;;  %v3869_v39 = vor.u32 %v3131_v36, %v2610_v31  ;;  %v3127_v45 = vld [vmem:[%s5476_s4 + $0xcc] sm:$0xf] }
  0x35   :  { %5745 = vst [vmem:[#allocation46_spill] sm:$0xff] %v3839_v12  ;;  %v3195_v44 = vld [vmem:[%s5476_s4 + $0x2e4] sm:$0xf0]  ;;  %v2612_v46 = vld [vmem:[%s5476_s4 + $0xe8] sm:$0xf0] }
  0x36   :  { %5746 = vst [vmem:[#allocation47_spill] sm:$0xff] %v3850_v23  ;;  %980 = vmatpush.bf16.msrb.mxu3 %v3857_v30  ;;  %v3881_v53 = vor.u32 %v3195_v44, %v2866_v37  ;;  %v3883_v55 = vor.u32 %v3127_v45, %v2612_v46  ;;  %v3191_v56 = vld [vmem:[%s5476_s4 + $0x2cc] sm:$0xf]  ;;  %942 = vmatpush.bf16.msrb.mxu0 %v3869_v39  ;;  %v2578_v14 = vld [vmem:[%s5476_s4 + $0x88] sm:$0xf] }
  0x37   :  { %5747 = vst [vmem:[#allocation48_spill] sm:$0xff] %v3857_v30  ;;  %v2868_v3 = vld [vmem:[%s5476_s4 + $0x2e8] sm:$0xf0]  ;;  %v3123_v15 = vld [vmem:[%s5476_s4 + $0xa4] sm:$0xf0] }
  0x38   :  { %5748 = vst [vmem:[#allocation49_spill] sm:$0xff] %v3869_v39  ;;  %v3891_v4 = vor.u32 %v3191_v56, %v2868_v3  ;;  %955 = vmatpush.bf16.msrb.mxu1 %v3881_v53  ;;  %v2834_v22 = vld [vmem:[%s5476_s4 + $0x288] sm:$0xf]  ;;  %968 = vmatpush.bf16.msrb.mxu2 %v3883_v55  ;;  %v3905_v27 = vor.u32 %v3123_v15, %v2578_v14  ;;  %v3119_v36 = vld [vmem:[%s5476_s4 + $0x8c] sm:$0xf] }
  0x39   :  { %5749 = vst [vmem:[#allocation50_spill] sm:$0xff] %v3881_v53  ;;  %v3187_v31 = vld [vmem:[%s5476_s4 + $0x2a4] sm:$0xf0]  ;;  %v2580_v37 = vld [vmem:[%s5476_s4 + $0xa8] sm:$0xf0] }
  0x3a   :  { %5750 = vst [vmem:[#allocation51_spill] sm:$0xff] %v3883_v55  ;;  %981 = vmatpush.bf16.msrb.mxu3 %v3891_v4  ;;  %v3917_v44 = vor.u32 %v3187_v31, %v2834_v22  ;;  %v3919_v45 = vor.u32 %v3119_v36, %v2580_v37  ;;  %v3183_v46 = vld [vmem:[%s5476_s4 + $0x28c] sm:$0xf]  ;;  %943 = vmatpush.bf16.msrb.mxu0 %v3905_v27  ;;  %v2546_v14 = vld [vmem:[%s5476_s4 + $0x48] sm:$0xf] }
  0x3b   :  { %5751 = vst [vmem:[#allocation52_spill] sm:$0xff] %v3891_v4  ;;  %v2836_v56 = vld [vmem:[%s5476_s4 + $0x2a8] sm:$0xf0]  ;;  %v3115_v15 = vld [vmem:[%s5476_s4 + $0x64] sm:$0xf0] }
  0x3c   :  { %5752 = vst [vmem:[#allocation53_spill] sm:$0xff] %v3905_v27  ;;  %v3927_v3 = vor.u32 %v3183_v46, %v2836_v56  ;;  %956 = vmatpush.bf16.msrb.mxu1 %v3917_v44  ;;  %v2802_v22 = vld [vmem:[%s5476_s4 + $0x248] sm:$0xf]  ;;  %969 = vmatpush.bf16.msrb.mxu2 %v3919_v45  ;;  %v3941_v31 = vor.u32 %v3115_v15, %v2546_v14  ;;  %v3111_v37 = vld [vmem:[%s5476_s4 + $0x4c] sm:$0xf] }
  0x3d   :  { %5753 = vst [vmem:[#allocation54_spill] sm:$0xff] %v3917_v44  ;;  %v3179_v36 = vld [vmem:[%s5476_s4 + $0x264] sm:$0xf0]  ;;  %v2548_v46 = vld [vmem:[%s5476_s4 + $0x68] sm:$0xf0] }
  0x3e   :  { %5754 = vst [vmem:[#allocation55_spill] sm:$0xff] %v3919_v45  ;;  %982 = vmatpush.bf16.msrb.mxu3 %v3927_v3  ;;  %v3953_v56 = vor.u32 %v3179_v36, %v2802_v22  ;;  %v3955_v4 = vor.u32 %v3111_v37, %v2548_v46  ;;  %v3175_v14 = vld [vmem:[%s5476_s4 + $0x24c] sm:$0xf]  ;;  %944 = vmatpush.bf16.msrb.mxu0 %v3941_v31  ;;  %v2514_v22 = vld [vmem:[%s5476_s4 + $0x8] sm:$0xf] }
  0x3f   :  { %5755 = vst [vmem:[#allocation56_spill] sm:$0xff] %v3927_v3  ;;  %v2804_v15 = vld [vmem:[%s5476_s4 + $0x268] sm:$0xf0]  ;;  %v3107_v36 = vld [vmem:[%s5476_s4 + $0x24] sm:$0xf0] }
  0x40   :  { %5756 = vst [vmem:[#allocation57_spill] sm:$0xff] %v3941_v31  ;;  %v3963_v45 = vor.u32 %v3175_v14, %v2804_v15  ;;  %957 = vmatpush.bf16.msrb.mxu1 %v3953_v56  ;;  %v2770_v37 = vld [vmem:[%s5476_s4 + $0x208] sm:$0xf]  ;;  %970 = vmatpush.bf16.msrb.mxu2 %v3955_v4  ;;  %v3977_v46 = vor.u32 %v3107_v36, %v2514_v22  ;;  %v3103_v15 = vld [vmem:[%s5476_s4 + $0xc] sm:$0xf] }
  0x41   :  { %5757 = vst [vmem:[#allocation58_spill] sm:$0xff] %v3953_v56  ;;  %v3171_v14 = vld [vmem:[%s5476_s4 + $0x224] sm:$0xf0]  ;;  %v2516_v3 = vld [vmem:[%s5476_s4 + $0x28] sm:$0xf0] }
  0x42   :  { %5758 = vst [vmem:[#allocation59_spill] sm:$0xff] %v3955_v4  ;;  %983 = vmatpush.bf16.msrb.mxu3 %v3963_v45  ;;  %v3989_v55 = vor.u32 %v3171_v14, %v2770_v37  ;;  %v3991_v30 = vor.u32 %v3103_v15, %v2516_v3  ;;  %v3167_v22 = vld [vmem:[%s5476_s4 + $0x20c] sm:$0xf]  ;;  %945 = vmatpush.bf16.msrb.mxu0 %v3977_v46  ;;  %v3366_v37 = vmov 269488144  }
  0x43   :  { %5759 = vst [vmem:[#allocation60_spill] sm:$0xff] %v3963_v45  ;;  %v2772_v36 = vld [vmem:[%s5476_s4 + $0x228] sm:$0xf0]  ;;  %v210_v14 = vunpack.c.l.s4 %v3366_v37  ;;  %v3156_v61 = vld [vmem:[%s5476_s4 + $0x1ac] sm:$0xf0] }
  0x44   :  { %5760 = vst [vmem:[#allocation61_spill] sm:$0xff] %v3977_v46  ;;  %v3999_v4 = vor.u32 %v3167_v22, %v2772_v36  ;;  %958 = vmatpush.bf16.msrb.mxu1 %v3989_v55  ;;  %971 = vmatpush.bf16.msrb.mxu2 %v3991_v30  ;;  %v3172_v19 = vld [vmem:[%s5476_s4 + $0x22c] sm:$0xf0]  ;;  %v2756_v2 = vld [vmem:[%s5476_s4 + $0x1f8] sm:$0xf0] }
  0x45   :  { %5761 = vst [vmem:[#allocation62_spill] sm:$0xff] %v3989_v55  ;;  %v4005_v15 = vunpack.c.0.s8 %v210_v14  ;;  %v3225_v62 = vld [vmem:[%s5476_s4 + $0x3dc] sm:$0xf] }
  0x46   :  { %5762 = vst [vmem:[#allocation63_spill] sm:$0xff] %v3991_v30  ;;  %984 = vmatpush.bf16.msrb.mxu3 %v3999_v4  ;;  %v200_v30 = vld [vmem:[#allocation2] sm:$0xf]  ;;  %v3012_v54 = vld [vmem:[%s5476_s4 + $0x3f8] sm:$0xf0] }
  0x47   :  { %5763 = vst [vmem:[#allocation64_spill] sm:$0xff] %v3999_v4 }
  0x48   :  { %5764 = vst [vmem:[#allocation65_spill] sm:$0xff] %v4005_v15 }
  0x74   :  { %v208_v3 = vpop.permute.xlu0 %207 }
  0x75   :  { %v216_v45 = vperm.slane %v208_v3, %v4005_v15 }
  0x77   :  { %v222_v49 = vrot.slane %v216_v45, 7  ;;  %v2746_v45 = vld [vmem:[%s5476_s4 + $0x1d0] sm:$0xf] }
  0x7c   :  { %v204_v23 = vpop.permute.xlu0 %203 }
  0x7d   :  { %v212_v22 = vperm.slane %v204_v23, %v4005_v15  ;;  %v3164_v23 = vld [vmem:[%s5476_s4 + $0x1ec] sm:$0xf0] }
  0x7e   :  { %v4044_v1 = vor.u32 %v3164_v23, %v2746_v45  ;;  %v2714_v15 = vld [vmem:[%s5476_s4 + $0x190] sm:$0xf]  ;;  %v3152_v23 = vld [vmem:[%s5476_s4 + $0x194] sm:$0xf] }
  0x7f   :  { %v224_v36 = vsel %vm223_vm0, %v222_v49, %v212_v22  ;;  %v3002_v22 = vld [vmem:[%s5476_s4 + $0x3d0] sm:$0xf] }
  0x80   :  { %v226_v37 = vsel %vm225_vm1, %v222_v49, %v224_v36  ;;  %v3224_v36 = vld [vmem:[%s5476_s4 + $0x3d4] sm:$0xf]  ;;  %5765 = vst [vmem:[#allocation66_spill] sm:$0xff] %v4044_v1  ;;  %v3220_v45 = vld [vmem:[%s5476_s4 + $0x3ac] sm:$0xf0] }
  0x81   :  { %v228_v4 = vsel %vm227_vm2, %v222_v49, %v226_v37  ;;  %v3004_v37 = vld [vmem:[%s5476_s4 + $0x3f0] sm:$0xf0] }
  0x82   :  { %v4013_v14 = vsel %vm229_vm3, %v222_v49, %v228_v4  ;;  %v3228_v49 = vld [vmem:[%s5476_s4 + $0x3ec] sm:$0xf0]  ;;  %v2748_v4 = vld [vmem:[%s5476_s4 + $0x1f0] sm:$0xf0]  ;;  %v4056_v40 = vor.u32 %v3224_v36, %v3004_v37 }
  0x83   :  { %v232_v3 = vmul.f32 %v4013_v14, %v200_v30  ;;  %v3160_v30 = vld [vmem:[%s5476_s4 + $0x1d4] sm:$0xf]  ;;  %v4046_v0 = vor.u32 %v3228_v49, %v3002_v22  ;;  %v2682_v37 = vld [vmem:[%s5476_s4 + $0x150] sm:$0xf] }
  0x84   :  { %v4054_v57 = vor.u32 %v3160_v30, %v2748_v4  ;;  %5768 = vst [vmem:[#allocation69_spill] sm:$0xff] %v4056_v40  ;;  %v2716_v22 = vld [vmem:[%s5476_s4 + $0x1b0] sm:$0xf0]  ;;  %v4082_v4 = vor.u32 %v3156_v61, %v2714_v15  ;;  %v2938_v61 = vld [vmem:[%s5476_s4 + $0x350] sm:$0xf] }
  0x85   :  { %239 = vst [vmem:[#allocation1] ss:$4 sm:$0xff] %v232_v3  ;;  %v3216_v49 = vld [vmem:[%s5476_s4 + $0x394] sm:$0xf]  ;;  %v4094_v35 = vor.u32 %v3152_v23, %v2716_v22  ;;  %v3212_v15 = vld [vmem:[%s5476_s4 + $0x36c] sm:$0xf0] }
  0x86   :  { %5766 = vst [vmem:[#allocation67_spill] sm:$0xff] %v4046_v0  ;;  %v2972_v30 = vld [vmem:[%s5476_s4 + $0x3b0] sm:$0xf0] }
  0x87   :  { %5767 = vst [vmem:[#allocation68_spill] sm:$0xff] %v4054_v57  ;;  %v3208_v23 = vld [vmem:[%s5476_s4 + $0x354] sm:$0xf] }
  0x88   :  { %5769 = vst [vmem:[#allocation70_spill] sm:$0xff] %v4082_v4  ;;  %v2940_v22 = vld [vmem:[%s5476_s4 + $0x370] sm:$0xf0] }
  0x89   :  { %5771 = vst [vmem:[#allocation72_spill] sm:$0xff] %v4094_v35 }
  0x8c   :  { %v240_v3 = vld.sshfl [vmem:[#allocation1] sm:$0xff pattern:$0x73625140]  ;;  %v241_v43 = vld.sshfl [vmem:[#allocation1 + $0x8] sm:$0xff pattern:$0x73625140] }
  0x8d   :  { %v4040_v24 = vpack.c.bf16 %v240_v3, %v240_v3  ;;  %v4042_v20 = vpack.c.bf16 %v241_v43, %v241_v43  ;;  %v2970_v43 = vld [vmem:[%s5476_s4 + $0x390] sm:$0xf] }
  0x8e   :  { %v4084_v36 = vor.u32 %v3220_v45, %v2970_v43  ;;  %v3148_v3 = vld [vmem:[%s5476_s4 + $0x16c] sm:$0xf0]  ;;  %v3144_v43 = vld [vmem:[%s5476_s4 + $0x154] sm:$0xf] }
  0x8f   :  { %894 = vmatmul.bf16.vlgmr.msra.gmra.mxu0 %v4040_v24  ;;  %907 = vmatmul.bf16.vlgmr.msra.gmra.mxu1 %v4042_v20  ;;  %v2684_v45 = vld [vmem:[%s5476_s4 + $0x170] sm:$0xf0] }
  0x90   :  { %920 = vmatmul.bf16.vlgmr.msra.gmra.mxu2 %v4040_v24  ;;  %933 = vmatmul.bf16.vlgmr.msra.gmra.mxu3 %v4042_v20  ;;  %5770 = vst [vmem:[#allocation71_spill] sm:$0xff] %v4084_v36 }
  0x91   :  { %990 = vmatpush.bf16.msra.mxu0 %v4044_v1  ;;  %1003 = vmatpush.bf16.msra.mxu1 %v4046_v0  ;;  %v4096_v1 = vor.u32 %v3216_v49, %v2972_v30  ;;  %v4118_v49 = vor.u32 %v3148_v3, %v2682_v37  ;;  %v4120_v30 = vor.u32 %v3212_v15, %v2938_v61  ;;  %v2906_v37 = vld [vmem:[%s5476_s4 + $0x310] sm:$0xf]  ;;  %v3136_v61 = vld [vmem:[%s5476_s4 + $0x114] sm:$0xf] }
  0x92   :  { %1016 = vmatpush.bf16.msra.mxu2 %v4054_v57  ;;  %1029 = vmatpush.bf16.msra.mxu3 %v4056_v40  ;;  %v2650_v40 = vld [vmem:[%s5476_s4 + $0x110] sm:$0xf]  ;;  %v4130_v0 = vor.u32 %v3144_v43, %v2684_v45  ;;  %v2652_v15 = vld [vmem:[%s5476_s4 + $0x130] sm:$0xf0] }
  0x93   :  { %5772 = vst [vmem:[#allocation73_spill] sm:$0xff] %v4096_v1  ;;  %v3140_v57 = vld [vmem:[%s5476_s4 + $0x12c] sm:$0xf0]  ;;  %v3200_v43 = vld [vmem:[%s5476_s4 + $0x314] sm:$0xf] }
  0x94   :  { %5773 = vst [vmem:[#allocation74_spill] sm:$0xff] %v4118_v49  ;;  %v3204_v3 = vld [vmem:[%s5476_s4 + $0x32c] sm:$0xf0]  ;;  %v2908_v45 = vld [vmem:[%s5476_s4 + $0x330] sm:$0xf0] }
  0x95   :  { %991 = vmatpush.bf16.msra.mxu0 %v4082_v4  ;;  %1004 = vmatpush.bf16.msra.mxu1 %v4084_v36  ;;  %5774 = vst [vmem:[#allocation75_spill] sm:$0xff] %v4120_v30  ;;  %v4132_v4 = vor.u32 %v3208_v23, %v2940_v22  ;;  %v4154_v23 = vor.u32 %v3140_v57, %v2650_v40  ;;  %v2874_v40 = vld [vmem:[%s5476_s4 + $0x2d0] sm:$0xf] }
  0x96   :  { %1017 = vmatpush.bf16.msra.mxu2 %v4094_v35  ;;  %1030 = vmatpush.bf16.msra.mxu3 %v4096_v1  ;;  %5775 = vst [vmem:[#allocation76_spill] sm:$0xff] %v4130_v0  ;;  %v4156_v22 = vor.u32 %v3204_v3, %v2906_v37  ;;  %v2618_v1 = vld [vmem:[%s5476_s4 + $0xd0] sm:$0xf]  ;;  %v4166_v36 = vor.u32 %v3136_v61, %v2652_v15  ;;  %v3128_v37 = vld [vmem:[%s5476_s4 + $0xd4] sm:$0xf] }
  0x97   :  { %5776 = vst [vmem:[#allocation77_spill] sm:$0xff] %v4132_v4  ;;  %v3132_v35 = vld [vmem:[%s5476_s4 + $0xec] sm:$0xf0]  ;;  %v2620_v3 = vld [vmem:[%s5476_s4 + $0xf0] sm:$0xf0] }
  0x98   :  { %5777 = vst [vmem:[#allocation78_spill] sm:$0xff] %v4154_v23  ;;  %v3196_v57 = vld [vmem:[%s5476_s4 + $0x2ec] sm:$0xf0]  ;;  %v3192_v61 = vld [vmem:[%s5476_s4 + $0x2d4] sm:$0xf] }
  0x99   :  { %992 = vmatpush.bf16.msra.mxu0 %v4118_v49  ;;  %1005 = vmatpush.bf16.msra.mxu1 %v4120_v30  ;;  %5778 = vst [vmem:[#allocation79_spill] sm:$0xff] %v4156_v22  ;;  %v4168_v49 = vor.u32 %v3200_v43, %v2908_v45  ;;  %v2876_v15 = vld [vmem:[%s5476_s4 + $0x2f0] sm:$0xf0]  ;;  %v4190_v43 = vor.u32 %v3132_v35, %v2618_v1  ;;  %v2842_v35 = vld [vmem:[%s5476_s4 + $0x290] sm:$0xf] }
  0x9a   :  { %1018 = vmatpush.bf16.msra.mxu2 %v4130_v0  ;;  %1031 = vmatpush.bf16.msra.mxu3 %v4132_v4  ;;  %5779 = vst [vmem:[#allocation80_spill] sm:$0xff] %v4166_v36  ;;  %v4192_v45 = vor.u32 %v3196_v57, %v2874_v40  ;;  %v2586_v4 = vld [vmem:[%s5476_s4 + $0x90] sm:$0xf]  ;;  %v4202_v30 = vor.u32 %v3128_v37, %v2620_v3  ;;  %v3120_v40 = vld [vmem:[%s5476_s4 + $0x94] sm:$0xf] }
  0x9b   :  { %5780 = vst [vmem:[#allocation81_spill] sm:$0xff] %v4168_v49  ;;  %v3124_v0 = vld [vmem:[%s5476_s4 + $0xac] sm:$0xf0]  ;;  %v2588_v57 = vld [vmem:[%s5476_s4 + $0xb0] sm:$0xf0] }
  0x9c   :  { %5781 = vst [vmem:[#allocation82_spill] sm:$0xff] %v4190_v43  ;;  %v3188_v1 = vld [vmem:[%s5476_s4 + $0x2ac] sm:$0xf0]  ;;  %v3184_v37 = vld [vmem:[%s5476_s4 + $0x294] sm:$0xf] }
  0x9d   :  { %993 = vmatpush.bf16.msra.mxu0 %v4154_v23  ;;  %1006 = vmatpush.bf16.msra.mxu1 %v4156_v22  ;;  %5782 = vst [vmem:[#allocation83_spill] sm:$0xff] %v4192_v45  ;;  %v4204_v23 = vor.u32 %v3192_v61, %v2876_v15  ;;  %v2844_v3 = vld [vmem:[%s5476_s4 + $0x2b0] sm:$0xf0]  ;;  %v4230_v61 = vor.u32 %v3124_v0, %v2586_v4  ;;  %v2810_v0 = vld [vmem:[%s5476_s4 + $0x250] sm:$0xf] }
  0x9e   :  { %1019 = vmatpush.bf16.msra.mxu2 %v4166_v36  ;;  %1032 = vmatpush.bf16.msra.mxu3 %v4168_v49  ;;  %5783 = vst [vmem:[#allocation84_spill] sm:$0xff] %v4202_v30  ;;  %v4232_v15 = vor.u32 %v3188_v1, %v2842_v35  ;;  %v2554_v49 = vld [vmem:[%s5476_s4 + $0x50] sm:$0xf]  ;;  %v4242_v22 = vor.u32 %v3120_v40, %v2588_v57  ;;  %v3112_v35 = vld [vmem:[%s5476_s4 + $0x54] sm:$0xf] }
  0x9f   :  { %5784 = vst [vmem:[#allocation85_spill] sm:$0xff] %v4204_v23  ;;  %946 = vmatmul.bf16.vlgmr.msrb.gmra.mxu0 %v4040_v24  ;;  %959 = vmatmul.bf16.vlgmr.msrb.gmra.mxu1 %v4042_v20  ;;  %v3116_v36 = vld [vmem:[%s5476_s4 + $0x6c] sm:$0xf0]  ;;  %v2556_v1 = vld [vmem:[%s5476_s4 + $0x70] sm:$0xf0] }
  0xa0   :  { %972 = vmatmul.bf16.vlgmr.msrb.gmra.mxu2 %v4040_v24  ;;  %985 = vmatmul.bf16.vlgmr.msrb.gmra.mxu3 %v4042_v20  ;;  %5785 = vst [vmem:[#allocation86_spill] sm:$0xff] %v4230_v61  ;;  %v3180_v4 = vld [vmem:[%s5476_s4 + $0x26c] sm:$0xf0]  ;;  %v3176_v40 = vld [vmem:[%s5476_s4 + $0x254] sm:$0xf] }
  0xa1   :  { %994 = vmatpush.bf16.msra.mxu0 %v4190_v43  ;;  %1007 = vmatpush.bf16.msra.mxu1 %v4192_v45  ;;  %5786 = vst [vmem:[#allocation87_spill] sm:$0xff] %v4232_v15  ;;  %v4244_v43 = vor.u32 %v3184_v37, %v2844_v3  ;;  %v2812_v57 = vld [vmem:[%s5476_s4 + $0x270] sm:$0xf0]  ;;  %v2522_v37 = vld [vmem:[%s5476_s4 + $0x10] sm:$0xf]  ;;  %v4269_v3 = vor.u32 %v3116_v36, %v2554_v49 }
  0xa2   :  { %1020 = vmatpush.bf16.msra.mxu2 %v4202_v30  ;;  %1033 = vmatpush.bf16.msra.mxu3 %v4204_v23  ;;  %5787 = vst [vmem:[#allocation88_spill] sm:$0xff] %v4242_v22  ;;  %v4271_v23 = vor.u32 %v3180_v4, %v2810_v0  ;;  %v3108_v30 = vld [vmem:[%s5476_s4 + $0x2c] sm:$0xf0]  ;;  %v4284_v36 = vor.u32 %v3112_v35, %v2556_v1  ;;  %v3104_v0 = vld [vmem:[%s5476_s4 + $0x14] sm:$0xf] }
  0xa3   :  { %5788 = vst [vmem:[#allocation89_spill] sm:$0xff] %v4244_v43  ;;  %v2778_v45 = vld [vmem:[%s5476_s4 + $0x210] sm:$0xf]  ;;  %v4286_v49 = vor.u32 %v3176_v40, %v2812_v57  ;;  %v2524_v4 = vld [vmem:[%s5476_s4 + $0x30] sm:$0xf0] }
  0xa4   :  { %5789 = vst [vmem:[#allocation90_spill] sm:$0xff] %v4269_v3  ;;  %v2754_v35 = vld [vmem:[%s5476_s4 + $0x1d8] sm:$0xf]  ;;  %v4319_v13 = vor.u32 %v3172_v19, %v2778_v45 }
  0xa5   :  { %995 = vmatpush.bf16.msra.mxu0 %v4230_v61  ;;  %1008 = vmatpush.bf16.msra.mxu1 %v4232_v15  ;;  %5790 = vst [vmem:[#allocation91_spill] sm:$0xff] %v4271_v23  ;;  %v3168_v15 = vld [vmem:[%s5476_s4 + $0x214] sm:$0xf]  ;;  %v3165_v1 = vld [vmem:[%s5476_s4 + $0x1f4] sm:$0xf0]  ;;  %v4317_v61 = vor.u32 %v3108_v30, %v2522_v37  ;;  %v4332_v30 = vor.u32 %v3104_v0, %v2524_v4 }
  0xa6   :  { %1021 = vmatpush.bf16.msra.mxu2 %v4242_v22  ;;  %1034 = vmatpush.bf16.msra.mxu3 %v4244_v43  ;;  %5791 = vst [vmem:[#allocation92_spill] sm:$0xff] %v4284_v36  ;;  %v2780_v43 = vld [vmem:[%s5476_s4 + $0x230] sm:$0xf0]  ;;  %v3010_v40 = vld [vmem:[%s5476_s4 + $0x3d8] sm:$0xf]  ;;  %v4336_v45 = vor.u32 %v3165_v1, %v2754_v35 }
  0xa7   :  { %5792 = vst [vmem:[#allocation93_spill] sm:$0xff] %v4286_v49  ;;  %v3229_v57 = vld [vmem:[%s5476_s4 + $0x3f4] sm:$0xf0]  ;;  %v3161_v22 = vld [vmem:[%s5476_s4 + $0x1dc] sm:$0xf]  ;;  %v4334_v19 = vor.u32 %v3168_v15, %v2780_v43 }
  0xa8   :  { %5793 = vst [vmem:[#allocation94_spill] sm:$0xff] %v4317_v61  ;;  %v4338_v37 = vor.u32 %v3229_v57, %v3010_v40  ;;  %v4346_v50 = vor.u32 %v3161_v22, %v2756_v2  ;;  %v2978_v43 = vld [vmem:[%s5476_s4 + $0x398] sm:$0xf]  ;;  %v3153_v0 = vld [vmem:[%s5476_s4 + $0x19c] sm:$0xf] }
  0xa9   :  { %996 = vmatpush.bf16.msra.mxu0 %v4269_v3  ;;  %1009 = vmatpush.bf16.msra.mxu1 %v4271_v23  ;;  %5794 = vst [vmem:[#allocation95_spill] sm:$0xff] %v4319_v13  ;;  %v2722_v23 = vld [vmem:[%s5476_s4 + $0x198] sm:$0xf]  ;;  %v2980_v2 = vld [vmem:[%s5476_s4 + $0x3b8] sm:$0xf0] }
  0xaa   :  { %1022 = vmatpush.bf16.msra.mxu2 %v4284_v36  ;;  %1035 = vmatpush.bf16.msra.mxu3 %v4286_v49  ;;  %5795 = vst [vmem:[#allocation96_spill] sm:$0xff] %v4332_v30  ;;  %v3157_v3 = vld [vmem:[%s5476_s4 + $0x1b4] sm:$0xf0]  ;;  %v4348_v36 = vor.u32 %v3225_v62, %v3012_v54  ;;  %v2724_v54 = vld [vmem:[%s5476_s4 + $0x1b8] sm:$0xf0] }
  0xab   :  { %5796 = vst [vmem:[#allocation97_spill] sm:$0xff] %v4334_v19  ;;  %v3221_v15 = vld [vmem:[%s5476_s4 + $0x3b4] sm:$0xf0]  ;;  %v3217_v62 = vld [vmem:[%s5476_s4 + $0x39c] sm:$0xf]  ;;  %v4374_v22 = vor.u32 %v3157_v3, %v2722_v23  ;;  %v4386_v40 = vor.u32 %v3153_v0, %v2724_v54 }
  0xac   :  { %5797 = vst [vmem:[#allocation98_spill] sm:$0xff] %v4336_v45  ;;  %v4376_v4 = vor.u32 %v3221_v15, %v2978_v43  ;;  %v2690_v35 = vld [vmem:[%s5476_s4 + $0x158] sm:$0xf]  ;;  %v4388_v57 = vor.u32 %v3217_v62, %v2980_v2  ;;  %v3145_v43 = vld [vmem:[%s5476_s4 + $0x15c] sm:$0xf] }
  0xad   :  { %5798 = vst [vmem:[#allocation99_spill] sm:$0xff] %v4338_v37  ;;  %997 = vmatpush.bf16.msra.mxu0 %v4317_v61  ;;  %1010 = vmatpush.bf16.msra.mxu1 %v4319_v13  ;;  %v3149_v1 = vld [vmem:[%s5476_s4 + $0x174] sm:$0xf0]  ;;  %v2692_v15 = vld [vmem:[%s5476_s4 + $0x178] sm:$0xf0] }
  0xae   :  { %5799 = vst [vmem:[#allocation100_spill] sm:$0xff] %v4346_v50  ;;  %1023 = vmatpush.bf16.msra.mxu2 %v4332_v30  ;;  %1036 = vmatpush.bf16.msra.mxu3 %v4334_v19  ;;  %v2946_v23 = vld [vmem:[%s5476_s4 + $0x358] sm:$0xf]  ;;  %v3209_v0 = vld [vmem:[%s5476_s4 + $0x35c] sm:$0xf]  ;;  %v4414_v62 = vor.u32 %v3149_v1, %v2690_v35 }
  0xaf   :  { %5800 = vst [vmem:[#allocation101_spill] sm:$0xff] %v4348_v36  ;;  %v3213_v3 = vld [vmem:[%s5476_s4 + $0x374] sm:$0xf0]  ;;  %v2948_v54 = vld [vmem:[%s5476_s4 + $0x378] sm:$0xf0] }
  0xb0   :  { %5801 = vst [vmem:[#allocation102_spill] sm:$0xff] %v4374_v22  ;;  %998 = vmatmul.bf16.vlgmr.msra.gmra.mxu0 %v4040_v24  ;;  %1011 = vmatmul.bf16.vlgmr.msra.gmra.mxu1 %v4042_v20  ;;  %v4416_v2 = vor.u32 %v3213_v3, %v2946_v23  ;;  %v3141_v19 = vld [vmem:[%s5476_s4 + $0x134] sm:$0xf0]  ;;  %v4428_v30 = vor.u32 %v3209_v0, %v2948_v54  ;;  %v3137_v23 = vld [vmem:[%s5476_s4 + $0x11c] sm:$0xf] }
  0xb1   :  { %1042 = vmatpush.bf16.msrb.mxu0 %v4336_v45  ;;  %1055 = vmatpush.bf16.msrb.mxu1 %v4338_v37  ;;  %5802 = vst [vmem:[#allocation103_spill] sm:$0xff] %v4386_v40  ;;  %v2914_v35 = vld [vmem:[%s5476_s4 + $0x318] sm:$0xf]  ;;  %v2660_v3 = vld [vmem:[%s5476_s4 + $0x138] sm:$0xf0] }
  0xb2   :  { %1068 = vmatpush.bf16.msrb.mxu2 %v4346_v50  ;;  %1081 = vmatpush.bf16.msrb.mxu3 %v4348_v36  ;;  %5803 = vst [vmem:[#allocation104_spill] sm:$0xff] %v4388_v57  ;;  %v2658_v36 = vld [vmem:[%s5476_s4 + $0x118] sm:$0xf]  ;;  %v4426_v50 = vor.u32 %v3145_v43, %v2692_v15  ;;  %v3201_v43 = vld [vmem:[%s5476_s4 + $0x31c] sm:$0xf]  ;;  %v4462_v49 = vor.u32 %v3137_v23, %v2660_v3 }
  0xb3   :  { %1024 = vmatmul.bf16.vlgmr.msra.gmra.mxu2 %v4040_v24  ;;  %1037 = vmatmul.bf16.vlgmr.msra.gmra.mxu3 %v4042_v20  ;;  %5804 = vst [vmem:[#allocation105_spill] sm:$0xff] %v4414_v62  ;;  %v3205_v1 = vld [vmem:[%s5476_s4 + $0x334] sm:$0xf0]  ;;  %v2916_v15 = vld [vmem:[%s5476_s4 + $0x338] sm:$0xf0]  ;;  %v4450_v0 = vor.u32 %v3141_v19, %v2658_v36 }
  0xb4   :  { %5805 = vst [vmem:[#allocation106_spill] sm:$0xff] %v4416_v2  ;;  %v4452_v54 = vor.u32 %v3205_v1, %v2914_v35  ;;  %v2882_v36 = vld [vmem:[%s5476_s4 + $0x2d8] sm:$0xf]  ;;  %v3129_v35 = vld [vmem:[%s5476_s4 + $0xdc] sm:$0xf] }
  0xb5   :  { %1043 = vmatpush.bf16.msrb.mxu0 %v4374_v22  ;;  %1056 = vmatpush.bf16.msrb.mxu1 %v4376_v4  ;;  %5806 = vst [vmem:[#allocation107_spill] sm:$0xff] %v4426_v50  ;;  %v3197_v19 = vld [vmem:[%s5476_s4 + $0x2f4] sm:$0xf0]  ;;  %v2628_v1 = vld [vmem:[%s5476_s4 + $0xf8] sm:$0xf0] }
  0xb6   :  { %1069 = vmatpush.bf16.msrb.mxu2 %v4386_v40  ;;  %1082 = vmatpush.bf16.msrb.mxu3 %v4388_v57  ;;  %5807 = vst [vmem:[#allocation108_spill] sm:$0xff] %v4428_v30  ;;  %v2626_v57 = vld [vmem:[%s5476_s4 + $0xd8] sm:$0xf]  ;;  %v3193_v23 = vld [vmem:[%s5476_s4 + $0x2dc] sm:$0xf] }
  0xb7   :  { %5808 = vst [vmem:[#allocation109_spill] sm:$0xff] %v4450_v0  ;;  %v3133_v40 = vld [vmem:[%s5476_s4 + $0xf4] sm:$0xf0]  ;;  %v2884_v3 = vld [vmem:[%s5476_s4 + $0x2f8] sm:$0xf0] }
  0xb8   :  { %5809 = vst [vmem:[#allocation110_spill] sm:$0xff] %v4452_v54 }
  0xb9   :  { %1044 = vmatpush.bf16.msrb.mxu0 %v4414_v62  ;;  %1057 = vmatpush.bf16.msrb.mxu1 %v4416_v2  ;;  %5810 = vst [vmem:[#allocation111_spill] sm:$0xff] %v4462_v49  ;;  %v4464_v62 = vor.u32 %v3201_v43, %v2916_v15  ;;  %v4486_v43 = vor.u32 %v3133_v40, %v2626_v57  ;;  %v2850_v40 = vld [vmem:[%s5476_s4 + $0x298] sm:$0xf] }
  0xba   :  { %1070 = vmatpush.bf16.msrb.mxu2 %v4426_v50  ;;  %1083 = vmatpush.bf16.msrb.mxu3 %v4428_v30  ;;  %v4488_v15 = vor.u32 %v3197_v19, %v2882_v36  ;;  %v2594_v30 = vld [vmem:[%s5476_s4 + $0x98] sm:$0xf]  ;;  %v4498_v2 = vor.u32 %v3129_v35, %v2628_v1  ;;  %v3121_v36 = vld [vmem:[%s5476_s4 + $0x9c] sm:$0xf] }
  0xbb   :  { %5811 = vst [vmem:[#allocation112_spill] sm:$0xff] %v4464_v62  ;;  %v3125_v50 = vld [vmem:[%s5476_s4 + $0xb4] sm:$0xf0]  ;;  %v2596_v19 = vld [vmem:[%s5476_s4 + $0xb8] sm:$0xf0] }
  0xbc   :  { %5812 = vst [vmem:[#allocation113_spill] sm:$0xff] %v4486_v43  ;;  %v3189_v57 = vld [vmem:[%s5476_s4 + $0x2b4] sm:$0xf0]  ;;  %v3185_v35 = vld [vmem:[%s5476_s4 + $0x29c] sm:$0xf] }
  0xbd   :  { %1045 = vmatpush.bf16.msrb.mxu0 %v4450_v0  ;;  %1058 = vmatpush.bf16.msrb.mxu1 %v4452_v54  ;;  %5813 = vst [vmem:[#allocation114_spill] sm:$0xff] %v4488_v15  ;;  %v4500_v0 = vor.u32 %v3193_v23, %v2884_v3  ;;  %v2852_v1 = vld [vmem:[%s5476_s4 + $0x2b8] sm:$0xf0]  ;;  %v4522_v23 = vor.u32 %v3125_v50, %v2594_v30  ;;  %v2818_v50 = vld [vmem:[%s5476_s4 + $0x258] sm:$0xf] }
  0xbe   :  { %1071 = vmatpush.bf16.msrb.mxu2 %v4462_v49  ;;  %1084 = vmatpush.bf16.msrb.mxu3 %v4464_v62  ;;  %5814 = vst [vmem:[#allocation115_spill] sm:$0xff] %v4498_v2  ;;  %v4524_v3 = vor.u32 %v3189_v57, %v2850_v40  ;;  %v2562_v62 = vld [vmem:[%s5476_s4 + $0x58] sm:$0xf]  ;;  %v4534_v54 = vor.u32 %v3121_v36, %v2596_v19  ;;  %v3113_v40 = vld [vmem:[%s5476_s4 + $0x5c] sm:$0xf] }
  0xbf   :  { %5815 = vst [vmem:[#allocation116_spill] sm:$0xff] %v4500_v0  ;;  %v3117_v49 = vld [vmem:[%s5476_s4 + $0x74] sm:$0xf0]  ;;  %v2564_v57 = vld [vmem:[%s5476_s4 + $0x78] sm:$0xf0] }
  0xc0   :  { %5816 = vst [vmem:[#allocation117_spill] sm:$0xff] %v4522_v23  ;;  %v3181_v30 = vld [vmem:[%s5476_s4 + $0x274] sm:$0xf0]  ;;  %v3177_v36 = vld [vmem:[%s5476_s4 + $0x25c] sm:$0xf] }
  0xc1   :  { %1046 = vmatpush.bf16.msrb.mxu0 %v4486_v43  ;;  %1059 = vmatpush.bf16.msrb.mxu1 %v4488_v15  ;;  %5817 = vst [vmem:[#allocation118_spill] sm:$0xff] %v4524_v3  ;;  %v4536_v43 = vor.u32 %v3185_v35, %v2852_v1  ;;  %v2820_v19 = vld [vmem:[%s5476_s4 + $0x278] sm:$0xf0]  ;;  %v4558_v35 = vor.u32 %v3117_v49, %v2562_v62  ;;  %v2786_v49 = vld [vmem:[%s5476_s4 + $0x218] sm:$0xf] }
  0xc2   :  { %1072 = vmatpush.bf16.msrb.mxu2 %v4498_v2  ;;  %1085 = vmatpush.bf16.msrb.mxu3 %v4500_v0  ;;  %5818 = vst [vmem:[#allocation119_spill] sm:$0xff] %v4534_v54  ;;  %v4560_v1 = vor.u32 %v3181_v30, %v2818_v50  ;;  %v2530_v0 = vld [vmem:[%s5476_s4 + $0x18] sm:$0xf]  ;;  %v4570_v15 = vor.u32 %v3113_v40, %v2564_v57  ;;  %v3105_v50 = vld [vmem:[%s5476_s4 + $0x1c] sm:$0xf] }
  0xc3   :  { %5819 = vst [vmem:[#allocation120_spill] sm:$0xff] %v4536_v43  ;;  %v3109_v2 = vld [vmem:[%s5476_s4 + $0x34] sm:$0xf0]  ;;  %v2532_v30 = vld [vmem:[%s5476_s4 + $0x38] sm:$0xf0] }
  0xc4   :  { %5820 = vst [vmem:[#allocation121_spill] sm:$0xff] %v4558_v35  ;;  %v3173_v62 = vld [vmem:[%s5476_s4 + $0x234] sm:$0xf0]  ;;  %v3169_v40 = vld [vmem:[%s5476_s4 + $0x21c] sm:$0xf] }
  0xc5   :  { %1047 = vmatpush.bf16.msrb.mxu0 %v4522_v23  ;;  %1060 = vmatpush.bf16.msrb.mxu1 %v4524_v3  ;;  %5821 = vst [vmem:[#allocation122_spill] sm:$0xff] %v4560_v1  ;;  %v4572_v23 = vor.u32 %v3177_v36, %v2820_v19  ;;  %v2788_v57 = vld [vmem:[%s5476_s4 + $0x238] sm:$0xf0]  ;;  %v4594_v36 = vor.u32 %v3109_v2, %v2530_v0 }
  0xc6   :  { %1073 = vmatpush.bf16.msrb.mxu2 %v4534_v54  ;;  %1086 = vmatpush.bf16.msrb.mxu3 %v4536_v43  ;;  %5822 = vst [vmem:[#allocation123_spill] sm:$0xff] %v4570_v15  ;;  %v4596_v19 = vor.u32 %v3173_v62, %v2786_v49  ;;  %v4600_v43 = vor.u32 %v3105_v50, %v2532_v30 }
  0xc7   :  { %5823 = vst [vmem:[#allocation124_spill] sm:$0xff] %v4572_v23  ;;  %v4602_v54 = vor.u32 %v3169_v40, %v2788_v57 }
  0xc8   :  { %5824 = vst [vmem:[#allocation125_spill] sm:$0xff] %v4594_v36 }
  0xc9   :  { %1048 = vmatpush.bf16.msrb.mxu0 %v4558_v35  ;;  %1061 = vmatpush.bf16.msrb.mxu1 %v4560_v1  ;;  %5825 = vst [vmem:[#allocation126_spill] sm:$0xff] %v4596_v19 }
  0xca   :  { %1074 = vmatpush.bf16.msrb.mxu2 %v4570_v15  ;;  %1087 = vmatpush.bf16.msrb.mxu3 %v4572_v23  ;;  %5826 = vst [vmem:[#allocation127_spill] sm:$0xff] %v4600_v43 }
  0xcb   :  { %5827 = vst [vmem:[#allocation128_spill] sm:$0xff] %v4602_v54 }
  0xcd   :  { %1049 = vmatpush.bf16.msrb.mxu0 %v4594_v36  ;;  %1062 = vmatpush.bf16.msrb.mxu1 %v4596_v19 }
  0xce   :  { %1075 = vmatpush.bf16.msrb.mxu2 %v4600_v43  ;;  %1088 = vmatpush.bf16.msrb.mxu3 %v4602_v54 }
  0xd0   :  { %1050 = vmatmul.bf16.vlgmr.msrb.gmra.mxu0 %v4040_v24  ;;  %1063 = vmatmul.bf16.vlgmr.msrb.gmra.mxu1 %v4042_v20 }
  0xd1   :  { %1076 = vmatmul.bf16.vlgmr.msrb.gmra.mxu2 %v4040_v24  ;;  %1089 = vmatmul.bf16.vlgmr.msrb.gmra.mxu3 %v4042_v20  ;;  %v1464_v20 = vld [vmem:[%s5475_s1 + $0x5] sm:$0x1]  ;;  %v1463_v24 = vld [vmem:[%s5475_s1 + $0x1] sm:$0x1] }
  0xd2   :  { %1505 = vmatpush.bf16.msra.mxu2 %v3432_v6  ;;  %1518 = vmatpush.bf16.msra.mxu3 %v3434_v7 }
  0xd3   :  { %1472 = vperm.xlu1 %3249, %v1464_v20  }
  0xd6   :  { %1506 = vmatpush.bf16.msra.mxu2 %v3463_v17  ;;  %1519 = vmatpush.bf16.msra.mxu3 %v3475_v21 }
  0xda   :  { %1507 = vmatpush.bf16.msra.mxu2 %v3511_v33  ;;  %1520 = vmatpush.bf16.msra.mxu3 %v3513_v34 }
  0xdb   :  { %1468 = vperm.xlu1 %3249, %v1463_v24  }
  0xde   :  { %1508 = vmatpush.bf16.msra.mxu2 %v3553_v47  ;;  %1521 = vmatpush.bf16.msra.mxu3 %v3555_v48 }
  0xe2   :  { %1509 = vmatpush.bf16.msra.mxu2 %v3589_v59  ;;  %1522 = vmatpush.bf16.msra.mxu3 %v3591_v60  ;;  %v5835_v60 = vld [vmem:[#allocation16_spill] sm:$0xff] }
  0xe6   :  { %1510 = vmatpush.bf16.msra.mxu2 %v3625_v9  ;;  %1523 = vmatpush.bf16.msra.mxu3 %v3627_v10 }
  0xea   :  { %1511 = vmatpush.bf16.msra.mxu2 %v3664_v28  ;;  %1524 = vmatpush.bf16.msra.mxu3 %v3666_v29 }
  0xee   :  { %1512 = vmatpush.bf16.msra.mxu2 %v3712_v51  ;;  %1525 = vmatpush.bf16.msra.mxu3 %v3714_v52 }
  0xf2   :  { %1557 = vmatpush.bf16.msrb.mxu2 %v3728_v58  ;;  %1570 = vmatpush.bf16.msrb.mxu3 %v3733_v63  ;;  %v4707_v58 = vld [vmem:[%s5479_s5 + $0x18] sm:$0xff] }
  0xf6   :  { %1558 = vmatpush.bf16.msrb.mxu2 %v3756_v8  ;;  %1571 = vmatpush.bf16.msrb.mxu3 %v3767_v18 }
  0xfa   :  { %1559 = vmatpush.bf16.msrb.mxu2 %v3792_v32  ;;  %1572 = vmatpush.bf16.msrb.mxu3 %v3803_v41 }
  0xfe   :  { %1560 = vmatpush.bf16.msrb.mxu2 %v3837_v5  ;;  %1573 = vmatpush.bf16.msrb.mxu3 %v3839_v12 }
 0x102   :  { %1561 = vmatpush.bf16.msrb.mxu2 %v3869_v39  ;;  %1574 = vmatpush.bf16.msrb.mxu3 %v3881_v53 }
 0x106   :  { %1562 = vmatpush.bf16.msrb.mxu2 %v3905_v27  ;;  %1575 = vmatpush.bf16.msrb.mxu3 %v3917_v44 }
 0x10a   :  { %1563 = vmatpush.bf16.msrb.mxu2 %v3941_v31  ;;  %1576 = vmatpush.bf16.msrb.mxu3 %v3953_v56 }
 0x10c   :  { %v895_v2 = vpop.f32.mrf.mxu0  ;;  %v908_v0 = vpop.f32.mrf.mxu1 }
 0x10d   :  { %v909_v49 = vadd.f32 %v908_v0, %v895_v2 }
 0x10e   :  { %1564 = vmatpush.bf16.msrb.mxu2 %v3977_v46  ;;  %1577 = vmatpush.bf16.msrb.mxu3 %v3989_v55 }
 0x113   :  { %v921_v62 = vpop.f32.mrf.mxu2  ;;  %v934_v50 = vpop.f32.mrf.mxu3 }
 0x114   :  { %v935_v30 = vadd.f32 %v934_v50, %v921_v62  ;;  %v897_v40 = vpop.f32.mrf.mxu0  ;;  %v910_v57 = vpop.f32.mrf.mxu1 }
 0x116   :  { %v1102_v20 = vrot.slane %v935_v30, 7 }
 0x118   :  { %v4651_v24 = vsel %vm1109_vm4, %v909_v49, %v1102_v20  ;;  %v4654_v31 = vsel %vm223_vm0, %v909_v49, %v1102_v20 }
 0x11b   :  { %v923_v56 = vpop.f32.mrf.mxu2  ;;  %v936_v46 = vpop.f32.mrf.mxu3 }
 0x11c   :  { %v947_v44 = vpop.f32.mrf.mxu0  ;;  %v960_v55 = vpop.f32.mrf.mxu1  ;;  %v4659_v56 = vld [vmem:[%s5479_s5 + $0x38] sm:$0xff] }
 0x11d   :  { %v4664_v46 = vld [vmem:[%s5479_s5 + $0x78] sm:$0xff]  ;;  %1432 = vmatpush.bf16.msra.mxu0 %v4659_v56 }
 0x11e   :  { %1445 = vmatpush.bf16.msra.mxu1 %v4664_v46 }
 0x123   :  { %v973_v27 = vpop.f32.mrf.mxu2  ;;  %v986_v53 = vpop.f32.mrf.mxu3 }
 0x124   :  { %v949_v2 = vpop.f32.mrf.mxu0  ;;  %v962_v0 = vpop.f32.mrf.mxu1 }
 0x125   :  { %v961_v2 = vadd.f32 %v960_v55, %v947_v44  ;;  %v4695_v0 = vld [vmem:[%s5479_s5 + $0x20] sm:$0xff] }
 0x12b   :  { %v975_v39 = vpop.f32.mrf.mxu2  ;;  %v988_v62 = vpop.f32.mrf.mxu3 }
 0x12c   :  { %v987_v39 = vadd.f32 %v986_v53, %v973_v27  ;;  %v4700_v62 = vld [vmem:[%s5479_s5 + $0x60] sm:$0xff]  ;;  %v1103_v27 = vrot.slane %v961_v2, 6 }
 0x12d   :  { %v999_v50 = vpop.f32.mrf.mxu0  ;;  %v1012_v40 = vpop.f32.mrf.mxu1 }
 0x12e   :  { %v1104_v18 = vrot.slane %v987_v39, 5  ;;  %v1013_v53 = vadd.f32 %v1012_v40, %v999_v50 }
 0x130   :  { %v1111_v50 = vsel %vm5702_vm5, %v1103_v27, %v1104_v18  ;;  %v1105_v2 = vrot.slane %v1013_v53, 4 }
 0x131   :  { %v1113_v29 = vsel %vm5678_vm6, %v4651_v24, %v1111_v50  ;;  %v235_v24 = vld [vmem:[%s5480_s0] ss:$4 sm:$0xff] }
 0x135   :  { %v1001_v12 = vpop.f32.mrf.mxu0  ;;  %v1014_v5 = vpop.f32.mrf.mxu1 }
 0x136   :  { %v1025_v30 = vpop.f32.mrf.mxu2  ;;  %v1038_v57 = vpop.f32.mrf.mxu3  ;;  %v4671_v5 = vld [vmem:[%s5479_s5 + $0x30] sm:$0xff]  ;;  %v4688_v12 = vld [vmem:[%s5479_s5 + $0x68] sm:$0xff] }
 0x137   :  { %1433 = vmatpush.bf16.msra.mxu0 %v4671_v5  ;;  %v1039_v8 = vadd.f32 %v1038_v57, %v1025_v30  ;;  %v4712_v30 = vld [vmem:[%s5479_s5 + $0x58] sm:$0xff] }
 0x139   :  { %v1106_v40 = vrot.slane %v1039_v8, 3  ;;  %v4723_v8 = vld [vmem:[%s5479_s5 + $0x10] sm:$0xff] }
 0x13a   :  { %5828 = vst [vmem:[#allocation129_spill] sm:$0xff] %v4723_v8 }
 0x13b   :  { %v1124_v53 = vsel %vm227_vm2, %v1105_v2, %v1106_v40 }
 0x13e   :  { %v1027_v41 = vpop.f32.mrf.mxu2  ;;  %v1040_v32 = vpop.f32.mrf.mxu3 }
 0x13f   :  { %v4676_v32 = vld [vmem:[%s5479_s5 + $0x70] sm:$0xff]  ;;  %v4683_v41 = vld [vmem:[%s5479_s5 + $0x28] sm:$0xff] }
 0x140   :  { %1446 = vmatpush.bf16.msra.mxu1 %v4676_v32  ;;  %1434 = vmatpush.bf16.msra.mxu0 %v4683_v41 }
 0x144   :  { %1447 = vmatpush.bf16.msra.mxu1 %v4688_v12  ;;  %1435 = vmatpush.bf16.msra.mxu0 %v4695_v0 }
 0x148   :  { %1448 = vmatpush.bf16.msra.mxu1 %v4700_v62  ;;  %1436 = vmatpush.bf16.msra.mxu0 %v4707_v58 }
 0x14c   :  { %1449 = vmatpush.bf16.msra.mxu1 %v4712_v30  ;;  %1437 = vmatpush.bf16.msra.mxu0 %v4723_v8 }
 0x14d   :  { %v1051_v49 = vpop.f32.mrf.mxu0  ;;  %v1064_v20 = vpop.f32.mrf.mxu1 }
 0x14e   :  { %v1065_v63 = vadd.f32 %v1064_v20, %v1051_v49  ;;  %v1121_v20 = vsel %vm225_vm1, %v1103_v27, %v1104_v18  ;;  %v4728_v18 = vld [vmem:[%s5479_s5 + $0x50] sm:$0xff] }
 0x14f   :  { %5829 = vst [vmem:[#allocation130_spill] sm:$0xff] %v4728_v18 }
 0x150   :  { %v1107_v52 = vrot.slane %v1065_v63, 2  ;;  %v1114_v63 = vsel %vm5681_vm7, %v1105_v2, %v1106_v40  ;;  %1450 = vmatpush.bf16.msra.mxu1 %v4728_v18  ;;  %v2503_v40 = vld [vmem:[%s5480_s0 + $0x20] ss:$4 sm:$0xff] }
 0x151   :  { %v4753_v2 = vld [vmem:[%s5479_s5 + $0x8] sm:$0xff]  ;;  %v5845_v18 = vld [vmem:[#allocation24_spill] sm:$0xff] }
 0x152   :  { %5830 = vst [vmem:[#allocation131_spill] sm:$0xff] %v4753_v2  ;;  %1438 = vmatpush.bf16.msra.mxu0 %v4753_v2 }
 0x154   :  { %v1077_v55 = vpop.f32.mrf.mxu2  ;;  %v1090_v44 = vpop.f32.mrf.mxu3 }
 0x155   :  { %v1091_v57 = vadd.f32 %v1090_v44, %v1077_v55  ;;  %v1053_v39 = vpop.f32.mrf.mxu0  ;;  %v1066_v49 = vpop.f32.mrf.mxu1  ;;  %v1123_v44 = vsel %vm5669_vm12, %v4654_v31, %v1121_v20 }
 0x157   :  { %v1108_v51 = vrot.slane %v1091_v57, 1 }
 0x159   :  { %v1115_v27 = vsel %vm5680_vm8, %v1107_v52, %v1108_v51  ;;  %v1126_v55 = vsel %vm5679_vm9, %v1108_v51, %v1107_v52 }
 0x15a   :  { %v1117_v50 = vsel %vm5668_vm10, %v1114_v63, %v1115_v27  ;;  %v1128_v57 = vsel %vm5667_vm11, %v1124_v53, %v1126_v55  ;;  %v4758_v63 = vld [vmem:[%s5479_s5 + $0x48] sm:$0xff] }
 0x15b   :  { %v1119_v39 = vsel %vm5666_vm13, %v1113_v29, %v1117_v50  ;;  %v1130_v49 = vsel %vm5665_vm14, %v1123_v44, %v1128_v57  ;;  %5831 = vst [vmem:[#allocation132_spill] sm:$0xff] %v4758_v63  ;;  %1451 = vmatpush.bf16.msra.mxu1 %v4758_v63 }
 0x15c   :  { %v1131_v51 = vrot.slane %v1130_v49, 1  ;;  %v4748_v52 = vadd.f32 %v1119_v39, %v235_v24  ;;  %v1079_v31 = vpop.f32.mrf.mxu2  ;;  %v1092_v20 = vpop.f32.mrf.mxu3  ;;  %v233_v24 = vld [vmem:[#allocation3] sm:$0xf]  ;;  %v4778_v49 = vld [vmem:[%s5479_s5 + $0x40] sm:$0xff] }
 0x15d   :  { %5833 = vst [vmem:[#allocation134_spill] sm:$0xff] %v4778_v49 }
 0x15e   :  { %v4760_v53 = vadd.f32 %v2503_v40, %v1131_v51  ;;  %v3016_v29 = vmul.f32 -1.442695, %v4748_v52  ;;  %v1176_v27 = vrot.slane %v4748_v52, 2  ;;  %v1224_v55 = vrot.slane %v4748_v52, 6  ;;  %v4772_v40 = vld [vmem:[%s5479_s5] sm:$0xff] }
 0x15f   :  { %5832 = vst [vmem:[#allocation133_spill] sm:$0xff] %v4772_v40  ;;  %v234_v51 = vmul.f32 %v233_v24, %v4013_v14  ;;  %1439 = vmatpush.bf16.msra.mxu0 %v4772_v40  ;;  %1452 = vmatpush.bf16.msra.mxu1 %v4778_v49 }
 0x160   :  { %3252 = vpow2.f32 %v3016_v29  ;;  %v3017_v44 = vmul.f32 -1.442695, %v4760_v53  ;;  %v1177_v50 = vrot.slane %v4760_v53, 2  ;;  %v3018_v57 = vmul.f32 -1.442695, %v1176_v27 }
 0x161   :  { %v1225_v39 = vrot.slane %v4760_v53, 6  ;;  %v3020_v20 = vmul.f32 -1.442695, %v1224_v55  ;;  %v1267_v28 = vrot.slane %v234_v51, 1  ;;  %v1268_v10 = vrot.slane %v234_v51, 2 }
 0x162   :  { %3254 = vpow2.f32 %v3017_v44  ;;  %v3019_v31 = vmul.f32 -1.442695, %v1177_v50  ;;  %v1269_v9 = vrot.slane %v234_v51, 3 }
 0x163   :  { %3256 = vpow2.f32 %v3018_v57  ;;  %v3021_v29 = vmul.f32 -1.442695, %v1225_v39  ;;  %1531 = vmatpush.bf16.msrb.mxu0 %v3445_v11  ;;  %1544 = vmatpush.bf16.msrb.mxu1 %v3461_v16  ;;  %v1273_v57 = vsel %vm223_vm0, %v234_v51, %v1267_v28 }
 0x164   :  { %3258 = vpow2.f32 %v3019_v31  ;;  %v1274_v39 = vsel %vm225_vm1, %v1268_v10, %v1269_v9 }
 0x165   :  { %3260 = vpow2.f32 %v3020_v20  ;;  %v1270_v20 = vsel %vm1109_vm4, %v234_v51, %v1267_v28  ;;  %v4807_v28 = vsel %vm5669_vm12, %v1273_v57, %v1274_v39 }
 0x166   :  { %v3253_v27 = vpop.eup %3252  ;;  %3262 = vpow2.f32 %v3021_v29  ;;  %v1218_v29 = vrot.slane %v4748_v52, 4 }
 0x167   :  { %v4785_v14 = vadd.f32 1.0, %v3253_v27  ;;  %1532 = vmatpush.bf16.msrb.mxu0 %v3487_v25  ;;  %1545 = vmatpush.bf16.msrb.mxu1 %v3489_v26  ;;  %v1219_v25 = vrot.slane %v4760_v53, 4 }
 0x168   :  { %v3255_v24 = vpop.eup %3254 }
 0x169   :  { %v3257_v55 = vpop.eup %3256  ;;  %v4789_v44 = vadd.f32 1.0, %v3255_v24  ;;  %3264 = vrcp.f32 %v4785_v14  ;;  %v1271_v24 = vsel %vm5702_vm5, %v1268_v10, %v1269_v9  ;;  %v1153_v51 = vand.u32 2147483647, %v4785_v14 }
 0x16a   :  { %v3259_v50 = vpop.eup %3258  ;;  %v4794_v31 = vadd.f32 1.0, %v3257_v55  ;;  %v1155_v52 = vand.u32 2147483648, %v4785_v14  ;;  %v4815_v9 = vsel %vm5678_vm6, %v1270_v20, %v1271_v24  ;;  %vm1149_vm15 = vweird.f32 %v4785_v14 }
 0x16b   :  { %3266 = vrcp.f32 %v4789_v44  ;;  %1533 = vmatpush.bf16.msrb.mxu0 %v3525_v38  ;;  %v3261_v27 = vpop.eup %3260  ;;  %v4801_v26 = vadd.f32 1.0, %v3259_v50  ;;  %1546 = vmatpush.bf16.msrb.mxu1 %v3537_v42  ;;  %v1168_v10 = vand.u32 2147483647, %v4789_v44  ;;  %v5834_v50 = vld [vmem:[#allocation15_spill] sm:$0xff]  ;;  %vm4828_vm14 = vcmp.eq.f32.partialorder %v1153_v51, 8.507059e+37 }
 0x16c   :  { %3268 = vrcp.f32 %v4794_v31  ;;  %v3263_v55 = vpop.eup %3262  ;;  %v4818_v53 = vadd.f32 1.0, %v3261_v27  ;;  %v1156_v57 = vor.u32 1.1754944e-38, %v1155_v52  ;;  %vm1164_vm13 = vweird.f32 %v4789_v44 }
 0x16d   :  { %3270 = vrcp.f32 %v4801_v26  ;;  %v4824_v42 = vadd.f32 1.0, %v3263_v55  ;;  %vm4836_vm11 = vcmp.eq.f32.partialorder %v1168_v10, 8.507059e+37  ;;  %vm1193_vm10 = vweird.f32 %v4794_v31  ;;  %v5841_v10 = vld [vmem:[#allocation20_spill] sm:$0xff] }
 0x16e   :  { %3272 = vtanh.f32 %v1218_v29  ;;  %v1170_v29 = vand.u32 2147483648, %v4789_v44  ;;  %v1197_v16 = vand.u32 2147483647, %v4794_v31  ;;  %v1199_v48 = vand.u32 2147483648, %v4794_v31 }
 0x16f   :  { %v4812_v38 = vpop.eup %3264  ;;  %1534 = vmatpush.bf16.msrb.mxu0 %v5834_v50  ;;  %3274 = vtanh.f32 %v1219_v25  ;;  %1547 = vmatpush.bf16.msrb.mxu1 %v5835_v60  ;;  %v5840_v60 = vld [vmem:[#allocation19_spill] sm:$0xff]  ;;  %vm1208_vm9 = vweird.f32 %v4801_v26  ;;  %v1212_v33 = vand.u32 2147483647, %v4801_v26 }
 0x170   :  { %v1145_v39 = vmul.f32 %v4812_v38, %v4785_v14  ;;  %3276 = vrcp.f32 %v4818_v53  ;;  %vm1150_vm12 = vweird.f32 %v4812_v38  ;;  %v1171_v49 = vor.u32 1.1754944e-38, %v1170_v29 }
 0x171   :  { %v3267_v59 = vpop.eup %3266  ;;  %3278 = vrcp.f32 %v4824_v42  ;;  %vm4858_vm8 = vmor %vm1149_vm15, %vm1150_vm12 }
 0x172   :  { %v3269_v27 = vpop.eup %3268  ;;  %v1146_v24 = vsub.f32 1.0, %v1145_v39  ;;  %v1160_v25 = vmul.f32 %v3267_v59, %v4789_v44  ;;  %vm1165_vm6 = vweird.f32 %v3267_v59 }
 0x173   :  { %v1189_v51 = vmul.f32 %v3269_v27, %v4794_v31  ;;  %1535 = vmatpush.bf16.msrb.mxu0 %v5840_v60  ;;  %v3271_v50 = vpop.eup %3270  ;;  %1548 = vmatpush.bf16.msrb.mxu1 %v5841_v10  ;;  %vm1194_vm7 = vweird.f32 %v3269_v27  ;;  %v1214_v10 = vand.u32 2147483648, %v4801_v26  ;;  %vm4874_vm12 = vmor %vm1164_vm13, %vm1165_vm6  ;;  %vm1198_vm6 = vcmp.eq.f32.partialorder %v1197_v16, 8.507059e+37  ;;  %v5849_v31 = vld [vmem:[#allocation28_spill] sm:$0xff] }
 0x174   :  { %v1147_v39 = vmul.f32 %v4812_v38, %v1146_v24  ;;  %v1161_v52 = vsub.f32 1.0, %v1160_v25  ;;  %v3273_v11 = vpop.eup %3272  ;;  %v1204_v47 = vmul.f32 %v3271_v50, %v4801_v26  ;;  %vm1195_vm15 = vmor %vm1193_vm10, %vm1194_vm7  ;;  %vm1213_vm7 = vcmp.eq.f32.partialorder %v1212_v33, 8.507059e+37 }
 0x175   :  { %v1190_v40 = vsub.f32 1.0, %v1189_v51  ;;  %v3275_v63 = vpop.eup %3274  ;;  %vm1241_vm10 = vweird.f32 %v4818_v53 }
 0x176   :  { %v1148_v60 = vadd.f32 %v4812_v38, %v1147_v39  ;;  %v1162_v2 = vmul.f32 %v3267_v59, %v1161_v52  ;;  %v4852_v24 = vpop.eup %3276  ;;  %v1205_v51 = vsub.f32 1.0, %v1204_v47  ;;  %v5844_v39 = vld [vmem:[#allocation23_spill] sm:$0xff]  ;;  %v5852_v47 = vld [vmem:[#allocation33_spill] sm:$0xff] }
 0x177   :  { %v1191_v25 = vmul.f32 %v3269_v27, %v1190_v40  ;;  %1536 = vmatpush.bf16.msrb.mxu0 %v5844_v39  ;;  %v1237_v14 = vmul.f32 %v4852_v24, %v4818_v53  ;;  %1549 = vmatpush.bf16.msrb.mxu1 %v5845_v18  ;;  %v3279_v8 = vpop.eup %3278  ;;  %v1200_v39 = vor.u32 1.1754944e-38, %v1199_v48  ;;  %v5848_v48 = vld [vmem:[#allocation27_spill] sm:$0xff] }
 0x178   :  { %v1152_v52 = vsel %vm4858_vm8, %v4812_v38, %v1148_v60  ;;  %v1163_v34 = vadd.f32 %v3267_v59, %v1162_v2  ;;  %v1206_v29 = vmul.f32 %v3271_v50, %v1205_v51  ;;  %vm1209_vm8 = vweird.f32 %v3271_v50 }
 0x179   :  { %v1192_v40 = vadd.f32 %v3269_v27, %v1191_v25  ;;  %v1157_v38 = vsel %vm4828_vm14, %v1156_v57, %v1152_v52  ;;  %v1238_v2 = vsub.f32 1.0, %v1237_v14  ;;  %v1252_v44 = vmul.f32 %v3279_v8, %v4824_v42  ;;  %vm1210_vm13 = vmor %vm1208_vm9, %vm1209_vm8 }
 0x17a   :  { %v1167_v60 = vsel %vm4874_vm12, %v3267_v59, %v1163_v34  ;;  %v1207_v21 = vadd.f32 %v3271_v50, %v1206_v29  ;;  %v1215_v25 = vor.u32 1.1754944e-38, %v1214_v10  ;;  %v5850_v14 = vrot.slane %v4807_v28, 1 }
 0x17b   :  { %v1196_v18 = vsel %vm1195_vm15, %v3269_v27, %v1192_v40  ;;  %1537 = vmatpush.bf16.msrb.mxu0 %v5848_v48  ;;  %v1172_v20 = vsel %vm4836_vm11, %v1171_v49, %v1167_v60  ;;  %v1239_v34 = vmul.f32 %v4852_v24, %v1238_v2  ;;  %v1253_v59 = vsub.f32 1.0, %v1252_v44  ;;  %1550 = vmatpush.bf16.msrb.mxu1 %v5849_v31 }
 0x17c   :  { %v1201_v57 = vsel %vm1198_vm6, %v1200_v39, %v1196_v18  ;;  %v1211_v51 = vsel %vm1210_vm13, %v3271_v50, %v1207_v21  ;;  %v1281_v27 = vmul.f32 %v3273_v11, %v1157_v38  ;;  %v1282_v49 = vmul.f32 %v3275_v63, %v1172_v20  ;;  %v5851_v39 = vld [vmem:[#allocation31_spill] sm:$0xff] }
 0x17d   :  { %v1279_v16 = vmul.f32 %v4815_v9, %v1201_v57  ;;  %v1216_v10 = vsel %vm1213_vm7, %v1215_v25, %v1211_v51  ;;  %v1254_v52 = vmul.f32 %v3279_v8, %v1253_v59  ;;  %v1240_v26 = vadd.f32 %v4852_v24, %v1239_v34  ;;  %v1473_v9 = vpop.permute.xlu1 %1472 }
 0x17e   :  { %v1280_v55 = vmul.f32 %v5850_v14, %v1216_v10  ;;  %vm1242_vm9 = vweird.f32 %v4852_v24  ;;  %v1247_v21 = vand.u32 2147483648, %v4818_v53  ;;  %v1245_v11 = vand.u32 2147483647, %v4818_v53 }
 0x17f   :  { %v1283_v18 = vadd.f32 %v1281_v27, %v1279_v16  ;;  %1538 = vmatpush.bf16.msrb.mxu0 %v5851_v39  ;;  %1551 = vmatpush.bf16.msrb.mxu1 %v5852_v47  ;;  %v1255_v28 = vadd.f32 %v3279_v8, %v1254_v52  ;;  %vm1257_vm11 = vweird.f32 %v3279_v8  ;;  %vm1243_vm14 = vmor %vm1241_vm10, %vm1242_vm9  ;;  %v1262_v63 = vand.u32 2147483648, %v4824_v42 }
 0x180   :  { %v1284_v33 = vadd.f32 %v1282_v49, %v1280_v55  ;;  %v1244_v50 = vsel %vm1243_vm14, %v4852_v24, %v1240_v26  ;;  %vm1256_vm12 = vweird.f32 %v4824_v42  ;;  %v1260_v40 = vand.u32 2147483647, %v4824_v42  ;;  %v5853_v24 = vld [vmem:[#allocation65_spill] sm:$0xff] }
 0x181   :  { %3280 = vtanh.f32 %v1283_v18  ;;  %v1248_v29 = vor.u32 1.1754944e-38, %v1247_v21  ;;  %vm1258_vm8 = vmor %vm1256_vm12, %vm1257_vm11  ;;  %vm1246_vm15 = vcmp.eq.f32.partialorder %v1245_v11, 8.507059e+37  ;;  %v1263_v53 = vor.u32 1.1754944e-38, %v1262_v63 }
 0x182   :  { %3282 = vtanh.f32 %v1284_v33  ;;  %v1259_v38 = vsel %vm1258_vm8, %v3279_v8, %v1255_v28  ;;  %vm1261_vm6 = vcmp.eq.f32.partialorder %v1260_v40, 8.507059e+37  ;;  %v1481_v51 = vperm.slane %v1473_v9, %v5853_v24 }
 0x183   :  { %v1249_v2 = vsel %vm1246_vm15, %v1248_v29, %v1244_v50  ;;  %v1264_v20 = vsel %vm1261_vm6, %v1263_v53, %v1259_v38  ;;  %vm5967_vm13 = vcmask 1044484   ;;  %vm5968_vm7 = vcmask 1046534  }
 0x184   :  { %v1484_v55 = vrot.slane %v1481_v51, 7  ;;  %vm5969_vm9 = vcmask 1046528   ;;  %vm5970_vm10 = vcmask 1041408   ;;  %vm5971_vm11 = vcmask 1042433  }
 0x185   :  { %v1469_v27 = vpop.permute.xlu1 %1468  ;;  %vm5972_vm14 = vcmask 1045508   ;;  %vm5973_vm12 = vcmask 1046533   ;;  %vm5974_vm8 = vcmask 1043456   ;;  %vm5975_vm15 = vcmask 1044481   ;;  %vm5976_vm6 = vmmov %vm5971_vm11 }
 0x186   :  { %v1477_v49 = vperm.slane %v1469_v27, %v5853_v24  ;;  %v5860_v27 = vld [vmem:[#allocation47_spill] sm:$0xff] }
 0x187   :  { %v3281_v60 = vpop.eup %3280 }
 0x188   :  { %v1287_v44 = vmul.f32 %v3281_v60, %v1249_v2  ;;  %v3283_v25 = vpop.eup %3282  ;;  %v1485_v9 = vsel %vm223_vm0, %v1484_v55, %v1477_v49 }
 0x189   :  { %v1288_v57 = vmul.f32 %v3283_v25, %v1264_v20  ;;  %v1486_v53 = vsel %vm225_vm1, %v1484_v55, %v1485_v9  ;;  %v5855_v25 = vld [vmem:[#allocation36_spill] sm:$0xff]  ;;  %v5870_v9 = vld [vmem:[#allocation59_spill] sm:$0xff] }
 0x18a   :  { %1291 = vst [vmem:[#allocation1] ss:$2 sm:$0xff] %v1287_v44  ;;  %v1305_v34 = vperm.slane %v1287_v44, 0  ;;  %v1306_v59 = vperm.slane %v1287_v44, 1  ;;  %v5854_v44 = vld [vmem:[#allocation35_spill] sm:$0xff] }
 0x18b   :  { %1293 = vst [vmem:[#allocation1 + $0x1] ss:$2 sm:$0xff] %v1288_v57  ;;  %v1307_v16 = vperm.slane %v1288_v57, 0  ;;  %v1308_v42 = vperm.slane %v1288_v57, 1  ;;  %v5856_v57 = vld [vmem:[#allocation39_spill] sm:$0xff] }
 0x18c   :  { %v1313_v10 = vpack.c.bf16 %v1305_v34, %v1305_v34  ;;  %v1314_v8 = vpack.c.bf16 %v1306_v59, %v1306_v59  ;;  %v5857_v34 = vld [vmem:[#allocation40_spill] sm:$0xff] }
 0x18d   :  { %v1315_v52 = vpack.c.bf16 %v1307_v16, %v1307_v16  ;;  %v1316_v14 = vpack.c.bf16 %v1308_v42, %v1308_v42  ;;  %v5858_v16 = vld [vmem:[#allocation43_spill] sm:$0xff]  ;;  %v5859_v42 = vld [vmem:[#allocation44_spill] sm:$0xff] }
 0x18e   :  { %v1324_v11 = vunpack.c.l.b16 %v1313_v10  ;;  %v1325_v63 = vunpack.c.l.b16 %v1314_v8  ;;  %v5861_v10 = vld [vmem:[#allocation48_spill] sm:$0xff]  ;;  %v5862_v8 = vld [vmem:[#allocation51_spill] sm:$0xff] }
 0x18f   :  { %v1326_v26 = vunpack.c.l.b16 %v1315_v52  ;;  %v1327_v21 = vunpack.c.l.b16 %v1316_v14  ;;  %v5863_v14 = vld [vmem:[#allocation52_spill] sm:$0xff] }
 0x191   :  { %v1328_v28 = vrot.slane %v1326_v26, 7  ;;  %v1330_v50 = vrot.slane %v1327_v21, 7  ;;  %v5864_v21 = vld [vmem:[#allocation66_spill] sm:$0xff] }
 0x192   :  { %v1294_v40 = vld [vmem:[#allocation1] sm:$0xff] }
 0x193   :  { %1299 = vst [vmem:[#allocation1] ss:$2 sm:$0xff] %v1283_v18  ;;  %v1329_v29 = vsel %vm223_vm0, %v1328_v28, %v1324_v11  ;;  %v1331_v38 = vsel %vm223_vm0, %v1330_v50, %v1325_v63  ;;  %v1487_v18 = vsel %vm227_vm2, %v1484_v55, %v1486_v53  ;;  %v5865_v11 = vld [vmem:[#allocation67_spill] sm:$0xff]  ;;  %v5867_v63 = vld [vmem:[#allocation56_spill] sm:$0xff]  ;;  %v5868_v50 = vld [vmem:[#allocation70_spill] sm:$0xff] }
 0x194   :  { %1301 = vst [vmem:[#allocation1 + $0x1] ss:$2 sm:$0xff] %v1284_v33  ;;  %v1332_v60 = vpack.c.b16 %v1329_v29, %v1329_v29  ;;  %v1333_v2 = vpack.c.b16 %v1331_v38, %v1331_v38  ;;  %v4919_v59 = vsel %vm229_vm3, %v1484_v55, %v1487_v18  ;;  %v5866_v28 = vld [vmem:[#allocation55_spill] sm:$0xff]  ;;  %v5871_v29 = vld [vmem:[#allocation60_spill] sm:$0xff]  ;;  %v5872_v38 = vld [vmem:[#allocation74_spill] sm:$0xff] }
 0x195   :  { %1296 = vst [vmem:[#allocation2] sm:$0xf] %v1294_v40  ;;  %v5869_v40 = vld [vmem:[#allocation71_spill] sm:$0xff]  ;;  %v5875_v53 = vld [vmem:[#allocation64_spill] sm:$0xff] }
 0x196   :  { %1440 = vmatmul.bf16.vlgmr.msra.gmra.mxu0 %v1332_v60  ;;  %1453 = vmatmul.bf16.vlgmr.msra.gmra.mxu1 %v1333_v2  ;;  %v5873_v60 = vld [vmem:[#allocation75_spill] sm:$0xff]  ;;  %v5876_v18 = vld [vmem:[#allocation68_spill] sm:$0xff] }
 0x197   :  { %1583 = vmatpush.bf16.msra.mxu0 %v5854_v44  ;;  %1596 = vmatpush.bf16.msra.mxu1 %v5855_v25  ;;  %v5874_v2 = vld [vmem:[#allocation63_spill] sm:$0xff] }
 0x19b   :  { %v1302_v20 = vld [vmem:[#allocation1] sm:$0xff]  ;;  %1584 = vmatpush.bf16.msra.mxu0 %v5856_v57  ;;  %1597 = vmatpush.bf16.msra.mxu1 %v5857_v34 }
 0x19c   :  { %1304 = vst [vmem:[#allocation3] sm:$0xf] %v1302_v20  ;;  %v1465_v33 = vld [vmem:[#allocation2] sm:$0xf]  ;;  %v5877_v20 = vld [vmem:[#allocation78_spill] sm:$0xff] }
 0x19d   :  { %v1490_v51 = vmul.f32 %v4919_v59, %v1465_v33  ;;  %v5878_v33 = vld [vmem:[#allocation69_spill] sm:$0xff] }
 0x19f   :  { %1498 = vst [vmem:[#allocation1] ss:$4 sm:$0xff] %v1490_v51  ;;  %1585 = vmatpush.bf16.msra.mxu0 %v5858_v16  ;;  %1598 = vmatpush.bf16.msra.mxu1 %v5859_v42  ;;  %v5879_v51 = vld [vmem:[#allocation79_spill] sm:$0xff] }
 0x1a3   :  { %1586 = vmatpush.bf16.msra.mxu0 %v5860_v27  ;;  %1599 = vmatpush.bf16.msra.mxu1 %v5861_v10 }
 0x1a6   :  { %v1499_v52 = vld.sshfl [vmem:[#allocation1] sm:$0xff pattern:$0x73625140]  ;;  %v1500_v55 = vld.sshfl [vmem:[#allocation1 + $0x8] sm:$0xff pattern:$0x73625140] }
 0x1a7   :  { %1587 = vmatpush.bf16.msra.mxu0 %v5862_v8  ;;  %1600 = vmatpush.bf16.msra.mxu1 %v5863_v14  ;;  %v4928_v49 = vpack.c.bf16 %v1499_v52, %v1499_v52  ;;  %v4931_v26 = vpack.c.bf16 %v1500_v55, %v1500_v55  ;;  %v5880_v52 = vld [vmem:[#allocation82_spill] sm:$0xff]  ;;  %v5881_v55 = vld [vmem:[#allocation72_spill] sm:$0xff] }
 0x1a9   :  { %1513 = vmatmul.bf16.vlgmr.msra.gmra.mxu2 %v4928_v49  ;;  %1539 = vmatmul.bf16.vlgmr.msrb.gmra.mxu0 %v4928_v49 }
 0x1aa   :  { %1609 = vmatpush.bf16.msra.mxu2 %v5864_v21  ;;  %1526 = vmatmul.bf16.vlgmr.msra.gmra.mxu3 %v4931_v26 }
 0x1ab   :  { %1552 = vmatmul.bf16.vlgmr.msrb.gmra.mxu1 %v4931_v26  ;;  %1622 = vmatpush.bf16.msra.mxu3 %v5865_v11 }
 0x1ac   :  { %1588 = vmatpush.bf16.msra.mxu0 %v5866_v28  ;;  %1601 = vmatpush.bf16.msra.mxu1 %v5867_v63 }
 0x1ae   :  { %1610 = vmatpush.bf16.msra.mxu2 %v5868_v50 }
 0x1af   :  { %1623 = vmatpush.bf16.msra.mxu3 %v5869_v40 }
 0x1b0   :  { %1589 = vmatpush.bf16.msra.mxu0 %v5870_v9  ;;  %1602 = vmatpush.bf16.msra.mxu1 %v5871_v29 }
 0x1b2   :  { %1611 = vmatpush.bf16.msra.mxu2 %v5872_v38  ;;  %v5891_v38 = vld [vmem:[#allocation81_spill] sm:$0xff] }
 0x1b3   :  { %1624 = vmatpush.bf16.msra.mxu3 %v5873_v60  ;;  %v5888_v60 = vld [vmem:[#allocation90_spill] sm:$0xff] }
 0x1b4   :  { %1590 = vmatpush.bf16.msra.mxu0 %v5874_v2  ;;  %1603 = vmatpush.bf16.msra.mxu1 %v5875_v53  ;;  %v5882_v53 = vld [vmem:[#allocation83_spill] sm:$0xff]  ;;  %v5887_v2 = vld [vmem:[#allocation77_spill] sm:$0xff] }
 0x1b6   :  { %1612 = vmatpush.bf16.msra.mxu2 %v5877_v20  ;;  %v5884_v20 = vld [vmem:[#allocation86_spill] sm:$0xff] }
 0x1b7   :  { %1625 = vmatpush.bf16.msra.mxu3 %v5879_v51  ;;  %v5886_v51 = vld [vmem:[#allocation87_spill] sm:$0xff] }
 0x1b8   :  { %1635 = vmatpush.bf16.msrb.mxu0 %v5876_v18  ;;  %1648 = vmatpush.bf16.msrb.mxu1 %v5878_v33  ;;  %v5883_v18 = vld [vmem:[#allocation73_spill] sm:$0xff]  ;;  %v5885_v33 = vld [vmem:[#allocation76_spill] sm:$0xff] }
 0x1b9   :  { %1565 = vmatmul.bf16.vlgmr.msrb.gmra.mxu2 %v4928_v49  ;;  %1591 = vmatmul.bf16.vlgmr.msra.gmra.mxu0 %v4928_v49 }
 0x1ba   :  { %1613 = vmatpush.bf16.msra.mxu2 %v5880_v52  ;;  %1578 = vmatmul.bf16.vlgmr.msrb.gmra.mxu3 %v4931_v26  ;;  %v5889_v52 = vld [vmem:[#allocation80_spill] sm:$0xff] }
 0x1bb   :  { %1604 = vmatmul.bf16.vlgmr.msra.gmra.mxu1 %v4931_v26  ;;  %1626 = vmatpush.bf16.msra.mxu3 %v5882_v53  ;;  %v5892_v53 = vld [vmem:[#allocation84_spill] sm:$0xff] }
 0x1bc   :  { %1636 = vmatpush.bf16.msrb.mxu0 %v5881_v55  ;;  %1649 = vmatpush.bf16.msrb.mxu1 %v5883_v18  ;;  %v5890_v55 = vld [vmem:[#allocation91_spill] sm:$0xff] }
 0x1be   :  { %1614 = vmatpush.bf16.msra.mxu2 %v5884_v20 }
 0x1bf   :  { %1627 = vmatpush.bf16.msra.mxu3 %v5886_v51 }
 0x1c0   :  { %1637 = vmatpush.bf16.msrb.mxu0 %v5885_v33  ;;  %1650 = vmatpush.bf16.msrb.mxu1 %v5887_v2  ;;  %v5893_v33 = vld [vmem:[#allocation85_spill] sm:$0xff] }
 0x1c2   :  { %1615 = vmatpush.bf16.msra.mxu2 %v5888_v60  ;;  %v5894_v60 = vld [vmem:[#allocation88_spill] sm:$0xff] }
 0x1c3   :  { %1628 = vmatpush.bf16.msra.mxu3 %v5890_v55  ;;  %v5903_v55 = vld [vmem:[#allocation97_spill] sm:$0xff] }
 0x1c4   :  { %1638 = vmatpush.bf16.msrb.mxu0 %v5889_v52  ;;  %1651 = vmatpush.bf16.msrb.mxu1 %v5891_v38  ;;  %v5895_v52 = vld [vmem:[#allocation89_spill] sm:$0xff] }
 0x1c6   :  { %1616 = vmatpush.bf16.msra.mxu2 %v4317_v61  ;;  %v5899_v61 = vld [vmem:[#allocation106_spill] sm:$0xff] }
 0x1c7   :  { %1629 = vmatpush.bf16.msra.mxu3 %v4319_v13  ;;  %v5898_v13 = vld [vmem:[#allocation93_spill] sm:$0xff] }
 0x1c8   :  { %1639 = vmatpush.bf16.msrb.mxu0 %v5892_v53  ;;  %1652 = vmatpush.bf16.msrb.mxu1 %v5893_v33  ;;  %v5896_v53 = vld [vmem:[#allocation92_spill] sm:$0xff]  ;;  %v5901_v33 = vld [vmem:[#allocation109_spill] sm:$0xff] }
 0x1c9   :  { %1617 = vmatmul.bf16.vlgmr.msra.gmra.mxu2 %v4928_v49 }
 0x1ca   :  { %1661 = vmatpush.bf16.msrb.mxu2 %v4336_v45  ;;  %1630 = vmatmul.bf16.vlgmr.msra.gmra.mxu3 %v4931_v26  ;;  %v5897_v45 = vld [vmem:[#allocation105_spill] sm:$0xff] }
 0x1cb   :  { %1674 = vmatpush.bf16.msrb.mxu3 %v4338_v37  ;;  %v5900_v37 = vld [vmem:[#allocation96_spill] sm:$0xff] }
 0x1cc   :  { %1640 = vmatpush.bf16.msrb.mxu0 %v5894_v60  ;;  %1653 = vmatpush.bf16.msrb.mxu1 %v5895_v52  ;;  %v5902_v60 = vld [vmem:[#allocation100_spill] sm:$0xff]  ;;  %v5905_v52 = vld [vmem:[#allocation101_spill] sm:$0xff] }
 0x1ce   :  { %1662 = vmatpush.bf16.msrb.mxu2 %v4374_v22  ;;  %v5904_v22 = vld [vmem:[#allocation110_spill] sm:$0xff] }
 0x1cf   :  { %1675 = vmatpush.bf16.msrb.mxu3 %v4376_v4 }
 0x1d0   :  { %1641 = vmatpush.bf16.msrb.mxu0 %v5896_v53  ;;  %1654 = vmatpush.bf16.msrb.mxu1 %v5898_v13  ;;  %v5907_v53 = vld [vmem:[#allocation103_spill] sm:$0xff] }
 0x1d2   :  { %1663 = vmatpush.bf16.msrb.mxu2 %v5897_v45  ;;  %v5906_v45 = vld [vmem:[#allocation113_spill] sm:$0xff] }
 0x1d3   :  { %1676 = vmatpush.bf16.msrb.mxu3 %v5899_v61  ;;  %v5908_v61 = vld [vmem:[#allocation114_spill] sm:$0xff] }
 0x1d4   :  { %1642 = vmatpush.bf16.msrb.mxu0 %v5900_v37  ;;  %1655 = vmatpush.bf16.msrb.mxu1 %v5903_v55  ;;  %v5909_v37 = vld [vmem:[#allocation104_spill] sm:$0xff] }
 0x1d6   :  { %1664 = vmatpush.bf16.msrb.mxu2 %v5901_v33  ;;  %v5910_v33 = vld [vmem:[#allocation117_spill] sm:$0xff] }
 0x1d7   :  { %1677 = vmatpush.bf16.msrb.mxu3 %v5904_v22  ;;  %1643 = vmatmul.bf16.vlgmr.msrb.gmra.mxu0 %v4928_v49  ;;  %v5912_v22 = vld [vmem:[#allocation108_spill] sm:$0xff] }
 0x1d8   :  { %1687 = vmatpush.bf16.msra.mxu0 %v5902_v60  ;;  %1700 = vmatpush.bf16.msra.mxu1 %v5905_v52  ;;  %v5911_v60 = vld [vmem:[#allocation107_spill] sm:$0xff] }
 0x1d9   :  { %1656 = vmatmul.bf16.vlgmr.msrb.gmra.mxu1 %v4931_v26  ;;  %v5913_v52 = vld [vmem:[#allocation111_spill] sm:$0xff] }
 0x1da   :  { %1665 = vmatpush.bf16.msrb.mxu2 %v5906_v45  ;;  %v5914_v45 = vld [vmem:[#allocation112_spill] sm:$0xff] }
 0x1db   :  { %1678 = vmatpush.bf16.msrb.mxu3 %v5908_v61 }
 0x1dc   :  { %1688 = vmatpush.bf16.msra.mxu0 %v5907_v53  ;;  %1701 = vmatpush.bf16.msra.mxu1 %v5909_v37  ;;  %v5915_v53 = vld [vmem:[#allocation115_spill] sm:$0xff] }
 0x1de   :  { %1666 = vmatpush.bf16.msrb.mxu2 %v5910_v33 }
 0x1df   :  { %1679 = vmatpush.bf16.msrb.mxu3 %v4524_v3 }
 0x1e0   :  { %1689 = vmatpush.bf16.msra.mxu0 %v5911_v60  ;;  %1702 = vmatpush.bf16.msra.mxu1 %v5912_v22  ;;  %v5916_v60 = vld [vmem:[#allocation116_spill] sm:$0xff] }
 0x1e2   :  { %1667 = vmatpush.bf16.msrb.mxu2 %v4558_v35 }
 0x1e3   :  { %1680 = vmatpush.bf16.msrb.mxu3 %v4560_v1  ;;  %v5918_v1 = vld [vmem:[#allocation120_spill] sm:$0xff] }
 0x1e4   :  { %1690 = vmatpush.bf16.msra.mxu0 %v5913_v52  ;;  %1703 = vmatpush.bf16.msra.mxu1 %v5914_v45  ;;  %v5917_v52 = vld [vmem:[#allocation119_spill] sm:$0xff] }
 0x1e6   :  { %1668 = vmatpush.bf16.msrb.mxu2 %v4594_v36 }
 0x1e7   :  { %1681 = vmatpush.bf16.msrb.mxu3 %v4596_v19 }
 0x1e8   :  { %1691 = vmatpush.bf16.msra.mxu0 %v5915_v53  ;;  %1704 = vmatpush.bf16.msra.mxu1 %v5916_v60 }
 0x1e9   :  { %1669 = vmatmul.bf16.vlgmr.msrb.gmra.mxu2 %v4928_v49 }
 0x1ea   :  { %1944 = vmatpush.bf16.msra.mxu2 %v4659_v56  ;;  %1682 = vmatmul.bf16.vlgmr.msrb.gmra.mxu3 %v4931_v26  ;;  %v5919_v56 = vld [vmem:[#allocation6_spill] sm:$0xff] }
 0x1eb   :  { %1957 = vmatpush.bf16.msra.mxu3 %v4664_v46  ;;  %v5920_v46 = vld [vmem:[#allocation129_spill] sm:$0xff] }
 0x1ec   :  { %1692 = vmatpush.bf16.msra.mxu0 %v5917_v52  ;;  %1705 = vmatpush.bf16.msra.mxu1 %v5918_v1 }
 0x1ee   :  { %1945 = vmatpush.bf16.msra.mxu2 %v4671_v5  ;;  %v5921_v5 = vld [vmem:[#allocation130_spill] sm:$0xff] }
 0x1ef   :  { %1958 = vmatpush.bf16.msra.mxu3 %v4676_v32  ;;  %v5922_v32 = vld [vmem:[#allocation9_spill] sm:$0xff] }
 0x1f0   :  { %1693 = vmatpush.bf16.msra.mxu0 %v4570_v15  ;;  %1706 = vmatpush.bf16.msra.mxu1 %v4572_v23 }
 0x1f2   :  { %1946 = vmatpush.bf16.msra.mxu2 %v4683_v41  ;;  %v5924_v41 = vld [vmem:[#allocation131_spill] sm:$0xff] }
 0x1f3   :  { %1959 = vmatpush.bf16.msra.mxu3 %v4688_v12  ;;  %v5926_v12 = vld [vmem:[#allocation13_spill] sm:$0xff] }
 0x1f4   :  { %1694 = vmatpush.bf16.msra.mxu0 %v4600_v43  ;;  %1707 = vmatpush.bf16.msra.mxu1 %v4602_v54 }
 0x1f6   :  { %1947 = vmatpush.bf16.msra.mxu2 %v4695_v0  ;;  %v5928_v0 = vld [vmem:[#allocation133_spill] sm:$0xff] }
 0x1f7   :  { %1960 = vmatpush.bf16.msra.mxu3 %v4700_v62  ;;  %1695 = vmatmul.bf16.vlgmr.msra.gmra.mxu0 %v4928_v49  ;;  %v5930_v62 = vld [vmem:[#allocation4_spill] sm:$0xff]  ;;  %v5932_v49 = vld [vmem:[#allocation17_spill] sm:$0xff] }
 0x1f8   :  { %2017 = vmatpush.bf16.msrb.mxu0 %v3432_v6  ;;  %2030 = vmatpush.bf16.msrb.mxu1 %v3434_v7  ;;  %v5923_v6 = vld [vmem:[#allocation10_spill] sm:$0xff]  ;;  %v5925_v7 = vld [vmem:[#allocation132_spill] sm:$0xff] }
 0x1f9   :  { %1708 = vmatmul.bf16.vlgmr.msra.gmra.mxu1 %v4931_v26  ;;  %v5933_v26 = vld [vmem:[#allocation18_spill] sm:$0xff] }
 0x1fa   :  { %1948 = vmatpush.bf16.msra.mxu2 %v4707_v58  ;;  %v5927_v58 = vld [vmem:[#allocation14_spill] sm:$0xff] }
 0x1fb   :  { %1961 = vmatpush.bf16.msra.mxu3 %v4712_v30  ;;  %v5931_v30 = vld [vmem:[#allocation5_spill] sm:$0xff] }
 0x1fc   :  { %2018 = vmatpush.bf16.msrb.mxu0 %v3463_v17  ;;  %2031 = vmatpush.bf16.msrb.mxu1 %v5919_v56  ;;  %v5929_v17 = vld [vmem:[#allocation134_spill] sm:$0xff]  ;;  %v5934_v56 = vld [vmem:[#allocation7_spill] sm:$0xff] }
 0x1fe   :  { %1949 = vmatpush.bf16.msra.mxu2 %v5920_v46  ;;  %v5935_v46 = vld [vmem:[#allocation8_spill] sm:$0xff] }
 0x1ff   :  { %1962 = vmatpush.bf16.msra.mxu3 %v5921_v5  ;;  %v5936_v5 = vld [vmem:[#allocation21_spill] sm:$0xff] }
 0x200   :  { %2019 = vmatpush.bf16.msrb.mxu0 %v5922_v32  ;;  %2032 = vmatpush.bf16.msrb.mxu1 %v5923_v6  ;;  %v5937_v32 = vld [vmem:[#allocation22_spill] sm:$0xff]  ;;  %v5938_v6 = vld [vmem:[#allocation11_spill] sm:$0xff] }
 0x202   :  { %1950 = vmatpush.bf16.msra.mxu2 %v5924_v41  ;;  %v5939_v41 = vld [vmem:[#allocation12_spill] sm:$0xff] }
 0x203   :  { %1963 = vmatpush.bf16.msra.mxu3 %v5925_v7  ;;  %v5940_v7 = vld [vmem:[#allocation25_spill] sm:$0xff] }
 0x204   :  { %2020 = vmatpush.bf16.msrb.mxu0 %v5926_v12  ;;  %2033 = vmatpush.bf16.msrb.mxu1 %v5927_v58  ;;  %v5941_v12 = vld [vmem:[#allocation26_spill] sm:$0xff]  ;;  %v5942_v58 = vld [vmem:[#allocation15_spill] sm:$0xff] }
 0x206   :  { %1951 = vmatpush.bf16.msra.mxu2 %v5928_v0  ;;  %v5943_v0 = vld [vmem:[#allocation16_spill] sm:$0xff] }
 0x207   :  { %1964 = vmatpush.bf16.msra.mxu3 %v5929_v17  ;;  %v5944_v17 = vld [vmem:[#allocation29_spill] sm:$0xff] }
 0x208   :  { %2021 = vmatpush.bf16.msrb.mxu0 %v5932_v49  ;;  %2034 = vmatpush.bf16.msrb.mxu1 %v5933_v26  ;;  %v5947_v49 = vld [vmem:[#allocation32_spill] sm:$0xff]  ;;  %v5948_v26 = vld [vmem:[#allocation34_spill] sm:$0xff] }
 0x20a   :  { %2043 = vmatpush.bf16.msrb.mxu2 %v5930_v62  ;;  %v5060_v62 = vld [vmem:[%s5481_s6] ss:$0 sm:$0xff] }
 0x20b   :  { %2056 = vmatpush.bf16.msrb.mxu3 %v5931_v30  ;;  %5945 = vst [vmem:[#allocation27_spill] sm:$0xff] %v5060_v62  ;;  %v5946_v30 = vld [vmem:[#allocation30_spill] sm:$0xff] }
 0x20c   :  { %2022 = vmatpush.bf16.msrb.mxu0 %v5936_v5  ;;  %2035 = vmatpush.bf16.msrb.mxu1 %v5937_v32  ;;  %v5950_v32 = vld [vmem:[#allocation20_spill] sm:$0xff] }
 0x20e   :  { %2044 = vmatpush.bf16.msrb.mxu2 %v5934_v56  ;;  %v5949_v56 = vld [vmem:[#allocation19_spill] sm:$0xff] }
 0x20f   :  { %2057 = vmatpush.bf16.msrb.mxu3 %v5935_v46 }
 0x210   :  { %2023 = vmatpush.bf16.msrb.mxu0 %v5940_v7  ;;  %2036 = vmatpush.bf16.msrb.mxu1 %v5941_v12  ;;  %v5952_v7 = vld [vmem:[#allocation38_spill] sm:$0xff] }
 0x212   :  { %2045 = vmatpush.bf16.msrb.mxu2 %v5938_v6 }
 0x213   :  { %2058 = vmatpush.bf16.msrb.mxu3 %v5939_v41  ;;  %v1441_v46 = vpop.f32.mrf.mxu0  ;;  %v1454_v5 = vpop.f32.mrf.mxu1  ;;  %v5951_v41 = vld [vmem:[#allocation37_spill] sm:$0xff] }
 0x214   :  { %2024 = vmatpush.bf16.msrb.mxu0 %v5944_v17  ;;  %2037 = vmatpush.bf16.msrb.mxu1 %v5946_v30  ;;  %v1442_v6 = vadd.f32 %v5060_v62, %v1441_v46  ;;  %v5955_v30 = vld [vmem:[#allocation41_spill] sm:$0xff] }
 0x215   :  { %v5957_v46 = vld [vmem:[#allocation45_spill] sm:$0xff] }
 0x216   :  { %2046 = vmatpush.bf16.msrb.mxu2 %v5942_v58  ;;  %v1455_v12 = vadd.f32 %v1454_v5, %v1442_v6  ;;  %v5953_v58 = vld [vmem:[#allocation23_spill] sm:$0xff]  ;;  %v5958_v5 = vld [vmem:[#allocation46_spill] sm:$0xff] }
 0x217   :  { %2059 = vmatpush.bf16.msrb.mxu3 %v5943_v0  ;;  %v5954_v0 = vld [vmem:[#allocation24_spill] sm:$0xff]  ;;  %v5960_v6 = vld [vmem:[#allocation50_spill] sm:$0xff] }
 0x218   :  { %2069 = vmatpush.bf16.msra.mxu0 %v5947_v49  ;;  %2082 = vmatpush.bf16.msra.mxu1 %v5948_v26  ;;  %v1459_v17 = vrot.slane %v1455_v12, 1  ;;  %1461 = vst [vmem:[%s5482_s7] sm:$0x1] %v1455_v12  ;;  %v5956_v49 = vld [vmem:[#allocation42_spill] sm:$0xff] }
 0x21a   :  { %2047 = vmatpush.bf16.msrb.mxu2 %v5949_v56  ;;  %1462 = vst [vmem:[%s5482_s7 + $0x4] sm:$0x1] %v1459_v17  ;;  %v5965_v17 = vld [vmem:[#allocation61_spill] sm:$0xff] }
 0x21b   :  { %2060 = vmatpush.bf16.msrb.mxu3 %v5950_v32  ;;  %v1443_v26 = vpop.f32.mrf.mxu0  ;;  %v1456_v56 = vpop.f32.mrf.mxu1  ;;  %v5959_v32 = vld [vmem:[#allocation49_spill] sm:$0xff] }
 0x21c   :  { %2070 = vmatpush.bf16.msra.mxu0 %v5951_v41  ;;  %2083 = vmatpush.bf16.msra.mxu1 %v5952_v7  ;;  %v5961_v41 = vld [vmem:[#allocation53_spill] sm:$0xff]  ;;  %v5962_v7 = vld [vmem:[#allocation54_spill] sm:$0xff] }
 0x21e   :  { %2048 = vmatpush.bf16.msrb.mxu2 %v5953_v58  ;;  %v5963_v58 = vld [vmem:[#allocation57_spill] sm:$0xff] }
 0x21f   :  { %2061 = vmatpush.bf16.msrb.mxu3 %v5954_v0  ;;  %v5964_v0 = vld [vmem:[#allocation58_spill] sm:$0xff] }
 0x220   :  { %2071 = vmatpush.bf16.msra.mxu0 %v5955_v30  ;;  %2084 = vmatpush.bf16.msra.mxu1 %v5956_v49  ;;  %v5966_v30 = vld [vmem:[#allocation62_spill] sm:$0xff] }
 0x222   :  { %2049 = vmatpush.bf16.msrb.mxu2 %v5848_v48 }
 0x223   :  { %2062 = vmatpush.bf16.msrb.mxu3 %v5849_v31  ;;  %v1976_v31 = vld [vmem:[%s5475_s1 + $0x6] sm:$0x1] }
 0x224   :  { %2072 = vmatpush.bf16.msra.mxu0 %v5957_v46  ;;  %2085 = vmatpush.bf16.msra.mxu1 %v5958_v5 }
 0x225   :  { %1984 = vperm.xlu2 %3250, %v1976_v31  }
 0x226   :  { %2050 = vmatpush.bf16.msrb.mxu2 %v5851_v39  ;;  %v1540_v48 = vpop.f32.mrf.mxu0 }
 0x227   :  { %2063 = vmatpush.bf16.msrb.mxu3 %v5852_v47 }
 0x228   :  { %2073 = vmatpush.bf16.msra.mxu0 %v5959_v32  ;;  %2086 = vmatpush.bf16.msra.mxu1 %v5960_v6  ;;  %v1553_v12 = vpop.f32.mrf.mxu1 }
 0x229   :  { %v1554_v39 = vadd.f32 %v1553_v12, %v1540_v48  ;;  %v1975_v12 = vld [vmem:[%s5475_s1 + $0x2] sm:$0x1] }
 0x22b   :  { %v1721_v56 = vrot.slane %v1554_v39, 7 }
 0x22c   :  { %2074 = vmatpush.bf16.msra.mxu0 %v5961_v41  ;;  %2087 = vmatpush.bf16.msra.mxu1 %v5962_v7  ;;  %v1514_v47 = vpop.f32.mrf.mxu2 }
 0x22d   :  { %v1527_v49 = vpop.f32.mrf.mxu3  ;;  %1980 = vperm.xlu2 %3250, %v1975_v12  }
 0x22e   :  { %v1542_v26 = vpop.f32.mrf.mxu0  ;;  %v1528_v46 = vadd.f32 %v1527_v49, %v1514_v47 }
 0x230   :  { %2075 = vmatpush.bf16.msra.mxu0 %v5963_v58  ;;  %2088 = vmatpush.bf16.msra.mxu1 %v5964_v0  ;;  %v1555_v5 = vpop.f32.mrf.mxu1  ;;  %v1728_v32 = vsel %vm1109_vm4, %v1528_v46, %v1721_v56  ;;  %v1735_v6 = vsel %vm223_vm0, %v1528_v46, %v1721_v56 }
 0x234   :  { %2076 = vmatpush.bf16.msra.mxu0 %v5965_v17  ;;  %2089 = vmatpush.bf16.msra.mxu1 %v5966_v30  ;;  %v1516_v41 = vpop.f32.mrf.mxu2 }
 0x235   :  { %v1529_v7 = vpop.f32.mrf.mxu3 }
 0x236   :  { %v1592_v31 = vpop.f32.mrf.mxu0 }
 0x238   :  { %v1605_v48 = vpop.f32.mrf.mxu1 }
 0x239   :  { %v1606_v23 = vadd.f32 %v1605_v48, %v1592_v31 }
 0x23c   :  { %v1566_v58 = vpop.f32.mrf.mxu2 }
 0x23d   :  { %v1579_v0 = vpop.f32.mrf.mxu3 }
 0x23e   :  { %v1594_v17 = vpop.f32.mrf.mxu0  ;;  %v1580_v54 = vadd.f32 %v1579_v0, %v1566_v58 }
 0x240   :  { %v1607_v30 = vpop.f32.mrf.mxu1  ;;  %v1722_v12 = vrot.slane %v1580_v54, 6 }
 0x241   :  { %v1723_v30 = vrot.slane %v1606_v23, 5 }
 0x243   :  { %v1729_v60 = vsel %vm5702_vm5, %v1722_v12, %v1723_v30 }
 0x244   :  { %v1568_v39 = vpop.f32.mrf.mxu2 }
 0x245   :  { %v1581_v47 = vpop.f32.mrf.mxu3 }
 0x24c   :  { %v1618_v49 = vpop.f32.mrf.mxu2 }
 0x24d   :  { %v1631_v26 = vpop.f32.mrf.mxu3 }
 0x24e   :  { %v1632_v1 = vadd.f32 %v1631_v26, %v1618_v49 }
 0x254   :  { %v1644_v5 = vpop.f32.mrf.mxu0  ;;  %v1620_v56 = vpop.f32.mrf.mxu2 }
 0x255   :  { %v1633_v46 = vpop.f32.mrf.mxu3 }
 0x256   :  { %v1657_v62 = vpop.f32.mrf.mxu1  ;;  %v1736_v46 = vsel %vm225_vm1, %v1722_v12, %v1723_v30 }
 0x257   :  { %v1658_v52 = vadd.f32 %v1657_v62, %v1644_v5  ;;  %v1737_v62 = vsel %vm5971_vm11, %v1735_v6, %v1736_v46  ;;  %v1491_v6 = vld [vmem:[#allocation3] sm:$0xf] }
 0x258   :  { %v1492_v46 = vmul.f32 %v1491_v6, %v4919_v59 }
 0x259   :  { %v1725_v19 = vrot.slane %v1658_v52, 3  ;;  %v1730_v52 = vsel %vm5970_vm10, %v1728_v32, %v1729_v60 }
 0x25c   :  { %v1646_v41 = vpop.f32.mrf.mxu0 }
 0x25d   :  { %v1724_v41 = vrot.slane %v1632_v1, 4 }
 0x25e   :  { %v1659_v7 = vpop.f32.mrf.mxu1 }
 0x25f   :  { %v1731_v31 = vsel %vm5967_vm13, %v1724_v41, %v1725_v19  ;;  %v1738_v54 = vsel %vm227_vm2, %v1724_v41, %v1725_v19  ;;  %v3087_v19 = vld [vmem:[%s5480_s0 + $0x21] ss:$4 sm:$0xff]  ;;  %vm5977_vm13 = vmmov %vm5970_vm10 }
 0x26c   :  { %v1670_v43 = vpop.f32.mrf.mxu2 }
 0x26d   :  { %v1683_v15 = vpop.f32.mrf.mxu3 }
 0x26e   :  { %v1684_v53 = vadd.f32 %v1683_v15, %v1670_v43  ;;  %v3086_v43 = vld [vmem:[%s5480_s0 + $0x1] ss:$4 sm:$0xff] }
 0x270   :  { %v1726_v7 = vrot.slane %v1684_v53, 2 }
 0x274   :  { %v1696_v17 = vpop.f32.mrf.mxu0  ;;  %v1672_v47 = vpop.f32.mrf.mxu2 }
 0x275   :  { %v1685_v56 = vpop.f32.mrf.mxu3 }
 0x276   :  { %v1709_v39 = vpop.f32.mrf.mxu1 }
 0x277   :  { %v1710_v36 = vadd.f32 %v1709_v39, %v1696_v17 }
 0x279   :  { %v1727_v58 = vrot.slane %v1710_v36, 1 }
 0x27b   :  { %v1732_v15 = vsel %vm5968_vm7, %v1726_v7, %v1727_v58  ;;  %v1739_v23 = vsel %vm5969_vm9, %v1727_v58, %v1726_v7 }
 0x27c   :  { %v1733_v1 = vsel %vm5972_vm14, %v1731_v31, %v1732_v15  ;;  %v1740_v36 = vsel %vm5973_vm12, %v1738_v54, %v1739_v23  ;;  %v1698_v0 = vpop.f32.mrf.mxu0  ;;  %v1878_v54 = vrot.slane %v1492_v46, 1  ;;  %v1880_v15 = vrot.slane %v1492_v46, 3 }
 0x27d   :  { %v1734_v53 = vsel %vm5974_vm8, %v1730_v52, %v1733_v1  ;;  %v1741_v48 = vsel %vm5975_vm15, %v1737_v62, %v1740_v36 }
 0x27e   :  { %v1742_v49 = vrot.slane %v1741_v48, 1  ;;  %v1745_v26 = vadd.f32 %v3086_v43, %v1734_v53  ;;  %v1711_v5 = vpop.f32.mrf.mxu1  ;;  %v1879_v43 = vrot.slane %v1492_v46, 2  ;;  %v1884_v59 = vsel %vm223_vm0, %v1492_v46, %v1878_v54 }
 0x27f   :  { %v1881_v48 = vsel %vm1109_vm4, %v1492_v46, %v1878_v54 }
 0x280   :  { %v1746_v12 = vadd.f32 %v3087_v19, %v1742_v49  ;;  %v3088_v60 = vmul.f32 -1.442695, %v1745_v26  ;;  %v1787_v32 = vrot.slane %v1745_v26, 2  ;;  %v1835_v17 = vrot.slane %v1745_v26, 6 }
 0x281   :  { %v1885_v19 = vsel %vm225_vm1, %v1879_v43, %v1880_v15  ;;  %v1829_v0 = vrot.slane %v1745_v26, 4  ;;  %v1882_v5 = vsel %vm5702_vm5, %v1879_v43, %v1880_v15 }
 0x282   :  { %3284 = vpow2.f32 %v3088_v60  ;;  %v3089_v30 = vmul.f32 -1.442695, %v1746_v12  ;;  %v1788_v39 = vrot.slane %v1746_v12, 2  ;;  %v3090_v47 = vmul.f32 -1.442695, %v1787_v32 }
 0x283   :  { %v1836_v56 = vrot.slane %v1746_v12, 6  ;;  %v3092_v7 = vmul.f32 -1.442695, %v1835_v17  ;;  %v1830_v32 = vrot.slane %v1746_v12, 4  ;;  %v5134_v17 = vsel %vm5976_vm6, %v1884_v59, %v1885_v19 }
 0x284   :  { %3286 = vpow2.f32 %v3089_v30  ;;  %v3091_v41 = vmul.f32 -1.442695, %v1788_v39 }
 0x285   :  { %3288 = vpow2.f32 %v3090_v47  ;;  %v3093_v58 = vmul.f32 -1.442695, %v1836_v56  ;;  %v5138_v56 = vsel %vm5977_vm13, %v1881_v48, %v1882_v5 }
 0x286   :  { %3290 = vpow2.f32 %v3091_v41 }
 0x287   :  { %3292 = vpow2.f32 %v3092_v7 }
 0x288   :  { %v3285_v31 = vpop.eup %3284  ;;  %3294 = vpow2.f32 %v3093_v58 }
 0x289   :  { %v1753_v23 = vadd.f32 1.0, %v3285_v31 }
 0x28a   :  { %v3287_v52 = vpop.eup %3286 }
 0x28b   :  { %v3289_v62 = vpop.eup %3288  ;;  %v5121_v1 = vadd.f32 1.0, %v3287_v52  ;;  %3296 = vrcp.f32 %v1753_v23  ;;  %v1764_v30 = vand.u32 2147483647, %v1753_v23  ;;  %v1766_v39 = vand.u32 2147483648, %v1753_v23 }
 0x28c   :  { %v3291_v36 = vpop.eup %3290  ;;  %v5125_v53 = vadd.f32 1.0, %v3289_v62  ;;  %vm1760_vm7 = vweird.f32 %v1753_v23 }
 0x28d   :  { %3298 = vrcp.f32 %v5121_v1  ;;  %v3293_v49 = vpop.eup %3292  ;;  %v5130_v60 = vadd.f32 1.0, %v3291_v36  ;;  %v1779_v26 = vand.u32 2147483647, %v5121_v1  ;;  %vm5146_vm9 = vcmp.eq.f32.partialorder %v1764_v30, 8.507059e+37  ;;  %v1985_v36 = vpop.permute.xlu2 %1984 }
 0x28e   :  { %3300 = vrcp.f32 %v5125_v53  ;;  %v3295_v6 = vpop.eup %3294  ;;  %v5141_v46 = vadd.f32 1.0, %v3293_v49  ;;  %v1781_v54 = vand.u32 2147483648, %v5121_v1  ;;  %v1767_v52 = vor.u32 1.1754944e-38, %v1766_v39 }
 0x28f   :  { %3302 = vrcp.f32 %v5130_v60  ;;  %v5144_v7 = vadd.f32 1.0, %v3295_v6  ;;  %vm1775_vm10 = vweird.f32 %v5121_v1  ;;  %vm5154_vm11 = vcmp.eq.f32.partialorder %v1779_v26, 8.507059e+37 }
 0x290   :  { %3304 = vtanh.f32 %v1829_v0  ;;  %vm1804_vm14 = vweird.f32 %v5125_v53  ;;  %v1808_v49 = vand.u32 2147483647, %v5125_v53  ;;  %v1810_v30 = vand.u32 2147483648, %v5125_v53 }
 0x291   :  { %v3297_v47 = vpop.eup %3296  ;;  %3306 = vtanh.f32 %v1830_v32  ;;  %v1782_v32 = vor.u32 1.1754944e-38, %v1781_v54  ;;  %vm1819_vm15 = vweird.f32 %v5130_v60 }
 0x292   :  { %v1756_v12 = vmul.f32 %v3297_v47, %v1753_v23  ;;  %3308 = vrcp.f32 %v5141_v46  ;;  %vm1761_vm12 = vweird.f32 %v3297_v47  ;;  %v1811_v22 = vor.u32 1.1754944e-38, %v1810_v30 }
 0x293   :  { %v3299_v58 = vpop.eup %3298  ;;  %3310 = vrcp.f32 %v5144_v7  ;;  %vm5166_vm6 = vmor %vm1760_vm7, %vm1761_vm12  ;;  %vm1809_vm5 = vcmp.eq.f32.partialorder %v1808_v49, 8.507059e+37 }
 0x294   :  { %v3301_v43 = vpop.eup %3300  ;;  %v1757_v15 = vsub.f32 1.0, %v1756_v12  ;;  %v1771_v62 = vmul.f32 %v3299_v58, %v5121_v1  ;;  %vm1776_vm8 = vweird.f32 %v3299_v58 }
 0x295   :  { %v1800_v59 = vmul.f32 %v3301_v43, %v5125_v53  ;;  %v3303_v19 = vpop.eup %3302  ;;  %vm1805_vm13 = vweird.f32 %v3301_v43  ;;  %vm1777_vm7 = vmor %vm1775_vm10, %vm1776_vm8 }
 0x296   :  { %v1758_v48 = vmul.f32 %v3297_v47, %v1757_v15  ;;  %v1772_v0 = vsub.f32 1.0, %v1771_v62  ;;  %v3305_v5 = vpop.eup %3304  ;;  %v1815_v39 = vmul.f32 %v3303_v19, %v5130_v60  ;;  %vm1820_vm12 = vweird.f32 %v3303_v19 }
 0x297   :  { %v1801_v6 = vsub.f32 1.0, %v1800_v59  ;;  %v3307_v26 = vpop.eup %3306  ;;  %v1825_v59 = vand.u32 2147483648, %v5130_v60  ;;  %vm1821_vm10 = vmor %vm1819_vm15, %vm1820_vm12  ;;  %vm1867_vm15 = vweird.f32 %v5144_v7 }
 0x298   :  { %v1759_v12 = vadd.f32 %v3297_v47, %v1758_v48  ;;  %v1773_v41 = vmul.f32 %v3299_v58, %v1772_v0  ;;  %v3309_v35 = vpop.eup %3308  ;;  %v1816_v54 = vsub.f32 1.0, %v1815_v39  ;;  %v1823_v48 = vand.u32 2147483647, %v5130_v60 }
 0x299   :  { %v1802_v62 = vmul.f32 %v3301_v43, %v1801_v6  ;;  %v1848_v0 = vmul.f32 %v3309_v35, %v5141_v46  ;;  %v3311_v33 = vpop.eup %3310  ;;  %v1826_v1 = vor.u32 1.1754944e-38, %v1825_v59 }
 0x29a   :  { %v1763_v45 = vsel %vm5166_vm6, %v3297_v47, %v1759_v12  ;;  %v1774_v3 = vadd.f32 %v3299_v58, %v1773_v41  ;;  %v1817_v61 = vmul.f32 %v3303_v19, %v1816_v54  ;;  %vm1806_vm6 = vmor %vm1804_vm14, %vm1805_vm13  ;;  %v1863_v41 = vmul.f32 %v3311_v33, %v5144_v7 }
 0x29b   :  { %v1803_v23 = vadd.f32 %v3301_v43, %v1802_v62  ;;  %v1768_v6 = vsel %vm5146_vm9, %v1767_v52, %v1763_v45  ;;  %v1849_v47 = vsub.f32 1.0, %v1848_v0  ;;  %vm1824_vm9 = vcmp.eq.f32.partialorder %v1823_v48, 8.507059e+37 }
 0x29c   :  { %v1778_v39 = vsel %vm1777_vm7, %v3299_v58, %v1774_v3  ;;  %v1818_v15 = vadd.f32 %v3303_v19, %v1817_v61  ;;  %v1864_v3 = vsub.f32 1.0, %v1863_v41  ;;  %v1892_v31 = vmul.f32 %v3305_v5, %v1768_v6 }
 0x29d   :  { %v1807_v12 = vsel %vm1806_vm6, %v3301_v43, %v1803_v23  ;;  %v1783_v30 = vsel %vm5154_vm11, %v1782_v32, %v1778_v39  ;;  %v1850_v45 = vmul.f32 %v3309_v35, %v1849_v47  ;;  %v5984_v43 = vrot.slane %v5134_v17, 1 }
 0x29e   :  { %v1812_v62 = vsel %vm1809_vm5, %v1811_v22, %v1807_v12  ;;  %v1822_v58 = vsel %vm1821_vm10, %v3303_v19, %v1818_v15  ;;  %v1865_v54 = vmul.f32 %v3311_v33, %v1864_v3  ;;  %v1893_v49 = vmul.f32 %v3307_v26, %v1783_v30  ;;  %v1981_v15 = vpop.permute.xlu2 %1980 }
 0x29f   :  { %v1890_v53 = vmul.f32 %v5138_v56, %v1812_v62  ;;  %v1827_v52 = vsel %vm1824_vm9, %v1826_v1, %v1822_v58  ;;  %v1851_v32 = vadd.f32 %v3309_v35, %v1850_v45  ;;  %vm1853_vm5 = vweird.f32 %v3309_v35 }
 0x2a0   :  { %v1891_v61 = vmul.f32 %v5984_v43, %v1827_v52  ;;  %v1858_v22 = vand.u32 2147483648, %v5141_v46  ;;  %vm1852_vm11 = vweird.f32 %v5141_v46  ;;  %v1856_v19 = vand.u32 2147483647, %v5141_v46 }
 0x2a1   :  { %v1894_v59 = vadd.f32 %v1892_v31, %v1890_v53  ;;  %v1866_v56 = vadd.f32 %v3311_v33, %v1865_v54  ;;  %vm1868_vm14 = vweird.f32 %v3311_v33  ;;  %vm1854_vm8 = vmor %vm1852_vm11, %vm1853_vm5  ;;  %v1873_v5 = vand.u32 2147483648, %v5144_v7 }
 0x2a2   :  { %v1895_v60 = vadd.f32 %v1893_v49, %v1891_v61  ;;  %v1855_v17 = vsel %vm1854_vm8, %v3309_v35, %v1851_v32  ;;  %v1871_v26 = vand.u32 2147483647, %v5144_v7  ;;  %v1859_v48 = vor.u32 1.1754944e-38, %v1858_v22  ;;  %vm1869_vm13 = vmor %vm1867_vm15, %vm1868_vm14 }
 0x2a3   :  { %3312 = vtanh.f32 %v1894_v59  ;;  %vm1857_vm7 = vcmp.eq.f32.partialorder %v1856_v19, 8.507059e+37  ;;  %v1870_v0 = vsel %vm1869_vm13, %v3311_v33, %v1866_v56  ;;  %v1874_v39 = vor.u32 1.1754944e-38, %v1873_v5 }
 0x2a4   :  { %3314 = vtanh.f32 %v1895_v60  ;;  %v1860_v6 = vsel %vm1857_vm7, %v1859_v48, %v1855_v17  ;;  %vm1872_vm12 = vcmp.eq.f32.partialorder %v1871_v26, 8.507059e+37  ;;  %v1993_v47 = vperm.slane %v1985_v36, %v5853_v24 }
 0x2a5   :  { %v1875_v12 = vsel %vm1872_vm12, %v1874_v39, %v1870_v0  ;;  %v1989_v62 = vperm.slane %v1981_v15, %v5853_v24  ;;  %v6002_v39 = vld [vmem:[#allocation95_spill] sm:$0xff]  ;;  %v6011_v15 = vld [vmem:[#allocation106_spill] sm:$0xff]  ;;  %vm6040_vm6 = vcmask 1041408   ;;  %vm6041_vm10 = vcmask 1042433  }
 0x2a6   :  { %v1996_v7 = vrot.slane %v1993_v47, 7  ;;  %v6008_v47 = vld [vmem:[#allocation102_spill] sm:$0xff]  ;;  %vm6042_vm9 = vcmask 1044484   ;;  %vm6043_vm5 = vcmask 1046534   ;;  %vm6044_vm11 = vcmask 1046528   ;;  %vm6050_vm7 = vmmov %vm6041_vm10 }
 0x2a7   :  { %vm6045_vm14 = vcmask 1045508   ;;  %vm6046_vm8 = vcmask 1046533   ;;  %vm6047_vm15 = vcmask 1043456  }
 0x2a8   :  { %v1997_v52 = vsel %vm223_vm0, %v1996_v7, %v1989_v62  ;;  %v6016_v62 = vld [vmem:[#allocation100_spill] sm:$0xff] }
 0x2a9   :  { %v3313_v23 = vpop.eup %3312  ;;  %v1998_v19 = vsel %vm225_vm1, %v1996_v7, %v1997_v52  ;;  %v6026_v52 = vld [vmem:[#allocation122_spill] sm:$0xff] }
 0x2aa   :  { %v1898_v46 = vmul.f32 %v3313_v23, %v1860_v6  ;;  %v3315_v41 = vpop.eup %3314  ;;  %v1999_v26 = vsel %vm227_vm2, %v1996_v7, %v1998_v19  ;;  %v6033_v19 = vld [vmem:[#allocation119_spill] sm:$0xff] }
 0x2ab   :  { %v1899_v1 = vmul.f32 %v3315_v41, %v1875_v12  ;;  %v5206_v48 = vsel %vm229_vm3, %v1996_v7, %v1999_v26  ;;  %v6009_v41 = vld [vmem:[#allocation92_spill] sm:$0xff]  ;;  %v6010_v12 = vld [vmem:[#allocation105_spill] sm:$0xff]  ;;  %v6015_v7 = vld [vmem:[#allocation110_spill] sm:$0xff]  ;;  %vm6039_vm3 = vcmask 1042434  }
 0x2ac   :  { %1902 = vst [vmem:[#allocation1] ss:$2 sm:$0xff] %v1898_v46  ;;  %v1916_v35 = vperm.slane %v1898_v46, 0  ;;  %v1917_v30 = vperm.slane %v1898_v46, 1  ;;  %v6007_v46 = vld [vmem:[#allocation88_spill] sm:$0xff]  ;;  %v3352_v26 = vld [vmem:[%s5479_s5 + $0x28] sm:$0xff]  ;;  %vm6049_vm13 = vmmov %vm6039_vm3 }
 0x2ad   :  { %1904 = vst [vmem:[#allocation1 + $0x1] ss:$2 sm:$0xff] %v1899_v1  ;;  %v1918_v45 = vperm.slane %v1899_v1, 0  ;;  %v1919_v33 = vperm.slane %v1899_v1, 1  ;;  %v6012_v1 = vld [vmem:[#allocation101_spill] sm:$0xff] }
 0x2ae   :  { %v1924_v3 = vpack.c.bf16 %v1916_v35, %v1916_v35  ;;  %v1925_v53 = vpack.c.bf16 %v1917_v30, %v1917_v30  ;;  %v6013_v35 = vld [vmem:[#allocation96_spill] sm:$0xff]  ;;  %v6014_v30 = vld [vmem:[#allocation109_spill] sm:$0xff] }
 0x2af   :  { %v1926_v58 = vpack.c.bf16 %v1918_v45, %v1918_v45  ;;  %v1927_v31 = vpack.c.bf16 %v1919_v33, %v1919_v33  ;;  %v6020_v45 = vld [vmem:[#allocation108_spill] sm:$0xff]  ;;  %v6021_v33 = vld [vmem:[#allocation117_spill] sm:$0xff] }
 0x2b0   :  { %v1932_v61 = vunpack.c.l.b16 %v1924_v3  ;;  %v1933_v36 = vunpack.c.l.b16 %v1925_v53  ;;  %v6022_v3 = vld [vmem:[#allocation118_spill] sm:$0xff]  ;;  %v6024_v53 = vld [vmem:[#allocation112_spill] sm:$0xff] }
 0x2b1   :  { %v1934_v54 = vunpack.c.l.b16 %v1926_v58  ;;  %v1935_v43 = vunpack.c.l.b16 %v1927_v31  ;;  %v6023_v58 = vld [vmem:[#allocation107_spill] sm:$0xff]  ;;  %v6025_v31 = vld [vmem:[#allocation121_spill] sm:$0xff] }
 0x2b3   :  { %v1936_v49 = vrot.slane %v1934_v54, 7  ;;  %v1938_v32 = vrot.slane %v1935_v43, 7  ;;  %v6028_v54 = vld [vmem:[#allocation116_spill] sm:$0xff]  ;;  %v6029_v43 = vld [vmem:[#allocation125_spill] sm:$0xff] }
 0x2b4   :  { %v1905_v22 = vld [vmem:[#allocation1] sm:$0xff] }
 0x2b5   :  { %1907 = vst [vmem:[#allocation2] sm:$0xf] %v1905_v22  ;;  %v1937_v24 = vsel %vm223_vm0, %v1936_v49, %v1932_v61  ;;  %v1939_v56 = vsel %vm223_vm0, %v1938_v32, %v1933_v36  ;;  %v6030_v61 = vld [vmem:[#allocation126_spill] sm:$0xff]  ;;  %v6031_v49 = vld [vmem:[#allocation115_spill] sm:$0xff]  ;;  %v3348_v36 = vld [vmem:[%s5479_s5 + $0x38] sm:$0xff] }
 0x2b6   :  { %1910 = vst [vmem:[#allocation1] ss:$2 sm:$0xff] %v1894_v59  ;;  %v1940_v5 = vpack.c.b16 %v1937_v24, %v1937_v24  ;;  %v1941_v17 = vpack.c.b16 %v1939_v56, %v1939_v56  ;;  %v6032_v32 = vld [vmem:[#allocation120_spill] sm:$0xff]  ;;  %v3349_v22 = vld [vmem:[%s5479_s5 + $0x78] sm:$0xff] }
 0x2b7   :  { %1912 = vst [vmem:[#allocation1 + $0x1] ss:$2 sm:$0xff] %v1895_v60  ;;  %v3350_v24 = vld [vmem:[%s5479_s5 + $0x30] sm:$0xff] }
 0x2b8   :  { %1952 = vmatmul.bf16.vlgmr.msra.gmra.mxu2 %v1940_v5  ;;  %1965 = vmatmul.bf16.vlgmr.msra.gmra.mxu3 %v1941_v17  ;;  %v6034_v56 = vld [vmem:[#allocation124_spill] sm:$0xff]  ;;  %v6035_v17 = vld [vmem:[#allocation123_spill] sm:$0xff] }
 0x2b9   :  { %2095 = vmatpush.bf16.msra.mxu2 %v5854_v44  ;;  %2108 = vmatpush.bf16.msra.mxu3 %v5855_v25  ;;  %v3351_v5 = vld [vmem:[%s5479_s5 + $0x70] sm:$0xff] }
 0x2bc   :  { %v1977_v0 = vld [vmem:[#allocation2] sm:$0xf] }
 0x2bd   :  { %v2002_v23 = vmul.f32 %v5206_v48, %v1977_v0  ;;  %2096 = vmatpush.bf16.msra.mxu2 %v5856_v57  ;;  %2109 = vmatpush.bf16.msra.mxu3 %v5857_v34  ;;  %v5985_v57 = vld [vmem:[#allocation74_spill] sm:$0xff]  ;;  %v5986_v34 = vld [vmem:[#allocation75_spill] sm:$0xff]  ;;  %v6036_v0 = vld [vmem:[#allocation128_spill] sm:$0xff] }
 0x2be   :  { %v1913_v59 = vld [vmem:[#allocation1] sm:$0xff] }
 0x2bf   :  { %1915 = vst [vmem:[#allocation3] sm:$0xf] %v1913_v59  ;;  %v6037_v59 = vld [vmem:[#allocation127_spill] sm:$0xff] }
 0x2c0   :  { %2010 = vst [vmem:[#allocation1] ss:$4 sm:$0xff] %v2002_v23  ;;  %v3353_v23 = vld [vmem:[%s5479_s5 + $0x68] sm:$0xff] }
 0x2c1   :  { %2097 = vmatpush.bf16.msra.mxu2 %v5858_v16  ;;  %2110 = vmatpush.bf16.msra.mxu3 %v5859_v42  ;;  %v5987_v16 = vld [vmem:[#allocation63_spill] sm:$0xff]  ;;  %v5988_v42 = vld [vmem:[#allocation64_spill] sm:$0xff] }
 0x2c5   :  { %2098 = vmatpush.bf16.msra.mxu2 %v5860_v27  ;;  %2111 = vmatpush.bf16.msra.mxu3 %v5861_v10  ;;  %v5989_v27 = vld [vmem:[#allocation68_spill] sm:$0xff]  ;;  %v5990_v10 = vld [vmem:[#allocation69_spill] sm:$0xff] }
 0x2c7   :  { %v2011_v44 = vld.sshfl [vmem:[#allocation1] sm:$0xff pattern:$0x73625140]  ;;  %v2012_v25 = vld.sshfl [vmem:[#allocation1 + $0x8] sm:$0xff pattern:$0x73625140] }
 0x2c8   :  { %v5215_v60 = vpack.c.bf16 %v2011_v44, %v2011_v44  ;;  %v5217_v6 = vpack.c.bf16 %v2012_v25, %v2012_v25  ;;  %v3354_v44 = vld [vmem:[%s5479_s5 + $0x20] sm:$0xff] }
 0x2c9   :  { %2099 = vmatpush.bf16.msra.mxu2 %v5862_v8  ;;  %2112 = vmatpush.bf16.msra.mxu3 %v5863_v14  ;;  %v5991_v8 = vld [vmem:[#allocation78_spill] sm:$0xff]  ;;  %v5992_v14 = vld [vmem:[#allocation79_spill] sm:$0xff] }
 0x2ca   :  { %2025 = vmatmul.bf16.vlgmr.msrb.gmra.mxu0 %v5215_v60  ;;  %2038 = vmatmul.bf16.vlgmr.msrb.gmra.mxu1 %v5217_v6  ;;  %v3355_v25 = vld [vmem:[%s5479_s5 + $0x60] sm:$0xff] }
 0x2cb   :  { %2051 = vmatmul.bf16.vlgmr.msrb.gmra.mxu2 %v5215_v60  ;;  %2064 = vmatmul.bf16.vlgmr.msrb.gmra.mxu3 %v5217_v6 }
 0x2cc   :  { %2121 = vmatpush.bf16.msrb.mxu0 %v5864_v21  ;;  %2134 = vmatpush.bf16.msrb.mxu1 %v5865_v11  ;;  %v5993_v21 = vld [vmem:[#allocation82_spill] sm:$0xff]  ;;  %v5994_v11 = vld [vmem:[#allocation83_spill] sm:$0xff] }
 0x2cd   :  { %2100 = vmatpush.bf16.msra.mxu2 %v5866_v28  ;;  %2113 = vmatpush.bf16.msra.mxu3 %v5867_v63  ;;  %v5995_v28 = vld [vmem:[#allocation72_spill] sm:$0xff] }
 0x2ce   :  { %v5996_v63 = vld [vmem:[#allocation76_spill] sm:$0xff] }
 0x2d0   :  { %2122 = vmatpush.bf16.msrb.mxu0 %v5868_v50  ;;  %2135 = vmatpush.bf16.msrb.mxu1 %v5869_v40  ;;  %v5997_v50 = vld [vmem:[#allocation90_spill] sm:$0xff]  ;;  %v5998_v40 = vld [vmem:[#allocation91_spill] sm:$0xff] }
 0x2d1   :  { %2101 = vmatpush.bf16.msra.mxu2 %v5870_v9  ;;  %2114 = vmatpush.bf16.msra.mxu3 %v5871_v29  ;;  %v5999_v9 = vld [vmem:[#allocation80_spill] sm:$0xff]  ;;  %v6000_v29 = vld [vmem:[#allocation85_spill] sm:$0xff] }
 0x2d4   :  { %2123 = vmatpush.bf16.msrb.mxu0 %v5985_v57  ;;  %2136 = vmatpush.bf16.msrb.mxu1 %v5986_v34  ;;  %v3356_v57 = vld [vmem:[%s5479_s5 + $0x18] sm:$0xff]  ;;  %v3358_v34 = vld [vmem:[%s5479_s5 + $0x10] sm:$0xff] }
 0x2d5   :  { %2102 = vmatpush.bf16.msra.mxu2 %v5987_v16  ;;  %2115 = vmatpush.bf16.msra.mxu3 %v5988_v42  ;;  %v3359_v16 = vld [vmem:[%s5479_s5 + $0x50] sm:$0xff]  ;;  %v3361_v42 = vld [vmem:[%s5479_s5 + $0x48] sm:$0xff] }
 0x2d8   :  { %2124 = vmatpush.bf16.msrb.mxu0 %v5991_v8  ;;  %2137 = vmatpush.bf16.msrb.mxu1 %v5992_v14 }
 0x2d9   :  { %2147 = vmatpush.bf16.msrb.mxu2 %v5989_v27  ;;  %2160 = vmatpush.bf16.msrb.mxu3 %v5990_v10  ;;  %v3362_v27 = vld [vmem:[%s5479_s5] sm:$0xff] }
 0x2da   :  { %2077 = vmatmul.bf16.vlgmr.msra.gmra.mxu0 %v5215_v60  ;;  %2090 = vmatmul.bf16.vlgmr.msra.gmra.mxu1 %v5217_v6  ;;  %v3363_v10 = vld [vmem:[%s5479_s5 + $0x40] sm:$0xff] }
 0x2db   :  { %2103 = vmatmul.bf16.vlgmr.msra.gmra.mxu2 %v5215_v60  ;;  %2116 = vmatmul.bf16.vlgmr.msra.gmra.mxu3 %v5217_v6 }
 0x2dc   :  { %2125 = vmatpush.bf16.msrb.mxu0 %v5993_v21  ;;  %2138 = vmatpush.bf16.msrb.mxu1 %v5994_v11  ;;  %v6038_v21 = vld [vmem:[#allocation27_spill] sm:$0xff] }
 0x2dd   :  { %2161 = vmatpush.bf16.msrb.mxu3 %v5883_v18  ;;  %2148 = vmatpush.bf16.msrb.mxu2 %v5995_v28  ;;  %v6001_v18 = vld [vmem:[#allocation94_spill] sm:$0xff] }
 0x2e0   :  { %2126 = vmatpush.bf16.msrb.mxu0 %v5884_v20  ;;  %2139 = vmatpush.bf16.msrb.mxu1 %v5886_v51  ;;  %v6004_v20 = vld [vmem:[#allocation98_spill] sm:$0xff]  ;;  %v6005_v51 = vld [vmem:[#allocation99_spill] sm:$0xff] }
 0x2e1   :  { %2162 = vmatpush.bf16.msrb.mxu3 %v5887_v2  ;;  %2149 = vmatpush.bf16.msrb.mxu2 %v5996_v63  ;;  %v6003_v2 = vld [vmem:[#allocation84_spill] sm:$0xff] }
 0x2e4   :  { %2127 = vmatpush.bf16.msrb.mxu0 %v5997_v50  ;;  %2140 = vmatpush.bf16.msrb.mxu1 %v5998_v40 }
 0x2e5   :  { %2163 = vmatpush.bf16.msrb.mxu3 %v5891_v38  ;;  %2150 = vmatpush.bf16.msrb.mxu2 %v5999_v9  ;;  %v6006_v38 = vld [vmem:[#allocation89_spill] sm:$0xff] }
 0x2e8   :  { %2128 = vmatpush.bf16.msrb.mxu0 %v6001_v18  ;;  %2141 = vmatpush.bf16.msrb.mxu1 %v6002_v39 }
 0x2e9   :  { %2164 = vmatpush.bf16.msrb.mxu3 %v6000_v29  ;;  %2151 = vmatpush.bf16.msrb.mxu2 %v6003_v2 }
 0x2eb   :  { %2129 = vmatmul.bf16.vlgmr.msrb.gmra.mxu0 %v5215_v60  ;;  %2142 = vmatmul.bf16.vlgmr.msrb.gmra.mxu1 %v5217_v6 }
 0x2ec   :  { %2173 = vmatpush.bf16.msra.mxu0 %v6004_v20  ;;  %2186 = vmatpush.bf16.msra.mxu1 %v6005_v51 }
 0x2ed   :  { %2165 = vmatpush.bf16.msrb.mxu3 %v6006_v38  ;;  %2152 = vmatpush.bf16.msrb.mxu2 %v6007_v46 }
 0x2f0   :  { %2174 = vmatpush.bf16.msra.mxu0 %v6008_v47  ;;  %2187 = vmatpush.bf16.msra.mxu1 %v4376_v4  ;;  %v6018_v4 = vld [vmem:[#allocation114_spill] sm:$0xff] }
 0x2f1   :  { %2166 = vmatpush.bf16.msrb.mxu3 %v5898_v13  ;;  %2153 = vmatpush.bf16.msrb.mxu2 %v6009_v41  ;;  %v6017_v13 = vld [vmem:[#allocation113_spill] sm:$0xff] }
 0x2f4   :  { %2175 = vmatpush.bf16.msra.mxu0 %v6010_v12  ;;  %2188 = vmatpush.bf16.msra.mxu1 %v6011_v15 }
 0x2f5   :  { %2167 = vmatpush.bf16.msrb.mxu3 %v5903_v55  ;;  %2154 = vmatpush.bf16.msrb.mxu2 %v6013_v35  ;;  %v6019_v55 = vld [vmem:[#allocation103_spill] sm:$0xff] }
 0x2f8   :  { %2176 = vmatpush.bf16.msra.mxu0 %v6014_v30  ;;  %2189 = vmatpush.bf16.msra.mxu1 %v6015_v7 }
 0x2f9   :  { %2212 = vmatpush.bf16.msra.mxu3 %v6012_v1  ;;  %2199 = vmatpush.bf16.msra.mxu2 %v6016_v62 }
 0x2fa   :  { %2168 = vmatmul.bf16.vlgmr.msrb.gmra.mxu3 %v5217_v6  ;;  %2155 = vmatmul.bf16.vlgmr.msrb.gmra.mxu2 %v5215_v60 }
 0x2fc   :  { %2177 = vmatpush.bf16.msra.mxu0 %v6017_v13  ;;  %2190 = vmatpush.bf16.msra.mxu1 %v6018_v4 }
 0x2fd   :  { %2213 = vmatpush.bf16.msra.mxu3 %v5909_v37  ;;  %2200 = vmatpush.bf16.msra.mxu2 %v6019_v55  ;;  %v6027_v37 = vld [vmem:[#allocation111_spill] sm:$0xff] }
 0x300   :  { %2178 = vmatpush.bf16.msra.mxu0 %v6021_v33  ;;  %2191 = vmatpush.bf16.msra.mxu1 %v6022_v3 }
 0x301   :  { %2214 = vmatpush.bf16.msra.mxu3 %v6020_v45  ;;  %2201 = vmatpush.bf16.msra.mxu2 %v6023_v58 }
 0x304   :  { %2179 = vmatpush.bf16.msra.mxu0 %v6025_v31  ;;  %2192 = vmatpush.bf16.msra.mxu1 %v6026_v52 }
 0x305   :  { %2215 = vmatpush.bf16.msra.mxu3 %v6024_v53  ;;  %2202 = vmatpush.bf16.msra.mxu2 %v6027_v37 }
 0x308   :  { %2180 = vmatpush.bf16.msra.mxu0 %v6029_v43  ;;  %2193 = vmatpush.bf16.msra.mxu1 %v6030_v61 }
 0x309   :  { %2216 = vmatpush.bf16.msra.mxu3 %v6028_v54  ;;  %2203 = vmatpush.bf16.msra.mxu2 %v6031_v49 }
 0x30b   :  { %2181 = vmatmul.bf16.vlgmr.msra.gmra.mxu0 %v5215_v60  ;;  %2194 = vmatmul.bf16.vlgmr.msra.gmra.mxu1 %v5217_v6 }
 0x30c   :  { %2456 = vmatpush.bf16.msrb.mxu0 %v3348_v36  ;;  %2469 = vmatpush.bf16.msrb.mxu1 %v3349_v22 }
 0x30d   :  { %2217 = vmatpush.bf16.msra.mxu3 %v6032_v32  ;;  %2204 = vmatpush.bf16.msra.mxu2 %v6033_v19 }
 0x310   :  { %2457 = vmatpush.bf16.msrb.mxu0 %v3350_v24  ;;  %2470 = vmatpush.bf16.msrb.mxu1 %v3351_v5 }
 0x311   :  { %2218 = vmatpush.bf16.msra.mxu3 %v6034_v56  ;;  %2205 = vmatpush.bf16.msra.mxu2 %v6035_v17 }
 0x314   :  { %2458 = vmatpush.bf16.msrb.mxu0 %v3352_v26  ;;  %2471 = vmatpush.bf16.msrb.mxu1 %v3353_v23 }
 0x315   :  { %2219 = vmatpush.bf16.msra.mxu3 %v6036_v0  ;;  %2206 = vmatpush.bf16.msra.mxu2 %v6037_v59 }
 0x318   :  { %2220 = vmatmul.bf16.vlgmr.msra.gmra.mxu3 %v5217_v6  ;;  %2459 = vmatpush.bf16.msrb.mxu0 %v3354_v44  ;;  %v3357_v6 = vld [vmem:[%s5479_s5 + $0x58] sm:$0xff] }
 0x319   :  { %2472 = vmatpush.bf16.msrb.mxu1 %v3355_v25  ;;  %2207 = vmatmul.bf16.vlgmr.msra.gmra.mxu2 %v5215_v60  ;;  %v3360_v60 = vld [vmem:[%s5479_s5 + $0x8] sm:$0xff] }
 0x31c   :  { %2460 = vmatpush.bf16.msrb.mxu0 %v3356_v57 }
 0x31d   :  { %2473 = vmatpush.bf16.msrb.mxu1 %v3357_v6 }
 0x320   :  { %2461 = vmatpush.bf16.msrb.mxu0 %v3358_v34 }
 0x321   :  { %2474 = vmatpush.bf16.msrb.mxu1 %v3359_v16 }
 0x324   :  { %2462 = vmatpush.bf16.msrb.mxu0 %v3360_v60 }
 0x325   :  { %2475 = vmatpush.bf16.msrb.mxu1 %v3361_v42 }
 0x328   :  { %2463 = vmatpush.bf16.msrb.mxu0 %v3362_v27  ;;  %v3094_v27 = vld [vmem:[%s5480_s0 + $0x2] ss:$4 sm:$0xff] }
 0x329   :  { %2476 = vmatpush.bf16.msrb.mxu1 %v3363_v10 }
 0x33b   :  { %v1953_v8 = vpop.f32.mrf.mxu2  ;;  %v1966_v14 = vpop.f32.mrf.mxu3 }
 0x33c   :  { %v1954_v11 = vadd.f32 %v6038_v21, %v1953_v8 }
 0x33e   :  { %v1967_v28 = vadd.f32 %v1966_v14, %v1954_v11 }
 0x340   :  { %v1971_v63 = vrot.slane %v1967_v28, 1  ;;  %1973 = vst [vmem:[%s5482_s7 + $0x1] sm:$0x1] %v1967_v28  ;;  %v3095_v28 = vld [vmem:[%s5480_s0 + $0x22] ss:$4 sm:$0xff] }
 0x342   :  { %1974 = vst [vmem:[%s5482_s7 + $0x5] sm:$0x1] %v1971_v63 }
 0x343   :  { %v1955_v50 = vpop.f32.mrf.mxu2  ;;  %v1968_v40 = vpop.f32.mrf.mxu3 }
 0x347   :  { %v2026_v9 = vpop.f32.mrf.mxu0  ;;  %v2039_v29 = vpop.f32.mrf.mxu1 }
 0x348   :  { %v2040_v18 = vadd.f32 %v2039_v29, %v2026_v9 }
 0x34e   :  { %v2052_v39 = vpop.f32.mrf.mxu2  ;;  %v2065_v2 = vpop.f32.mrf.mxu3 }
 0x34f   :  { %v2028_v20 = vpop.f32.mrf.mxu0  ;;  %v2066_v51 = vadd.f32 %v2065_v2, %v2052_v39  ;;  %v2041_v38 = vpop.f32.mrf.mxu1 }
 0x350   :  { %v2003_v20 = vld [vmem:[#allocation3] sm:$0xf] }
 0x351   :  { %v2233_v46 = vrot.slane %v2066_v51, 7 }
 0x353   :  { %v2240_v47 = vsel %vm1109_vm4, %v2040_v18, %v2233_v46  ;;  %v2247_v41 = vsel %vm223_vm0, %v2040_v18, %v2233_v46 }
 0x356   :  { %v2054_v12 = vpop.f32.mrf.mxu2  ;;  %v2067_v15 = vpop.f32.mrf.mxu3 }
 0x357   :  { %v2078_v1 = vpop.f32.mrf.mxu0  ;;  %v2091_v35 = vpop.f32.mrf.mxu1  ;;  %v2004_v12 = vmul.f32 %v2003_v20, %v5206_v48 }
 0x358   :  { %v2092_v30 = vadd.f32 %v2091_v35, %v2078_v1 }
 0x35a   :  { %v2234_v45 = vrot.slane %v2092_v30, 6 }
 0x35e   :  { %v2104_v7 = vpop.f32.mrf.mxu2  ;;  %v2117_v62 = vpop.f32.mrf.mxu3 }
 0x35f   :  { %v2080_v13 = vpop.f32.mrf.mxu0  ;;  %v2118_v4 = vadd.f32 %v2117_v62, %v2104_v7  ;;  %v2093_v55 = vpop.f32.mrf.mxu1  ;;  %v2390_v7 = vrot.slane %v2004_v12, 1  ;;  %v2391_v62 = vrot.slane %v2004_v12, 2 }
 0x360   :  { %v2392_v13 = vrot.slane %v2004_v12, 3 }
 0x361   :  { %v2235_v33 = vrot.slane %v2118_v4, 5  ;;  %v2396_v48 = vsel %vm223_vm0, %v2004_v12, %v2390_v7 }
 0x363   :  { %v2241_v3 = vsel %vm6039_vm3, %v2234_v45, %v2235_v33  ;;  %v2248_v58 = vsel %vm225_vm1, %v2234_v45, %v2235_v33 }
 0x364   :  { %v2242_v53 = vsel %vm6040_vm6, %v2240_v47, %v2241_v3  ;;  %v2249_v31 = vsel %vm6041_vm10, %v2247_v41, %v2248_v58  ;;  %v2397_v58 = vsel %vm225_vm1, %v2391_v62, %v2392_v13  ;;  %vm6051_vm1 = vmmov %vm6040_vm6 }
 0x366   :  { %v2106_v52 = vpop.f32.mrf.mxu2  ;;  %v2119_v37 = vpop.f32.mrf.mxu3 }
 0x367   :  { %v2394_v52 = vsel %vm6049_vm13, %v2391_v62, %v2392_v13 }
 0x368   :  { %v2130_v54 = vpop.f32.mrf.mxu0  ;;  %v2143_v43 = vpop.f32.mrf.mxu1 }
 0x369   :  { %v2144_v23 = vadd.f32 %v2143_v43, %v2130_v54 }
 0x36b   :  { %v2236_v6 = vrot.slane %v2144_v23, 4 }
 0x370   :  { %v2132_v61 = vpop.f32.mrf.mxu0  ;;  %v2145_v49 = vpop.f32.mrf.mxu1 }
 0x37d   :  { %v2169_v36 = vpop.f32.mrf.mxu3  ;;  %v2156_v32 = vpop.f32.mrf.mxu2 }
 0x37e   :  { %v2170_v26 = vadd.f32 %v2169_v36, %v2156_v32  ;;  %v5396_v36 = vsel %vm6050_vm7, %v2396_v48, %v2397_v58 }
 0x380   :  { %v2237_v25 = vrot.slane %v2170_v26, 3 }
 0x382   :  { %v2243_v60 = vsel %vm6042_vm9, %v2236_v6, %v2237_v25  ;;  %v2250_v42 = vsel %vm227_vm2, %v2236_v6, %v2237_v25  ;;  %vm6048_vm2 = vcmask 1044481  }
 0x385   :  { %v2171_v22 = vpop.f32.mrf.mxu3  ;;  %v2158_v19 = vpop.f32.mrf.mxu2 }
 0x388   :  { %v2182_v24 = vpop.f32.mrf.mxu0  ;;  %v2195_v56 = vpop.f32.mrf.mxu1 }
 0x389   :  { %v2196_v59 = vadd.f32 %v2195_v56, %v2182_v24 }
 0x38b   :  { %v2238_v34 = vrot.slane %v2196_v59, 2 }
 0x390   :  { %v2184_v5 = vpop.f32.mrf.mxu0  ;;  %v2197_v17 = vpop.f32.mrf.mxu1 }
 0x391   :  { %v2399_v17 = vrot.slane %v5396_v36, 1 }
 0x39b   :  { %v2221_v0 = vpop.f32.mrf.mxu3 }
 0x39c   :  { %v2208_v44 = vpop.f32.mrf.mxu2 }
 0x39d   :  { %v2222_v57 = vadd.f32 %v2221_v0, %v2208_v44 }
 0x39f   :  { %v2239_v16 = vrot.slane %v2222_v57, 1 }
 0x3a1   :  { %v2244_v10 = vsel %vm6043_vm5, %v2238_v34, %v2239_v16  ;;  %v2251_v8 = vsel %vm6044_vm11, %v2239_v16, %v2238_v34 }
 0x3a2   :  { %v2245_v21 = vsel %vm6045_vm14, %v2243_v60, %v2244_v10  ;;  %v2252_v11 = vsel %vm6046_vm8, %v2250_v42, %v2251_v8 }
 0x3a3   :  { %v2223_v14 = vpop.f32.mrf.mxu3  ;;  %v2246_v63 = vsel %vm6047_vm15, %v2242_v53, %v2245_v21  ;;  %v2253_v50 = vsel %vm6048_vm2, %v2249_v31, %v2252_v11  ;;  %v2393_v31 = vsel %vm1109_vm4, %v2004_v12, %v2390_v7 }
 0x3a4   :  { %v2254_v40 = vrot.slane %v2253_v50, 1  ;;  %v2257_v9 = vadd.f32 %v3094_v27, %v2246_v63  ;;  %v2210_v29 = vpop.f32.mrf.mxu2  ;;  %v5399_v22 = vsel %vm6051_vm1, %v2393_v31, %v2394_v52 }
 0x3a6   :  { %v2258_v18 = vadd.f32 %v3095_v28, %v2254_v40  ;;  %v3096_v39 = vmul.f32 -1.442695, %v2257_v9  ;;  %v2299_v2 = vrot.slane %v2257_v9, 2  ;;  %v2347_v51 = vrot.slane %v2257_v9, 6 }
 0x3a7   :  { %v2341_v37 = vrot.slane %v2257_v9, 4 }
 0x3a8   :  { %3316 = vpow2.f32 %v3096_v39  ;;  %v3097_v38 = vmul.f32 -1.442695, %v2258_v18  ;;  %v2300_v46 = vrot.slane %v2258_v18, 2  ;;  %v3098_v47 = vmul.f32 -1.442695, %v2299_v2 }
 0x3a9   :  { %v2348_v41 = vrot.slane %v2258_v18, 6  ;;  %v3100_v1 = vmul.f32 -1.442695, %v2347_v51  ;;  %v2342_v61 = vrot.slane %v2258_v18, 4 }
 0x3aa   :  { %3318 = vpow2.f32 %v3097_v38  ;;  %v3099_v15 = vmul.f32 -1.442695, %v2300_v46 }
 0x3ab   :  { %3320 = vpow2.f32 %v3098_v47  ;;  %v3101_v35 = vmul.f32 -1.442695, %v2348_v41 }
 0x3ac   :  { %3322 = vpow2.f32 %v3099_v15 }
 0x3ad   :  { %3324 = vpow2.f32 %v3100_v1 }
 0x3ae   :  { %v3317_v30 = vpop.eup %3316  ;;  %3326 = vpow2.f32 %v3101_v35 }
 0x3af   :  { %v2265_v4 = vadd.f32 1.0, %v3317_v30 }
 0x3b0   :  { %v3319_v55 = vpop.eup %3318 }
 0x3b1   :  { %v3321_v45 = vpop.eup %3320  ;;  %v5383_v33 = vadd.f32 1.0, %v3319_v55  ;;  %3328 = vrcp.f32 %v2265_v4  ;;  %v2276_v32 = vand.u32 2147483647, %v2265_v4  ;;  %v2278_v24 = vand.u32 2147483648, %v2265_v4 }
 0x3b2   :  { %v3323_v3 = vpop.eup %3322  ;;  %v5387_v53 = vadd.f32 1.0, %v3321_v45  ;;  %vm2272_vm4 = vweird.f32 %v2265_v4 }
 0x3b3   :  { %3330 = vrcp.f32 %v5383_v33  ;;  %v3325_v54 = vpop.eup %3324  ;;  %v5392_v43 = vadd.f32 1.0, %v3323_v3  ;;  %v2291_v56 = vand.u32 2147483647, %v5383_v33  ;;  %vm5408_vm12 = vcmp.eq.f32.partialorder %v2276_v32, 8.507059e+37 }
 0x3b4   :  { %3332 = vrcp.f32 %v5387_v53  ;;  %v3327_v49 = vpop.eup %3326  ;;  %v5403_v5 = vadd.f32 1.0, %v3325_v54  ;;  %v2293_v44 = vand.u32 2147483648, %v5383_v33  ;;  %vm2287_vm3 = vweird.f32 %v5383_v33 }
 0x3b5   :  { %3334 = vrcp.f32 %v5392_v43  ;;  %v5406_v0 = vadd.f32 1.0, %v3327_v49  ;;  %v2279_v34 = vor.u32 1.1754944e-38, %v2278_v24  ;;  %vm5417_vm6 = vcmp.eq.f32.partialorder %v2291_v56, 8.507059e+37 }
 0x3b6   :  { %3336 = vtanh.f32 %v2341_v37  ;;  %vm2316_vm10 = vweird.f32 %v5387_v53  ;;  %v2320_v8 = vand.u32 2147483647, %v5387_v53  ;;  %v2294_v21 = vor.u32 1.1754944e-38, %v2293_v44 }
 0x3b7   :  { %v3329_v19 = vpop.eup %3328  ;;  %3338 = vtanh.f32 %v2342_v61  ;;  %v2322_v28 = vand.u32 2147483648, %v5387_v53  ;;  %vm2331_vm11 = vweird.f32 %v5392_v43  ;;  %v2335_v20 = vand.u32 2147483647, %v5392_v43 }
 0x3b8   :  { %v2268_v26 = vmul.f32 %v3329_v19, %v2265_v4  ;;  %3340 = vrcp.f32 %v5403_v5  ;;  %vm2273_vm9 = vweird.f32 %v3329_v19  ;;  %v2337_v47 = vand.u32 2147483648, %v5392_v43 }
 0x3b9   :  { %v3331_v23 = vpop.eup %3330  ;;  %3342 = vrcp.f32 %v5406_v0  ;;  %vm5428_vm14 = vmor %vm2272_vm4, %vm2273_vm9  ;;  %v2323_v7 = vor.u32 1.1754944e-38, %v2322_v28  ;;  %vm2321_vm7 = vcmp.eq.f32.partialorder %v2320_v8, 8.507059e+37  ;;  %vm2336_vm4 = vcmp.eq.f32.partialorder %v2335_v20, 8.507059e+37 }
 0x3ba   :  { %v3333_v25 = vpop.eup %3332  ;;  %v2269_v57 = vsub.f32 1.0, %v2268_v26  ;;  %v2283_v6 = vmul.f32 %v3331_v23, %v5383_v33  ;;  %vm2288_vm5 = vweird.f32 %v3331_v23  ;;  %v2338_v3 = vor.u32 1.1754944e-38, %v2337_v47 }
 0x3bb   :  { %v2312_v60 = vmul.f32 %v3333_v25, %v5387_v53  ;;  %v3335_v42 = vpop.eup %3334  ;;  %vm2317_vm8 = vweird.f32 %v3333_v25  ;;  %vm2289_vm15 = vmor %vm2287_vm3, %vm2288_vm5  ;;  %vm2364_vm3 = vweird.f32 %v5403_v5  ;;  %v2368_v24 = vand.u32 2147483647, %v5403_v5 }
 0x3bc   :  { %v2270_v27 = vmul.f32 %v3329_v19, %v2269_v57  ;;  %v2284_v10 = vsub.f32 1.0, %v2283_v6  ;;  %v3337_v14 = vpop.eup %3336  ;;  %v2327_v63 = vmul.f32 %v3335_v42, %v5392_v43  ;;  %vm2332_vm2 = vweird.f32 %v3335_v42  ;;  %vm2318_vm13 = vmor %vm2316_vm10, %vm2317_vm8 }
 0x3bd   :  { %v2313_v11 = vsub.f32 1.0, %v2312_v60  ;;  %v3339_v50 = vpop.eup %3338  ;;  %vm2333_vm1 = vmor %vm2331_vm11, %vm2332_vm2  ;;  %v2370_v43 = vand.u32 2147483648, %v5403_v5  ;;  %vm2379_vm9 = vweird.f32 %v5406_v0  ;;  %vm2369_vm11 = vcmp.eq.f32.partialorder %v2368_v24, 8.507059e+37 }
 0x3be   :  { %v2271_v40 = vadd.f32 %v3329_v19, %v2270_v27  ;;  %v2285_v9 = vmul.f32 %v3331_v23, %v2284_v10  ;;  %v3341_v29 = vpop.eup %3340  ;;  %v2328_v2 = vsub.f32 1.0, %v2327_v63 }
 0x3bf   :  { %v2314_v39 = vmul.f32 %v3333_v25, %v2313_v11  ;;  %v3343_v51 = vpop.eup %3342  ;;  %v2360_v41 = vmul.f32 %v3341_v29, %v5403_v5  ;;  %v2371_v26 = vor.u32 1.1754944e-38, %v2370_v43 }
 0x3c0   :  { %v2275_v38 = vsel %vm5428_vm14, %v3329_v19, %v2271_v40  ;;  %v2286_v46 = vadd.f32 %v3331_v23, %v2285_v9  ;;  %v2329_v15 = vmul.f32 %v3335_v42, %v2328_v2  ;;  %v2375_v1 = vmul.f32 %v3343_v51, %v5406_v0 }
 0x3c1   :  { %v2315_v12 = vadd.f32 %v3333_v25, %v2314_v39  ;;  %v2280_v35 = vsel %vm5408_vm12, %v2279_v34, %v2275_v38  ;;  %v2361_v62 = vsub.f32 1.0, %v2360_v41  ;;  %vm2365_vm12 = vweird.f32 %v3341_v29  ;;  %v3364_v41 = vld [vmem:[%s5481_s6] ss:$0 sm:$0xff] }
 0x3c2   :  { %v2290_v30 = vsel %vm2289_vm15, %v3331_v23, %v2286_v46  ;;  %v2330_v4 = vadd.f32 %v3335_v42, %v2329_v15  ;;  %v2376_v55 = vsub.f32 1.0, %v2375_v1  ;;  %v2404_v31 = vmul.f32 %v3337_v14, %v2280_v35  ;;  %vm2366_vm10 = vmor %vm2364_vm3, %vm2365_vm12 }
 0x3c3   :  { %v2319_v13 = vsel %vm2318_vm13, %v3333_v25, %v2315_v12  ;;  %v2295_v45 = vsel %vm5417_vm6, %v2294_v21, %v2290_v30  ;;  %v2362_v48 = vmul.f32 %v3341_v29, %v2361_v62  ;;  %vm2380_vm6 = vweird.f32 %v3343_v51 }
 0x3c4   :  { %v2324_v33 = vsel %vm2321_vm7, %v2323_v7, %v2319_v13  ;;  %v2334_v58 = vsel %vm2333_vm1, %v3335_v42, %v2330_v4  ;;  %v2377_v37 = vmul.f32 %v3343_v51, %v2376_v55  ;;  %v2405_v61 = vmul.f32 %v3339_v50, %v2295_v45  ;;  %vm2381_vm5 = vmor %vm2379_vm9, %vm2380_vm6 }
 0x3c5   :  { %v2402_v53 = vmul.f32 %v5399_v22, %v2324_v33  ;;  %v2339_v52 = vsel %vm2336_vm4, %v2338_v3, %v2334_v58  ;;  %v2363_v32 = vadd.f32 %v3341_v29, %v2362_v48  ;;  %v2385_v22 = vand.u32 2147483648, %v5406_v0 }
 0x3c6   :  { %v2403_v54 = vmul.f32 %v2399_v17, %v2339_v52  ;;  %v2378_v56 = vadd.f32 %v3343_v51, %v2377_v37  ;;  %v2383_v17 = vand.u32 2147483647, %v5406_v0 }
 0x3c7   :  { %v2406_v49 = vadd.f32 %v2404_v31, %v2402_v53  ;;  %v2367_v36 = vsel %vm2366_vm10, %v3341_v29, %v2363_v32  ;;  %v2386_v25 = vor.u32 1.1754944e-38, %v2385_v22 }
 0x3c8   :  { %v2407_v19 = vadd.f32 %v2405_v61, %v2403_v54  ;;  %v2382_v23 = vsel %vm2381_vm5, %v3343_v51, %v2378_v56  ;;  %v2372_v44 = vsel %vm2369_vm11, %v2371_v26, %v2367_v36  ;;  %vm2384_vm14 = vcmp.eq.f32.partialorder %v2383_v17, 8.507059e+37 }
 0x3c9   :  { %3344 = vtanh.f32 %v2406_v49  ;;  %v2387_v6 = vsel %vm2384_vm14, %v2386_v25, %v2382_v23 }
 0x3ca   :  { %3346 = vtanh.f32 %v2407_v19 }
 0x3cf   :  { %v3345_v59 = vpop.eup %3344 }
 0x3d0   :  { %v2410_v5 = vmul.f32 %v3345_v59, %v2372_v44  ;;  %v3347_v57 = vpop.eup %3346 }
 0x3d1   :  { %v2411_v34 = vmul.f32 %v3347_v57, %v2387_v6 }
 0x3d2   :  { %2414 = vst [vmem:[#allocation1] ss:$2 sm:$0xff] %v2410_v5  ;;  %v2428_v16 = vperm.slane %v2410_v5, 0  ;;  %v2429_v60 = vperm.slane %v2410_v5, 1 }
 0x3d3   :  { %2416 = vst [vmem:[#allocation1 + $0x1] ss:$2 sm:$0xff] %v2411_v34  ;;  %v2430_v42 = vperm.slane %v2411_v34, 0  ;;  %v2431_v27 = vperm.slane %v2411_v34, 1 }
 0x3d4   :  { %v2436_v10 = vpack.c.bf16 %v2428_v16, %v2428_v16  ;;  %v2437_v8 = vpack.c.bf16 %v2429_v60, %v2429_v60 }
 0x3d5   :  { %v2438_v0 = vpack.c.bf16 %v2430_v42, %v2430_v42  ;;  %v2439_v14 = vpack.c.bf16 %v2431_v27, %v2431_v27 }
 0x3d6   :  { %v2444_v28 = vunpack.c.l.b16 %v2436_v10  ;;  %v2445_v50 = vunpack.c.l.b16 %v2437_v8 }
 0x3d7   :  { %v2446_v21 = vunpack.c.l.b16 %v2438_v0  ;;  %v2447_v11 = vunpack.c.l.b16 %v2439_v14 }
 0x3d9   :  { %v2448_v63 = vrot.slane %v2446_v21, 7  ;;  %v2450_v40 = vrot.slane %v2447_v11, 7 }
 0x3da   :  { %v2417_v9 = vld [vmem:[#allocation1] sm:$0xff] }
 0x3db   :  { %2419 = vst [vmem:[#allocation2] sm:$0xf] %v2417_v9  ;;  %v2449_v29 = vsel %vm223_vm0, %v2448_v63, %v2444_v28  ;;  %v2451_v18 = vsel %vm223_vm0, %v2450_v40, %v2445_v50 }
 0x3dc   :  { %2422 = vst [vmem:[#allocation1] ss:$2 sm:$0xff] %v2406_v49  ;;  %v2452_v39 = vpack.c.b16 %v2449_v29, %v2449_v29  ;;  %v2453_v2 = vpack.c.b16 %v2451_v18, %v2451_v18 }
 0x3dd   :  { %2424 = vst [vmem:[#allocation1 + $0x1] ss:$2 sm:$0xff] %v2407_v19 }
 0x3de   :  { %2464 = vmatmul.bf16.vlgmr.msrb.gmra.mxu0 %v2452_v39  ;;  %2477 = vmatmul.bf16.vlgmr.msrb.gmra.mxu1 %v2453_v2 }
 0x3e2   :  { %v2487_v20 = vld [vmem:[#allocation2] sm:$0xf] }
 0x3e3   :  { %2488 = vst [vmem:[%s5483_s8] sm:$0xf] %v2487_v20 }
 0x3e4   :  { %v2425_v51 = vld [vmem:[#allocation1] sm:$0xff] }
 0x3e5   :  { %2427 = vst [vmem:[#allocation3] sm:$0xf] %v2425_v51 }
 0x3ec   :  { %v2489_v38 = vld [vmem:[#allocation3] sm:$0xf] }
 0x3ed   :  { %2490 = vst [vmem:[%s5484_s9] sm:$0xf] %v2489_v38 }
 0x45b   :  { %v2465_v46 = vpop.f32.mrf.mxu0  ;;  %v2478_v47 = vpop.f32.mrf.mxu1 }
 0x45c   :  { %v2466_v12 = vadd.f32 %v3364_v41, %v2465_v46 }
 0x45e   :  { %v2479_v15 = vadd.f32 %v2478_v47, %v2466_v12 }
 0x460   :  { %v2483_v1 = vrot.slane %v2479_v15, 1  ;;  %2485 = vst [vmem:[%s5482_s7 + $0x2] sm:$0x1] %v2479_v15 }
 0x462   :  { %2486 = vst [vmem:[%s5482_s7 + $0x6] sm:$0x1] %v2483_v1 }
 0x463   :  { %v2467_v35 = vpop.f32.mrf.mxu0  ;;  %v2480_v30 = vpop.f32.mrf.mxu1 }

// kernel: unreal_forward.6
= control target key start
LH: loop header
LB: loop body
LE: loop exit
PB: predicated region body
PF: predicated region fallthrough
CT: control target
= control target key end

     0   :  { %vm2061_vm0 = vcmask 261120   ;;  %s9275_s2 = inlined_call_operand.vmem [shape: bf16[2592,256], index: 2, kind: input, shape index: {}]   ;;  %s9276_s0 = inlined_call_operand.vmem [shape: bf16[8,2592], index: 0, kind: input, shape index: {}]   ;;  %s9277_s3 = inlined_call_operand.vmem [shape: f32[1,256], index: 3, kind: input, shape index: {}]   ;;  %s9278_s4 = inlined_call_operand.vmem [shape: bf16[256,1024], index: 4, kind: input, shape index: {}]   ;;  %s9279_s1 = inlined_call_operand.vmem [shape: f32[8,7], index: 1, kind: input, shape index: {}]   ;;  %s9280_s5 = inlined_call_operand.vmem [shape: f32[7,1024], index: 5, kind: input, shape index: {}]   ;;  %s9281_s6 = inlined_call_operand.vmem [shape: f32[1,1024], index: 6, kind: input, shape index: {}]   ;;  %s9282_s7 = inlined_call_operand.vmem [shape: f32[8,1024], index: 7, kind: output, shape index: {}]  }
   0x1   :  { %v3885_v0 = vld [vmem:[%s9275_s2 + $0x70] sm:$0xf]  ;;  %v5652_v1 = vld [vmem:[%s9275_s2 + $0x74] sm:$0xf0]  ;;  %v3877_v11 = vld [vmem:[%s9275_s2 + $0x60] sm:$0xf] }
   0x2   :  { %v3949_v2 = vld [vmem:[%s9275_s2 + $0xf0] sm:$0xf]  ;;  %v3886_v3 = vor.u32 %v5652_v1, %v3885_v0  ;;  %v5668_v4 = vld [vmem:[%s9275_s2 + $0xf4] sm:$0xf0]  ;;  %v5650_v13 = vld [vmem:[%s9275_s2 + $0x64] sm:$0xf0] }
   0x3   :  { %v4013_v5 = vld [vmem:[%s9275_s2 + $0x170] sm:$0xf]  ;;  %v5684_v6 = vld [vmem:[%s9275_s2 + $0x174] sm:$0xf0]  ;;  %v3950_v7 = vor.u32 %v5668_v4, %v3949_v2  ;;  %v3941_v14 = vld [vmem:[%s9275_s2 + $0xe0] sm:$0xf]  ;;  %v3878_v16 = vor.u32 %v5650_v13, %v3877_v11 }
   0x4   :  { %v4014_v8 = vor.u32 %v5684_v6, %v4013_v5  ;;  %v4077_v9 = vld [vmem:[%s9275_s2 + $0x1f0] sm:$0xf]  ;;  %v5700_v10 = vld [vmem:[%s9275_s2 + $0x1f4] sm:$0xf0]  ;;  %2065 = vmatpush.bf16.msra.mxu0 %v3886_v3  ;;  %v5666_v15 = vld [vmem:[%s9275_s2 + $0xe4] sm:$0xf0] }
   0x5   :  { %v4078_v12 = vor.u32 %v5700_v10, %v4077_v9  ;;  %2078 = vmatpush.bf16.msra.mxu1 %v3950_v7  ;;  %v3942_v17 = vor.u32 %v5666_v15, %v3941_v14  ;;  %v4005_v18 = vld [vmem:[%s9275_s2 + $0x160] sm:$0xf]  ;;  %v5682_v19 = vld [vmem:[%s9275_s2 + $0x164] sm:$0xf0]  ;;  %v3869_v23 = vld [vmem:[%s9275_s2 + $0x50] sm:$0xf] }
   0x6   :  { %2091 = vmatpush.bf16.msra.mxu2 %v4014_v8  ;;  %v4069_v20 = vld [vmem:[%s9275_s2 + $0x1e0] sm:$0xf]  ;;  %v4006_v21 = vor.u32 %v5682_v19, %v4005_v18  ;;  %v5698_v22 = vld [vmem:[%s9275_s2 + $0x1e4] sm:$0xf0]  ;;  %v5648_v24 = vld [vmem:[%s9275_s2 + $0x54] sm:$0xf0] }
   0x7   :  { %2104 = vmatpush.bf16.msra.mxu3 %v4078_v12  ;;  %v4070_v25 = vor.u32 %v5698_v22, %v4069_v20  ;;  %v3933_v26 = vld [vmem:[%s9275_s2 + $0xd0] sm:$0xf]  ;;  %v5664_v27 = vld [vmem:[%s9275_s2 + $0xd4] sm:$0xf0]  ;;  %v3870_v29 = vor.u32 %v5648_v24, %v3869_v23  ;;  %v3861_v35 = vld [vmem:[%s9275_s2 + $0x40] sm:$0xf] }
   0x8   :  { %v3997_v28 = vld [vmem:[%s9275_s2 + $0x150] sm:$0xf]  ;;  %2066 = vmatpush.bf16.msra.mxu0 %v3878_v16  ;;  %v5680_v30 = vld [vmem:[%s9275_s2 + $0x154] sm:$0xf0]  ;;  %v3934_v33 = vor.u32 %v5664_v27, %v3933_v26  ;;  %v5646_v36 = vld [vmem:[%s9275_s2 + $0x44] sm:$0xf0] }
   0x9   :  { %v4061_v31 = vld [vmem:[%s9275_s2 + $0x1d0] sm:$0xf]  ;;  %v5696_v32 = vld [vmem:[%s9275_s2 + $0x1d4] sm:$0xf0]  ;;  %2079 = vmatpush.bf16.msra.mxu1 %v3942_v17  ;;  %v3998_v34 = vor.u32 %v5680_v30, %v3997_v28  ;;  %v3925_v37 = vld [vmem:[%s9275_s2 + $0xc0] sm:$0xf]  ;;  %v3862_v44 = vor.u32 %v5646_v36, %v3861_v35 }
   0xa   :  { %2092 = vmatpush.bf16.msra.mxu2 %v4006_v21  ;;  %v4062_v38 = vor.u32 %v5696_v32, %v4061_v31  ;;  %v5662_v39 = vld [vmem:[%s9275_s2 + $0xc4] sm:$0xf0]  ;;  %v3989_v40 = vld [vmem:[%s9275_s2 + $0x140] sm:$0xf]  ;;  %v3853_v47 = vld [vmem:[%s9275_s2 + $0x30] sm:$0xf] }
   0xb   :  { %2105 = vmatpush.bf16.msra.mxu3 %v4070_v25  ;;  %v5678_v41 = vld [vmem:[%s9275_s2 + $0x144] sm:$0xf0]  ;;  %v4053_v42 = vld [vmem:[%s9275_s2 + $0x1c0] sm:$0xf]  ;;  %v3926_v45 = vor.u32 %v5662_v39, %v3925_v37  ;;  %v5644_v48 = vld [vmem:[%s9275_s2 + $0x34] sm:$0xf0] }
   0xc   :  { %v5694_v43 = vld [vmem:[%s9275_s2 + $0x1c4] sm:$0xf0]  ;;  %2067 = vmatpush.bf16.msra.mxu0 %v3870_v29  ;;  %v3990_v46 = vor.u32 %v5678_v41, %v3989_v40  ;;  %v3917_v49 = vld [vmem:[%s9275_s2 + $0xb0] sm:$0xf]  ;;  %v5660_v51 = vld [vmem:[%s9275_s2 + $0xb4] sm:$0xf0]  ;;  %v3854_v56 = vor.u32 %v5644_v48, %v3853_v47 }
   0xd   :  { %2080 = vmatpush.bf16.msra.mxu1 %v3934_v33  ;;  %v4054_v50 = vor.u32 %v5694_v43, %v4053_v42  ;;  %v3981_v52 = vld [vmem:[%s9275_s2 + $0x130] sm:$0xf]  ;;  %v5676_v53 = vld [vmem:[%s9275_s2 + $0x134] sm:$0xf0]  ;;  %v3918_v57 = vor.u32 %v5660_v51, %v3917_v49  ;;  %v3845_v59 = vld [vmem:[%s9275_s2 + $0x20] sm:$0xf] }
   0xe   :  { %2093 = vmatpush.bf16.msra.mxu2 %v3998_v34  ;;  %v4045_v54 = vld [vmem:[%s9275_s2 + $0x1b0] sm:$0xf]  ;;  %v5692_v55 = vld [vmem:[%s9275_s2 + $0x1b4] sm:$0xf0]  ;;  %v3982_v58 = vor.u32 %v5676_v53, %v3981_v52  ;;  %v5642_v60 = vld [vmem:[%s9275_s2 + $0x24] sm:$0xf0] }
   0xf   :  { %2106 = vmatpush.bf16.msra.mxu3 %v4062_v38  ;;  %v3909_v61 = vld [vmem:[%s9275_s2 + $0xa0] sm:$0xf]  ;;  %v4046_v62 = vor.u32 %v5692_v55, %v4045_v54  ;;  %v5658_v63 = vld [vmem:[%s9275_s2 + $0xa4] sm:$0xf0]  ;;  %v3846_v4 = vor.u32 %v5642_v60, %v3845_v59  ;;  %v3837_v7 = vld [vmem:[%s9275_s2 + $0x10] sm:$0xf] }
  0x10   :  { %2068 = vmatpush.bf16.msra.mxu0 %v3862_v44  ;;  %v3973_v0 = vld [vmem:[%s9275_s2 + $0x120] sm:$0xf]  ;;  %v5674_v1 = vld [vmem:[%s9275_s2 + $0x124] sm:$0xf0]  ;;  %v3910_v5 = vor.u32 %v5658_v63, %v3909_v61  ;;  %v5640_v8 = vld [vmem:[%s9275_s2 + $0x14] sm:$0xf0] }
  0x11   :  { %2081 = vmatpush.bf16.msra.mxu1 %v3926_v45  ;;  %v4037_v2 = vld [vmem:[%s9275_s2 + $0x1a0] sm:$0xf]  ;;  %v5690_v3 = vld [vmem:[%s9275_s2 + $0x1a4] sm:$0xf0]  ;;  %v3974_v6 = vor.u32 %v5674_v1, %v3973_v0  ;;  %v3901_v9 = vld [vmem:[%s9275_s2 + $0x90] sm:$0xf]  ;;  %v3838_v16 = vor.u32 %v5640_v8, %v3837_v7 }
  0x12   :  { %2094 = vmatpush.bf16.msra.mxu2 %v3990_v46  ;;  %v4038_v10 = vor.u32 %v5690_v3, %v4037_v2  ;;  %v5656_v11 = vld [vmem:[%s9275_s2 + $0x94] sm:$0xf0]  ;;  %v3965_v12 = vld [vmem:[%s9275_s2 + $0x110] sm:$0xf]  ;;  %v3829_v17 = vld [vmem:[%s9275_s2] sm:$0xf] }
  0x13   :  { %2107 = vmatpush.bf16.msra.mxu3 %v4054_v50  ;;  %v5672_v13 = vld [vmem:[%s9275_s2 + $0x114] sm:$0xf0]  ;;  %v4029_v14 = vld [vmem:[%s9275_s2 + $0x190] sm:$0xf]  ;;  %v5638_v18 = vld [vmem:[%s9275_s2 + $0x4] sm:$0xf0]  ;;  %v3902_v19 = vor.u32 %v5656_v11, %v3901_v9 }
  0x14   :  { %2069 = vmatpush.bf16.msra.mxu0 %v3854_v56  ;;  %v5688_v15 = vld [vmem:[%s9275_s2 + $0x194] sm:$0xf0]  ;;  %v3966_v20 = vor.u32 %v5672_v13, %v3965_v12  ;;  %v3893_v21 = vld [vmem:[%s9275_s2 + $0x80] sm:$0xf]  ;;  %v5654_v22 = vld [vmem:[%s9275_s2 + $0x84] sm:$0xf0]  ;;  %v3830_v31 = vor.u32 %v5638_v18, %v3829_v17 }
  0x15   :  { %2082 = vmatpush.bf16.msra.mxu1 %v3918_v57  ;;  %v3957_v23 = vld [vmem:[%s9275_s2 + $0x100] sm:$0xf]  ;;  %v4030_v24 = vor.u32 %v5688_v15, %v4029_v14  ;;  %v5670_v25 = vld [vmem:[%s9275_s2 + $0x104] sm:$0xf0]  ;;  %v4141_v28 = vld [vmem:[%s9275_s2 + $0x270] sm:$0xf]  ;;  %v3894_v35 = vor.u32 %v5654_v22, %v3893_v21 }
  0x16   :  { %2095 = vmatpush.bf16.msra.mxu2 %v3982_v58  ;;  %v4021_v26 = vld [vmem:[%s9275_s2 + $0x180] sm:$0xf]  ;;  %v5686_v27 = vld [vmem:[%s9275_s2 + $0x184] sm:$0xf0]  ;;  %v5716_v29 = vld [vmem:[%s9275_s2 + $0x274] sm:$0xf0]  ;;  %v3958_v36 = vor.u32 %v5670_v25, %v3957_v23 }
  0x17   :  { %2108 = vmatpush.bf16.msra.mxu3 %v4046_v62  ;;  %v4205_v30 = vld [vmem:[%s9275_s2 + $0x2f0] sm:$0xf]  ;;  %v5732_v32 = vld [vmem:[%s9275_s2 + $0x2f4] sm:$0xf0]  ;;  %v4022_v39 = vor.u32 %v5686_v27, %v4021_v26  ;;  %v4142_v40 = vor.u32 %v5716_v29, %v4141_v28  ;;  %v4133_v43 = vld [vmem:[%s9275_s2 + $0x260] sm:$0xf] }
  0x18   :  { %2070 = vmatpush.bf16.msra.mxu0 %v3846_v4  ;;  %v4269_v33 = vld [vmem:[%s9275_s2 + $0x370] sm:$0xf]  ;;  %v5748_v34 = vld [vmem:[%s9275_s2 + $0x374] sm:$0xf0]  ;;  %v4206_v41 = vor.u32 %v5732_v32, %v4205_v30  ;;  %v5714_v44 = vld [vmem:[%s9275_s2 + $0x264] sm:$0xf0] }
  0x19   :  { %2083 = vmatpush.bf16.msra.mxu1 %v3910_v5  ;;  %v4333_v37 = vld [vmem:[%s9275_s2 + $0x3f0] sm:$0xf]  ;;  %v5764_v38 = vld [vmem:[%s9275_s2 + $0x3f4] sm:$0xf0]  ;;  %v4270_v42 = vor.u32 %v5748_v34, %v4269_v33  ;;  %v4197_v45 = vld [vmem:[%s9275_s2 + $0x2e0] sm:$0xf]  ;;  %v4134_v52 = vor.u32 %v5714_v44, %v4133_v43 }
  0x1a   :  { %2096 = vmatpush.bf16.msra.mxu2 %v3974_v6  ;;  %v4334_v46 = vor.u32 %v5764_v38, %v4333_v37  ;;  %v5730_v47 = vld [vmem:[%s9275_s2 + $0x2e4] sm:$0xf0]  ;;  %v4261_v48 = vld [vmem:[%s9275_s2 + $0x360] sm:$0xf]  ;;  %v4125_v53 = vld [vmem:[%s9275_s2 + $0x250] sm:$0xf] }
  0x1b   :  { %2109 = vmatpush.bf16.msra.mxu3 %v4038_v10  ;;  %v5746_v49 = vld [vmem:[%s9275_s2 + $0x364] sm:$0xf0]  ;;  %v4325_v50 = vld [vmem:[%s9275_s2 + $0x3e0] sm:$0xf]  ;;  %v5712_v54 = vld [vmem:[%s9275_s2 + $0x254] sm:$0xf0]  ;;  %v4198_v55 = vor.u32 %v5730_v47, %v4197_v45 }
  0x1c   :  { %2071 = vmatpush.bf16.msra.mxu0 %v3838_v16  ;;  %v5762_v51 = vld [vmem:[%s9275_s2 + $0x3e4] sm:$0xf0]  ;;  %v4262_v56 = vor.u32 %v5746_v49, %v4261_v48  ;;  %v4189_v57 = vld [vmem:[%s9275_s2 + $0x2d0] sm:$0xf]  ;;  %v5728_v58 = vld [vmem:[%s9275_s2 + $0x2d4] sm:$0xf0]  ;;  %v4126_v6 = vor.u32 %v5712_v54, %v4125_v53 }
  0x1d   :  { %2084 = vmatpush.bf16.msra.mxu1 %v3902_v19  ;;  %v28_v59 = vld [vmem:[%s9276_s0 + $0x8] sm:$0xff]  ;;  %v4326_v60 = vor.u32 %v5762_v51, %v4325_v50  ;;  %v4253_v61 = vld [vmem:[%s9275_s2 + $0x350] sm:$0xf]  ;;  %v5744_v62 = vld [vmem:[%s9275_s2 + $0x354] sm:$0xf0]  ;;  %v4190_v9 = vor.u32 %v5728_v58, %v4189_v57 }
  0x1e   :  { %2097 = vmatpush.bf16.msra.mxu2 %v3966_v20  ;;  %v381_v63 = vunpack.c.l.b16 %v28_v59  ;;  %v27_v0 = vld [vmem:[%s9276_s0] sm:$0xff]  ;;  %v382_v1 = vunpack.c.h.b16 %v28_v59  ;;  %v4317_v2 = vld [vmem:[%s9275_s2 + $0x3d0] sm:$0xf]  ;;  %v5760_v3 = vld [vmem:[%s9275_s2 + $0x3d4] sm:$0xf0]  ;;  %v4254_v10 = vor.u32 %v5744_v62, %v4253_v61 }
  0x1f   :  { %2110 = vmatpush.bf16.msra.mxu3 %v4030_v24  ;;  %v379_v4 = vunpack.c.l.b16 %v27_v0  ;;  %v380_v5 = vunpack.c.h.b16 %v27_v0  ;;  %v4117_v11 = vld [vmem:[%s9275_s2 + $0x240] sm:$0xf]  ;;  %v5710_v12 = vld [vmem:[%s9275_s2 + $0x244] sm:$0xf0]  ;;  %v4318_v15 = vor.u32 %v5760_v3, %v4317_v2  ;;  %v4109_v25 = vld [vmem:[%s9275_s2 + $0x230] sm:$0xf] }
  0x20   :  { %2072 = vmatpush.bf16.msra.mxu0 %v3830_v31  ;;  %v6422_v7 = vpack.c.b16 %v381_v63, %v381_v63  ;;  %v6424_v8 = vpack.c.b16 %v382_v1, %v382_v1  ;;  %v4181_v13 = vld [vmem:[%s9275_s2 + $0x2c0] sm:$0xf]  ;;  %v5726_v16 = vld [vmem:[%s9275_s2 + $0x2c4] sm:$0xf0]  ;;  %v4118_v22 = vor.u32 %v5710_v12, %v4117_v11  ;;  %v5708_v26 = vld [vmem:[%s9275_s2 + $0x234] sm:$0xf0] }
  0x21   :  { %2085 = vmatpush.bf16.msra.mxu1 %v3894_v35  ;;  %v6435_v14 = vpack.c.b16 %v379_v4, %v379_v4  ;;  %v4245_v17 = vld [vmem:[%s9275_s2 + $0x340] sm:$0xf]  ;;  %v5742_v18 = vld [vmem:[%s9275_s2 + $0x344] sm:$0xf0]  ;;  %v6447_v19 = vpack.c.b16 %v380_v5, %v380_v5  ;;  %v4182_v23 = vor.u32 %v5726_v16, %v4181_v13  ;;  %v4173_v27 = vld [vmem:[%s9275_s2 + $0x2b0] sm:$0xf]  ;;  %v4110_v34 = vor.u32 %v5708_v26, %v4109_v25 }
  0x22   :  { %2098 = vmatpush.bf16.msra.mxu2 %v3958_v36  ;;  %v4309_v20 = vld [vmem:[%s9275_s2 + $0x3c0] sm:$0xf]  ;;  %v5758_v21 = vld [vmem:[%s9275_s2 + $0x3c4] sm:$0xf0]  ;;  %v4246_v24 = vor.u32 %v5742_v18, %v4245_v17  ;;  %v5724_v29 = vld [vmem:[%s9275_s2 + $0x2b4] sm:$0xf0] }
  0x23   :  { %2111 = vmatpush.bf16.msra.mxu3 %v4022_v39  ;;  %2073 = vmatmul.bf16.vlgmr.msra.gmra.mxu0 %v6435_v14  ;;  %v4310_v28 = vor.u32 %v5758_v21, %v4309_v20  ;;  %v4237_v30 = vld [vmem:[%s9275_s2 + $0x330] sm:$0xf]  ;;  %v5740_v31 = vld [vmem:[%s9275_s2 + $0x334] sm:$0xf0]  ;;  %v4174_v35 = vor.u32 %v5724_v29, %v4173_v27  ;;  %v4101_v37 = vld [vmem:[%s9275_s2 + $0x220] sm:$0xf] }
  0x24   :  { %2117 = vmatpush.bf16.msrb.mxu0 %v4142_v40  ;;  %2086 = vmatmul.bf16.vlgmr.msra.gmra.mxu1 %v6447_v19  ;;  %v4301_v32 = vld [vmem:[%s9275_s2 + $0x3b0] sm:$0xf]  ;;  %v5756_v33 = vld [vmem:[%s9275_s2 + $0x3b4] sm:$0xf0]  ;;  %v4238_v36 = vor.u32 %v5740_v31, %v4237_v30  ;;  %v5706_v38 = vld [vmem:[%s9275_s2 + $0x224] sm:$0xf0] }
  0x25   :  { %2130 = vmatpush.bf16.msrb.mxu1 %v4206_v41  ;;  %2099 = vmatmul.bf16.vlgmr.msra.gmra.mxu2 %v6422_v7  ;;  %v4165_v39 = vld [vmem:[%s9275_s2 + $0x2a0] sm:$0xf]  ;;  %v4302_v40 = vor.u32 %v5756_v33, %v4301_v32  ;;  %v5722_v41 = vld [vmem:[%s9275_s2 + $0x2a4] sm:$0xf0]  ;;  %v4093_v49 = vld [vmem:[%s9275_s2 + $0x210] sm:$0xf] }
  0x26   :  { %2143 = vmatpush.bf16.msrb.mxu2 %v4270_v42  ;;  %2112 = vmatmul.bf16.vlgmr.msra.gmra.mxu3 %v6424_v8  ;;  %v4229_v42 = vld [vmem:[%s9275_s2 + $0x320] sm:$0xf]  ;;  %v5738_v43 = vld [vmem:[%s9275_s2 + $0x324] sm:$0xf0]  ;;  %v4166_v47 = vor.u32 %v5722_v41, %v4165_v39  ;;  %v5704_v50 = vld [vmem:[%s9275_s2 + $0x214] sm:$0xf0] }
  0x27   :  { %2156 = vmatpush.bf16.msrb.mxu3 %v4334_v46  ;;  %v4293_v44 = vld [vmem:[%s9275_s2 + $0x3a0] sm:$0xf]  ;;  %v5754_v45 = vld [vmem:[%s9275_s2 + $0x3a4] sm:$0xf0]  ;;  %v4102_v46 = vor.u32 %v5706_v38, %v4101_v37  ;;  %v4230_v48 = vor.u32 %v5738_v43, %v4229_v42  ;;  %v4157_v51 = vld [vmem:[%s9275_s2 + $0x290] sm:$0xf]  ;;  %v4094_v59 = vor.u32 %v5704_v50, %v4093_v49 }
  0x28   :  { %2118 = vmatpush.bf16.msrb.mxu0 %v4134_v52  ;;  %v4294_v52 = vor.u32 %v5754_v45, %v4293_v44  ;;  %v5720_v53 = vld [vmem:[%s9275_s2 + $0x294] sm:$0xf0]  ;;  %v4221_v54 = vld [vmem:[%s9275_s2 + $0x310] sm:$0xf]  ;;  %v4085_v58 = vld [vmem:[%s9275_s2 + $0x200] sm:$0xf] }
  0x29   :  { %2131 = vmatpush.bf16.msrb.mxu1 %v4198_v55  ;;  %v5736_v55 = vld [vmem:[%s9275_s2 + $0x314] sm:$0xf0]  ;;  %v4149_v61 = vld [vmem:[%s9275_s2 + $0x280] sm:$0xf]  ;;  %v5718_v62 = vld [vmem:[%s9275_s2 + $0x284] sm:$0xf0]  ;;  %v4158_v63 = vor.u32 %v5720_v53, %v4157_v51 }
  0x2a   :  { %2144 = vmatpush.bf16.msrb.mxu2 %v4262_v56  ;;  %v4285_v56 = vld [vmem:[%s9275_s2 + $0x390] sm:$0xf]  ;;  %v5752_v57 = vld [vmem:[%s9275_s2 + $0x394] sm:$0xf0]  ;;  %v4222_v0 = vor.u32 %v5736_v55, %v4221_v54  ;;  %v4213_v1 = vld [vmem:[%s9275_s2 + $0x300] sm:$0xf]  ;;  %v4150_v20 = vor.u32 %v5718_v62, %v4149_v61 }
  0x2b   :  { %2157 = vmatpush.bf16.msrb.mxu3 %v4326_v60  ;;  %v5702_v60 = vld [vmem:[%s9275_s2 + $0x204] sm:$0xf0]  ;;  %v30_v3 = vld [vmem:[%s9276_s0 + $0x18] sm:$0xff]  ;;  %v4286_v4 = vor.u32 %v5752_v57, %v4285_v56  ;;  %v4277_v5 = vld [vmem:[%s9275_s2 + $0x380] sm:$0xf] }
  0x2c   :  { %2119 = vmatpush.bf16.msrb.mxu0 %v4126_v6  ;;  %v5734_v2 = vld [vmem:[%s9275_s2 + $0x304] sm:$0xf0]  ;;  %v5780_v11 = vld [vmem:[%s9275_s2 + $0x474] sm:$0xf0]  ;;  %v4461_v12 = vld [vmem:[%s9275_s2 + $0x4f0] sm:$0xf]  ;;  %v4086_v13 = vor.u32 %v5702_v60, %v4085_v58  ;;  %v385_v18 = vunpack.c.l.b16 %v30_v3  ;;  %v386_v25 = vunpack.c.h.b16 %v30_v3 }
  0x2d   :  { %2132 = vmatpush.bf16.msrb.mxu1 %v4190_v9  ;;  %v5750_v6 = vld [vmem:[%s9275_s2 + $0x384] sm:$0xf0]  ;;  %v29_v9 = vld [vmem:[%s9276_s0 + $0x10] sm:$0xff]  ;;  %v5812_v17 = vld [vmem:[%s9275_s2 + $0x574] sm:$0xf0]  ;;  %v4214_v21 = vor.u32 %v5734_v2, %v4213_v1 }
  0x2e   :  { %2145 = vmatpush.bf16.msrb.mxu2 %v4254_v10  ;;  %v4397_v10 = vld [vmem:[%s9275_s2 + $0x470] sm:$0xf]  ;;  %v4278_v26 = vor.u32 %v5750_v6, %v4277_v5  ;;  %v4389_v31 = vld [vmem:[%s9275_s2 + $0x460] sm:$0xf]  ;;  %v5778_v32 = vld [vmem:[%s9275_s2 + $0x464] sm:$0xf0]  ;;  %v6612_v42 = vpack.c.b16 %v386_v25, %v386_v25 }
  0x2f   :  { %2158 = vmatpush.bf16.msrb.mxu3 %v4318_v15  ;;  %v5796_v15 = vld [vmem:[%s9275_s2 + $0x4f4] sm:$0xf0]  ;;  %v4525_v16 = vld [vmem:[%s9275_s2 + $0x570] sm:$0xf]  ;;  %v4398_v27 = vor.u32 %v5780_v11, %v4397_v10  ;;  %v4453_v33 = vld [vmem:[%s9275_s2 + $0x4e0] sm:$0xf]  ;;  %v4390_v43 = vor.u32 %v5778_v32, %v4389_v31 }
  0x30   :  { %2120 = vmatpush.bf16.msrb.mxu0 %v4118_v22  ;;  %v4589_v22 = vld [vmem:[%s9275_s2 + $0x5f0] sm:$0xf]  ;;  %v4462_v29 = vor.u32 %v5796_v15, %v4461_v12  ;;  %v4526_v30 = vor.u32 %v5812_v17, %v4525_v16  ;;  %v4517_v37 = vld [vmem:[%s9275_s2 + $0x560] sm:$0xf]  ;;  %v5810_v38 = vld [vmem:[%s9275_s2 + $0x564] sm:$0xf0] }
  0x31   :  { %2133 = vmatpush.bf16.msrb.mxu1 %v4182_v23  ;;  %v5828_v23 = vld [vmem:[%s9275_s2 + $0x5f4] sm:$0xf0]  ;;  %v4581_v39 = vld [vmem:[%s9275_s2 + $0x5e0] sm:$0xf]  ;;  %v4445_v49 = vld [vmem:[%s9275_s2 + $0x4d0] sm:$0xf] }
  0x32   :  { %2146 = vmatpush.bf16.msrb.mxu2 %v4246_v24  ;;  %v383_v24 = vunpack.c.l.b16 %v29_v9  ;;  %v5792_v51 = vld [vmem:[%s9275_s2 + $0x4d4] sm:$0xf0]  ;;  %v4573_v54 = vld [vmem:[%s9275_s2 + $0x5d0] sm:$0xf]  ;;  %v5774_v60 = vld [vmem:[%s9275_s2 + $0x444] sm:$0xf0] }
  0x33   :  { %2159 = vmatpush.bf16.msrb.mxu3 %v4310_v28  ;;  %v384_v28 = vunpack.c.h.b16 %v29_v9  ;;  %v5808_v53 = vld [vmem:[%s9275_s2 + $0x554] sm:$0xf0]  ;;  %v4446_v57 = vor.u32 %v5792_v51, %v4445_v49  ;;  %v4437_v61 = vld [vmem:[%s9275_s2 + $0x4c0] sm:$0xf]  ;;  %v5806_v1 = vld [vmem:[%s9275_s2 + $0x544] sm:$0xf0] }
  0x34   :  { %2121 = vmatpush.bf16.msrb.mxu0 %v4110_v34  ;;  %v4590_v34 = vor.u32 %v5828_v23, %v4589_v22  ;;  %v6610_v41 = vpack.c.b16 %v383_v24, %v383_v24  ;;  %v5824_v55 = vld [vmem:[%s9275_s2 + $0x5d4] sm:$0xf0]  ;;  %v4565_v2 = vld [vmem:[%s9275_s2 + $0x5c0] sm:$0xf]  ;;  %v5822_v3 = vld [vmem:[%s9275_s2 + $0x5c4] sm:$0xf0] }
  0x35   :  { %2134 = vmatpush.bf16.msrb.mxu1 %v4174_v35  ;;  %v6593_v35 = vpack.c.b16 %v385_v18, %v385_v18  ;;  %v6614_v44 = vpack.c.b16 %v384_v28, %v384_v28  ;;  %v4574_v62 = vor.u32 %v5824_v55, %v4573_v54  ;;  %v4365_v9 = vld [vmem:[%s9275_s2 + $0x430] sm:$0xf]  ;;  %v5772_v10 = vld [vmem:[%s9275_s2 + $0x434] sm:$0xf0]  ;;  %v4566_v12 = vor.u32 %v5822_v3, %v4565_v2  ;;  %v4357_v23 = vld [vmem:[%s9275_s2 + $0x420] sm:$0xf] }
  0x36   :  { %2147 = vmatpush.bf16.msrb.mxu2 %v4238_v36  ;;  %v5794_v36 = vld [vmem:[%s9275_s2 + $0x4e4] sm:$0xf0]  ;;  %v4429_v11 = vld [vmem:[%s9275_s2 + $0x4b0] sm:$0xf]  ;;  %v5804_v16 = vld [vmem:[%s9275_s2 + $0x534] sm:$0xf0] }
  0x37   :  { %2160 = vmatpush.bf16.msrb.mxu3 %v4302_v40  ;;  %v5826_v40 = vld [vmem:[%s9275_s2 + $0x5e4] sm:$0xf0]  ;;  %v4454_v45 = vor.u32 %v5794_v36, %v4453_v33  ;;  %v4493_v15 = vld [vmem:[%s9275_s2 + $0x530] sm:$0xf]  ;;  %v5820_v18 = vld [vmem:[%s9275_s2 + $0x5b4] sm:$0xf0] }
  0x38   :  { %2122 = vmatpush.bf16.msrb.mxu0 %v4102_v46  ;;  %v4518_v46 = vor.u32 %v5810_v38, %v4517_v37  ;;  %v4582_v50 = vor.u32 %v5826_v40, %v4581_v39  ;;  %v4557_v17 = vld [vmem:[%s9275_s2 + $0x5b0] sm:$0xf]  ;;  %v4494_v22 = vor.u32 %v5804_v16, %v4493_v15  ;;  %v5770_v24 = vld [vmem:[%s9275_s2 + $0x424] sm:$0xf0]  ;;  %v4421_v25 = vld [vmem:[%s9275_s2 + $0x4a0] sm:$0xf] }
  0x39   :  { %2135 = vmatpush.bf16.msrb.mxu1 %v4166_v47  ;;  %v4381_v47 = vld [vmem:[%s9275_s2 + $0x450] sm:$0xf]  ;;  %v4485_v28 = vld [vmem:[%s9275_s2 + $0x520] sm:$0xf]  ;;  %v5818_v31 = vld [vmem:[%s9275_s2 + $0x5a4] sm:$0xf0]  ;;  %v4358_v32 = vor.u32 %v5770_v24, %v4357_v23 }
  0x3a   :  { %2148 = vmatpush.bf16.msrb.mxu2 %v4230_v48  ;;  %v5776_v48 = vld [vmem:[%s9275_s2 + $0x454] sm:$0xf0]  ;;  %v4349_v36 = vld [vmem:[%s9275_s2 + $0x410] sm:$0xf]  ;;  %v4405_v51 = vld [vmem:[%s9275_s2 + $0x480] sm:$0xf] }
  0x3b   :  { %2161 = vmatpush.bf16.msrb.mxu3 %v4294_v52  ;;  %v4509_v52 = vld [vmem:[%s9275_s2 + $0x550] sm:$0xf]  ;;  %v4382_v56 = vor.u32 %v5776_v48, %v4381_v47  ;;  %v5768_v37 = vld [vmem:[%s9275_s2 + $0x414] sm:$0xf0]  ;;  %v4341_v48 = vld [vmem:[%s9275_s2 + $0x400] sm:$0xf] }
  0x3c   :  { %2123 = vmatpush.bf16.msrb.mxu0 %v4094_v59  ;;  %v4510_v58 = vor.u32 %v5808_v53, %v4509_v52  ;;  %v4373_v59 = vld [vmem:[%s9275_s2 + $0x440] sm:$0xf]  ;;  %v4413_v38 = vld [vmem:[%s9275_s2 + $0x490] sm:$0xf]  ;;  %v5784_v40 = vld [vmem:[%s9275_s2 + $0x494] sm:$0xf0]  ;;  %v4350_v49 = vor.u32 %v5768_v37, %v4349_v36 }
  0x3d   :  { %2136 = vmatpush.bf16.msrb.mxu1 %v4158_v63  ;;  %v5790_v63 = vld [vmem:[%s9275_s2 + $0x4c4] sm:$0xf0]  ;;  %v5816_v47 = vld [vmem:[%s9275_s2 + $0x594] sm:$0xf0]  ;;  %v4414_v53 = vor.u32 %v5784_v40, %v4413_v38  ;;  %v4469_v55 = vld [vmem:[%s9275_s2 + $0x500] sm:$0xf] }
  0x3e   :  { %2149 = vmatpush.bf16.msrb.mxu2 %v4222_v0  ;;  %v4501_v0 = vld [vmem:[%s9275_s2 + $0x540] sm:$0xf]  ;;  %v4438_v5 = vor.u32 %v5790_v63, %v4437_v61  ;;  %v5782_v52 = vld [vmem:[%s9275_s2 + $0x484] sm:$0xf0]  ;;  %v5844_v63 = vld [vmem:[%s9275_s2 + $0x674] sm:$0xf0] }
  0x3f   :  { %2162 = vmatpush.bf16.msrb.mxu3 %v4286_v4  ;;  %v4374_v4 = vor.u32 %v5774_v60, %v4373_v59  ;;  %v4502_v6 = vor.u32 %v5806_v1, %v4501_v0  ;;  %v4533_v59 = vld [vmem:[%s9275_s2 + $0x580] sm:$0xf]  ;;  %v5814_v60 = vld [vmem:[%s9275_s2 + $0x584] sm:$0xf0]  ;;  %v4717_v0 = vld [vmem:[%s9275_s2 + $0x6f0] sm:$0xf] }
  0x40   :  { %2124 = vmatpush.bf16.msrb.mxu0 %v4086_v13  ;;  %v5788_v13 = vld [vmem:[%s9275_s2 + $0x4b4] sm:$0xf0]  ;;  %v32_v61 = vld [vmem:[%s9276_s0 + $0x28] sm:$0xff]  ;;  %v4781_v3 = vld [vmem:[%s9275_s2 + $0x770] sm:$0xf]  ;;  %v4534_v15 = vor.u32 %v5814_v60, %v4533_v59 }
  0x41   :  { %2137 = vmatpush.bf16.msrb.mxu1 %v4150_v20  ;;  %v4366_v20 = vor.u32 %v5772_v10, %v4365_v9  ;;  %v5860_v2 = vld [vmem:[%s9275_s2 + $0x6f4] sm:$0xf0]  ;;  %v4845_v10 = vld [vmem:[%s9275_s2 + $0x7f0] sm:$0xf]  ;;  %v4709_v23 = vld [vmem:[%s9275_s2 + $0x6e0] sm:$0xf] }
  0x42   :  { %2150 = vmatpush.bf16.msrb.mxu2 %v4214_v21  ;;  %v4430_v21 = vor.u32 %v5788_v13, %v4429_v11  ;;  %v5892_v11 = vld [vmem:[%s9275_s2 + $0x7f4] sm:$0xf0]  ;;  %v4637_v38 = vld [vmem:[%s9275_s2 + $0x650] sm:$0xf]  ;;  %v5870_v59 = vld [vmem:[%s9275_s2 + $0x744] sm:$0xf0] }
  0x43   :  { %2163 = vmatpush.bf16.msrb.mxu3 %v4278_v26  ;;  %2125 = vmatmul.bf16.vlgmr.msrb.gmra.mxu0 %v6610_v41  ;;  %v4558_v26 = vor.u32 %v5820_v18, %v4557_v17  ;;  %v390_v17 = vunpack.c.h.b16 %v32_v61  ;;  %v4718_v18 = vor.u32 %v5860_v2, %v4717_v0  ;;  %v4846_v24 = vor.u32 %v5892_v11, %v4845_v10  ;;  %v4701_v40 = vld [vmem:[%s9275_s2 + $0x6d0] sm:$0xf]  ;;  %v4821_v60 = vld [vmem:[%s9275_s2 + $0x7c0] sm:$0xf]  ;;  %v5836_v2 = vld [vmem:[%s9275_s2 + $0x634] sm:$0xf0] }
  0x44   :  { %2169 = vmatpush.bf16.msra.mxu0 %v4398_v27  ;;  %2138 = vmatmul.bf16.vlgmr.msrb.gmra.mxu1 %v6614_v44  ;;  %v5786_v27 = vld [vmem:[%s9275_s2 + $0x4a4] sm:$0xf0]  ;;  %v4813_v10 = vld [vmem:[%s9275_s2 + $0x7b0] sm:$0xf]  ;;  %v5884_v11 = vld [vmem:[%s9275_s2 + $0x7b4] sm:$0xf0] }
  0x45   :  { %2182 = vmatpush.bf16.msra.mxu1 %v4462_v29  ;;  %2151 = vmatmul.bf16.vlgmr.msrb.gmra.mxu2 %v6593_v35  ;;  %v5802_v29 = vld [vmem:[%s9275_s2 + $0x524] sm:$0xf0]  ;;  %v4422_v33 = vor.u32 %v5786_v27, %v4421_v25  ;;  %v4773_v27 = vld [vmem:[%s9275_s2 + $0x760] sm:$0xf] }
  0x46   :  { %2195 = vmatpush.bf16.msra.mxu2 %v4526_v30  ;;  %2164 = vmatmul.bf16.vlgmr.msrb.gmra.mxu3 %v6612_v42  ;;  %v4549_v30 = vld [vmem:[%s9275_s2 + $0x5a0] sm:$0xf] }
  0x47   :  { %2208 = vmatpush.bf16.msra.mxu3 %v4590_v34  ;;  %v4486_v34 = vor.u32 %v5802_v29, %v4485_v28  ;;  %v4550_v39 = vor.u32 %v5818_v31, %v4549_v30  ;;  %v5874_v28 = vld [vmem:[%s9275_s2 + $0x764] sm:$0xf0]  ;;  %v4837_v31 = vld [vmem:[%s9275_s2 + $0x7e0] sm:$0xf] }
  0x48   :  { %2170 = vmatpush.bf16.msra.mxu0 %v4390_v43  ;;  %v4477_v43 = vld [vmem:[%s9275_s2 + $0x510] sm:$0xf]  ;;  %v4774_v37 = vor.u32 %v5874_v28, %v4773_v27 }
  0x49   :  { %2183 = vmatpush.bf16.msra.mxu1 %v4454_v45  ;;  %v5800_v45 = vld [vmem:[%s9275_s2 + $0x514] sm:$0xf0] }
  0x4a   :  { %2196 = vmatpush.bf16.msra.mxu2 %v4518_v46  ;;  %v4541_v46 = vld [vmem:[%s9275_s2 + $0x590] sm:$0xf]  ;;  %v4478_v54 = vor.u32 %v5800_v45, %v4477_v43  ;;  %v5856_v45 = vld [vmem:[%s9275_s2 + $0x6d4] sm:$0xf0] }
  0x4b   :  { %2209 = vmatpush.bf16.msra.mxu3 %v4582_v50  ;;  %v5766_v50 = vld [vmem:[%s9275_s2 + $0x404] sm:$0xf0] }
  0x4c   :  { %2171 = vmatpush.bf16.msra.mxu0 %v4382_v56  ;;  %v5798_v56 = vld [vmem:[%s9275_s2 + $0x504] sm:$0xf0]  ;;  %v4342_v1 = vor.u32 %v5766_v50, %v4341_v48  ;;  %v4829_v48 = vld [vmem:[%s9275_s2 + $0x7d0] sm:$0xf] }
  0x4d   :  { %2184 = vmatpush.bf16.msra.mxu1 %v4446_v57  ;;  %v31_v57 = vld [vmem:[%s9276_s0 + $0x20] sm:$0xff]  ;;  %v4470_v9 = vor.u32 %v5798_v56, %v4469_v55 }
  0x4e   :  { %2197 = vmatpush.bf16.msra.mxu2 %v4510_v58  ;;  %v4542_v58 = vor.u32 %v5816_v47, %v4541_v46  ;;  %v388_v13 = vunpack.c.h.b16 %v31_v57  ;;  %v4765_v46 = vld [vmem:[%s9275_s2 + $0x750] sm:$0xf]  ;;  %v5872_v47 = vld [vmem:[%s9275_s2 + $0x754] sm:$0xf0]  ;;  %v4693_v55 = vld [vmem:[%s9275_s2 + $0x6c0] sm:$0xf] }
  0x4f   :  { %2210 = vmatpush.bf16.msra.mxu3 %v4574_v62  ;;  %v4653_v62 = vld [vmem:[%s9275_s2 + $0x670] sm:$0xf] }
  0x50   :  { %2172 = vmatpush.bf16.msra.mxu0 %v4374_v4  ;;  %v5876_v4 = vld [vmem:[%s9275_s2 + $0x774] sm:$0xf0]  ;;  %v4654_v16 = vor.u32 %v5844_v63, %v4653_v62  ;;  %v6816_v30 = vpack.c.b16 %v388_v13, %v388_v13 }
  0x51   :  { %2185 = vmatpush.bf16.msra.mxu1 %v4438_v5  ;;  %v387_v5 = vunpack.c.l.b16 %v31_v57  ;;  %v5854_v57 = vld [vmem:[%s9275_s2 + $0x6c4] sm:$0xf0] }
  0x52   :  { %2198 = vmatpush.bf16.msra.mxu2 %v4502_v6  ;;  %v4406_v6 = vor.u32 %v5782_v52, %v4405_v51  ;;  %v4702_v51 = vor.u32 %v5856_v45, %v4701_v40  ;;  %v4766_v52 = vor.u32 %v5872_v47, %v4765_v46  ;;  %v4694_v63 = vor.u32 %v5854_v57, %v4693_v55  ;;  %v5864_v40 = vld [vmem:[%s9275_s2 + $0x714] sm:$0xf0]  ;;  %v4597_v46 = vld [vmem:[%s9275_s2 + $0x600] sm:$0xf]  ;;  %v33_v55 = vld [vmem:[%s9276_s0 + $0x30] sm:$0xff] }
  0x53   :  { %2211 = vmatpush.bf16.msra.mxu3 %v4566_v12  ;;  %v389_v12 = vunpack.c.l.b16 %v32_v61  ;;  %v6803_v25 = vpack.c.b16 %v387_v5, %v387_v5  ;;  %v5886_v61 = vld [vmem:[%s9275_s2 + $0x7c4] sm:$0xf0]  ;;  %v5852_v5 = vld [vmem:[%s9275_s2 + $0x6b4] sm:$0xf0]  ;;  %v4789_v57 = vld [vmem:[%s9275_s2 + $0x780] sm:$0xf] }
  0x54   :  { %2173 = vmatpush.bf16.msra.mxu0 %v4366_v20  ;;  %v4782_v20 = vor.u32 %v5876_v4, %v4781_v3  ;;  %v4685_v3 = vld [vmem:[%s9275_s2 + $0x6b0] sm:$0xf]  ;;  %v4822_v4 = vor.u32 %v5886_v61, %v4821_v60  ;;  %v5880_v45 = vld [vmem:[%s9275_s2 + $0x794] sm:$0xf0] }
  0x55   :  { %2186 = vmatpush.bf16.msra.mxu1 %v4430_v21  ;;  %v4645_v21 = vld [vmem:[%s9275_s2 + $0x660] sm:$0xf]  ;;  %v6814_v29 = vpack.c.b16 %v389_v12, %v389_v12  ;;  %v4686_v13 = vor.u32 %v5852_v5, %v4685_v3  ;;  %v4909_v60 = vld [vmem:[%s9275_s2 + $0x870] sm:$0xf]  ;;  %v5908_v61 = vld [vmem:[%s9275_s2 + $0x874] sm:$0xf0]  ;;  %v391_v3 = vunpack.c.l.b16 %v33_v55 }
  0x56   :  { %2199 = vmatpush.bf16.msra.mxu2 %v4494_v22  ;;  %v5842_v22 = vld [vmem:[%s9275_s2 + $0x664] sm:$0xf0] }
  0x57   :  { %2212 = vmatpush.bf16.msra.mxu3 %v4558_v26  ;;  %v5858_v26 = vld [vmem:[%s9275_s2 + $0x6e4] sm:$0xf0] }
  0x58   :  { %2174 = vmatpush.bf16.msra.mxu0 %v4358_v32  ;;  %v5890_v32 = vld [vmem:[%s9275_s2 + $0x7e4] sm:$0xf0]  ;;  %v4710_v36 = vor.u32 %v5858_v26, %v4709_v23 }
  0x59   :  { %2187 = vmatpush.bf16.msra.mxu1 %v4422_v33  ;;  %v6824_v33 = vpack.c.b16 %v390_v17, %v390_v17  ;;  %v4838_v43 = vor.u32 %v5890_v32, %v4837_v31  ;;  %v5834_v17 = vld [vmem:[%s9275_s2 + $0x624] sm:$0xf0]  ;;  %v4605_v32 = vld [vmem:[%s9275_s2 + $0x610] sm:$0xf] }
  0x5a   :  { %2200 = vmatpush.bf16.msra.mxu2 %v4486_v34  ;;  %v4646_v34 = vor.u32 %v5842_v22, %v4645_v21  ;;  %v5850_v21 = vld [vmem:[%s9275_s2 + $0x6a4] sm:$0xf0]  ;;  %v4741_v22 = vld [vmem:[%s9275_s2 + $0x720] sm:$0xf] }
  0x5b   :  { %2213 = vmatpush.bf16.msra.mxu3 %v4550_v39  ;;  %v5840_v39 = vld [vmem:[%s9275_s2 + $0x654] sm:$0xf0]  ;;  %v5866_v23 = vld [vmem:[%s9275_s2 + $0x724] sm:$0xf0] }
  0x5c   :  { %2175 = vmatpush.bf16.msra.mxu0 %v4350_v49  ;;  %v5888_v49 = vld [vmem:[%s9275_s2 + $0x7d4] sm:$0xf0]  ;;  %v4638_v50 = vor.u32 %v5840_v39, %v4637_v38  ;;  %v5882_v26 = vld [vmem:[%s9275_s2 + $0x7a4] sm:$0xf0]  ;;  %v4742_v31 = vor.u32 %v5866_v23, %v4741_v22  ;;  %v4733_v39 = vld [vmem:[%s9275_s2 + $0x710] sm:$0xf]  ;;  %v7013_v23 = vpack.c.b16 %v391_v3, %v391_v3 }
  0x5d   :  { %2188 = vmatpush.bf16.msra.mxu1 %v4414_v53  ;;  %v4629_v53 = vld [vmem:[%s9275_s2 + $0x640] sm:$0xf]  ;;  %v4830_v56 = vor.u32 %v5888_v49, %v4829_v48  ;;  %v5848_v38 = vld [vmem:[%s9275_s2 + $0x694] sm:$0xf0]  ;;  %v5830_v48 = vld [vmem:[%s9275_s2 + $0x604] sm:$0xf0] }
  0x5e   :  { %2201 = vmatpush.bf16.msra.mxu2 %v4478_v54  ;;  %v5838_v54 = vld [vmem:[%s9275_s2 + $0x644] sm:$0xf0]  ;;  %v4661_v49 = vld [vmem:[%s9275_s2 + $0x680] sm:$0xf]  ;;  %v4877_v3 = vld [vmem:[%s9275_s2 + $0x830] sm:$0xf] }
  0x5f   :  { %2214 = vmatpush.bf16.msra.mxu3 %v4542_v58  ;;  %v4757_v58 = vld [vmem:[%s9275_s2 + $0x740] sm:$0xf]  ;;  %v4630_v62 = vor.u32 %v5838_v54, %v4629_v53  ;;  %v5862_v54 = vld [vmem:[%s9275_s2 + $0x704] sm:$0xf0] }
  0x60   :  { %2176 = vmatpush.bf16.msra.mxu0 %v4342_v1  ;;  %v4758_v0 = vor.u32 %v5870_v59, %v4757_v58  ;;  %v4621_v1 = vld [vmem:[%s9275_s2 + $0x630] sm:$0xf]  ;;  %v4725_v53 = vld [vmem:[%s9275_s2 + $0x700] sm:$0xf]  ;;  %v5878_v58 = vld [vmem:[%s9275_s2 + $0x784] sm:$0xf0] }
  0x61   :  { %2189 = vmatpush.bf16.msra.mxu1 %v4406_v6  ;;  %v4749_v6 = vld [vmem:[%s9275_s2 + $0x730] sm:$0xf]  ;;  %v4622_v12 = vor.u32 %v5836_v2, %v4621_v1  ;;  %v34_v59 = vld [vmem:[%s9276_s0 + $0x38] sm:$0xff]  ;;  %v4726_v5 = vor.u32 %v5862_v54, %v4725_v53 }
  0x62   :  { %2202 = vmatpush.bf16.msra.mxu2 %v4470_v9  ;;  %v5868_v9 = vld [vmem:[%s9275_s2 + $0x734] sm:$0xf0]  ;;  %v5037_v1 = vld [vmem:[%s9275_s2 + $0x970] sm:$0xf] }
  0x63   :  { %2215 = vmatpush.bf16.msra.mxu3 %v4534_v15  ;;  %2177 = vmatmul.bf16.vlgmr.msra.gmra.mxu0 %v6803_v25  ;;  %v4750_v15 = vor.u32 %v5868_v9, %v4749_v6  ;;  %v5940_v2 = vld [vmem:[%s9275_s2 + $0x974] sm:$0xf0]  ;;  %v5101_v6 = vld [vmem:[%s9275_s2 + $0x9f0] sm:$0xf] }
  0x64   :  { %2221 = vmatpush.bf16.msrb.mxu0 %v4654_v16  ;;  %2190 = vmatmul.bf16.vlgmr.msra.gmra.mxu1 %v6816_v30  ;;  %v4613_v16 = vld [vmem:[%s9275_s2 + $0x620] sm:$0xf]  ;;  %v5956_v9 = vld [vmem:[%s9275_s2 + $0x9f4] sm:$0xf0] }
  0x65   :  { %2234 = vmatpush.bf16.msrb.mxu1 %v4718_v18  ;;  %2203 = vmatmul.bf16.vlgmr.msra.gmra.mxu2 %v6814_v29  ;;  %v4677_v18 = vld [vmem:[%s9275_s2 + $0x6a0] sm:$0xf]  ;;  %v4614_v27 = vor.u32 %v5834_v17, %v4613_v16  ;;  %v5038_v17 = vor.u32 %v5940_v2, %v5037_v1  ;;  %v5102_v22 = vor.u32 %v5956_v9, %v5101_v6  ;;  %v5916_v9 = vld [vmem:[%s9275_s2 + $0x8b4] sm:$0xf0] }
  0x66   :  { %2247 = vmatpush.bf16.msrb.mxu2 %v4782_v20  ;;  %2216 = vmatmul.bf16.vlgmr.msra.gmra.mxu3 %v6824_v33  ;;  %v4814_v20 = vor.u32 %v5884_v11, %v4813_v10  ;;  %v4678_v28 = vor.u32 %v5850_v21, %v4677_v18  ;;  %v393_v10 = vunpack.c.l.b16 %v34_v59  ;;  %v392_v11 = vunpack.c.h.b16 %v33_v55  ;;  %v4901_v18 = vld [vmem:[%s9275_s2 + $0x860] sm:$0xf] }
  0x67   :  { %2260 = vmatpush.bf16.msrb.mxu3 %v4846_v24  ;;  %v4805_v24 = vld [vmem:[%s9275_s2 + $0x7a0] sm:$0xf] }
  0x68   :  { %2222 = vmatpush.bf16.msrb.mxu0 %v4646_v34  ;;  %v5832_v34 = vld [vmem:[%s9275_s2 + $0x614] sm:$0xf0]  ;;  %v4965_v21 = vld [vmem:[%s9275_s2 + $0x8e0] sm:$0xf] }
  0x69   :  { %2235 = vmatpush.bf16.msrb.mxu1 %v4710_v36  ;;  %v4669_v36 = vld [vmem:[%s9275_s2 + $0x690] sm:$0xf]  ;;  %v4606_v47 = vor.u32 %v5832_v34, %v4605_v32  ;;  %v5093_v32 = vld [vmem:[%s9275_s2 + $0x9e0] sm:$0xf]  ;;  %v5954_v34 = vld [vmem:[%s9275_s2 + $0x9e4] sm:$0xf0] }
  0x6a   :  { %2248 = vmatpush.bf16.msrb.mxu2 %v4774_v37  ;;  %v4806_v37 = vor.u32 %v5882_v26, %v4805_v24  ;;  %v5922_v24 = vld [vmem:[%s9275_s2 + $0x8e4] sm:$0xf0]  ;;  %v5029_v26 = vld [vmem:[%s9275_s2 + $0x960] sm:$0xf] }
  0x6b   :  { %2261 = vmatpush.bf16.msrb.mxu3 %v4838_v43  ;;  %v4797_v43 = vld [vmem:[%s9275_s2 + $0x790] sm:$0xf]  ;;  %v4885_v55 = vld [vmem:[%s9275_s2 + $0x840] sm:$0xf] }
  0x6c   :  { %2223 = vmatpush.bf16.msrb.mxu0 %v4638_v50  ;;  %v5846_v50 = vld [vmem:[%s9275_s2 + $0x684] sm:$0xf0] }
  0x6d   :  { %2236 = vmatpush.bf16.msrb.mxu1 %v4702_v51  ;;  %v4670_v51 = vor.u32 %v5848_v38, %v4669_v36  ;;  %v4966_v38 = vor.u32 %v5922_v24, %v4965_v21  ;;  %v4933_v21 = vld [vmem:[%s9275_s2 + $0x8a0] sm:$0xf]  ;;  %v5914_v24 = vld [vmem:[%s9275_s2 + $0x8a4] sm:$0xf0] }
  0x6e   :  { %2249 = vmatpush.bf16.msrb.mxu2 %v4766_v52  ;;  %v4734_v52 = vor.u32 %v5864_v40, %v4733_v39  ;;  %v4893_v40 = vld [vmem:[%s9275_s2 + $0x850] sm:$0xf] }
  0x6f   :  { %2262 = vmatpush.bf16.msrb.mxu3 %v4830_v56  ;;  %v4798_v56 = vor.u32 %v5880_v45, %v4797_v43  ;;  %v5904_v43 = vld [vmem:[%s9275_s2 + $0x854] sm:$0xf0]  ;;  %v4957_v45 = vld [vmem:[%s9275_s2 + $0x8d0] sm:$0xf] }
  0x70   :  { %2224 = vmatpush.bf16.msrb.mxu0 %v4630_v62  ;;  %v4973_v62 = vld [vmem:[%s9275_s2 + $0x8f0] sm:$0xf] }
  0x71   :  { %2237 = vmatpush.bf16.msrb.mxu1 %v4694_v63  ;;  %v4598_v63 = vor.u32 %v5830_v48, %v4597_v46  ;;  %v5094_v46 = vor.u32 %v5954_v34, %v5093_v32  ;;  %v5021_v48 = vld [vmem:[%s9275_s2 + $0x950] sm:$0xf]  ;;  %v5061_v32 = vld [vmem:[%s9275_s2 + $0x9a0] sm:$0xf]  ;;  %v5946_v34 = vld [vmem:[%s9275_s2 + $0x9a4] sm:$0xf0] }
  0x72   :  { %2250 = vmatpush.bf16.msrb.mxu2 %v4758_v0  ;;  %v5924_v0 = vld [vmem:[%s9275_s2 + $0x8f4] sm:$0xf0] }
  0x73   :  { %2263 = vmatpush.bf16.msrb.mxu3 %v4822_v4  ;;  %v4662_v4 = vor.u32 %v5846_v50, %v4661_v49  ;;  %v4974_v16 = vor.u32 %v5924_v0, %v4973_v62  ;;  %v5936_v49 = vld [vmem:[%s9275_s2 + $0x954] sm:$0xf0]  ;;  %v5085_v50 = vld [vmem:[%s9275_s2 + $0x9d0] sm:$0xf]  ;;  %v5077_v62 = vld [vmem:[%s9275_s2 + $0x9c0] sm:$0xf] }
  0x74   :  { %2225 = vmatpush.bf16.msrb.mxu0 %v4622_v12  ;;  %v4790_v12 = vor.u32 %v5878_v58, %v4789_v57  ;;  %v5022_v54 = vor.u32 %v5936_v49, %v5021_v48  ;;  %v4949_v57 = vld [vmem:[%s9275_s2 + $0x8c0] sm:$0xf]  ;;  %v4989_v48 = vld [vmem:[%s9275_s2 + $0x910] sm:$0xf]  ;;  %v5928_v49 = vld [vmem:[%s9275_s2 + $0x914] sm:$0xf0] }
  0x75   :  { %2238 = vmatpush.bf16.msrb.mxu1 %v4686_v13  ;;  %v4910_v13 = vor.u32 %v5908_v61, %v4909_v60  ;;  %v5013_v60 = vld [vmem:[%s9275_s2 + $0x940] sm:$0xf]  ;;  %v5934_v61 = vld [vmem:[%s9275_s2 + $0x944] sm:$0xf0] }
  0x76   :  { %2251 = vmatpush.bf16.msrb.mxu2 %v4750_v15  ;;  %v394_v15 = vunpack.c.h.b16 %v34_v59  ;;  %v5918_v59 = vld [vmem:[%s9275_s2 + $0x8c4] sm:$0xf0]  ;;  %v5014_v2 = vor.u32 %v5934_v61, %v5013_v60  ;;  %v35_v61 = vld [vmem:[%s9276_s0 + $0x40] sm:$0xff] }
  0x77   :  { %2264 = vmatpush.bf16.msrb.mxu3 %v4814_v20  ;;  %v5906_v20 = vld [vmem:[%s9275_s2 + $0x864] sm:$0xf0]  ;;  %v4950_v1 = vor.u32 %v5918_v59, %v4949_v57  ;;  %v4981_v59 = vld [vmem:[%s9275_s2 + $0x900] sm:$0xf] }
  0x78   :  { %2226 = vmatpush.bf16.msrb.mxu0 %v4614_v27  ;;  %v5938_v27 = vld [vmem:[%s9275_s2 + $0x964] sm:$0xf0]  ;;  %v7034_v36 = vpack.c.b16 %v394_v15, %v394_v15 }
  0x79   :  { %2239 = vmatpush.bf16.msrb.mxu1 %v4678_v28  ;;  %v7024_v28 = vpack.c.b16 %v393_v10, %v393_v10  ;;  %v5030_v39 = vor.u32 %v5938_v27, %v5029_v26  ;;  %v5005_v10 = vld [vmem:[%s9275_s2 + $0x930] sm:$0xf]  ;;  %v4997_v26 = vld [vmem:[%s9275_s2 + $0x920] sm:$0xf]  ;;  %v5930_v27 = vld [vmem:[%s9275_s2 + $0x924] sm:$0xf0] }
  0x7a   :  { %2252 = vmatpush.bf16.msrb.mxu2 %v4742_v31  ;;  %v7026_v31 = vpack.c.b16 %v392_v11, %v392_v11  ;;  %v5932_v11 = vld [vmem:[%s9275_s2 + $0x934] sm:$0xf0]  ;;  %v5926_v60 = vld [vmem:[%s9275_s2 + $0x904] sm:$0xf0] }
  0x7b   :  { %2265 = vmatpush.bf16.msrb.mxu3 %v4806_v37  ;;  %v4902_v37 = vor.u32 %v5906_v20, %v4901_v18  ;;  %v4869_v18 = vld [vmem:[%s9275_s2 + $0x820] sm:$0xf]  ;;  %v5898_v20 = vld [vmem:[%s9275_s2 + $0x824] sm:$0xf0] }
  0x7c   :  { %2227 = vmatpush.bf16.msrb.mxu0 %v4606_v47  ;;  %v5920_v47 = vld [vmem:[%s9275_s2 + $0x8d4] sm:$0xf0] }
  0x7d   :  { %2240 = vmatpush.bf16.msrb.mxu1 %v4670_v51  ;;  %v5952_v51 = vld [vmem:[%s9275_s2 + $0x9d4] sm:$0xf0]  ;;  %v4958_v53 = vor.u32 %v5920_v47, %v4957_v45  ;;  %v4925_v45 = vld [vmem:[%s9275_s2 + $0x890] sm:$0xf] }
  0x7e   :  { %2253 = vmatpush.bf16.msrb.mxu2 %v4734_v52  ;;  %v4894_v52 = vor.u32 %v5904_v43, %v4893_v40  ;;  %v5086_v58 = vor.u32 %v5952_v51, %v5085_v50  ;;  %v4861_v40 = vld [vmem:[%s9275_s2 + $0x810] sm:$0xf]  ;;  %v5896_v43 = vld [vmem:[%s9275_s2 + $0x814] sm:$0xf0] }
  0x7f   :  { %2266 = vmatpush.bf16.msrb.mxu3 %v4798_v56  ;;  %v5902_v56 = vld [vmem:[%s9275_s2 + $0x844] sm:$0xf0]  ;;  %v5912_v47 = vld [vmem:[%s9275_s2 + $0x894] sm:$0xf0]  ;;  %v5053_v50 = vld [vmem:[%s9275_s2 + $0x990] sm:$0xf] }
  0x80   :  { %2228 = vmatpush.bf16.msrb.mxu0 %v4598_v63  ;;  %v5950_v63 = vld [vmem:[%s9275_s2 + $0x9c4] sm:$0xf0]  ;;  %v4886_v0 = vor.u32 %v5902_v56, %v4885_v55  ;;  %v5944_v51 = vld [vmem:[%s9275_s2 + $0x994] sm:$0xf0]  ;;  %v4917_v55 = vld [vmem:[%s9275_s2 + $0x880] sm:$0xf]  ;;  %v4926_v57 = vor.u32 %v5912_v47, %v4925_v45 }
  0x81   :  { %2241 = vmatpush.bf16.msrb.mxu1 %v4662_v4  ;;  %v5900_v4 = vld [vmem:[%s9275_s2 + $0x834] sm:$0xf0]  ;;  %v5078_v6 = vor.u32 %v5950_v63, %v5077_v62  ;;  %v5910_v56 = vld [vmem:[%s9275_s2 + $0x884] sm:$0xf0]  ;;  %v5054_v62 = vor.u32 %v5944_v51, %v5053_v50  ;;  %v5045_v63 = vld [vmem:[%s9275_s2 + $0x980] sm:$0xf] }
  0x82   :  { %2254 = vmatpush.bf16.msrb.mxu2 %v4726_v5  ;;  %v4941_v5 = vld [vmem:[%s9275_s2 + $0x8b0] sm:$0xf]  ;;  %v4878_v15 = vor.u32 %v5900_v4, %v4877_v3  ;;  %v5960_v3 = vld [vmem:[%s9275_s2 + $0xa14] sm:$0xf0]  ;;  %v5651_v4 = vld [vmem:[%s9275_s2 + $0x74] sm:$0xf] }
  0x83   :  { %2267 = vmatpush.bf16.msrb.mxu3 %v4790_v12  ;;  %2229 = vmatmul.bf16.vlgmr.msrb.gmra.mxu0 %v7013_v23  ;;  %v5069_v12 = vld [vmem:[%s9275_s2 + $0x9b0] sm:$0xf]  ;;  %v5681_v45 = vld [vmem:[%s9275_s2 + $0x164] sm:$0xf]  ;;  %v4079_v50 = vld [vmem:[%s9275_s2 + $0x1f8] sm:$0xf0] }
  0x84   :  { %2273 = vmatpush.bf16.msra.mxu0 %v4910_v13  ;;  %2242 = vmatmul.bf16.vlgmr.msrb.gmra.mxu1 %v7026_v31  ;;  %v5948_v13 = vld [vmem:[%s9275_s2 + $0x9b4] sm:$0xf0] }
  0x85   :  { %2286 = vmatpush.bf16.msra.mxu1 %v4974_v16  ;;  %2255 = vmatmul.bf16.vlgmr.msrb.gmra.mxu2 %v7024_v28  ;;  %v4942_v16 = vor.u32 %v5916_v9, %v4941_v5  ;;  %v5667_v9 = vld [vmem:[%s9275_s2 + $0xf4] sm:$0xf] }
  0x86   :  { %2299 = vmatpush.bf16.msra.mxu2 %v5038_v17  ;;  %2268 = vmatmul.bf16.vlgmr.msrb.gmra.mxu3 %v7034_v36  ;;  %v5006_v17 = vor.u32 %v5932_v11, %v5005_v10  ;;  %v3951_v10 = vld [vmem:[%s9275_s2 + $0xf8] sm:$0xf0]  ;;  %v395_v11 = vunpack.c.l.b16 %v35_v61 }
  0x87   :  { %2312 = vmatpush.bf16.msra.mxu3 %v5102_v22  ;;  %v5070_v22 = vor.u32 %v5948_v13, %v5069_v12  ;;  %v4918_v12 = vor.u32 %v5910_v56, %v4917_v55  ;;  %v4982_v13 = vor.u32 %v5926_v60, %v4981_v59  ;;  %v5647_v55 = vld [vmem:[%s9275_s2 + $0x54] sm:$0xf]  ;;  %v3871_v56 = vld [vmem:[%s9275_s2 + $0x58] sm:$0xf0] }
  0x88   :  { %2274 = vmatpush.bf16.msra.mxu0 %v4902_v37  ;;  %v4870_v37 = vor.u32 %v5898_v20, %v4869_v18  ;;  %v396_v18 = vunpack.c.h.b16 %v35_v61  ;;  %v5663_v59 = vld [vmem:[%s9275_s2 + $0xd4] sm:$0xf]  ;;  %v3935_v60 = vld [vmem:[%s9275_s2 + $0xd8] sm:$0xf0] }
  0x89   :  { %2287 = vmatpush.bf16.msra.mxu1 %v4966_v38  ;;  %v4934_v38 = vor.u32 %v5914_v24, %v4933_v21  ;;  %v5109_v24 = vld [vmem:[%s9275_s2 + $0xa00] sm:$0xf]  ;;  %v5679_v61 = vld [vmem:[%s9275_s2 + $0x154] sm:$0xf] }
  0x8a   :  { %2300 = vmatpush.bf16.msra.mxu2 %v5030_v39  ;;  %v4998_v39 = vor.u32 %v5930_v27, %v4997_v26  ;;  %v3954_v27 = vor.u32 %v5667_v9, %v3951_v10  ;;  %v7239_v47 = vpack.c.b16 %v396_v18, %v396_v18  ;;  %v3927_v10 = vld [vmem:[%s9275_s2 + $0xc8] sm:$0xf0] }
  0x8b   :  { %2313 = vmatpush.bf16.msra.mxu3 %v5094_v46  ;;  %v5062_v46 = vor.u32 %v5946_v34, %v5061_v32  ;;  %v5958_v32 = vld [vmem:[%s9275_s2 + $0xa04] sm:$0xf0]  ;;  %v5649_v34 = vld [vmem:[%s9275_s2 + $0x64] sm:$0xf] }
  0x8c   :  { %2275 = vmatpush.bf16.msra.mxu0 %v4894_v52  ;;  %v4853_v52 = vld [vmem:[%s9275_s2 + $0x800] sm:$0xf] }
  0x8d   :  { %2288 = vmatpush.bf16.msra.mxu1 %v4958_v53  ;;  %v4862_v53 = vor.u32 %v5896_v43, %v4861_v40  ;;  %v5665_v40 = vld [vmem:[%s9275_s2 + $0xe4] sm:$0xf]  ;;  %v3943_v43 = vld [vmem:[%s9275_s2 + $0xe8] sm:$0xf0] }
  0x8e   :  { %2301 = vmatpush.bf16.msra.mxu2 %v5022_v54  ;;  %v5894_v54 = vld [vmem:[%s9275_s2 + $0x804] sm:$0xf0] }
  0x8f   :  { %2314 = vmatpush.bf16.msra.mxu3 %v5086_v58  ;;  %v4990_v58 = vor.u32 %v5928_v49, %v4989_v48  ;;  %v4854_v5 = vor.u32 %v5894_v54, %v4853_v52  ;;  %v4007_v48 = vld [vmem:[%s9275_s2 + $0x168] sm:$0xf0]  ;;  %v5699_v49 = vld [vmem:[%s9275_s2 + $0x1f4] sm:$0xf]  ;;  %v5110_v52 = vor.u32 %v5958_v32, %v5109_v24  ;;  %v3946_v54 = vor.u32 %v5665_v40, %v3943_v43  ;;  %v5693_v40 = vld [vmem:[%s9275_s2 + $0x1c4] sm:$0xf] }
  0x90   :  { %2276 = vmatpush.bf16.msra.mxu0 %v4886_v0  ;;  %v5942_v0 = vld [vmem:[%s9275_s2 + $0x984] sm:$0xf0]  ;;  %v5659_v32 = vld [vmem:[%s9275_s2 + $0xb4] sm:$0xf]  ;;  %v4055_v43 = vld [vmem:[%s9275_s2 + $0x1c8] sm:$0xf0] }
  0x91   :  { %2289 = vmatpush.bf16.msra.mxu1 %v4950_v1  ;;  %v36_v1 = vld [vmem:[%s9276_s0 + $0x48] sm:$0xff]  ;;  %v5046_v20 = vor.u32 %v5942_v0, %v5045_v63  ;;  %v5697_v63 = vld [vmem:[%s9275_s2 + $0x1e4] sm:$0xf] }
  0x92   :  { %2302 = vmatpush.bf16.msra.mxu2 %v5014_v2  ;;  %v5117_v2 = vld [vmem:[%s9275_s2 + $0xa10] sm:$0xf]  ;;  %v4071_v0 = vld [vmem:[%s9275_s2 + $0x1e8] sm:$0xf0] }
  0x93   :  { %2315 = vmatpush.bf16.msra.mxu3 %v5078_v6  ;;  %v3887_v6 = vld [vmem:[%s9275_s2 + $0x78] sm:$0xf0]  ;;  %v5118_v21 = vor.u32 %v5960_v3, %v5117_v2  ;;  %v3938_v2 = vor.u32 %v5663_v59, %v3935_v60  ;;  %v5645_v3 = vld [vmem:[%s9275_s2 + $0x44] sm:$0xf]  ;;  %v4074_v9 = vor.u32 %v5697_v63, %v4071_v0  ;;  %v3911_v59 = vld [vmem:[%s9275_s2 + $0xa8] sm:$0xf0] }
  0x94   :  { %2277 = vmatpush.bf16.msra.mxu0 %v4878_v15  ;;  %v5683_v15 = vld [vmem:[%s9275_s2 + $0x174] sm:$0xf]  ;;  %v3890_v26 = vor.u32 %v5651_v4, %v3887_v6  ;;  %v3863_v4 = vld [vmem:[%s9275_s2 + $0x48] sm:$0xf0]  ;;  %v5673_v60 = vld [vmem:[%s9275_s2 + $0x124] sm:$0xf] }
  0x95   :  { %2290 = vmatpush.bf16.msra.mxu1 %v4942_v16  ;;  %v4015_v16 = vld [vmem:[%s9275_s2 + $0x178] sm:$0xf0]  ;;  %v3866_v18 = vor.u32 %v5645_v3, %v3863_v4  ;;  %v5691_v63 = vld [vmem:[%s9275_s2 + $0x1b4] sm:$0xf] }
  0x96   :  { %2303 = vmatpush.bf16.msra.mxu2 %v5006_v17  ;;  %v397_v17 = vunpack.c.l.b16 %v36_v1  ;;  %v4047_v0 = vld [vmem:[%s9275_s2 + $0x1b8] sm:$0xf0]  ;;  %v5639_v4 = vld [vmem:[%s9275_s2 + $0x14] sm:$0xf] }
  0x97   :  { %2316 = vmatpush.bf16.msra.mxu3 %v5070_v22  ;;  %v398_v22 = vunpack.c.h.b16 %v36_v1  ;;  %v3874_v1 = vor.u32 %v5647_v55, %v3871_v56 }
  0x98   :  { %2278 = vmatpush.bf16.msra.mxu0 %v4870_v37  ;;  %v3879_v37 = vld [vmem:[%s9275_s2 + $0x68] sm:$0xf0] }
  0x99   :  { %2291 = vmatpush.bf16.msra.mxu1 %v4934_v38  ;;  %v4018_v38 = vor.u32 %v5683_v15, %v4015_v16  ;;  %v7250_v51 = vpack.c.b16 %v398_v22, %v398_v22  ;;  %v5695_v15 = vld [vmem:[%s9275_s2 + $0x1d4] sm:$0xf]  ;;  %v4063_v16 = vld [vmem:[%s9275_s2 + $0x1d8] sm:$0xf0] }
  0x9a   :  { %2304 = vmatpush.bf16.msra.mxu2 %v4998_v39  ;;  %v7226_v39 = vpack.c.b16 %v395_v11, %v395_v11  ;;  %v5677_v11 = vld [vmem:[%s9275_s2 + $0x144] sm:$0xf]  ;;  %v3855_v22 = vld [vmem:[%s9275_s2 + $0x38] sm:$0xf0] }
  0x9b   :  { %2317 = vmatpush.bf16.msra.mxu3 %v5062_v46  ;;  %v7237_v46 = vpack.c.b16 %v397_v17, %v397_v17  ;;  %v37_v17 = vld [vmem:[%s9276_s0 + $0x50] sm:$0xf] }
  0x9c   :  { %2279 = vmatpush.bf16.msra.mxu0 %v4862_v53  ;;  %v3882_v53 = vor.u32 %v5649_v34, %v3879_v37  ;;  %v3919_v34 = vld [vmem:[%s9275_s2 + $0xb8] sm:$0xf0]  ;;  %v5675_v37 = vld [vmem:[%s9275_s2 + $0x134] sm:$0xf] }
  0x9d   :  { %2292 = vmatpush.bf16.msra.mxu1 %v4926_v57  ;;  %v4010_v57 = vor.u32 %v5681_v45, %v4007_v48  ;;  %v399_v45 = vunpack.c.l.b16 %v37_v17  ;;  %v3967_v17 = vld [vmem:[%s9275_s2 + $0x118] sm:$0xf0] }
  0x9e   :  { %2305 = vmatpush.bf16.msra.mxu2 %v4990_v58  ;;  %v4082_v58 = vor.u32 %v5699_v49, %v4079_v50  ;;  %v3922_v50 = vor.u32 %v5659_v32, %v3919_v34  ;;  %v3831_v32 = vld [vmem:[%s9275_s2 + $0x8] sm:$0xf0]  ;;  %v5653_v34 = vld [vmem:[%s9275_s2 + $0x84] sm:$0xf] }
  0x9f   :  { %2318 = vmatpush.bf16.msra.mxu3 %v5054_v62  ;;  %v3999_v62 = vld [vmem:[%s9275_s2 + $0x158] sm:$0xf0] }
  0xa0   :  { %2280 = vmatpush.bf16.msra.mxu0 %v4854_v5  ;;  %v5661_v5 = vld [vmem:[%s9275_s2 + $0xc4] sm:$0xf]  ;;  %v4002_v6 = vor.u32 %v5679_v61, %v3999_v62  ;;  %v2074_v48 = vpop.f32.mrf.mxu0  ;;  %v7349_v61 = vpack.c.b16 %v399_v45, %v399_v45  ;;  %v3975_v62 = vld [vmem:[%s9275_s2 + $0x128] sm:$0xf0] }
  0xa1   :  { %2293 = vmatpush.bf16.msra.mxu1 %v4918_v12  ;;  %v362_v12 = vld [vmem:[%s9277_s3] sm:$0x3]  ;;  %v2087_v55 = vpop.f32.mrf.mxu1  ;;  %v5669_v45 = vld [vmem:[%s9275_s2 + $0x104] sm:$0xf] }
  0xa2   :  { %2306 = vmatpush.bf16.msra.mxu2 %v4982_v13  ;;  %v3991_v13 = vld [vmem:[%s9275_s2 + $0x148] sm:$0xf0]  ;;  %v364_v24 = vperm.slane %v362_v12, 0  ;;  %v3903_v12 = vld [vmem:[%s9275_s2 + $0x98] sm:$0xf0] }
  0xa3   :  { %2319 = vmatpush.bf16.msra.mxu3 %v5046_v20  ;;  %2281 = vmatmul.bf16.vlgmr.msra.gmra.mxu0 %v7226_v39  ;;  %v3930_v20 = vor.u32 %v5661_v5, %v3927_v10  ;;  %v3839_v5 = vld [vmem:[%s9275_s2 + $0x18] sm:$0xf0]  ;;  %v4050_v10 = vor.u32 %v5691_v63, %v4047_v0  ;;  %v5685_v0 = vld [vmem:[%s9275_s2 + $0x184] sm:$0xf] }
  0xa4   :  { %2331 = vmatpush.bf16.msrb.mxu0 %v5118_v21  ;;  %2294 = vmatmul.bf16.vlgmr.msra.gmra.mxu1 %v7239_v47  ;;  %v5643_v21 = vld [vmem:[%s9275_s2 + $0x34] sm:$0xf] }
  0xa5   :  { %2338 = vmatpush.bf16.msrb.mxu1 %v3890_v26  ;;  %2307 = vmatmul.bf16.vlgmr.msra.gmra.mxu2 %v7237_v46  ;;  %v3994_v26 = vor.u32 %v5677_v11, %v3991_v13  ;;  %v3858_v49 = vor.u32 %v5643_v21, %v3855_v22  ;;  %v5655_v11 = vld [vmem:[%s9275_s2 + $0x94] sm:$0xf] }
  0xa6   :  { %2351 = vmatpush.bf16.msrb.mxu2 %v3954_v27  ;;  %2320 = vmatmul.bf16.vlgmr.msra.gmra.mxu3 %v7250_v51  ;;  %v4066_v27 = vor.u32 %v5695_v15, %v4063_v16  ;;  %v5671_v13 = vld [vmem:[%s9275_s2 + $0x114] sm:$0xf] }
  0xa7   :  { %2364 = vmatpush.bf16.msrb.mxu3 %v4018_v38  ;;  %v3983_v38 = vld [vmem:[%s9275_s2 + $0x138] sm:$0xf0] }
  0xa8   :  { %2332 = vmatpush.bf16.msrb.mxu0 %v5110_v52  ;;  %v5641_v52 = vld [vmem:[%s9275_s2 + $0x24] sm:$0xf]  ;;  %v3986_v56 = vor.u32 %v5675_v37, %v3983_v38  ;;  %v2076_v22 = vpop.f32.mrf.mxu0  ;;  %v3970_v38 = vor.u32 %v5671_v13, %v3967_v17  ;;  %v4263_v13 = vld [vmem:[%s9275_s2 + $0x368] sm:$0xf0] }
  0xa9   :  { %2339 = vmatpush.bf16.msrb.mxu1 %v3882_v53  ;;  %v3847_v53 = vld [vmem:[%s9275_s2 + $0x28] sm:$0xf0]  ;;  %v2113_v16 = vpop.f32.mrf.mxu3  ;;  %v2089_v37 = vpop.f32.mrf.mxu1  ;;  %v5711_v22 = vld [vmem:[%s9275_s2 + $0x254] sm:$0xf] }
  0xaa   :  { %2352 = vmatpush.bf16.msrb.mxu2 %v3946_v54  ;;  %v2075_v54 = vadd.f32 %v2074_v48, %v364_v24  ;;  %v3842_v24 = vor.u32 %v5639_v4, %v3839_v5  ;;  %v3959_v48 = vld [vmem:[%s9275_s2 + $0x108] sm:$0xf0]  ;;  %v5713_v5 = vld [vmem:[%s9275_s2 + $0x264] sm:$0xf]  ;;  %v5743_v37 = vld [vmem:[%s9275_s2 + $0x354] sm:$0xf] }
  0xab   :  { %2365 = vmatpush.bf16.msrb.mxu3 %v4010_v57  ;;  %v4058_v57 = vor.u32 %v5693_v40, %v4055_v43  ;;  %v3895_v43 = vld [vmem:[%s9275_s2 + $0x88] sm:$0xf0] }
  0xac   :  { %2377 = vmatpush.bf16.msra.mxu0 %v4082_v58  ;;  %v5657_v58 = vld [vmem:[%s9275_s2 + $0xa4] sm:$0xf]  ;;  %v4023_v4 = vld [vmem:[%s9275_s2 + $0x188] sm:$0xf0] }
  0xad   :  { %2340 = vmatpush.bf16.msrb.mxu1 %v3874_v1  ;;  %v2088_v1 = vadd.f32 %v2087_v55, %v2075_v54  ;;  %v3914_v3 = vor.u32 %v5657_v58, %v3911_v59  ;;  %v5731_v54 = vld [vmem:[%s9275_s2 + $0x2f4] sm:$0xf]  ;;  %v4207_v55 = vld [vmem:[%s9275_s2 + $0x2f8] sm:$0xf0]  ;;  %v4026_v17 = vor.u32 %v5685_v0, %v4023_v4 }
  0xae   :  { %2353 = vmatpush.bf16.msrb.mxu2 %v3938_v2  ;;  %v3850_v2 = vor.u32 %v5641_v52, %v3847_v53  ;;  %v5715_v52 = vld [vmem:[%s9275_s2 + $0x274] sm:$0xf]  ;;  %v4143_v53 = vld [vmem:[%s9275_s2 + $0x278] sm:$0xf0] }
  0xaf   :  { %2366 = vmatpush.bf16.msrb.mxu3 %v4002_v6  ;;  %v2100_v6 = vpop.f32.mrf.mxu2  ;;  %v5747_v58 = vld [vmem:[%s9275_s2 + $0x374] sm:$0xf]  ;;  %v4271_v59 = vld [vmem:[%s9275_s2 + $0x378] sm:$0xf0] }
  0xb0   :  { %2378 = vmatpush.bf16.msra.mxu0 %v4074_v9  ;;  %v3978_v9 = vor.u32 %v5673_v60, %v3975_v62  ;;  %v2101_v15 = vadd.f32 %v2100_v6, %v2088_v1  ;;  %v3962_v62 = vor.u32 %v5669_v45, %v3959_v48  ;;  %v4135_v6 = vld [vmem:[%s9275_s2 + $0x268] sm:$0xf0]  ;;  %v5709_v48 = vld [vmem:[%s9275_s2 + $0x244] sm:$0xf]  ;;  %v4239_v4 = vld [vmem:[%s9275_s2 + $0x338] sm:$0xf0] }
  0xb1   :  { %2341 = vmatpush.bf16.msrb.mxu1 %v3866_v18  ;;  %v5689_v18 = vld [vmem:[%s9275_s2 + $0x1a4] sm:$0xf]  ;;  %v2115_v1 = vpop.f32.mrf.mxu3 }
  0xb2   :  { %2354 = vmatpush.bf16.msrb.mxu2 %v3930_v20  ;;  %v4039_v20 = vld [vmem:[%s9275_s2 + $0x1a8] sm:$0xf0]  ;;  %v7386_v21 = vadd.f32 %v2113_v16, %v2101_v15  ;;  %v5763_v15 = vld [vmem:[%s9275_s2 + $0x3f4] sm:$0xf]  ;;  %v4335_v16 = vld [vmem:[%s9275_s2 + $0x3f8] sm:$0xf0] }
  0xb3   :  { %2367 = vmatpush.bf16.msrb.mxu3 %v3994_v26  ;;  %5123 = vmatmul.msk.bf16.vlgmr.msrb.gmra.mxu0 %vm2061_vm0, %v7349_v61  ;;  %v3906_v26 = vor.u32 %v5655_v11, %v3903_v12  ;;  %v4042_v40 = vor.u32 %v5689_v18, %v4039_v20  ;;  %v4199_v11 = vld [vmem:[%s9275_s2 + $0x2e8] sm:$0xf0]  ;;  %v5745_v12 = vld [vmem:[%s9275_s2 + $0x364] sm:$0xf]  ;;  %v4138_v18 = vor.u32 %v5713_v5, %v4135_v6 }
  0xb4   :  { %2379 = vmatpush.bf16.msra.mxu0 %v4066_v27  ;;  %v5637_v27 = vld [vmem:[%s9275_s2 + $0x4] sm:$0xf] }
  0xb5   :  { %2342 = vmatpush.bf16.msrb.mxu1 %v3858_v49  ;;  %v5687_v49 = vld [vmem:[%s9275_s2 + $0x194] sm:$0xf]  ;;  %v5757_v6 = vld [vmem:[%s9275_s2 + $0x3c4] sm:$0xf] }
  0xb6   :  { %2355 = vmatpush.bf16.msrb.mxu2 %v3922_v50  ;;  %v4031_v50 = vld [vmem:[%s9275_s2 + $0x198] sm:$0xf0] }
  0xb7   :  { %2368 = vmatpush.bf16.msrb.mxu3 %v3986_v56  ;;  %v3834_v56 = vor.u32 %v5637_v27, %v3831_v32  ;;  %v2102_v60 = vpop.f32.mrf.mxu2  ;;  %v4034_v63 = vor.u32 %v5687_v49, %v4031_v50  ;;  %v4338_v27 = vor.u32 %v5763_v15, %v4335_v16  ;;  %v5727_v32 = vld [vmem:[%s9275_s2 + $0x2d4] sm:$0xf]  ;;  %v4119_v49 = vld [vmem:[%s9275_s2 + $0x248] sm:$0xf0] }
  0xb8   :  { %2380 = vmatpush.bf16.msra.mxu0 %v4058_v57  ;;  %v3898_v57 = vor.u32 %v5653_v34, %v3895_v43  ;;  %v4191_v34 = vld [vmem:[%s9275_s2 + $0x2d8] sm:$0xf0]  ;;  %v4327_v43 = vld [vmem:[%s9275_s2 + $0x3e8] sm:$0xf0] }
  0xb9   :  { %2343 = vmatpush.bf16.msrb.mxu1 %v3850_v2  ;;  %v4146_v2 = vor.u32 %v5715_v52, %v4143_v53  ;;  %v4194_v45 = vor.u32 %v5727_v32, %v4191_v34  ;;  %v5741_v53 = vld [vmem:[%s9275_s2 + $0x344] sm:$0xf]  ;;  %v4103_v15 = vld [vmem:[%s9275_s2 + $0x228] sm:$0xf0]  ;;  %v5755_v32 = vld [vmem:[%s9275_s2 + $0x3b4] sm:$0xf] }
  0xba   :  { %2356 = vmatpush.bf16.msrb.mxu2 %v3914_v3  ;;  %v4210_v3 = vor.u32 %v5731_v54, %v4207_v55  ;;  %v4247_v54 = vld [vmem:[%s9275_s2 + $0x348] sm:$0xf0]  ;;  %v5759_v55 = vld [vmem:[%s9275_s2 + $0x3d4] sm:$0xf]  ;;  %v4303_v34 = vld [vmem:[%s9275_s2 + $0x3b8] sm:$0xf0] }
  0xbb   :  { %2369 = vmatpush.bf16.msrb.mxu3 %v3978_v9  ;;  %v4274_v9 = vor.u32 %v5747_v58, %v4271_v59  ;;  %v4122_v58 = vor.u32 %v5709_v48, %v4119_v49  ;;  %v4250_v1 = vor.u32 %v5741_v53, %v4247_v54  ;;  %v4223_v53 = vld [vmem:[%s9275_s2 + $0x318] sm:$0xf0]  ;;  %v5753_v54 = vld [vmem:[%s9275_s2 + $0x3a4] sm:$0xf] }
  0xbc   :  { %2381 = vmatpush.bf16.msra.mxu0 %v4050_v10  ;;  %v5729_v10 = vld [vmem:[%s9275_s2 + $0x2e4] sm:$0xf] }
  0xbd   :  { %2344 = vmatpush.bf16.msrb.mxu1 %v3842_v24  ;;  %v4202_v20 = vor.u32 %v5729_v10, %v4199_v11  ;;  %v4127_v24 = vld [vmem:[%s9275_s2 + $0x258] sm:$0xf0] }
  0xbe   :  { %2357 = vmatpush.bf16.msrb.mxu2 %v3906_v26  ;;  %v4266_v26 = vor.u32 %v5745_v12, %v4263_v13  ;;  %v5705_v13 = vld [vmem:[%s9275_s2 + $0x224] sm:$0xf] }
  0xbf   :  { %2370 = vmatpush.bf16.msrb.mxu3 %v3970_v38  ;;  %v4255_v38 = vld [vmem:[%s9275_s2 + $0x358] sm:$0xf0] }
  0xc0   :  { %2382 = vmatpush.bf16.msra.mxu0 %v4042_v40  ;;  %v5761_v40 = vld [vmem:[%s9275_s2 + $0x3e4] sm:$0xf]  ;;  %v4258_v50 = vor.u32 %v5743_v37, %v4255_v38 }
  0xc1   :  { %2345 = vmatpush.bf16.msrb.mxu1 %v3834_v56  ;;  %v4330_v52 = vor.u32 %v5761_v40, %v4327_v43  ;;  %v4319_v56 = vld [vmem:[%s9275_s2 + $0x3d8] sm:$0xf0]  ;;  %v2139_v0 = vpop.f32.mrf.mxu1  ;;  %v4106_v40 = vor.u32 %v5705_v13, %v4103_v15  ;;  %v5811_v13 = vld [vmem:[%s9275_s2 + $0x574] sm:$0xf] }
  0xc2   :  { %2358 = vmatpush.bf16.msrb.mxu2 %v3898_v57  ;;  %v2126_v57 = vpop.f32.mrf.mxu0  ;;  %v4527_v15 = vld [vmem:[%s9275_s2 + $0x578] sm:$0xf0] }
  0xc3   :  { %2371 = vmatpush.bf16.msrb.mxu3 %v3962_v62  ;;  %v2127_v60 = vadd.f32 %v2126_v57, %v7386_v21  ;;  %v5707_v62 = vld [vmem:[%s9275_s2 + $0x234] sm:$0xf]  ;;  %v4175_v21 = vld [vmem:[%s9275_s2 + $0x2b8] sm:$0xf0] }
  0xc4   :  { %2383 = vmatpush.bf16.msra.mxu0 %v4034_v63  ;;  %2346 = vmatmul.bf16.vlgmr.msrb.gmra.mxu1 %v6435_v14  ;;  %v4183_v14 = vld [vmem:[%s9275_s2 + $0x2c8] sm:$0xf0]  ;;  %v4111_v63 = vld [vmem:[%s9275_s2 + $0x238] sm:$0xf0] }
  0xc5   :  { %2390 = vmatpush.bf16.msra.mxu1 %v4146_v2  ;;  %2359 = vmatmul.bf16.vlgmr.msrb.gmra.mxu2 %v6447_v19  ;;  %v4130_v19 = vor.u32 %v5711_v22, %v4127_v24  ;;  %v5723_v2 = vld [vmem:[%s9275_s2 + $0x2b4] sm:$0xf]  ;;  %v2140_v5 = vadd.f32 %v2139_v0, %v2127_v60  ;;  %v4114_v10 = vor.u32 %v5707_v62, %v4111_v63  ;;  %v4167_v22 = vld [vmem:[%s9275_s2 + $0x2a8] sm:$0xf0]  ;;  %v5737_v24 = vld [vmem:[%s9275_s2 + $0x324] sm:$0xf] }
  0xc6   :  { %2403 = vmatpush.bf16.msra.mxu2 %v4210_v3  ;;  %2372 = vmatmul.bf16.vlgmr.msrb.gmra.mxu3 %v6422_v7  ;;  %v5725_v7 = vld [vmem:[%s9275_s2 + $0x2c4] sm:$0xf]  ;;  %v5739_v3 = vld [vmem:[%s9275_s2 + $0x334] sm:$0xf]  ;;  %v4178_v11 = vor.u32 %v5723_v2, %v4175_v21  ;;  %v4215_v2 = vld [vmem:[%s9275_s2 + $0x308] sm:$0xf0] }
  0xc7   :  { %2416 = vmatpush.bf16.msra.mxu3 %v4274_v9  ;;  %v4186_v59 = vor.u32 %v5725_v7, %v4183_v14  ;;  %v4311_v9 = vld [vmem:[%s9275_s2 + $0x3c8] sm:$0xf0]  ;;  %v4242_v16 = vor.u32 %v5739_v3, %v4239_v4  ;;  %v4159_v7 = vld [vmem:[%s9275_s2 + $0x298] sm:$0xf0]  ;;  %v5735_v14 = vld [vmem:[%s9275_s2 + $0x314] sm:$0xf] }
  0xc8   :  { %2384 = vmatpush.bf16.msra.mxu0 %v4026_v17  ;;  %v2152_v12 = vpop.f32.mrf.mxu2  ;;  %v4314_v17 = vor.u32 %v5757_v6, %v4311_v9  ;;  %v5717_v60 = vld [vmem:[%s9275_s2 + $0x284] sm:$0xf]  ;;  %v4226_v63 = vor.u32 %v5735_v14, %v4223_v53  ;;  %v5751_v3 = vld [vmem:[%s9275_s2 + $0x394] sm:$0xf]  ;;  %v4287_v4 = vld [vmem:[%s9275_s2 + $0x398] sm:$0xf0] }
  0xc9   :  { %2391 = vmatpush.bf16.msra.mxu1 %v4138_v18  ;;  %v2153_v18 = vadd.f32 %v2152_v12, %v2140_v5  ;;  %v2141_v48 = vpop.f32.mrf.mxu1  ;;  %v5779_v5 = vld [vmem:[%s9275_s2 + $0x474] sm:$0xf]  ;;  %v4399_v6 = vld [vmem:[%s9275_s2 + $0x478] sm:$0xf0] }
  0xca   :  { %2404 = vmatpush.bf16.msra.mxu2 %v4202_v20  ;;  %v5721_v20 = vld [vmem:[%s9275_s2 + $0x2a4] sm:$0xf]  ;;  %v2128_v38 = vpop.f32.mrf.mxu0  ;;  %v5795_v9 = vld [vmem:[%s9275_s2 + $0x4f4] sm:$0xf] }
  0xcb   :  { %2417 = vmatpush.bf16.msra.mxu3 %v4266_v26  ;;  %2385 = vmatmul.bf16.vlgmr.msra.gmra.mxu0 %v6424_v8  ;;  %v4322_v8 = vor.u32 %v5759_v55, %v4319_v56  ;;  %v2165_v26 = vpop.f32.mrf.mxu3  ;;  %v4170_v43 = vor.u32 %v5721_v20, %v4167_v22  ;;  %v4295_v55 = vld [vmem:[%s9275_s2 + $0x3a8] sm:$0xf0]  ;;  %v4402_v20 = vor.u32 %v5779_v5, %v4399_v6 }
  0xcc   :  { %2429 = vmatpush.bf16.msrb.mxu0 %v4338_v27  ;;  %v4231_v27 = vld [vmem:[%s9275_s2 + $0x328] sm:$0xf0]  ;;  %v7561_v37 = vadd.f32 %v2165_v26, %v2153_v18  ;;  %v4298_v0 = vor.u32 %v5753_v54, %v4295_v55  ;;  %v5749_v18 = vld [vmem:[%s9275_s2 + $0x384] sm:$0xf]  ;;  %v5791_v54 = vld [vmem:[%s9275_s2 + $0x4d4] sm:$0xf] }
  0xcd   :  { %2392 = vmatpush.bf16.msra.mxu1 %v4130_v19  ;;  %v5703_v19 = vld [vmem:[%s9275_s2 + $0x214] sm:$0xf]  ;;  %v4234_v49 = vor.u32 %v5737_v24, %v4231_v27  ;;  %v4279_v24 = vld [vmem:[%s9275_s2 + $0x388] sm:$0xf0]  ;;  %v5777_v26 = vld [vmem:[%s9275_s2 + $0x464] sm:$0xf] }
  0xce   :  { %2405 = vmatpush.bf16.msra.mxu2 %v4194_v45  ;;  %v4095_v45 = vld [vmem:[%s9275_s2 + $0x218] sm:$0xf0]  ;;  %v4391_v27 = vld [vmem:[%s9275_s2 + $0x468] sm:$0xf0]  ;;  %v4282_v48 = vor.u32 %v5749_v18, %v4279_v24 }
  0xcf   :  { %2418 = vmatpush.bf16.msra.mxu3 %v4258_v50  ;;  %v4306_v50 = vor.u32 %v5755_v32, %v4303_v34  ;;  %v4098_v56 = vor.u32 %v5703_v19, %v4095_v45  ;;  %v4530_v32 = vor.u32 %v5811_v13, %v4527_v15  ;;  %v5793_v34 = vld [vmem:[%s9275_s2 + $0x4e4] sm:$0xf]  ;;  %v4455_v38 = vld [vmem:[%s9275_s2 + $0x4e8] sm:$0xf0]  ;;  %v5827_v19 = vld [vmem:[%s9275_s2 + $0x5f4] sm:$0xf] }
  0xd0   :  { %2430 = vmatpush.bf16.msrb.mxu0 %v4330_v52  ;;  %v5719_v52 = vld [vmem:[%s9275_s2 + $0x294] sm:$0xf]  ;;  %v2154_v62 = vpop.f32.mrf.mxu2  ;;  %v4591_v45 = vld [vmem:[%s9275_s2 + $0x5f8] sm:$0xf0] }
  0xd1   :  { %2393 = vmatpush.bf16.msra.mxu1 %v4122_v58  ;;  %v4162_v57 = vor.u32 %v5719_v52, %v4159_v7  ;;  %v5701_v58 = vld [vmem:[%s9275_s2 + $0x204] sm:$0xf]  ;;  %v5775_v52 = vld [vmem:[%s9275_s2 + $0x454] sm:$0xf]  ;;  %v4383_v7 = vld [vmem:[%s9275_s2 + $0x458] sm:$0xf0]  ;;  %v4594_v53 = vor.u32 %v5827_v19, %v4591_v45 }
  0xd2   :  { %2406 = vmatpush.bf16.msra.mxu2 %v4186_v59  ;;  %v4087_v59 = vld [vmem:[%s9275_s2 + $0x208] sm:$0xf0]  ;;  %v4447_v55 = vld [vmem:[%s9275_s2 + $0x4d8] sm:$0xf0]  ;;  %v5801_v45 = vld [vmem:[%s9275_s2 + $0x524] sm:$0xf] }
  0xd3   :  { %2419 = vmatpush.bf16.msra.mxu3 %v4250_v1  ;;  %v4151_v1 = vld [vmem:[%s9275_s2 + $0x288] sm:$0xf0]  ;;  %v2167_v21 = vpop.f32.mrf.mxu3  ;;  %v4495_v18 = vld [vmem:[%s9275_s2 + $0x538] sm:$0xf0] }
  0xd4   :  { %2431 = vmatpush.bf16.msrb.mxu0 %v4322_v8  ;;  %v5733_v8 = vld [vmem:[%s9275_s2 + $0x304] sm:$0xf]  ;;  %v4154_v12 = vor.u32 %v5717_v60, %v4151_v1  ;;  %v4450_v60 = vor.u32 %v5791_v54, %v4447_v55  ;;  %v4439_v1 = vld [vmem:[%s9275_s2 + $0x4c8] sm:$0xf0] }
  0xd5   :  { %2394 = vmatpush.bf16.msra.mxu1 %v4114_v10  ;;  %v4463_v10 = vld [vmem:[%s9275_s2 + $0x4f8] sm:$0xf0]  ;;  %v4503_v21 = vld [vmem:[%s9275_s2 + $0x548] sm:$0xf0] }
  0xd6   :  { %2407 = vmatpush.bf16.msra.mxu2 %v4178_v11  ;;  %v4090_v11 = vor.u32 %v5701_v58, %v4087_v59  ;;  %v4466_v22 = vor.u32 %v5795_v9, %v4463_v10  ;;  %v4583_v58 = vld [vmem:[%s9275_s2 + $0x5e8] sm:$0xf0]  ;;  %v4386_v59 = vor.u32 %v5775_v52, %v4383_v7  ;;  %v5819_v52 = vld [vmem:[%s9275_s2 + $0x5b4] sm:$0xf]  ;;  %v4559_v7 = vld [vmem:[%s9275_s2 + $0x5b8] sm:$0xf0] }
  0xd7   :  { %2420 = vmatpush.bf16.msra.mxu3 %v4242_v16  ;;  %v4218_v16 = vor.u32 %v5733_v8, %v4215_v2  ;;  %v5805_v8 = vld [vmem:[%s9275_s2 + $0x544] sm:$0xf]  ;;  %v4423_v19 = vld [vmem:[%s9275_s2 + $0x4a8] sm:$0xf0] }
  0xd8   :  { %2432 = vmatpush.bf16.msrb.mxu0 %v4314_v17  ;;  %v4290_v17 = vor.u32 %v5751_v3, %v4287_v4  ;;  %v5823_v3 = vld [vmem:[%s9275_s2 + $0x5d4] sm:$0xf]  ;;  %v4575_v4 = vld [vmem:[%s9275_s2 + $0x5d8] sm:$0xf0]  ;;  %v4506_v13 = vor.u32 %v5805_v8, %v4503_v21  ;;  %v4343_v21 = vld [vmem:[%s9275_s2 + $0x408] sm:$0xf0] }
  0xd9   :  { %2395 = vmatpush.bf16.msra.mxu1 %v4106_v40  ;;  %v5809_v40 = vld [vmem:[%s9275_s2 + $0x564] sm:$0xf] }
  0xda   :  { %2408 = vmatpush.bf16.msra.mxu2 %v4170_v43  ;;  %v4519_v43 = vld [vmem:[%s9275_s2 + $0x568] sm:$0xf0] }
  0xdb   :  { %2421 = vmatpush.bf16.msra.mxu3 %v4234_v49  ;;  %v4394_v49 = vor.u32 %v5777_v26, %v4391_v27  ;;  %v4522_v14 = vor.u32 %v5809_v40, %v4519_v43  ;;  %v5769_v27 = vld [vmem:[%s9275_s2 + $0x424] sm:$0xf] }
  0xdc   :  { %2433 = vmatpush.bf16.msrb.mxu0 %v4306_v50  ;;  %v4458_v50 = vor.u32 %v5793_v34, %v4455_v38  ;;  %v5785_v43 = vld [vmem:[%s9275_s2 + $0x4a4] sm:$0xf] }
  0xdd   :  { %2396 = vmatpush.bf16.msra.mxu1 %v4098_v56  ;;  %v5807_v56 = vld [vmem:[%s9275_s2 + $0x554] sm:$0xf] }
  0xde   :  { %2409 = vmatpush.bf16.msra.mxu2 %v4162_v57  ;;  %v5825_v57 = vld [vmem:[%s9275_s2 + $0x5e4] sm:$0xf] }
  0xdf   :  { %2422 = vmatpush.bf16.msra.mxu3 %v4226_v63  ;;  %v4586_v63 = vor.u32 %v5825_v57, %v4583_v58  ;;  %v4351_v57 = vld [vmem:[%s9275_s2 + $0x418] sm:$0xf0] }
  0xe0   :  { %2434 = vmatpush.bf16.msrb.mxu0 %v4298_v0  ;;  %v5789_v0 = vld [vmem:[%s9275_s2 + $0x4c4] sm:$0xf]  ;;  %v2178_v2 = vpop.f32.mrf.mxu0 }
  0xe1   :  { %2397 = vmatpush.bf16.msra.mxu1 %v4090_v11  ;;  %v2179_v5 = vadd.f32 %v2178_v2, %v7561_v37  ;;  %v2191_v6 = vpop.f32.mrf.mxu1  ;;  %v4442_v10 = vor.u32 %v5789_v0, %v4439_v1  ;;  %v5771_v11 = vld [vmem:[%s9275_s2 + $0x434] sm:$0xf]  ;;  %v4551_v0 = vld [vmem:[%s9275_s2 + $0x5a8] sm:$0xf0]  ;;  %v5765_v2 = vld [vmem:[%s9275_s2 + $0x404] sm:$0xf] }
  0xe2   :  { %2410 = vmatpush.bf16.msra.mxu2 %v4154_v12  ;;  %v4367_v12 = vld [vmem:[%s9275_s2 + $0x438] sm:$0xf0]  ;;  %v5787_v37 = vld [vmem:[%s9275_s2 + $0x4b4] sm:$0xf] }
  0xe3   :  { %2423 = vmatpush.bf16.msra.mxu3 %v4218_v16  ;;  %v2192_v15 = vadd.f32 %v2191_v6, %v2179_v5  ;;  %v4431_v16 = vld [vmem:[%s9275_s2 + $0x4b8] sm:$0xf0]  ;;  %v4370_v24 = vor.u32 %v5771_v11, %v4367_v12  ;;  %v4407_v6 = vld [vmem:[%s9275_s2 + $0x488] sm:$0xf0]  ;;  %v5815_v12 = vld [vmem:[%s9275_s2 + $0x594] sm:$0xf] }
  0xe4   :  { %2435 = vmatpush.bf16.msrb.mxu0 %v4290_v17  ;;  %2398 = vmatmul.bf16.vlgmr.msra.gmra.mxu1 %v6610_v41  ;;  %v4375_v41 = vld [vmem:[%s9275_s2 + $0x448] sm:$0xf0]  ;;  %v5803_v17 = vld [vmem:[%s9275_s2 + $0x534] sm:$0xf]  ;;  %v4434_v26 = vor.u32 %v5787_v37, %v4431_v16  ;;  %v4655_v37 = vld [vmem:[%s9275_s2 + $0x678] sm:$0xf0] }
  0xe5   :  { %2442 = vmatpush.bf16.msrb.mxu1 %v4402_v20  ;;  %2411 = vmatmul.bf16.vlgmr.msra.gmra.mxu2 %v6614_v44  ;;  %v4511_v44 = vld [vmem:[%s9275_s2 + $0x558] sm:$0xf0]  ;;  %v5821_v20 = vld [vmem:[%s9275_s2 + $0x5c4] sm:$0xf]  ;;  %v4498_v34 = vor.u32 %v5803_v17, %v4495_v18  ;;  %v5859_v16 = vld [vmem:[%s9275_s2 + $0x6f4] sm:$0xf]  ;;  %v4346_v18 = vor.u32 %v5765_v2, %v4343_v21 }
  0xe6   :  { %2455 = vmatpush.bf16.msrb.mxu2 %v4466_v22  ;;  %2424 = vmatmul.bf16.vlgmr.msra.gmra.mxu3 %v6593_v35  ;;  %v5773_v35 = vld [vmem:[%s9275_s2 + $0x444] sm:$0xf]  ;;  %v4514_v62 = vor.u32 %v5807_v56, %v4511_v44  ;;  %v4567_v22 = vld [vmem:[%s9275_s2 + $0x5c8] sm:$0xf0]  ;;  %v4426_v56 = vor.u32 %v5785_v43, %v4423_v19  ;;  %v5767_v44 = vld [vmem:[%s9275_s2 + $0x414] sm:$0xf] }
  0xe7   :  { %2468 = vmatpush.bf16.msrb.mxu3 %v4530_v32  ;;  %v4378_v9 = vor.u32 %v5773_v35, %v4375_v41  ;;  %v4359_v32 = vld [vmem:[%s9275_s2 + $0x428] sm:$0xf0]  ;;  %v4570_v40 = vor.u32 %v5821_v20, %v4567_v22  ;;  %v4415_v35 = vld [vmem:[%s9275_s2 + $0x498] sm:$0xf0]  ;;  %v5799_v41 = vld [vmem:[%s9275_s2 + $0x514] sm:$0xf]  ;;  %v4354_v1 = vor.u32 %v5767_v44, %v4351_v57 }
  0xe8   :  { %2436 = vmatpush.bf16.msrb.mxu0 %v4282_v48  ;;  %v2204_v38 = vpop.f32.mrf.mxu2  ;;  %v4362_v55 = vor.u32 %v5769_v27, %v4359_v32  ;;  %v4719_v17 = vld [vmem:[%s9275_s2 + $0x6f8] sm:$0xf0]  ;;  %v5875_v22 = vld [vmem:[%s9275_s2 + $0x774] sm:$0xf]  ;;  %v5813_v32 = vld [vmem:[%s9275_s2 + $0x584] sm:$0xf] }
  0xe9   :  { %2443 = vmatpush.bf16.msrb.mxu1 %v4394_v49  ;;  %v2205_v48 = vadd.f32 %v2204_v38, %v2192_v15  ;;  %v2217_v49 = vpop.f32.mrf.mxu3  ;;  %v5843_v15 = vld [vmem:[%s9275_s2 + $0x674] sm:$0xf]  ;;  %v4722_v38 = vor.u32 %v5859_v16, %v4719_v17  ;;  %v5841_v43 = vld [vmem:[%s9275_s2 + $0x664] sm:$0xf]  ;;  %v4647_v19 = vld [vmem:[%s9275_s2 + $0x668] sm:$0xf0] }
  0xea   :  { %2456 = vmatpush.bf16.msrb.mxu2 %v4458_v50  ;;  %v4487_v50 = vld [vmem:[%s9275_s2 + $0x528] sm:$0xf0]  ;;  %v5839_v44 = vld [vmem:[%s9275_s2 + $0x654] sm:$0xf]  ;;  %v4639_v57 = vld [vmem:[%s9275_s2 + $0x658] sm:$0xf0] }
  0xeb   :  { %2469 = vmatpush.bf16.msrb.mxu3 %v4522_v14  ;;  %2437 = vmatmul.bf16.vlgmr.msrb.gmra.mxu0 %v6612_v42  ;;  %v4578_v42 = vor.u32 %v5823_v3, %v4575_v4  ;;  %v2180_v14 = vpop.f32.mrf.mxu0  ;;  %v7760_v54 = vadd.f32 %v2217_v49, %v2205_v48  ;;  %v4490_v58 = vor.u32 %v5801_v45, %v4487_v50  ;;  %v5781_v3 = vld [vmem:[%s9275_s2 + $0x484] sm:$0xf]  ;;  %v4711_v49 = vld [vmem:[%s9275_s2 + $0x6e8] sm:$0xf0]  ;;  %v5851_v16 = vld [vmem:[%s9275_s2 + $0x6b4] sm:$0xf] }
  0xec   :  { %2481 = vmatpush.bf16.msra.mxu0 %v4594_v53  ;;  %v2193_v53 = vpop.f32.mrf.mxu1  ;;  %v4410_v20 = vor.u32 %v5781_v3, %v4407_v6  ;;  %v5857_v48 = vld [vmem:[%s9275_s2 + $0x6e4] sm:$0xf]  ;;  %v4847_v14 = vld [vmem:[%s9275_s2 + $0x7f8] sm:$0xf0]  ;;  %v4695_v3 = vld [vmem:[%s9275_s2 + $0x6c8] sm:$0xf0] }
  0xed   :  { %2444 = vmatpush.bf16.msrb.mxu1 %v4386_v59  ;;  %v4562_v59 = vor.u32 %v5819_v52, %v4559_v7  ;;  %v5873_v50 = vld [vmem:[%s9275_s2 + $0x764] sm:$0xf]  ;;  %v4775_v52 = vld [vmem:[%s9275_s2 + $0x768] sm:$0xf0]  ;;  %v5891_v7 = vld [vmem:[%s9275_s2 + $0x7f4] sm:$0xf] }
  0xee   :  { %2457 = vmatpush.bf16.msrb.mxu2 %v4450_v60  ;;  %v5783_v60 = vld [vmem:[%s9275_s2 + $0x494] sm:$0xf]  ;;  %v5853_v21 = vld [vmem:[%s9275_s2 + $0x6c4] sm:$0xf]  ;;  %v4759_v6 = vld [vmem:[%s9275_s2 + $0x748] sm:$0xf0] }
  0xef   :  { %2470 = vmatpush.bf16.msrb.mxu3 %v4514_v62  ;;  %v4479_v62 = vld [vmem:[%s9275_s2 + $0x518] sm:$0xf0]  ;;  %v4418_v8 = vor.u32 %v5783_v60, %v4415_v35  ;;  %v5855_v60 = vld [vmem:[%s9275_s2 + $0x6d4] sm:$0xf] }
  0xf0   :  { %2482 = vmatpush.bf16.msra.mxu0 %v4586_v63  ;;  %v5817_v63 = vld [vmem:[%s9275_s2 + $0x5a4] sm:$0xf]  ;;  %v4482_v4 = vor.u32 %v5799_v41, %v4479_v62  ;;  %v2206_v11 = vpop.f32.mrf.mxu2  ;;  %v4703_v35 = vld [vmem:[%s9275_s2 + $0x6d8] sm:$0xf0]  ;;  %v5871_v41 = vld [vmem:[%s9275_s2 + $0x754] sm:$0xf] }
  0xf1   :  { %2445 = vmatpush.bf16.msrb.mxu1 %v4378_v9  ;;  %v4554_v5 = vor.u32 %v5817_v63, %v4551_v0  ;;  %v5797_v9 = vld [vmem:[%s9275_s2 + $0x504] sm:$0xf]  ;;  %v4839_v63 = vld [vmem:[%s9275_s2 + $0x7e8] sm:$0xf0]  ;;  %v4642_v0 = vor.u32 %v5839_v44, %v4639_v57  ;;  %v4687_v17 = vld [vmem:[%s9275_s2 + $0x6b8] sm:$0xf0] }
  0xf2   :  { %2458 = vmatpush.bf16.msrb.mxu2 %v4442_v10  ;;  %v4471_v10 = vld [vmem:[%s9275_s2 + $0x508] sm:$0xf0]  ;;  %v5889_v62 = vld [vmem:[%s9275_s2 + $0x7e4] sm:$0xf]  ;;  %v5831_v44 = vld [vmem:[%s9275_s2 + $0x614] sm:$0xf] }
  0xf3   :  { %2471 = vmatpush.bf16.msrb.mxu3 %v4506_v13  ;;  %v4543_v13 = vld [vmem:[%s9275_s2 + $0x598] sm:$0xf0]  ;;  %v4842_v2 = vor.u32 %v5889_v62, %v4839_v63  ;;  %v5881_v62 = vld [vmem:[%s9275_s2 + $0x7a4] sm:$0xf]  ;;  %v4807_v63 = vld [vmem:[%s9275_s2 + $0x7a8] sm:$0xf0] }
  0xf4   :  { %2483 = vmatpush.bf16.msra.mxu0 %v4578_v42  ;;  %v2219_v42 = vpop.f32.mrf.mxu3  ;;  %v4546_v27 = vor.u32 %v5815_v12, %v4543_v13  ;;  %v4698_v13 = vor.u32 %v5853_v21, %v4695_v3  ;;  %v4607_v57 = vld [vmem:[%s9275_s2 + $0x618] sm:$0xf0]  ;;  %v4810_v21 = vor.u32 %v5881_v62, %v4807_v63  ;;  %v4663_v3 = vld [vmem:[%s9275_s2 + $0x688] sm:$0xf0] }
  0xf5   :  { %2446 = vmatpush.bf16.msrb.mxu1 %v4370_v24  ;;  %v4783_v24 = vld [vmem:[%s9275_s2 + $0x778] sm:$0xf0]  ;;  %v5095_v62 = vld [vmem:[%s9275_s2 + $0x9e8] sm:$0xf0] }
  0xf6   :  { %2459 = vmatpush.bf16.msrb.mxu2 %v4434_v26  ;;  %v4474_v26 = vor.u32 %v5797_v9, %v4471_v10  ;;  %v4786_v45 = vor.u32 %v5875_v22, %v4783_v24  ;;  %v5887_v9 = vld [vmem:[%s9275_s2 + $0x7d4] sm:$0xf]  ;;  %v4831_v10 = vld [vmem:[%s9275_s2 + $0x7d8] sm:$0xf0]  ;;  %v5885_v22 = vld [vmem:[%s9275_s2 + $0x7c4] sm:$0xf] }
  0xf7   :  { %2472 = vmatpush.bf16.msrb.mxu3 %v4498_v34  ;;  %v4658_v34 = vor.u32 %v5843_v15, %v4655_v37  ;;  %v4623_v15 = vld [vmem:[%s9275_s2 + $0x638] sm:$0xf0]  ;;  %v4834_v37 = vor.u32 %v5887_v9, %v4831_v10  ;;  %v4823_v24 = vld [vmem:[%s9275_s2 + $0x7c8] sm:$0xf0]  ;;  %v5879_v10 = vld [vmem:[%s9275_s2 + $0x794] sm:$0xf] }
  0xf8   :  { %2484 = vmatpush.bf16.msra.mxu0 %v4570_v40  ;;  %v4535_v40 = vld [vmem:[%s9275_s2 + $0x588] sm:$0xf0] }
  0xf9   :  { %2447 = vmatpush.bf16.msrb.mxu1 %v4362_v55  ;;  %v4538_v53 = vor.u32 %v5813_v32, %v4535_v40  ;;  %v4650_v55 = vor.u32 %v5841_v43, %v4647_v19  ;;  %v5833_v32 = vld [vmem:[%s9275_s2 + $0x624] sm:$0xf]  ;;  %v4826_v43 = vor.u32 %v5885_v22, %v4823_v24 }
  0xfa   :  { %2460 = vmatpush.bf16.msrb.mxu2 %v4426_v56  ;;  %v4714_v56 = vor.u32 %v5857_v48, %v4711_v49  ;;  %v5849_v19 = vld [vmem:[%s9275_s2 + $0x6a4] sm:$0xf] }
  0xfb   :  { %2473 = vmatpush.bf16.msrb.mxu3 %v4490_v58  ;;  %v4778_v58 = vor.u32 %v5873_v50, %v4775_v52  ;;  %v5865_v48 = vld [vmem:[%s9275_s2 + $0x724] sm:$0xf]  ;;  %v4743_v50 = vld [vmem:[%s9275_s2 + $0x728] sm:$0xf0]  ;;  %v5883_v52 = vld [vmem:[%s9275_s2 + $0x7b4] sm:$0xf] }
  0xfc   :  { %2485 = vmatpush.bf16.msra.mxu0 %v4562_v59  ;;  %v4850_v59 = vor.u32 %v5891_v7, %v4847_v14  ;;  %v4815_v7 = vld [vmem:[%s9275_s2 + $0x7b8] sm:$0xf0] }
  0xfd   :  { %2448 = vmatpush.bf16.msrb.mxu1 %v4354_v1  ;;  %v4706_v1 = vor.u32 %v5855_v60, %v4703_v35  ;;  %v5847_v60 = vld [vmem:[%s9275_s2 + $0x694] sm:$0xf]  ;;  %v4671_v35 = vld [vmem:[%s9275_s2 + $0x698] sm:$0xf0] }
  0xfe   :  { %2461 = vmatpush.bf16.msrb.mxu2 %v4418_v8 }
  0xff   :  { %2474 = vmatpush.bf16.msrb.mxu3 %v4482_v4  ;;  %v5869_v4 = vld [vmem:[%s9275_s2 + $0x744] sm:$0xf] }
 0x100   :  { %2486 = vmatpush.bf16.msra.mxu0 %v4554_v5  ;;  %v7900_v5 = vpop.f32.mrf.mxu0  ;;  %v4762_v42 = vor.u32 %v5869_v4, %v4759_v6  ;;  %v5861_v4 = vld [vmem:[%s9275_s2 + $0x704] sm:$0xf]  ;;  %v4727_v6 = vld [vmem:[%s9275_s2 + $0x708] sm:$0xf0] }
 0x101   :  { %2449 = vmatpush.bf16.msrb.mxu1 %v4346_v18  ;;  %v7912_v11 = vpop.f32.mrf.mxu1  ;;  %v5867_v18 = vld [vmem:[%s9275_s2 + $0x734] sm:$0xf]  ;;  %v4730_v22 = vor.u32 %v5861_v4, %v4727_v6  ;;  %v5087_v6 = vld [vmem:[%s9275_s2 + $0x9d8] sm:$0xf0] }
 0x102   :  { %2462 = vmatpush.bf16.msrb.mxu2 %v4410_v20  ;;  %v4751_v20 = vld [vmem:[%s9275_s2 + $0x738] sm:$0xf0]  ;;  %v5951_v4 = vld [vmem:[%s9275_s2 + $0x9d4] sm:$0xf] }
 0x103   :  { %2475 = vmatpush.bf16.msrb.mxu3 %v4474_v26 }
 0x104   :  { %2487 = vmatpush.bf16.msra.mxu0 %v4546_v27  ;;  %2450 = vmatmul.bf16.vlgmr.msrb.gmra.mxu1 %v6803_v25  ;;  %v4767_v25 = vld [vmem:[%s9275_s2 + $0x758] sm:$0xf0]  ;;  %v4690_v27 = vor.u32 %v5851_v16, %v4687_v17 }
 0x105   :  { %2494 = vmatpush.bf16.msra.mxu1 %v4658_v34  ;;  %2463 = vmatmul.bf16.vlgmr.msrb.gmra.mxu2 %v6816_v30  ;;  %v4631_v30 = vld [vmem:[%s9275_s2 + $0x648] sm:$0xf0]  ;;  %v4770_v8 = vor.u32 %v5871_v41, %v4767_v25  ;;  %v5863_v41 = vld [vmem:[%s9275_s2 + $0x714] sm:$0xf]  ;;  %v4735_v25 = vld [vmem:[%s9275_s2 + $0x718] sm:$0xf0] }
 0x106   :  { %2507 = vmatpush.bf16.msra.mxu2 %v4722_v38  ;;  %2476 = vmatmul.bf16.vlgmr.msrb.gmra.mxu3 %v6814_v29  ;;  %v5837_v29 = vld [vmem:[%s9275_s2 + $0x644] sm:$0xf]  ;;  %v4615_v34 = vld [vmem:[%s9275_s2 + $0x628] sm:$0xf0]  ;;  %v4754_v38 = vor.u32 %v5867_v18, %v4751_v20  ;;  %v5939_v18 = vld [vmem:[%s9275_s2 + $0x974] sm:$0xf] }
 0x107   :  { %2520 = vmatpush.bf16.msra.mxu3 %v4786_v45  ;;  %v4634_v12 = vor.u32 %v5837_v29, %v4631_v30  ;;  %v4679_v45 = vld [vmem:[%s9275_s2 + $0x6a8] sm:$0xf0]  ;;  %v5829_v29 = vld [vmem:[%s9275_s2 + $0x604] sm:$0xf]  ;;  %v5039_v20 = vld [vmem:[%s9275_s2 + $0x978] sm:$0xf0] }
 0x108   :  { %2488 = vmatpush.bf16.msra.mxu0 %v4538_v53  ;;  %v7944_v40 = vpop.f32.mrf.mxu2  ;;  %v2232_v14 = vpop.f32.mrf.mxu0  ;;  %v4599_v30 = vld [vmem:[%s9275_s2 + $0x608] sm:$0xf0] }
 0x109   :  { %2495 = vmatpush.bf16.msra.mxu1 %v4650_v55  ;;  %v7955_v49 = vpop.f32.mrf.mxu3  ;;  %v2245_v53 = vpop.f32.mrf.mxu1  ;;  %v4618_v55 = vor.u32 %v5833_v32, %v4615_v34  ;;  %v4602_v16 = vor.u32 %v5829_v29, %v4599_v30  ;;  %v4791_v34 = vld [vmem:[%s9275_s2 + $0x788] sm:$0xf0]  ;;  %v5103_v14 = vld [vmem:[%s9275_s2 + $0x9f8] sm:$0xf0]  ;;  %v5917_v30 = vld [vmem:[%s9275_s2 + $0x8c4] sm:$0xf] }
 0x10a   :  { %2508 = vmatpush.bf16.msra.mxu2 %v4714_v56  ;;  %v4682_v56 = vor.u32 %v5849_v19, %v4679_v45  ;;  %v5042_v19 = vor.u32 %v5939_v18, %v5039_v20  ;;  %v5921_v45 = vld [vmem:[%s9275_s2 + $0x8e4] sm:$0xf]  ;;  %v5079_v20 = vld [vmem:[%s9275_s2 + $0x9c8] sm:$0xf0] }
 0x10b   :  { %2521 = vmatpush.bf16.msra.mxu3 %v4778_v58  ;;  %2489 = vmatmul.bf16.vlgmr.msra.gmra.mxu0 %v6824_v33  ;;  %v5835_v33 = vld [vmem:[%s9275_s2 + $0x634] sm:$0xf]  ;;  %v4746_v58 = vor.u32 %v5865_v48, %v4743_v50  ;;  %v4967_v48 = vld [vmem:[%s9275_s2 + $0x8e8] sm:$0xf0]  ;;  %v5937_v50 = vld [vmem:[%s9275_s2 + $0x964] sm:$0xf] }
 0x10c   :  { %2533 = vmatpush.bf16.msrb.mxu0 %v4850_v59  ;;  %v4626_v26 = vor.u32 %v5835_v33, %v4623_v15  ;;  %v4818_v59 = vor.u32 %v5883_v52, %v4815_v7  ;;  %v4911_v15 = vld [vmem:[%s9275_s2 + $0x878] sm:$0xf0]  ;;  %v5031_v52 = vld [vmem:[%s9275_s2 + $0x968] sm:$0xf0]  ;;  %v5955_v7 = vld [vmem:[%s9275_s2 + $0x9f4] sm:$0xf] }
 0x10d   :  { %2496 = vmatpush.bf16.msra.mxu1 %v4642_v0  ;;  %v4610_v0 = vor.u32 %v5831_v44, %v4607_v57  ;;  %v5903_v44 = vld [vmem:[%s9275_s2 + $0x854] sm:$0xf]  ;;  %v4895_v57 = vld [vmem:[%s9275_s2 + $0x858] sm:$0xf0]  ;;  %v5949_v18 = vld [vmem:[%s9275_s2 + $0x9c4] sm:$0xf] }
 0x10e   :  { %2509 = vmatpush.bf16.msra.mxu2 %v4706_v1  ;;  %v4674_v1 = vor.u32 %v5847_v60, %v4671_v35  ;;  %v5919_v60 = vld [vmem:[%s9275_s2 + $0x8d4] sm:$0xf]  ;;  %v4959_v35 = vld [vmem:[%s9275_s2 + $0x8d8] sm:$0xf0]  ;;  %v4898_v63 = vor.u32 %v5903_v44, %v4895_v57 }
 0x10f   :  { %2522 = vmatpush.bf16.msra.mxu3 %v4770_v8  ;;  %v5845_v8 = vld [vmem:[%s9275_s2 + $0x684] sm:$0xf]  ;;  %v5895_v44 = vld [vmem:[%s9275_s2 + $0x814] sm:$0xf]  ;;  %v4863_v57 = vld [vmem:[%s9275_s2 + $0x818] sm:$0xf0] }
 0x110   :  { %2534 = vmatpush.bf16.msrb.mxu0 %v4842_v2  ;;  %v4738_v2 = vor.u32 %v5863_v41, %v4735_v25  ;;  %v2258_v9 = vpop.f32.mrf.mxu2  ;;  %v4666_v17 = vor.u32 %v5845_v8, %v4663_v3  ;;  %v5935_v41 = vld [vmem:[%s9275_s2 + $0x954] sm:$0xf]  ;;  %v5953_v25 = vld [vmem:[%s9275_s2 + $0x9e4] sm:$0xf]  ;;  %v4951_v8 = vld [vmem:[%s9275_s2 + $0x8c8] sm:$0xf0] }
 0x111   :  { %2497 = vmatpush.bf16.msra.mxu1 %v4634_v12  ;;  %v4799_v12 = vld [vmem:[%s9275_s2 + $0x798] sm:$0xf0]  ;;  %v2271_v33 = vpop.f32.mrf.mxu3  ;;  %v5098_v29 = vor.u32 %v5953_v25, %v5095_v62  ;;  %v5015_v3 = vld [vmem:[%s9275_s2 + $0x948] sm:$0xf0]  ;;  %v5945_v25 = vld [vmem:[%s9275_s2 + $0x9a4] sm:$0xf] }
 0x112   :  { %2510 = vmatpush.bf16.msra.mxu2 %v4698_v13  ;;  %v5907_v13 = vld [vmem:[%s9275_s2 + $0x874] sm:$0xf]  ;;  %v4802_v24 = vor.u32 %v5879_v10, %v4799_v12  ;;  %v4954_v12 = vor.u32 %v5917_v30, %v4951_v8  ;;  %v5063_v62 = vld [vmem:[%s9275_s2 + $0x9a8] sm:$0xf0] }
 0x113   :  { %2523 = vmatpush.bf16.msra.mxu3 %v4762_v42  ;;  %v5923_v42 = vld [vmem:[%s9275_s2 + $0x8f4] sm:$0xf]  ;;  %v5066_v30 = vor.u32 %v5945_v25, %v5063_v62  ;;  %v4919_v8 = vld [vmem:[%s9275_s2 + $0x888] sm:$0xf0] }
 0x114   :  { %2535 = vmatpush.bf16.msrb.mxu0 %v4834_v37  ;;  %v4975_v37 = vld [vmem:[%s9275_s2 + $0x8f8] sm:$0xf0] }
 0x115   :  { %2498 = vmatpush.bf16.msra.mxu1 %v4626_v26  ;;  %v5877_v26 = vld [vmem:[%s9275_s2 + $0x784] sm:$0xf]  ;;  %v4978_v32 = vor.u32 %v5923_v42, %v4975_v37  ;;  %v5915_v42 = vld [vmem:[%s9275_s2 + $0x8b4] sm:$0xf]  ;;  %v4943_v37 = vld [vmem:[%s9275_s2 + $0x8b8] sm:$0xf0] }
 0x116   :  { %2511 = vmatpush.bf16.msra.mxu2 %v4690_v27  ;;  %v4914_v27 = vor.u32 %v5907_v13, %v4911_v15  ;;  %v4794_v53 = vor.u32 %v5877_v26, %v4791_v34  ;;  %v4879_v13 = vld [vmem:[%s9275_s2 + $0x838] sm:$0xf0]  ;;  %v5090_v15 = vor.u32 %v5951_v4, %v5087_v6  ;;  %v5897_v26 = vld [vmem:[%s9275_s2 + $0x824] sm:$0xf]  ;;  %v5943_v6 = vld [vmem:[%s9275_s2 + $0x994] sm:$0xf] }
 0x117   :  { %2524 = vmatpush.bf16.msra.mxu3 %v4754_v38  ;;  %v5905_v38 = vld [vmem:[%s9275_s2 + $0x864] sm:$0xf] }
 0x118   :  { %2536 = vmatpush.bf16.msrb.mxu0 %v4826_v43  ;;  %v4903_v43 = vld [vmem:[%s9275_s2 + $0x868] sm:$0xf0] }
 0x119   :  { %2499 = vmatpush.bf16.msra.mxu1 %v4618_v55  ;;  %v4906_v55 = vor.u32 %v5905_v38, %v4903_v43  ;;  %v5082_v38 = vor.u32 %v5949_v18, %v5079_v20  ;;  %v5913_v43 = vld [vmem:[%s9275_s2 + $0x8a4] sm:$0xf]  ;;  %v2231_v20 = vadd.f32 %v7900_v5, %v7760_v54 }
 0x11a   :  { %2512 = vmatpush.bf16.msra.mxu2 %v4682_v56  ;;  %v4970_v56 = vor.u32 %v5921_v45, %v4967_v48  ;;  %v5929_v45 = vld [vmem:[%s9275_s2 + $0x924] sm:$0xf] }
 0x11b   :  { %2525 = vmatpush.bf16.msra.mxu3 %v4746_v58  ;;  %v5034_v58 = vor.u32 %v5937_v50, %v5031_v52  ;;  %v4999_v52 = vld [vmem:[%s9275_s2 + $0x928] sm:$0xf0]  ;;  %v6017_v54 = vld [vmem:[%s9278_s4 + $0x1c4] sm:$0xf] }
 0x11c   :  { %2537 = vmatpush.bf16.msrb.mxu0 %v4818_v59  ;;  %v5106_v59 = vor.u32 %v5955_v7, %v5103_v14  ;;  %v5947_v7 = vld [vmem:[%s9275_s2 + $0x9b4] sm:$0xf]  ;;  %v5071_v14 = vld [vmem:[%s9275_s2 + $0x9b8] sm:$0xf0]  ;;  %v5353_v5 = vld [vmem:[%s9278_s4 + $0x1e0] sm:$0xf0] }
 0x11d   :  { %2500 = vmatpush.bf16.msra.mxu1 %v4610_v0  ;;  %v4962_v0 = vor.u32 %v5919_v60, %v4959_v35  ;;  %v5911_v60 = vld [vmem:[%s9275_s2 + $0x894] sm:$0xf]  ;;  %v4927_v35 = vld [vmem:[%s9275_s2 + $0x898] sm:$0xf0] }
 0x11e   :  { %2513 = vmatpush.bf16.msra.mxu2 %v4674_v1 }
 0x11f   :  { %2526 = vmatpush.bf16.msra.mxu3 %v4738_v2  ;;  %v5933_v2 = vld [vmem:[%s9275_s2 + $0x944] sm:$0xf] }
 0x120   :  { %2538 = vmatpush.bf16.msrb.mxu0 %v4810_v21  ;;  %v8104_v21 = vpop.f32.mrf.mxu0  ;;  %v5018_v33 = vor.u32 %v5933_v2, %v5015_v3  ;;  %v5925_v2 = vld [vmem:[%s9275_s2 + $0x904] sm:$0xf]  ;;  %v4983_v3 = vld [vmem:[%s9275_s2 + $0x908] sm:$0xf0] }
 0x121   :  { %2501 = vmatpush.bf16.msra.mxu1 %v4602_v16  ;;  %v8116_v9 = vpop.f32.mrf.mxu1  ;;  %v5931_v16 = vld [vmem:[%s9275_s2 + $0x934] sm:$0xf] }
 0x122   :  { %2514 = vmatpush.bf16.msra.mxu2 %v4666_v17  ;;  %v5007_v17 = vld [vmem:[%s9275_s2 + $0x938] sm:$0xf0] }
 0x123   :  { %2527 = vmatpush.bf16.msra.mxu3 %v4730_v22 }
 0x124   :  { %2539 = vmatpush.bf16.msrb.mxu0 %v4802_v24  ;;  %2502 = vmatmul.bf16.vlgmr.msra.gmra.mxu1 %v7013_v23  ;;  %v5023_v23 = vld [vmem:[%s9275_s2 + $0x958] sm:$0xf0]  ;;  %v4946_v24 = vor.u32 %v5915_v42, %v4943_v37 }
 0x125   :  { %2546 = vmatpush.bf16.msrb.mxu1 %v4914_v27  ;;  %2515 = vmatmul.bf16.vlgmr.msra.gmra.mxu2 %v7026_v31  ;;  %v4887_v31 = vld [vmem:[%s9275_s2 + $0x848] sm:$0xf0]  ;;  %v5026_v1 = vor.u32 %v5935_v41, %v5023_v23  ;;  %v5927_v41 = vld [vmem:[%s9275_s2 + $0x914] sm:$0xf]  ;;  %v4991_v23 = vld [vmem:[%s9275_s2 + $0x918] sm:$0xf0] }
 0x126   :  { %2559 = vmatpush.bf16.msrb.mxu2 %v4978_v32  ;;  %2528 = vmatmul.bf16.vlgmr.msra.gmra.mxu3 %v7024_v28  ;;  %v5901_v28 = vld [vmem:[%s9275_s2 + $0x844] sm:$0xf]  ;;  %v4871_v27 = vld [vmem:[%s9275_s2 + $0x828] sm:$0xf0]  ;;  %v5010_v32 = vor.u32 %v5931_v16, %v5007_v17  ;;  %v5119_v42 = vld [vmem:[%s9275_s2 + $0xa18] sm:$0xf0]  ;;  %v4986_v17 = vor.u32 %v5925_v2, %v4983_v3 }
 0x127   :  { %2572 = vmatpush.bf16.msrb.mxu3 %v5042_v19  ;;  %v4890_v10 = vor.u32 %v5901_v28, %v4887_v31  ;;  %v4935_v19 = vld [vmem:[%s9275_s2 + $0x8a8] sm:$0xf0]  ;;  %v5893_v28 = vld [vmem:[%s9275_s2 + $0x804] sm:$0xf]  ;;  %v5191_v3 = vld [vmem:[%s9278_s4 + $0x80] sm:$0xf] }
 0x128   :  { %2540 = vmatpush.bf16.msrb.mxu0 %v4794_v53  ;;  %v8148_v34 = vpop.f32.mrf.mxu2  ;;  %v2284_v48 = vpop.f32.mrf.mxu0  ;;  %v4855_v31 = vld [vmem:[%s9275_s2 + $0x808] sm:$0xf0] }
 0x129   :  { %2547 = vmatpush.bf16.msrb.mxu1 %v4906_v55  ;;  %v8159_v50 = vpop.f32.mrf.mxu3  ;;  %v2297_v53 = vpop.f32.mrf.mxu1  ;;  %v4874_v55 = vor.u32 %v5897_v26, %v4871_v27  ;;  %v4858_v37 = vor.u32 %v5893_v28, %v4855_v31  ;;  %v5047_v26 = vld [vmem:[%s9275_s2 + $0x988] sm:$0xf0]  ;;  %v5319_v27 = vld [vmem:[%s9278_s4 + $0x180] sm:$0xf]  ;;  %v2244_v48 = vadd.f32 %v7912_v11, %v2231_v20  ;;  %v6009_v11 = vld [vmem:[%s9278_s4 + $0x184] sm:$0xf] }
 0x12a   :  { %2560 = vmatpush.bf16.msrb.mxu2 %v4970_v56  ;;  %v4938_v56 = vor.u32 %v5913_v43, %v4935_v19  ;;  %v5957_v43 = vld [vmem:[%s9275_s2 + $0xa04] sm:$0xf]  ;;  %v5111_v19 = vld [vmem:[%s9275_s2 + $0xa08] sm:$0xf0]  ;;  %v6005_v53 = vld [vmem:[%s9278_s4 + $0x15c] sm:$0xf0] }
 0x12b   :  { %2573 = vmatpush.bf16.msrb.mxu3 %v5034_v58  ;;  %2541 = vmatmul.bf16.vlgmr.msrb.gmra.mxu0 %v7034_v36  ;;  %v5899_v36 = vld [vmem:[%s9275_s2 + $0x834] sm:$0xf]  ;;  %v5002_v58 = vor.u32 %v5929_v45, %v4999_v52  ;;  %v5989_v28 = vld [vmem:[%s9278_s4 + $0xdc] sm:$0xf0]  ;;  %v5193_v20 = vld [vmem:[%s9278_s4 + $0xa0] sm:$0xf0] }
 0x12c   :  { %2585 = vmatpush.bf16.msra.mxu0 %v5106_v59  ;;  %v4882_v22 = vor.u32 %v5899_v36, %v4879_v13  ;;  %v5074_v59 = vor.u32 %v5947_v7, %v5071_v14  ;;  %v5356_v7 = vor.u32 %v6017_v54, %v5353_v5  ;;  %v5287_v14 = vld [vmem:[%s9278_s4 + $0x140] sm:$0xf] }
 0x12d   :  { %2548 = vmatpush.bf16.msrb.mxu1 %v4898_v63  ;;  %v4866_v63 = vor.u32 %v5895_v44, %v4863_v57  ;;  %v2257_v57 = vadd.f32 %v7944_v40, %v2244_v48  ;;  %v6104_v40 = vld [vmem:[%s9277_s3] sm:$0x3] }
 0x12e   :  { %2561 = vmatpush.bf16.msrb.mxu2 %v4962_v0  ;;  %v4930_v0 = vor.u32 %v5911_v60, %v4927_v35  ;;  %v6001_v60 = vld [vmem:[%s9278_s4 + $0x144] sm:$0xf]  ;;  %v365_v35 = vperm.slane %v6104_v40, 1  ;;  %v5965_v5 = vld [vmem:[%s9278_s4 + $0x1c] sm:$0xf0] }
 0x12f   :  { %2574 = vmatpush.bf16.msrb.mxu3 %v5026_v1  ;;  %v5909_v1 = vld [vmem:[%s9275_s2 + $0x884] sm:$0xf]  ;;  %v6010_v40 = vld [vmem:[%s9278_s4 + $0x18c] sm:$0xf] }
 0x130   :  { %2586 = vmatpush.bf16.msra.mxu0 %v5098_v29  ;;  %v4994_v29 = vor.u32 %v5927_v41, %v4991_v23  ;;  %v2310_v4 = vpop.f32.mrf.mxu2  ;;  %v8221_v13 = vpop.f32.mrf.mxu0  ;;  %v4922_v16 = vor.u32 %v5909_v1, %v4919_v8  ;;  %v2270_v41 = vadd.f32 %v7955_v49, %v2257_v57  ;;  %v5993_v49 = vld [vmem:[%s9278_s4 + $0x104] sm:$0xf]  ;;  %v6105_v1 = vmov 0   ;;  %v5361_v57 = vld [vmem:[%s9278_s4 + $0x1e8] sm:$0xf0] }
 0x131   :  { %2549 = vmatpush.bf16.msrb.mxu1 %v4890_v10  ;;  %v5055_v10 = vld [vmem:[%s9275_s2 + $0x998] sm:$0xf0]  ;;  %v2323_v36 = vpop.f32.mrf.mxu3  ;;  %v8308_v31 = vld [vmem:[%s9279_s1] sm:$0xff]  ;;  %6096 = vset.pattern.permute.xlu0 %v6105_v1  ;;  %v5990_v1 = vld [vmem:[%s9278_s4 + $0xe4] sm:$0xf0] }
 0x132   :  { %2562 = vmatpush.bf16.msrb.mxu2 %v4954_v12  ;;  %v5351_v12 = vld [vmem:[%s9278_s4 + $0x1c0] sm:$0xf]  ;;  %v5058_v18 = vor.u32 %v5943_v6, %v5055_v10  ;;  %v2283_v25 = vadd.f32 %v8104_v21, %v2270_v41  ;;  %2754 = vperm.xlu0 %6096, %v8308_v31   ;;  %v5985_v10 = vld [vmem:[%s9278_s4 + $0xc4] sm:$0xf] }
 0x133   :  { %2575 = vmatpush.bf16.msrb.mxu3 %v5018_v33  ;;  %v6021_v33 = vld [vmem:[%s9278_s4 + $0x1dc] sm:$0xf0] }
 0x134   :  { %2587 = vmatpush.bf16.msra.mxu0 %v5090_v15  ;;  %v5959_v15 = vld [vmem:[%s9275_s2 + $0xa14] sm:$0xf]  ;;  %v5981_v6 = vld [vmem:[%s9278_s4 + $0x9c] sm:$0xf0] }
 0x135   :  { %2550 = vmatpush.bf16.msrb.mxu1 %v4882_v22  ;;  %v5352_v22 = vor.u32 %v6021_v33, %v5351_v12 }
 0x136   :  { %2563 = vmatpush.bf16.msrb.mxu2 %v4946_v24  ;;  %v5941_v24 = vld [vmem:[%s9275_s2 + $0x984] sm:$0xf] }
 0x137   :  { %2576 = vmatpush.bf16.msrb.mxu3 %v5010_v32  ;;  %v5122_v32 = vor.u32 %v5959_v15, %v5119_v42  ;;  %v5050_v45 = vor.u32 %v5941_v24, %v5047_v26 }
 0x138   :  { %2588 = vmatpush.bf16.msra.mxu0 %v5082_v38  ;;  %v6013_v38 = vld [vmem:[%s9278_s4 + $0x19c] sm:$0xf0]  ;;  %v2336_v44 = vpop.f32.mrf.mxu0 }
 0x139   :  { %2551 = vmatpush.bf16.msrb.mxu1 %v4874_v55  ;;  %v5320_v52 = vor.u32 %v6013_v38, %v5319_v27  ;;  %v5321_v55 = vld [vmem:[%s9278_s4 + $0x1a0] sm:$0xf0]  ;;  %v5127_v38 = vld [vmem:[%s9278_s4] sm:$0xf]  ;;  %v6018_v44 = vld [vmem:[%s9278_s4 + $0x1cc] sm:$0xf] }
 0x13a   :  { %2564 = vmatpush.bf16.msrb.mxu2 %v4938_v56  ;;  %v5114_v56 = vor.u32 %v5957_v43, %v5111_v19  ;;  %v5359_v19 = vld [vmem:[%s9278_s4 + $0x1c8] sm:$0xf] }
 0x13b   :  { %2577 = vmatpush.bf16.msrb.mxu3 %v5002_v58  ;;  %v5255_v58 = vld [vmem:[%s9278_s4 + $0x100] sm:$0xf] }
 0x13c   :  { %2589 = vmatpush.bf16.msra.mxu0 %v5074_v59  ;;  %v5997_v59 = vld [vmem:[%s9278_s4 + $0x11c] sm:$0xf0] }
 0x13d   :  { %2552 = vmatpush.bf16.msrb.mxu1 %v4866_v63  ;;  %v5256_v62 = vor.u32 %v5997_v59, %v5255_v58  ;;  %v5364_v59 = vor.u32 %v6018_v44, %v5361_v57  ;;  %v5607_v57 = vld [vmem:[%s9278_s4 + $0x3c0] sm:$0xf] }
 0x13e   :  { %2565 = vmatpush.bf16.msrb.mxu2 %v4930_v0  ;;  %v5223_v0 = vld [vmem:[%s9278_s4 + $0xc0] sm:$0xf] }
 0x13f   :  { %2578 = vmatpush.bf16.msrb.mxu3 %v4994_v29  ;;  %v5224_v8 = vor.u32 %v5989_v28, %v5223_v0  ;;  %v5297_v0 = vld [vmem:[%s9278_s4 + $0x168] sm:$0xf0] }
 0x140   :  { %2590 = vmatpush.bf16.msra.mxu0 %v5066_v30  ;;  %v2296_v30 = vadd.f32 %v8116_v9, %v2283_v25  ;;  %v5225_v9 = vld [vmem:[%s9278_s4 + $0xe0] sm:$0xf0]  ;;  %v5263_v25 = vld [vmem:[%s9278_s4 + $0x108] sm:$0xf] }
 0x141   :  { %2553 = vmatpush.bf16.msrb.mxu1 %v4858_v37  ;;  %v2347_v23 = vpop.f32.mrf.mxu1  ;;  %v5192_v37 = vor.u32 %v5981_v6, %v5191_v3 }
 0x142   :  { %2566 = vmatpush.bf16.msrb.mxu2 %v4922_v16  ;;  %v2348_v21 = vadd.f32 %v2347_v23, %v365_v35  ;;  %v2309_v33 = vadd.f32 %v8148_v34, %v2296_v30  ;;  %v5228_v16 = vor.u32 %v5985_v10, %v5225_v9  ;;  %v5977_v34 = vld [vmem:[%s9278_s4 + $0x84] sm:$0xf]  ;;  %v5329_v35 = vld [vmem:[%s9278_s4 + $0x1a8] sm:$0xf0]  ;;  %v5982_v9 = vld [vmem:[%s9278_s4 + $0xa4] sm:$0xf0] }
 0x143   :  { %2579 = vmatpush.bf16.msrb.mxu3 %v4986_v17  ;;  %v5159_v17 = vld [vmem:[%s9278_s4 + $0x40] sm:$0xf]  ;;  %v5332_v23 = vor.u32 %v6010_v40, %v5329_v35  ;;  %v5994_v30 = vld [vmem:[%s9278_s4 + $0x10c] sm:$0xf]  ;;  %v6081_v40 = vld [vmem:[%s9278_s4 + $0x3c4] sm:$0xf] }
 0x144   :  { %2591 = vmatpush.bf16.msra.mxu0 %v5058_v18  ;;  %2554 = vmatmul.bf16.vlgmr.msrb.gmra.mxu1 %v7226_v39  ;;  %v5288_v39 = vor.u32 %v6005_v53, %v5287_v14  ;;  %v5973_v18 = vld [vmem:[%s9278_s4 + $0x5c] sm:$0xf0]  ;;  %v2322_v24 = vadd.f32 %v8159_v50, %v2309_v33  ;;  %v5969_v50 = vld [vmem:[%s9278_s4 + $0x44] sm:$0xf] }
 0x145   :  { %2604 = vmatpush.bf16.msra.mxu1 %v5122_v32  ;;  %2567 = vmatmul.bf16.vlgmr.msrb.gmra.mxu2 %v7239_v47  ;;  %v5324_v47 = vor.u32 %v6009_v11, %v5321_v55  ;;  %v5196_v32 = vor.u32 %v5977_v34, %v5193_v20  ;;  %v5961_v53 = vld [vmem:[%s9278_s4 + $0x4] sm:$0xf]  ;;  %v5327_v55 = vld [vmem:[%s9278_s4 + $0x188] sm:$0xf]  ;;  %v5978_v20 = vld [vmem:[%s9278_s4 + $0x8c] sm:$0xf] }
 0x146   :  { %3413 = vmatpush.bf16.msra.mxu2 %v5352_v22  ;;  %2580 = vmatmul.bf16.vlgmr.msrb.gmra.mxu3 %v7237_v46  ;;  %v5289_v46 = vld [vmem:[%s9278_s4 + $0x160] sm:$0xf0]  ;;  %v2335_v27 = vadd.f32 %v8221_v13, %v2322_v24  ;;  %v5974_v34 = vld [vmem:[%s9278_s4 + $0x64] sm:$0xf0] }
 0x147   :  { %v5292_v63 = vor.u32 %v6001_v60, %v5289_v46  ;;  %v5161_v13 = vld [vmem:[%s9278_s4 + $0x60] sm:$0xf0]  ;;  %v5295_v60 = vld [vmem:[%s9278_s4 + $0x148] sm:$0xf] }
 0x148   :  { %2592 = vmatpush.bf16.msra.mxu0 %v5050_v45  ;;  %v2386_v29 = vpop.f32.mrf.mxu0  ;;  %v2360_v4 = vpop.f32.mrf.mxu2  ;;  %v6022_v45 = vld [vmem:[%s9278_s4 + $0x1e4] sm:$0xf0]  ;;  %v2611_v48 = vmax.f32 %v2335_v27, 0.0  ;;  %v5129_v11 = vld [vmem:[%s9278_s4 + $0x20] sm:$0xf0] }
 0x149   :  { %2605 = vmatpush.bf16.msra.mxu1 %v5114_v56  ;;  %v2361_v12 = vadd.f32 %v2360_v4, %v2348_v21  ;;  %v2373_v36 = vpop.f32.mrf.mxu3  ;;  %v2349_v42 = vpop.f32.mrf.mxu1  ;;  %v5360_v14 = vor.u32 %v6022_v45, %v5359_v19  ;;  %v6014_v56 = vld [vmem:[%s9278_s4 + $0x1a4] sm:$0xf0]  ;;  %v5609_v35 = vld [vmem:[%s9278_s4 + $0x3e0] sm:$0xf0] }
 0x14a   :  { %3414 = vmatpush.bf16.msra.mxu2 %v5320_v52  ;;  %v5128_v52 = vor.u32 %v5965_v5, %v5127_v38  ;;  %v5328_v58 = vor.u32 %v6014_v56, %v5327_v55  ;;  %v6006_v46 = vld [vmem:[%s9278_s4 + $0x164] sm:$0xf0]  ;;  %v5169_v5 = vld [vmem:[%s9278_s4 + $0x68] sm:$0xf0]  ;;  %v6019_v55 = vld [vmem:[%s9278_s4 + $0x1d4] sm:$0xf] }
 0x14b   :  { %2593 = vmatmul.bf16.vlgmr.msra.gmra.mxu0 %v7250_v51  ;;  %v5257_v51 = vld [vmem:[%s9278_s4 + $0x120] sm:$0xf0]  ;;  %v2374_v15 = vadd.f32 %v2373_v36, %v2361_v12  ;;  %v5296_v41 = vor.u32 %v6006_v46, %v5295_v60  ;;  %v5199_v4 = vld [vmem:[%s9278_s4 + $0x88] sm:$0xf]  ;;  %v5986_v12 = vld [vmem:[%s9278_s4 + $0xcc] sm:$0xf] }
 0x14c   :  { %3439 = vmatpush.bf16.msrb.mxu0 %v5356_v7  ;;  %v5260_v2 = vor.u32 %v5993_v49, %v5257_v51  ;;  %v5164_v7 = vor.u32 %v5969_v50, %v5161_v13  ;;  %v5231_v51 = vld [vmem:[%s9278_s4 + $0xc8] sm:$0xf]  ;;  %v5233_v36 = vld [vmem:[%s9278_s4 + $0xe8] sm:$0xf0]  ;;  %v5200_v42 = vor.u32 %v5982_v9, %v5199_v4  ;;  %v5367_v13 = vld [vmem:[%s9278_s4 + $0x1d0] sm:$0xf] }
 0x14d   :  { %v2387_v22 = vadd.f32 %v2386_v29, %v2374_v15  ;;  %v5966_v38 = vld [vmem:[%s9278_s4 + $0x24] sm:$0xf0]  ;;  %v5369_v56 = vld [vmem:[%s9278_s4 + $0x1f0] sm:$0xf0]  ;;  %v5303_v60 = vld [vmem:[%s9278_s4 + $0x150] sm:$0xf] }
 0x14e   :  { %3415 = vmatpush.bf16.msra.mxu2 %v5288_v39  ;;  %v5132_v39 = vor.u32 %v5961_v53, %v5129_v11  ;;  %v5335_v53 = vld [vmem:[%s9278_s4 + $0x190] sm:$0xf]  ;;  %v5543_v4 = vld [vmem:[%s9278_s4 + $0x340] sm:$0xf] }
 0x14f   :  { %v6015_v11 = vld [vmem:[%s9278_s4 + $0x1ac] sm:$0xf0] }
 0x150   :  { %3440 = vmatpush.bf16.msrb.mxu0 %v5324_v47  ;;  %v2388_v26 = vpop.f32.mrf.mxu0  ;;  %v2362_v54 = vpop.f32.mrf.mxu2  ;;  %v8377_v47 = vpack.c.bf16 %v2611_v48, %v2611_v48 }
 0x151   :  { %v2375_v43 = vpop.f32.mrf.mxu3  ;;  %v5970_v54 = vld [vmem:[%s9278_s4 + $0x4c] sm:$0xf] }
 0x152   :  { %3416 = vmatpush.bf16.msra.mxu2 %v5256_v62  ;;  %v5998_v62 = vld [vmem:[%s9278_s4 + $0x124] sm:$0xf0]  ;;  %v6023_v43 = vld [vmem:[%s9278_s4 + $0x1ec] sm:$0xf0]  ;;  %v5172_v48 = vor.u32 %v5970_v54, %v5169_v5 }
 0x153   :  { %v5264_v28 = vor.u32 %v5998_v62, %v5263_v25  ;;  %v5337_v25 = vld [vmem:[%s9278_s4 + $0x1b0] sm:$0xf0]  ;;  %v5612_v62 = vor.u32 %v6081_v40, %v5609_v35  ;;  %v5983_v54 = vld [vmem:[%s9278_s4 + $0xac] sm:$0xf0]  ;;  %v6041_v40 = vld [vmem:[%s9278_s4 + $0x284] sm:$0xf] }
 0x154   :  { %3441 = vmatpush.bf16.msrb.mxu0 %v5292_v63  ;;  %5124 = vmatmul.msk.bf16.vlgmr.msra.gmra.mxu1 %vm2061_vm0, %v7349_v61  ;;  %v5160_v61 = vor.u32 %v5973_v18, %v5159_v17  ;;  %v6002_v63 = vld [vmem:[%s9278_s4 + $0x14c] sm:$0xf]  ;;  %v5167_v17 = vld [vmem:[%s9278_s4 + $0x48] sm:$0xf] }
 0x155   :  { %v5300_v49 = vor.u32 %v6002_v63, %v5297_v0  ;;  %v5168_v26 = vor.u32 %v5974_v34, %v5167_v17  ;;  %3452 = vmatpush.bf16.msrb.mxu1 %v5612_v62  ;;  %v5575_v63 = vld [vmem:[%s9278_s4 + $0x380] sm:$0xf]  ;;  %v5273_v17 = vld [vmem:[%s9278_s4 + $0x130] sm:$0xf0]  ;;  %v5449_v62 = vld [vmem:[%s9278_s4 + $0x2a0] sm:$0xf0] }
 0x156   :  { %3417 = vmatpush.bf16.msra.mxu2 %v5224_v8  ;;  %v5265_v8 = vld [vmem:[%s9278_s4 + $0x128] sm:$0xf0]  ;;  %v6077_v0 = vld [vmem:[%s9278_s4 + $0x39c] sm:$0xf0] }
 0x157   :  { %v5268_v3 = vor.u32 %v5994_v30, %v5265_v8  ;;  %v5999_v30 = vld [vmem:[%s9278_s4 + $0x12c] sm:$0xf0]  ;;  %v6003_v8 = vld [vmem:[%s9278_s4 + $0x154] sm:$0xf]  ;;  %v5511_v34 = vld [vmem:[%s9278_s4 + $0x300] sm:$0xf] }
 0x158   :  { %3442 = vmatpush.bf16.msrb.mxu0 %v5260_v2  ;;  %v5232_v2 = vor.u32 %v5990_v1, %v5231_v51  ;;  %v5576_v1 = vor.u32 %v6077_v0, %v5575_v63  ;;  %v5967_v63 = vld [vmem:[%s9278_s4 + $0x2c] sm:$0xf0]  ;;  %v5971_v0 = vld [vmem:[%s9278_s4 + $0x54] sm:$0xf] }
 0x15a   :  { %3418 = vmatpush.bf16.msra.mxu2 %v5192_v37 }
 0x15c   :  { %3443 = vmatpush.bf16.msrb.mxu0 %v5228_v16  ;;  %v5236_v16 = vor.u32 %v5986_v12, %v5233_v36 }
 0x15e   :  { %3419 = vmatpush.bf16.msra.mxu2 %v5160_v61  ;;  %v5135_v61 = vld [vmem:[%s9278_s4 + $0x8] sm:$0xf] }
 0x15f   :  { %v5136_v45 = vor.u32 %v5966_v38, %v5135_v61  ;;  %v5207_v61 = vld [vmem:[%s9278_s4 + $0x90] sm:$0xf]  ;;  %v5513_v38 = vld [vmem:[%s9278_s4 + $0x320] sm:$0xf0] }
 0x160   :  { %3444 = vmatpush.bf16.msrb.mxu0 %v5196_v32 }
 0x161   :  { %v2399_v21 = vpop.f32.mrf.mxu1 }
 0x162   :  { %3420 = vmatpush.bf16.msra.mxu2 %v5128_v52  ;;  %v2400_v29 = vadd.f32 %v2399_v21, %v2387_v22  ;;  %v5201_v22 = vld [vmem:[%s9278_s4 + $0xa8] sm:$0xf0]  ;;  %v5368_v52 = vor.u32 %v6023_v43, %v5367_v13  ;;  %v5271_v21 = vld [vmem:[%s9278_s4 + $0x110] sm:$0xf]  ;;  %v5241_v13 = vld [vmem:[%s9278_s4 + $0xf0] sm:$0xf0] }
 0x163   :  { %v5204_v27 = vor.u32 %v5978_v20, %v5201_v22  ;;  %v5272_v12 = vor.u32 %v5999_v30, %v5271_v21  ;;  %v6061_v20 = vld [vmem:[%s9278_s4 + $0x31c] sm:$0xf0]  ;;  %v6057_v22 = vld [vmem:[%s9278_s4 + $0x304] sm:$0xf]  ;;  %v5375_v21 = vld [vmem:[%s9278_s4 + $0x1d8] sm:$0xf] }
 0x164   :  { %3445 = vmatpush.bf16.msrb.mxu0 %v5164_v7  ;;  %v5962_v7 = vld [vmem:[%s9278_s4 + $0xc] sm:$0xf]  ;;  %v5516_v43 = vor.u32 %v6057_v22, %v5513_v38  ;;  %v6025_v22 = vld [vmem:[%s9278_s4 + $0x204] sm:$0xf] }
 0x165   :  { %3421 = vmatmul.bf16.vlgmr.msra.gmra.mxu2 %v8377_v47  ;;  %v5385_v38 = vld [vmem:[%s9278_s4 + $0x220] sm:$0xf0] }
 0x166   :  { %3465 = vmatpush.bf16.msrb.mxu2 %v5360_v14  ;;  %v5137_v14 = vld [vmem:[%s9278_s4 + $0x28] sm:$0xf0] }
 0x167   :  { %v5140_v44 = vor.u32 %v5962_v7, %v5137_v14  ;;  %v6049_v7 = vld [vmem:[%s9278_s4 + $0x2c4] sm:$0xf]  ;;  %v5208_v14 = vor.u32 %v5983_v54, %v5207_v61  ;;  %v6008_v61 = vld [vmem:[%s9278_s4 + $0x174] sm:$0xf0] }
 0x168   :  { %3446 = vmatpush.bf16.msrb.mxu0 %v5132_v39  ;;  %v2438_v6 = vpop.f32.mrf.mxu0  ;;  %v2412_v10 = vpop.f32.mrf.mxu2  ;;  %v6085_v39 = vld [vmem:[%s9278_s4 + $0x3dc] sm:$0xf0] }
 0x169   :  { %v2413_v33 = vadd.f32 %v2412_v10, %v2400_v29  ;;  %v2425_v15 = vpop.f32.mrf.mxu3  ;;  %v2401_v18 = vpop.f32.mrf.mxu1  ;;  %v5608_v46 = vor.u32 %v6085_v39, %v5607_v57  ;;  %v5577_v29 = vld [vmem:[%s9278_s4 + $0x3a0] sm:$0xf0]  ;;  %v5975_v57 = vld [vmem:[%s9278_s4 + $0x6c] sm:$0xf0]  ;;  %v5979_v39 = vld [vmem:[%s9278_s4 + $0x94] sm:$0xf] }
 0x16a   :  { %3466 = vmatpush.bf16.msrb.mxu2 %v5328_v58  ;;  %v5336_v58 = vor.u32 %v6015_v11, %v5335_v53  ;;  %v6065_v10 = vld [vmem:[%s9278_s4 + $0x344] sm:$0xf]  ;;  %v5175_v11 = vld [vmem:[%s9278_s4 + $0x50] sm:$0xf] }
 0x16b   :  { %3447 = vmatmul.bf16.vlgmr.msrb.gmra.mxu0 %v8377_v47  ;;  %v2426_v37 = vadd.f32 %v2425_v15, %v2413_v33  ;;  %3426 = vmatpush.bf16.msra.mxu3 %v5608_v46  ;;  %v5239_v33 = vld [vmem:[%s9278_s4 + $0xd0] sm:$0xf]  ;;  %v6045_v46 = vld [vmem:[%s9278_s4 + $0x29c] sm:$0xf0]  ;;  %v5176_v35 = vor.u32 %v5975_v57, %v5175_v11  ;;  %v5617_v11 = vld [vmem:[%s9278_s4 + $0x3e8] sm:$0xf0] }
 0x16c   :  { %3491 = vmatpush.bf16.msra.mxu0 %v5364_v59  ;;  %v5372_v59 = vor.u32 %v6019_v55, %v5369_v56  ;;  %v6074_v57 = vld [vmem:[%s9278_s4 + $0x38c] sm:$0xf] }
 0x16d   :  { %v8441_v24 = vadd.f32 %v2438_v6, %v2426_v37  ;;  %v6069_v6 = vld [vmem:[%s9278_s4 + $0x35c] sm:$0xf0]  ;;  %v5991_v37 = vld [vmem:[%s9278_s4 + $0xec] sm:$0xf0] }
 0x16e   :  { %3467 = vmatpush.bf16.msrb.mxu2 %v5296_v41  ;;  %v6007_v41 = vld [vmem:[%s9278_s4 + $0x16c] sm:$0xf0]  ;;  %v5544_v15 = vor.u32 %v6069_v6, %v5543_v4 }
 0x16f   :  { %3427 = vmatpush.bf16.msra.mxu3 %v5576_v1  ;;  %v6024_v1 = vld [vmem:[%s9278_s4 + $0x1f4] sm:$0xf0] }
 0x170   :  { %3492 = vmatpush.bf16.msra.mxu0 %v5332_v23  ;;  %v2440_v32 = vpop.f32.mrf.mxu0  ;;  %v2414_v50 = vpop.f32.mrf.mxu2  ;;  %v6011_v23 = vld [vmem:[%s9278_s4 + $0x194] sm:$0xf] }
 0x171   :  { %v2427_v19 = vpop.f32.mrf.mxu3  ;;  %v5340_v51 = vor.u32 %v6011_v23, %v5337_v25  ;;  %v5512_v32 = vor.u32 %v6061_v20, %v5511_v34  ;;  %v5987_v50 = vld [vmem:[%s9278_s4 + $0xd4] sm:$0xf]  ;;  %v5143_v23 = vld [vmem:[%s9278_s4 + $0x10] sm:$0xf]  ;;  %v5383_v34 = vld [vmem:[%s9278_s4 + $0x200] sm:$0xf] }
 0x172   :  { %3468 = vmatpush.bf16.msrb.mxu2 %v5264_v28  ;;  %v6073_v28 = vld [vmem:[%s9278_s4 + $0x384] sm:$0xf]  ;;  %v5244_v53 = vor.u32 %v5987_v50, %v5241_v13  ;;  %v5144_v4 = vor.u32 %v5967_v63, %v5143_v23  ;;  %v6029_v20 = vld [vmem:[%s9278_s4 + $0x21c] sm:$0xf0]  ;;  %v5388_v13 = vor.u32 %v6025_v22, %v5385_v38  ;;  %v6066_v63 = vld [vmem:[%s9278_s4 + $0x34c] sm:$0xf] }
 0x173   :  { %3428 = vmatpush.bf16.msra.mxu3 %v5544_v15  ;;  %v5145_v15 = vld [vmem:[%s9278_s4 + $0x30] sm:$0xf0]  ;;  %v6050_v22 = vld [vmem:[%s9278_s4 + $0x2cc] sm:$0xf]  ;;  %v5183_v38 = vld [vmem:[%s9278_s4 + $0x58] sm:$0xf] }
 0x174   :  { %3493 = vmatpush.bf16.msra.mxu0 %v5300_v49  ;;  %v5304_v49 = vor.u32 %v6007_v41, %v5303_v60  ;;  %v5447_v60 = vld [vmem:[%s9278_s4 + $0x280] sm:$0xf] }
 0x175   :  { %v5448_v25 = vor.u32 %v6045_v46, %v5447_v60  ;;  %v5585_v46 = vld [vmem:[%s9278_s4 + $0x3a8] sm:$0xf0] }
 0x176   :  { %3469 = vmatpush.bf16.msrb.mxu2 %v5232_v2  ;;  %v5305_v2 = vld [vmem:[%s9278_s4 + $0x170] sm:$0xf0]  ;;  %v5588_v23 = vor.u32 %v6074_v57, %v5585_v46  ;;  %v5457_v57 = vld [vmem:[%s9278_s4 + $0x2a8] sm:$0xf0] }
 0x177   :  { %v5308_v36 = vor.u32 %v6003_v8, %v5305_v2  ;;  %3429 = vmatpush.bf16.msra.mxu3 %v5512_v32  ;;  %v5415_v8 = vld [vmem:[%s9278_s4 + $0x240] sm:$0xf]  ;;  %v5384_v32 = vor.u32 %v6029_v20, %v5383_v34  ;;  %v5487_v34 = vld [vmem:[%s9278_s4 + $0x2c8] sm:$0xf] }
 0x178   :  { %3494 = vmatpush.bf16.msra.mxu0 %v5268_v3  ;;  %v5580_v3 = vor.u32 %v6073_v28, %v5577_v29  ;;  %v5177_v28 = vld [vmem:[%s9278_s4 + $0x70] sm:$0xf0]  ;;  %v6037_v2 = vld [vmem:[%s9278_s4 + $0x25c] sm:$0xf0]  ;;  %v6054_v20 = vld [vmem:[%s9278_s4 + $0x2e4] sm:$0xf0] }
 0x179   :  { %v5180_v6 = vor.u32 %v5971_v0, %v5177_v28 }
 0x17a   :  { %3470 = vmatpush.bf16.msrb.mxu2 %v5200_v42  ;;  %3453 = vmatpush.bf16.msrb.mxu1 %v5580_v3  ;;  %v5545_v42 = vld [vmem:[%s9278_s4 + $0x360] sm:$0xf0] }
 0x17b   :  { %v5548_v18 = vor.u32 %v6065_v10, %v5545_v42  ;;  %v6033_v3 = vld [vmem:[%s9278_s4 + $0x244] sm:$0xf]  ;;  %v5416_v10 = vor.u32 %v6037_v2, %v5415_v8  ;;  %v5343_v42 = vld [vmem:[%s9278_s4 + $0x198] sm:$0xf]  ;;  %v5281_v8 = vld [vmem:[%s9278_s4 + $0x138] sm:$0xf0] }
 0x17c   :  { %3495 = vmatpush.bf16.msra.mxu0 %v5236_v16  ;;  %v5995_v16 = vld [vmem:[%s9278_s4 + $0x114] sm:$0xf] }
 0x17e   :  { %3471 = vmatpush.bf16.msrb.mxu2 %v5168_v26  ;;  %3454 = vmatpush.bf16.msrb.mxu1 %v5548_v18  ;;  %v5240_v26 = vor.u32 %v5991_v37, %v5239_v33  ;;  %v5963_v33 = vld [vmem:[%s9278_s4 + $0x14] sm:$0xf]  ;;  %v5377_v18 = vld [vmem:[%s9278_s4 + $0x1f8] sm:$0xf0] }
 0x180   :  { %3496 = vmatpush.bf16.msra.mxu0 %v5204_v27  ;;  %v5276_v27 = vor.u32 %v5995_v16, %v5273_v17  ;;  %v6016_v16 = vld [vmem:[%s9278_s4 + $0x1b4] sm:$0xf0]  ;;  %v6020_v17 = vld [vmem:[%s9278_s4 + $0x1dc] sm:$0xf] }
 0x181   :  { %v8538_v9 = vpop.f32.mrf.mxu1  ;;  %v5344_v54 = vor.u32 %v6016_v16, %v5343_v42  ;;  %v5380_v50 = vor.u32 %v6020_v17, %v5377_v18  ;;  %v5984_v42 = vld [vmem:[%s9278_s4 + $0xb4] sm:$0xf0]  ;;  %v5249_v16 = vld [vmem:[%s9278_s4 + $0xf8] sm:$0xf0] }
 0x182   :  { %3472 = vmatpush.bf16.msrb.mxu2 %v5136_v45  ;;  %3455 = vmatpush.bf16.msrb.mxu1 %v5516_v43  ;;  %v5615_v43 = vld [vmem:[%s9278_s4 + $0x3c8] sm:$0xf] }
 0x184   :  { %3497 = vmatpush.bf16.msra.mxu0 %v5172_v48  ;;  %v5479_v48 = vld [vmem:[%s9278_s4 + $0x2c0] sm:$0xf] }
 0x185   :  { %3473 = vmatmul.bf16.vlgmr.msrb.gmra.mxu2 %v8377_v47 }
 0x186   :  { %3517 = vmatpush.bf16.msra.mxu2 %v5368_v52  ;;  %v6053_v52 = vld [vmem:[%s9278_s4 + $0x2dc] sm:$0xf0] }
 0x187   :  { %v5480_v56 = vor.u32 %v6053_v52, %v5479_v48  ;;  %v6086_v48 = vld [vmem:[%s9278_s4 + $0x3e4] sm:$0xf0]  ;;  %v6082_v52 = vld [vmem:[%s9278_s4 + $0x3cc] sm:$0xf] }
 0x188   :  { %3498 = vmatpush.bf16.msra.mxu0 %v5140_v44  ;;  %v8573_v5 = vpop.f32.mrf.mxu0  ;;  %v8581_v19 = vpop.f32.mrf.mxu2  ;;  %v5481_v44 = vld [vmem:[%s9278_s4 + $0x2e0] sm:$0xf0] }
 0x189   :  { %v8583_v45 = vpop.f32.mrf.mxu3  ;;  %v2453_v55 = vpop.f32.mrf.mxu1  ;;  %3430 = vmatpush.bf16.msra.mxu3 %v5480_v56  ;;  %v5583_v56 = vld [vmem:[%s9278_s4 + $0x388] sm:$0xf] }
 0x18a   :  { %3518 = vmatpush.bf16.msra.mxu2 %v5336_v58  ;;  %v5209_v58 = vld [vmem:[%s9278_s4 + $0xb0] sm:$0xf0]  ;;  %v5620_v55 = vor.u32 %v6082_v52, %v5617_v11  ;;  %v5217_v52 = vld [vmem:[%s9278_s4 + $0xb8] sm:$0xf0]  ;;  %v6046_v11 = vld [vmem:[%s9278_s4 + $0x2a4] sm:$0xf0] }
 0x18b   :  { %3499 = vmatmul.bf16.vlgmr.msra.gmra.mxu0 %v8377_v47  ;;  %v5212_v41 = vor.u32 %v5979_v39, %v5209_v58 }
 0x18c   :  { %3543 = vmatpush.bf16.msrb.mxu0 %v5372_v59  ;;  %v5484_v59 = vor.u32 %v6049_v7, %v5481_v44  ;;  %v6012_v7 = vld [vmem:[%s9278_s4 + $0x19c] sm:$0xf]  ;;  %v6078_v44 = vld [vmem:[%s9278_s4 + $0x3a4] sm:$0xf0] }
 0x18d   :  { %3431 = vmatpush.bf16.msra.mxu3 %v5448_v25  ;;  %v5584_v60 = vor.u32 %v6078_v44, %v5583_v56  ;;  %v5551_v25 = vld [vmem:[%s9278_s4 + $0x348] sm:$0xf] }
 0x18e   :  { %3519 = vmatpush.bf16.msra.mxu2 %v5304_v49  ;;  %3456 = vmatpush.bf16.msrb.mxu1 %v5484_v59  ;;  %v5279_v59 = vld [vmem:[%s9278_s4 + $0x118] sm:$0xf] }
 0x190   :  { %3544 = vmatpush.bf16.msrb.mxu0 %v5340_v51  ;;  %v2492_v49 = vpop.f32.mrf.mxu0  ;;  %v5452_v51 = vor.u32 %v6041_v40, %v5449_v62  ;;  %v2466_v29 = vpop.f32.mrf.mxu2  ;;  %v6000_v40 = vld [vmem:[%s9278_s4 + $0x134] sm:$0xf0]  ;;  %v6070_v62 = vld [vmem:[%s9278_s4 + $0x364] sm:$0xf0] }
 0x191   :  { %v2479_v30 = vpop.f32.mrf.mxu3  ;;  %3432 = vmatpush.bf16.msra.mxu3 %v5416_v10  ;;  %v5280_v0 = vor.u32 %v6000_v40, %v5279_v59  ;;  %v5247_v49 = vld [vmem:[%s9278_s4 + $0xd8] sm:$0xf]  ;;  %v5185_v59 = vld [vmem:[%s9278_s4 + $0x78] sm:$0xf0] }
 0x192   :  { %3520 = vmatpush.bf16.msra.mxu2 %v5272_v12  ;;  %3457 = vmatpush.bf16.msrb.mxu1 %v5452_v51  ;;  %v5417_v12 = vld [vmem:[%s9278_s4 + $0x260] sm:$0xf0]  ;;  %v5552_v51 = vor.u32 %v6070_v62, %v5551_v25  ;;  %v5992_v29 = vld [vmem:[%s9278_s4 + $0xf4] sm:$0xf0]  ;;  %v5996_v30 = vld [vmem:[%s9278_s4 + $0x11c] sm:$0xf] }
 0x193   :  { %v5420_v37 = vor.u32 %v6033_v3, %v5417_v12  ;;  %v5519_v3 = vld [vmem:[%s9278_s4 + $0x308] sm:$0xf]  ;;  %v5248_v10 = vor.u32 %v5992_v29, %v5247_v49  ;;  %v5284_v12 = vor.u32 %v5996_v30, %v5281_v8  ;;  %v5964_v49 = vld [vmem:[%s9278_s4 + $0x1c] sm:$0xf] }
 0x194   :  { %3545 = vmatpush.bf16.msrb.mxu0 %v5308_v36  ;;  %v5376_v36 = vor.u32 %v6024_v1, %v5375_v21  ;;  %v5553_v21 = vld [vmem:[%s9278_s4 + $0x368] sm:$0xf0]  ;;  %v5391_v30 = vld [vmem:[%s9278_s4 + $0x208] sm:$0xf] }
 0x195   :  { %3433 = vmatpush.bf16.msra.mxu3 %v5384_v32  ;;  %v5556_v2 = vor.u32 %v6066_v63, %v5553_v21  ;;  %v6030_v8 = vld [vmem:[%s9278_s4 + $0x224] sm:$0xf0] }
 0x196   :  { %3521 = vmatpush.bf16.msra.mxu2 %v5240_v26  ;;  %3458 = vmatpush.bf16.msrb.mxu1 %v5420_v37  ;;  %v5148_v26 = vor.u32 %v5963_v33, %v5145_v15  ;;  %v5521_v15 = vld [vmem:[%s9278_s4 + $0x328] sm:$0xf0]  ;;  %v5988_v37 = vld [vmem:[%s9278_s4 + $0xdc] sm:$0xf] }
 0x197   :  { %v5252_v32 = vor.u32 %v5988_v37, %v5249_v16  ;;  %v6107_v37 = vmov 1  }
 0x198   :  { %3546 = vmatpush.bf16.msrb.mxu0 %v5276_v27  ;;  %v5311_v27 = vld [vmem:[%s9278_s4 + $0x158] sm:$0xf]  ;;  %6097 = vset.pattern.permute.xlu0 %v6107_v37 }
 0x199   :  { %v5312_v39 = vor.u32 %v6008_v61, %v5311_v27  ;;  %3622 = vperm.xlu0 %6097, %v8308_v31  }
 0x19a   :  { %3522 = vmatpush.bf16.msra.mxu2 %v5208_v14  ;;  %v5345_v14 = vld [vmem:[%s9278_s4 + $0x1b8] sm:$0xf0]  ;;  %3459 = vmatpush.bf16.msrb.mxu1 %v5388_v13 }
 0x19b   :  { %v5348_v58 = vor.u32 %v6012_v7, %v5345_v14  ;;  %v2452_v14 = vadd.f32 %v8538_v9, %v8441_v24  ;;  %v5151_v24 = vld [vmem:[%s9278_s4 + $0x18] sm:$0xf] }
 0x19c   :  { %3547 = vmatpush.bf16.msrb.mxu0 %v5244_v53  ;;  %v5616_v53 = vor.u32 %v6086_v48, %v5615_v43  ;;  %v5976_v43 = vld [vmem:[%s9278_s4 + $0x74] sm:$0xf0]  ;;  %v5980_v48 = vld [vmem:[%s9278_s4 + $0x9c] sm:$0xf] }
 0x19d   :  { %v5184_v56 = vor.u32 %v5976_v43, %v5183_v38  ;;  %v5220_v44 = vor.u32 %v5980_v48, %v5217_v52  ;;  %v2465_v46 = vadd.f32 %v8581_v19, %v2452_v14  ;;  %v6087_v43 = vld [vmem:[%s9278_s4 + $0x3ec] sm:$0xf0]  ;;  %v6083_v48 = vld [vmem:[%s9278_s4 + $0x3d4] sm:$0xf] }
 0x19e   :  { %3523 = vmatpush.bf16.msra.mxu2 %v5176_v35  ;;  %3478 = vmatpush.bf16.msrb.mxu3 %v5616_v53  ;;  %v6004_v35 = vld [vmem:[%s9278_s4 + $0x15c] sm:$0xf]  ;;  %v5455_v53 = vld [vmem:[%s9278_s4 + $0x288] sm:$0xf]  ;;  %v5625_v52 = vld [vmem:[%s9278_s4 + $0x3f0] sm:$0xf0] }
 0x19f   :  { %3504 = vmatpush.bf16.msra.mxu1 %v5620_v55  ;;  %v6042_v55 = vld [vmem:[%s9278_s4 + $0x28c] sm:$0xf]  ;;  %v5456_v9 = vor.u32 %v6046_v11, %v5455_v53  ;;  %v2478_v29 = vadd.f32 %v8583_v45, %v2465_v46  ;;  %v5628_v53 = vor.u32 %v6083_v48, %v5625_v52  ;;  %v5591_v11 = vld [vmem:[%s9278_s4 + $0x390] sm:$0xf]  ;;  %v5561_v46 = vld [vmem:[%s9278_s4 + $0x370] sm:$0xf0] }
 0x1a0   :  { %3548 = vmatpush.bf16.msrb.mxu0 %v5212_v41  ;;  %v5313_v41 = vld [vmem:[%s9278_s4 + $0x178] sm:$0xf0]  ;;  %v5393_v45 = vld [vmem:[%s9278_s4 + $0x228] sm:$0xf0] }
 0x1a1   :  { %v5316_v28 = vor.u32 %v6004_v35, %v5313_v41  ;;  %v8746_v1 = vpop.f32.mrf.mxu1  ;;  %v5423_v35 = vld [vmem:[%s9278_s4 + $0x248] sm:$0xf]  ;;  %v5601_v48 = vld [vmem:[%s9278_s4 + $0x3b8] sm:$0xf0] }
 0x1a2   :  { %3524 = vmatpush.bf16.msra.mxu2 %v5144_v4  ;;  %3479 = vmatpush.bf16.msrb.mxu3 %v5584_v60  ;;  %v6062_v4 = vld [vmem:[%s9278_s4 + $0x324] sm:$0xf0]  ;;  %v5460_v60 = vor.u32 %v6042_v55, %v5457_v57 }
 0x1a3   :  { %3505 = vmatpush.bf16.msra.mxu1 %v5588_v23  ;;  %v5520_v33 = vor.u32 %v6062_v4, %v5519_v3  ;;  %v6038_v41 = vld [vmem:[%s9278_s4 + $0x264] sm:$0xf0]  ;;  %v6034_v23 = vld [vmem:[%s9278_s4 + $0x24c] sm:$0xf]  ;;  %v5392_v4 = vor.u32 %v6030_v8, %v5391_v30  ;;  %v6111_v30 = vmov 5  }
 0x1a4   :  { %3549 = vmatpush.bf16.msrb.mxu0 %v5180_v6  ;;  %v6058_v6 = vld [vmem:[%s9278_s4 + $0x30c] sm:$0xf] }
 0x1a5   :  { %3525 = vmatmul.bf16.vlgmr.msra.gmra.mxu2 %v8377_v47  ;;  %v5524_v17 = vor.u32 %v6058_v6, %v5521_v15 }
 0x1a6   :  { %3569 = vmatpush.bf16.msrb.mxu2 %v5376_v36  ;;  %3480 = vmatpush.bf16.msrb.mxu3 %v5552_v51  ;;  %v5215_v36 = vld [vmem:[%s9278_s4 + $0x98] sm:$0xf]  ;;  %v5153_v51 = vld [vmem:[%s9278_s4 + $0x38] sm:$0xf0] }
 0x1a7   :  { %3506 = vmatpush.bf16.msra.mxu1 %v5556_v2  ;;  %v5216_v61 = vor.u32 %v5984_v42, %v5215_v36  ;;  %v6026_v2 = vld [vmem:[%s9278_s4 + $0x20c] sm:$0xf]  ;;  %v5156_v3 = vor.u32 %v5964_v49, %v5153_v51  ;;  %v6106_v36 = vmov 2   ;;  %v6055_v49 = vld [vmem:[%s9278_s4 + $0x2ec] sm:$0xf0] }
 0x1a8   :  { %3550 = vmatpush.bf16.msrb.mxu0 %v5148_v26  ;;  %v8781_v18 = vpop.f32.mrf.mxu0  ;;  %v8792_v26 = vpop.f32.mrf.mxu2  ;;  %v5396_v6 = vor.u32 %v6026_v2, %v5393_v45  ;;  %6098 = vset.pattern.permute.xlu1 %v6106_v36  ;;  %v6051_v51 = vld [vmem:[%s9278_s4 + $0x2d4] sm:$0xf]  ;;  %v6047_v45 = vld [vmem:[%s9278_s4 + $0x2ac] sm:$0xf0] }
 0x1a9   :  { %v8794_v27 = vpop.f32.mrf.mxu3  ;;  %v2505_v13 = vpop.f32.mrf.mxu1  ;;  %3650 = vperm.xlu1 %6098, %v8308_v31   ;;  %v5431_v36 = vld [vmem:[%s9278_s4 + $0x250] sm:$0xf] }
 0x1aa   :  { %3570 = vmatpush.bf16.msrb.mxu2 %v5344_v54  ;;  %3481 = vmatpush.bf16.msrb.mxu3 %v5520_v33  ;;  %v5488_v54 = vor.u32 %v6054_v20, %v5487_v34 }
 0x1ab   :  { %3551 = vmatmul.bf16.vlgmr.msrb.gmra.mxu0 %v8377_v47  ;;  %3507 = vmatpush.bf16.msra.mxu1 %v5524_v17 }
 0x1ac   :  { %3595 = vmatpush.bf16.msra.mxu0 %v5380_v50  ;;  %v5489_v50 = vld [vmem:[%s9278_s4 + $0x2e8] sm:$0xf0] }
 0x1ad   :  { %v5492_v7 = vor.u32 %v6050_v22, %v5489_v50 }
 0x1ae   :  { %3571 = vmatpush.bf16.msrb.mxu2 %v5312_v39  ;;  %3482 = vmatpush.bf16.msrb.mxu3 %v5488_v54  ;;  %v5968_v39 = vld [vmem:[%s9278_s4 + $0x34] sm:$0xf0] }
 0x1af   :  { %3508 = vmatpush.bf16.msra.mxu1 %v5492_v7  ;;  %v5152_v25 = vor.u32 %v5968_v39, %v5151_v24  ;;  %v5593_v24 = vld [vmem:[%s9278_s4 + $0x3b0] sm:$0xf0] }
 0x1b0   :  { %3596 = vmatpush.bf16.msra.mxu0 %v5348_v58  ;;  %v5972_v58 = vld [vmem:[%s9278_s4 + $0x5c] sm:$0xf]  ;;  %v2544_v40 = vpop.f32.mrf.mxu0  ;;  %v2518_v63 = vpop.f32.mrf.mxu2 }
 0x1b1   :  { %v5188_v62 = vor.u32 %v5972_v58, %v5185_v59  ;;  %v2531_v19 = vpop.f32.mrf.mxu3  ;;  %v5559_v58 = vld [vmem:[%s9278_s4 + $0x350] sm:$0xf]  ;;  %v6110_v40 = vmov 4   ;;  %v5529_v63 = vld [vmem:[%s9278_s4 + $0x330] sm:$0xf0] }
 0x1b2   :  { %3572 = vmatpush.bf16.msrb.mxu2 %v5280_v0  ;;  %3483 = vmatpush.bf16.msrb.mxu3 %v5456_v9  ;;  %v5424_v0 = vor.u32 %v6038_v41, %v5423_v35  ;;  %v6071_v59 = vld [vmem:[%s9278_s4 + $0x36c] sm:$0xf0] }
 0x1b3   :  { %3509 = vmatpush.bf16.msra.mxu1 %v5460_v60  ;;  %v6067_v60 = vld [vmem:[%s9278_s4 + $0x354] sm:$0xf]  ;;  %6100 = vset.pattern.permute.xlu2 %v6110_v40  ;;  %v5560_v35 = vor.u32 %v6071_v59, %v5559_v58  ;;  %v5537_v58 = vld [vmem:[%s9278_s4 + $0x338] sm:$0xf0]  ;;  %v6056_v40 = vld [vmem:[%s9278_s4 + $0x2f4] sm:$0xf0] }
 0x1b4   :  { %3597 = vmatpush.bf16.msra.mxu0 %v5316_v28  ;;  %v5425_v28 = vld [vmem:[%s9278_s4 + $0x268] sm:$0xf0]  ;;  %3706 = vperm.xlu2 %6100, %v8308_v31   ;;  %v5564_v41 = vor.u32 %v6067_v60, %v5561_v46  ;;  %v5503_v46 = vld [vmem:[%s9278_s4 + $0x2d8] sm:$0xf] }
 0x1b5   :  { %v5428_v21 = vor.u32 %v6034_v23, %v5425_v28  ;;  %v5527_v23 = vld [vmem:[%s9278_s4 + $0x310] sm:$0xf] }
 0x1b6   :  { %3573 = vmatpush.bf16.msrb.mxu2 %v5248_v10  ;;  %3484 = vmatpush.bf16.msrb.mxu3 %v5424_v0  ;;  %v2491_v10 = vadd.f32 %v8573_v5, %v2478_v29  ;;  %v6108_v5 = vmov 3   ;;  %v5495_v28 = vld [vmem:[%s9278_s4 + $0x2d0] sm:$0xf] }
 0x1b7   :  { %3510 = vmatpush.bf16.msra.mxu1 %v5428_v21  ;;  %6099 = vset.pattern.permute.xlu1 %v6108_v5  ;;  %v5497_v21 = vld [vmem:[%s9278_s4 + $0x2f0] sm:$0xf0]  ;;  %v5496_v2 = vor.u32 %v6055_v49, %v5495_v28  ;;  %v6044_v28 = vld [vmem:[%s9278_s4 + $0x29c] sm:$0xf] }
 0x1b8   :  { %3598 = vmatpush.bf16.msra.mxu0 %v5284_v12  ;;  %v2504_v12 = vadd.f32 %v8746_v1, %v2491_v10  ;;  %3678 = vperm.xlu1 %6099, %v8308_v31   ;;  %v5473_v49 = vld [vmem:[%s9278_s4 + $0x2b8] sm:$0xf0] }
 0x1ba   :  { %3574 = vmatpush.bf16.msrb.mxu2 %v5216_v61  ;;  %3485 = vmatpush.bf16.msrb.mxu3 %v5392_v4  ;;  %v2517_v33 = vadd.f32 %v8792_v26, %v2504_v12  ;;  %v6109_v61 = vmov 6   ;;  %v5463_v4 = vld [vmem:[%s9278_s4 + $0x290] sm:$0xf] }
 0x1bb   :  { %3511 = vmatpush.bf16.msra.mxu1 %v5396_v6  ;;  %6103 = vset.pattern.permute.xlu0 %v6109_v61  ;;  %v6043_v6 = vld [vmem:[%s9278_s4 + $0x294] sm:$0xf]  ;;  %v5464_v10 = vor.u32 %v6047_v45, %v5463_v4  ;;  %v5441_v4 = vld [vmem:[%s9278_s4 + $0x278] sm:$0xf0] }
 0x1bc   :  { %3599 = vmatpush.bf16.msra.mxu0 %v5252_v32  ;;  %v2530_v15 = vadd.f32 %v8794_v27, %v2517_v33  ;;  %6101 = vset.pattern.permute.xlu2 %v6111_v30  ;;  %v6039_v33 = vld [vmem:[%s9278_s4 + $0x26c] sm:$0xf0]  ;;  %v5439_v30 = vld [vmem:[%s9278_s4 + $0x258] sm:$0xf] }
 0x1bd   :  { %3734 = vperm.xlu2 %6101, %v8308_v31  }
 0x1be   :  { %3575 = vmatpush.bf16.msrb.mxu2 %v5184_v56  ;;  %v2543_v1 = vadd.f32 %v8781_v18, %v2530_v15  ;;  %v5623_v18 = vld [vmem:[%s9278_s4 + $0x3d0] sm:$0xf]  ;;  %v6035_v15 = vld [vmem:[%s9278_s4 + $0x254] sm:$0xf] }
 0x1bf   :  { %v5624_v14 = vor.u32 %v6087_v43, %v5623_v18  ;;  %v6079_v56 = vld [vmem:[%s9278_s4 + $0x3ac] sm:$0xf0]  ;;  %v5599_v18 = vld [vmem:[%s9278_s4 + $0x398] sm:$0xf]  ;;  %v6076_v43 = vld [vmem:[%s9278_s4 + $0x39c] sm:$0xf] }
 0x1c0   :  { %3600 = vmatpush.bf16.msra.mxu0 %v5220_v44  ;;  %6102 = vset.pattern.permute.xlu1 %v6109_v61  ;;  %v6075_v44 = vld [vmem:[%s9278_s4 + $0x394] sm:$0xf]  ;;  %v5592_v57 = vor.u32 %v6079_v56, %v5591_v11  ;;  %v6084_v61 = vld [vmem:[%s9278_s4 + $0x3dc] sm:$0xf] }
 0x1c1   :  { %v2555_v42 = vpop.f32.mrf.mxu1  ;;  %3762 = vperm.xlu1 %6102, %v8308_v31   ;;  %v5596_v39 = vor.u32 %v6075_v44, %v5593_v24  ;;  %v5465_v31 = vld [vmem:[%s9278_s4 + $0x2b0] sm:$0xf0]  ;;  %v6068_v11 = vld [vmem:[%s9278_s4 + $0x35c] sm:$0xf] }
 0x1c2   :  { %3576 = vmatpush.bf16.msrb.mxu2 %v5152_v25  ;;  %v2556_v16 = vadd.f32 %v2555_v42, %v2543_v1  ;;  %v6063_v25 = vld [vmem:[%s9278_s4 + $0x32c] sm:$0xf0]  ;;  %v5468_v12 = vor.u32 %v6043_v6, %v5465_v31  ;;  %v5433_v42 = vld [vmem:[%s9278_s4 + $0x270] sm:$0xf0]  ;;  %v5432_v1 = vor.u32 %v6039_v33, %v5431_v36  ;;  %v5569_v56 = vld [vmem:[%s9278_s4 + $0x378] sm:$0xf0] }
 0x1c3   :  { %v5528_v19 = vor.u32 %v6063_v25, %v5527_v23  ;;  %v5572_v24 = vor.u32 %v6068_v11, %v5569_v56  ;;  %v6032_v36 = vld [vmem:[%s9278_s4 + $0x234] sm:$0xf0]  ;;  %v6028_v33 = vld [vmem:[%s9278_s4 + $0x21c] sm:$0xf] }
 0x1c4   :  { %3601 = vmatpush.bf16.msra.mxu0 %v5188_v62  ;;  %v6059_v62 = vld [vmem:[%s9278_s4 + $0x314] sm:$0xf] }
 0x1c5   :  { %3577 = vmatmul.bf16.vlgmr.msrb.gmra.mxu2 %v8377_v47  ;;  %v5532_v0 = vor.u32 %v6059_v62, %v5529_v63  ;;  %v5504_v62 = vor.u32 %v6056_v40, %v5503_v46 }
 0x1c8   :  { %3602 = vmatpush.bf16.msra.mxu0 %v5156_v3  ;;  %v2594_v17 = vpop.f32.mrf.mxu0  ;;  %v2568_v34 = vpop.f32.mrf.mxu2  ;;  %v5500_v3 = vor.u32 %v6051_v51, %v5497_v21  ;;  %v5476_v21 = vor.u32 %v6044_v28, %v5473_v49 }
 0x1c9   :  { %v2569_v20 = vadd.f32 %v2568_v34, %v2556_v16  ;;  %v2581_v22 = vpop.f32.mrf.mxu3  ;;  %v2557_v26 = vpop.f32.mrf.mxu1  ;;  %v5436_v16 = vor.u32 %v6035_v15, %v5433_v42  ;;  %v6031_v34 = vld [vmem:[%s9278_s4 + $0x22c] sm:$0xf0]  ;;  %v5409_v15 = vld [vmem:[%s9278_s4 + $0x238] sm:$0xf0] }
 0x1ca   :  { %v5631_v26 = vld [vmem:[%s9278_s4 + $0x3d8] sm:$0xf] }
 0x1cb   :  { %3603 = vmatmul.bf16.vlgmr.msra.gmra.mxu0 %v8377_v47  ;;  %v2582_v47 = vadd.f32 %v2581_v22, %v2569_v20  ;;  %v6027_v20 = vld [vmem:[%s9278_s4 + $0x214] sm:$0xf] }
 0x1cc   :  { %v5401_v22 = vld [vmem:[%s9278_s4 + $0x230] sm:$0xf0] }
 0x1cd   :  { %v2595_v38 = vadd.f32 %v2594_v17, %v2582_v47  ;;  %v5399_v17 = vld [vmem:[%s9278_s4 + $0x210] sm:$0xf]  ;;  %v6088_v47 = vld [vmem:[%s9278_s4 + $0x3f4] sm:$0xf0] }
 0x1d0   :  { %v2596_v27 = vpop.f32.mrf.mxu0  ;;  %v2570_v32 = vpop.f32.mrf.mxu2 }
 0x1d1   :  { %v2583_v54 = vpop.f32.mrf.mxu3  ;;  %v2607_v50 = vpop.f32.mrf.mxu1  ;;  %v5633_v27 = vld [vmem:[%s9278_s4 + $0x3f8] sm:$0xf0]  ;;  %v5400_v32 = vor.u32 %v6031_v34, %v5399_v17 }
 0x1d2   :  { %v2608_v13 = vadd.f32 %v2607_v50, %v2595_v38  ;;  %v5404_v38 = vor.u32 %v6027_v20, %v5401_v22  ;;  %v5632_v54 = vor.u32 %v6088_v47, %v5631_v26  ;;  %v5636_v50 = vor.u32 %v6084_v61, %v5633_v27  ;;  %v9102_v61 = vpop.permute.xlu0 %2754 }
 0x1d4   :  { %v2612_v7 = vmax.f32 %v2608_v13, 0.0  ;;  %v6080_v13 = vld [vmem:[%s9278_s4 + $0x3b4] sm:$0xf0] }
 0x1d5   :  { %v5600_v52 = vor.u32 %v6080_v13, %v5599_v18 }
 0x1d6   :  { %v8895_v55 = vpack.c.bf16 %v2612_v7, %v2612_v7  ;;  %v5604_v7 = vor.u32 %v6076_v43, %v5601_v48 }
 0x1d8   :  { %3434 = vmatmul.bf16.vlgmr.msra.gmra.mxu3 %v8895_v55  ;;  %3460 = vmatmul.bf16.vlgmr.msrb.gmra.mxu1 %v8895_v55 }
 0x1d9   :  { %3530 = vmatpush.bf16.msra.mxu3 %v5624_v14  ;;  %3556 = vmatpush.bf16.msrb.mxu1 %v5628_v53  ;;  %v2609_v9 = vpop.f32.mrf.mxu1  ;;  %v5567_v14 = vld [vmem:[%s9278_s4 + $0x358] sm:$0xf] }
 0x1da   :  { %v6072_v53 = vld [vmem:[%s9278_s4 + $0x374] sm:$0xf0] }
 0x1db   :  { %v5568_v44 = vor.u32 %v6072_v53, %v5567_v14  ;;  %v5535_v9 = vld [vmem:[%s9278_s4 + $0x318] sm:$0xf] }
 0x1dd   :  { %3531 = vmatpush.bf16.msra.mxu3 %v5592_v57  ;;  %3557 = vmatpush.bf16.msrb.mxu1 %v5596_v39  ;;  %v6064_v57 = vld [vmem:[%s9278_s4 + $0x334] sm:$0xf0]  ;;  %v6060_v39 = vld [vmem:[%s9278_s4 + $0x31c] sm:$0xf] }
 0x1de   :  { %v5536_v59 = vor.u32 %v6064_v57, %v5535_v9  ;;  %v5540_v60 = vor.u32 %v6060_v39, %v5537_v58  ;;  %v9124_v57 = vld [vmem:[%s9280_s5 + $0x18] sm:$0x7f] }
 0x1e1   :  { %3532 = vmatpush.bf16.msra.mxu3 %v5560_v35  ;;  %3558 = vmatpush.bf16.msrb.mxu1 %v5564_v41  ;;  %v6052_v35 = vld [vmem:[%s9278_s4 + $0x2dc] sm:$0xf] }
 0x1e2   :  { %v5505_v41 = vld [vmem:[%s9278_s4 + $0x2f8] sm:$0xf0] }
 0x1e3   :  { %v5508_v63 = vor.u32 %v6052_v35, %v5505_v41 }
 0x1e5   :  { %3533 = vmatpush.bf16.msra.mxu3 %v5528_v19  ;;  %3559 = vmatpush.bf16.msrb.mxu1 %v5532_v0  ;;  %v5471_v19 = vld [vmem:[%s9278_s4 + $0x298] sm:$0xf] }
 0x1e6   :  { %v6048_v0 = vld [vmem:[%s9278_s4 + $0x2b4] sm:$0xf0] }
 0x1e7   :  { %v5472_v51 = vor.u32 %v6048_v0, %v5471_v19  ;;  %v2760_v19 = vperm.slane %v9124_v57, 0 }
 0x1e8   :  { %v8945_v29 = vpop.f32.mrf.mxu0  ;;  %v8948_v8 = vpop.f32.mrf.mxu2  ;;  %3486 = vmatmul.bf16.vlgmr.msrb.gmra.mxu3 %v8895_v55  ;;  %3512 = vmatmul.bf16.vlgmr.msra.gmra.mxu1 %v8895_v55 }
 0x1e9   :  { %3534 = vmatpush.bf16.msra.mxu3 %v5496_v2  ;;  %3560 = vmatpush.bf16.msrb.mxu1 %v5500_v3  ;;  %v6040_v2 = vld [vmem:[%s9278_s4 + $0x274] sm:$0xf0]  ;;  %v6036_v3 = vld [vmem:[%s9278_s4 + $0x25c] sm:$0xf] }
 0x1ea   :  { %v5440_v31 = vor.u32 %v6040_v2, %v5439_v30 }
 0x1ed   :  { %3535 = vmatpush.bf16.msra.mxu3 %v5464_v10  ;;  %3561 = vmatpush.bf16.msrb.mxu1 %v5468_v12  ;;  %v5444_v10 = vor.u32 %v6036_v3, %v5441_v4  ;;  %v5407_v12 = vld [vmem:[%s9278_s4 + $0x218] sm:$0xf]  ;;  %v9141_v4 = vld [vmem:[%s9281_s6] sm:$0xff] }
 0x1ee   :  { %v5408_v42 = vor.u32 %v6032_v36, %v5407_v12  ;;  %v2768_v36 = vmul.f32 %v2760_v19, %v9102_v61 }
 0x1f0   :  { %v3450_v37 = vpop.f32.mrf.mxu0  ;;  %v3424_v5 = vpop.f32.mrf.mxu2 }
 0x1f1   :  { %3536 = vmatpush.bf16.msra.mxu3 %v5432_v1  ;;  %3562 = vmatpush.bf16.msrb.mxu1 %v5436_v16  ;;  %v5412_v37 = vor.u32 %v6028_v33, %v5409_v15 }
 0x1f5   :  { %3537 = vmatpush.bf16.msra.mxu3 %v5400_v32  ;;  %3563 = vmatpush.bf16.msrb.mxu1 %v5404_v38  ;;  %v2744_v32 = vld [vmem:[%s9280_s5] sm:$0x7f] }
 0x1f6   :  { %v2757_v18 = vperm.slane %v2744_v32, 0  ;;  %v3625_v9 = vperm.slane %v2744_v32, 1  ;;  %v3681_v46 = vperm.slane %v2744_v32, 3  ;;  %v3709_v28 = vperm.slane %v2744_v32, 4 }
 0x1f7   :  { %v3765_v15 = vperm.slane %v2744_v32, 6 }
 0x1f8   :  { %3538 = vmatmul.bf16.vlgmr.msra.gmra.mxu3 %v8895_v55  ;;  %3564 = vmatmul.bf16.vlgmr.msrb.gmra.mxu1 %v8895_v55  ;;  %v2765_v53 = vmul.f32 %v2757_v18, %v9102_v61 }
 0x1f9   :  { %3582 = vmatpush.bf16.msrb.mxu3 %v5632_v54  ;;  %3608 = vmatpush.bf16.msra.mxu1 %v5636_v50 }
 0x1fd   :  { %3583 = vmatpush.bf16.msrb.mxu3 %v5600_v52  ;;  %3609 = vmatpush.bf16.msra.mxu1 %v5604_v7 }
 0x201   :  { %3584 = vmatpush.bf16.msrb.mxu3 %v5568_v44  ;;  %3610 = vmatpush.bf16.msra.mxu1 %v5572_v24 }
 0x205   :  { %3585 = vmatpush.bf16.msrb.mxu3 %v5536_v59  ;;  %3611 = vmatpush.bf16.msra.mxu1 %v5540_v60  ;;  %v3423_v60 = vadd.f32 %v8948_v8, %v2765_v53 }
 0x208   :  { %v9050_v23 = vpop.f32.mrf.mxu0  ;;  %v9052_v25 = vpop.f32.mrf.mxu2 }
 0x209   :  { %3586 = vmatpush.bf16.msrb.mxu3 %v5504_v62  ;;  %3612 = vmatpush.bf16.msra.mxu1 %v5508_v63 }
 0x20b   :  { %v9113_v13 = vpop.permute.xlu0 %3622 }
 0x20c   :  { %v3633_v62 = vmul.f32 %v3625_v9, %v9113_v13 }
 0x20d   :  { %3587 = vmatpush.bf16.msrb.mxu3 %v5472_v51  ;;  %3613 = vmatpush.bf16.msra.mxu1 %v5476_v21 }
 0x20e   :  { %v9110_v38 = vpop.permute.xlu2 %3706 }
 0x20f   :  { %v3717_v33 = vmul.f32 %v3709_v28, %v9110_v38 }
 0x210   :  { %v3502_v45 = vpop.f32.mrf.mxu0  ;;  %v3476_v6 = vpop.f32.mrf.mxu2 }
 0x211   :  { %3588 = vmatpush.bf16.msrb.mxu3 %v5440_v31  ;;  %3614 = vmatpush.bf16.msra.mxu1 %v5444_v10  ;;  %v9146_v45 = vld [vmem:[%s9280_s5 + $0x10] sm:$0x7f]  ;;  %v3737_v31 = vperm.slane %v2744_v32, 5 }
 0x215   :  { %3589 = vmatpush.bf16.msrb.mxu3 %v5408_v42  ;;  %3615 = vmatpush.bf16.msra.mxu1 %v5412_v37 }
 0x217   :  { %v9128_v40 = vpop.permute.xlu2 %3734 }
 0x218   :  { %3590 = vmatmul.bf16.vlgmr.msrb.gmra.mxu3 %v8895_v55  ;;  %3616 = vmatmul.bf16.vlgmr.msra.gmra.mxu1 %v8895_v55  ;;  %v2745_v55 = vld [vmem:[%s9280_s5 + $0x8] sm:$0x7f] }
 0x219   :  { %v2758_v27 = vperm.slane %v2745_v55, 0  ;;  %v3626_v50 = vperm.slane %v2745_v55, 1  ;;  %v3654_v48 = vperm.slane %v2745_v55, 2  ;;  %v3682_v14 = vperm.slane %v2745_v55, 3 }
 0x21a   :  { %v3710_v56 = vperm.slane %v2745_v55, 4  ;;  %v3738_v59 = vperm.slane %v2745_v55, 5  ;;  %v3766_v63 = vperm.slane %v2745_v55, 6  ;;  %v3745_v55 = vmul.f32 %v3737_v31, %v9128_v40 }
 0x21b   :  { %v9100_v47 = vpop.permute.xlu1 %3650  ;;  %v2766_v54 = vmul.f32 %v2758_v27, %v9102_v61  ;;  %v3634_v7 = vmul.f32 %v3626_v50, %v9113_v13  ;;  %v3501_v50 = vadd.f32 %v9050_v23, %v2768_v36 }
 0x21c   :  { %v3662_v24 = vmul.f32 %v3654_v48, %v9100_v47  ;;  %v3718_v35 = vmul.f32 %v3710_v56, %v9110_v38  ;;  %v3746_v8 = vmul.f32 %v3738_v59, %v9128_v40 }
 0x21d   :  { %v3449_v52 = vadd.f32 %v8945_v29, %v2766_v54  ;;  %v3653_v29 = vperm.slane %v2744_v32, 2  ;;  %v3656_v54 = vperm.slane %v9124_v57, 2 }
 0x21f   :  { %v3661_v21 = vmul.f32 %v3653_v29, %v9100_v47  ;;  %v3664_v9 = vmul.f32 %v3656_v54, %v9100_v47  ;;  %v9172_v29 = vld [vmem:[%s9280_s5 + $0x28] sm:$0x7f] }
 0x228   :  { %v9092_v5 = vpop.f32.mrf.mxu0  ;;  %v9094_v1 = vpop.f32.mrf.mxu2 }
 0x22a   :  { %v9115_v43 = vpop.permute.xlu1 %3678 }
 0x22b   :  { %v3690_v58 = vmul.f32 %v3682_v14, %v9115_v43  ;;  %v3689_v2 = vmul.f32 %v3681_v46, %v9115_v43  ;;  %v3684_v14 = vperm.slane %v9124_v57, 3 }
 0x22d   :  { %v3692_v46 = vmul.f32 %v3684_v14, %v9115_v43 }
 0x230   :  { %v3554_v16 = vpop.f32.mrf.mxu0  ;;  %v3528_v17 = vpop.f32.mrf.mxu2 }
 0x231   :  { %v3792_v16 = vperm.slane %v9141_v4, 1  ;;  %v3628_v17 = vperm.slane %v9124_v57, 1 }
 0x233   :  { %v9133_v49 = vpop.permute.xlu1 %3762 }
 0x234   :  { %v3774_v12 = vmul.f32 %v3766_v63, %v9133_v49  ;;  %v3773_v18 = vmul.f32 %v3765_v15, %v9133_v49  ;;  %v3768_v63 = vperm.slane %v9124_v57, 6  ;;  %v3739_v15 = vperm.slane %v9146_v45, 5 }
 0x248   :  { %v9096_v34 = vpop.f32.mrf.mxu0  ;;  %v9098_v20 = vpop.f32.mrf.mxu2 }
 0x250   :  { %v3606_v22 = vpop.f32.mrf.mxu0  ;;  %v3580_v26 = vpop.f32.mrf.mxu2 }
 0x251   :  { %v2759_v22 = vperm.slane %v9146_v45, 0 }
 0x253   :  { %v2767_v53 = vmul.f32 %v2759_v22, %v9102_v61 }
 0x255   :  { %v3461_v11 = vpop.f32.mrf.mxu1 }
 0x256   :  { %v3462_v44 = vadd.f32 %v3461_v11, %v3449_v52  ;;  %v3791_v11 = vperm.slane %v9141_v4, 0 }
 0x258   :  { %v3642_v39 = vadd.f32 %v3634_v7, %v3462_v44  ;;  %v3636_v7 = vmul.f32 %v3628_v17, %v9113_v13  ;;  %v3712_v44 = vperm.slane %v9124_v57, 4 }
 0x25a   :  { %v3670_v41 = vadd.f32 %v3662_v24, %v3642_v39  ;;  %v3627_v39 = vperm.slane %v9146_v45, 1 }
 0x25b   :  { %v3435_v0 = vpop.f32.mrf.mxu3 }
 0x25c   :  { %v3436_v51 = vadd.f32 %v3435_v0, %v3423_v60  ;;  %v3698_v30 = vadd.f32 %v3690_v58, %v3670_v41  ;;  %v3740_v58 = vperm.slane %v9124_v57, 5  ;;  %v3475_v41 = vadd.f32 %v9052_v25, %v2767_v53 }
 0x25d   :  { %v3463_v3 = vpop.f32.mrf.mxu1  ;;  %v3635_v28 = vmul.f32 %v3627_v39, %v9113_v13  ;;  %v3711_v57 = vperm.slane %v9146_v45, 4 }
 0x25e   :  { %v3641_v6 = vadd.f32 %v3633_v62, %v3436_v51  ;;  %v3726_v10 = vadd.f32 %v3718_v35, %v3698_v30  ;;  %v3655_v35 = vperm.slane %v9146_v45, 2  ;;  %v3720_v62 = vmul.f32 %v3712_v44, %v9110_v38 }
 0x25f   :  { %v3683_v51 = vperm.slane %v9146_v45, 3  ;;  %v3748_v30 = vmul.f32 %v3740_v58, %v9128_v40  ;;  %v3793_v44 = vperm.slane %v9141_v4, 2 }
 0x260   :  { %v3669_v42 = vadd.f32 %v3661_v21, %v3641_v6  ;;  %v3754_v37 = vadd.f32 %v3746_v8, %v3726_v10  ;;  %v2762_v21 = vperm.slane %v9172_v29, 0  ;;  %v3663_v3 = vmul.f32 %v3655_v35, %v9100_v47  ;;  %v9192_v10 = vld [vmem:[%s9280_s5 + $0x20] sm:$0x7f] }
 0x261   :  { %v3776_v6 = vmul.f32 %v3768_v63, %v9133_v49  ;;  %v3629_v58 = vperm.slane %v9192_v10, 1 }
 0x262   :  { %v3697_v26 = vadd.f32 %v3689_v2, %v3669_v42  ;;  %v3782_v27 = vadd.f32 %v3774_v12, %v3754_v37  ;;  %v2770_v42 = vmul.f32 %v2762_v21, %v9102_v61  ;;  %v3794_v37 = vperm.slane %v9141_v4, 3 }
 0x263   :  { %v3437_v48 = vpop.f32.mrf.mxu3  ;;  %v3685_v21 = vperm.slane %v9192_v10, 3 }
 0x264   :  { %v3725_v32 = vadd.f32 %v3717_v33, %v3697_v26  ;;  %v3808_v52 = vadd.f32 %v3792_v16, %v3782_v27  ;;  %v3691_v33 = vmul.f32 %v3683_v51, %v9115_v43  ;;  %v3767_v16 = vperm.slane %v9146_v45, 6 }
 0x265   :  { %v3513_v56 = vpop.f32.mrf.mxu1  ;;  %v3719_v26 = vmul.f32 %v3711_v57, %v9110_v38  ;;  %v2761_v27 = vperm.slane %v9192_v10, 0  ;;  %v3658_v48 = vperm.slane %v9172_v29, 2  ;;  %v3637_v51 = vmul.f32 %v3629_v58, %v9113_v13 }
 0x266   :  { %v3753_v24 = vadd.f32 %v3745_v55, %v3725_v32  ;;  %3816 = vst [vmem:[%s9282_s7 + $0x8] sm:$0xff] %v3808_v52  ;;  %v3514_v23 = vadd.f32 %v3513_v56, %v3501_v50  ;;  %v3630_v55 = vperm.slane %v9172_v29, 1  ;;  %v3553_v32 = vadd.f32 %v9092_v5, %v2770_v42 }
 0x267   :  { %v3775_v52 = vmul.f32 %v3767_v16, %v9133_v49  ;;  %v2769_v56 = vmul.f32 %v2761_v27, %v9102_v61  ;;  %v3666_v39 = vmul.f32 %v3658_v48, %v9100_v47  ;;  %v3769_v16 = vperm.slane %v9192_v10, 6 }
 0x268   :  { %v3781_v59 = vadd.f32 %v3773_v18, %v3753_v24  ;;  %v3644_v60 = vadd.f32 %v3636_v7, %v3514_v23  ;;  %v3747_v18 = vmul.f32 %v3739_v15, %v9128_v40  ;;  %v3638_v53 = vmul.f32 %v3630_v55, %v9113_v13 }
 0x269   :  { %v3714_v23 = vperm.slane %v9172_v29, 4 }
 0x26a   :  { %v3807_v19 = vadd.f32 %v3791_v11, %v3781_v59  ;;  %v3672_v0 = vadd.f32 %v3664_v9, %v3644_v60  ;;  %v3686_v11 = vperm.slane %v9172_v29, 3  ;;  %v3742_v59 = vperm.slane %v9172_v29, 5 }
 0x26b   :  { %v3487_v8 = vpop.f32.mrf.mxu3  ;;  %v3722_v63 = vmul.f32 %v3714_v23, %v9110_v38 }
 0x26c   :  { %3815 = vst [vmem:[%s9282_s7] sm:$0xff] %v3807_v19  ;;  %v3700_v25 = vadd.f32 %v3692_v46, %v3672_v0  ;;  %v3488_v2 = vadd.f32 %v3487_v8, %v3475_v41  ;;  %v3694_v35 = vmul.f32 %v3686_v11, %v9115_v43  ;;  %v3657_v41 = vperm.slane %v9192_v10, 2 }
 0x26d   :  { %v3515_v31 = vpop.f32.mrf.mxu1  ;;  %v3770_v19 = vperm.slane %v9172_v29, 6 }
 0x26e   :  { %v3728_v12 = vadd.f32 %v3720_v62, %v3700_v25  ;;  %v3643_v36 = vadd.f32 %v3635_v28, %v3488_v2  ;;  %v3527_v62 = vadd.f32 %v9094_v1, %v2769_v56  ;;  %v3665_v1 = vmul.f32 %v3657_v41, %v9100_v47 }
 0x26f   :  { %v3778_v29 = vmul.f32 %v3770_v19, %v9133_v49 }
 0x270   :  { %v3756_v17 = vadd.f32 %v3748_v30, %v3728_v12  ;;  %v3671_v22 = vadd.f32 %v3663_v3, %v3643_v36  ;;  %v3750_v30 = vmul.f32 %v3742_v59, %v9128_v40  ;;  %v3713_v3 = vperm.slane %v9192_v10, 4 }
 0x271   :  { %v3693_v12 = vmul.f32 %v3685_v21, %v9115_v43  ;;  %v3741_v36 = vperm.slane %v9192_v10, 5  ;;  %v3795_v10 = vperm.slane %v9141_v4, 4 }
 0x272   :  { %v3784_v54 = vadd.f32 %v3776_v6, %v3756_v17  ;;  %v3699_v50 = vadd.f32 %v3691_v33, %v3671_v22  ;;  %v3796_v33 = vperm.slane %v9141_v4, 5 }
 0x273   :  { %v3489_v7 = vpop.f32.mrf.mxu3 }
 0x274   :  { %v3810_v45 = vadd.f32 %v3794_v37, %v3784_v54  ;;  %v3727_v14 = vadd.f32 %v3719_v26, %v3699_v50  ;;  %v3721_v37 = vmul.f32 %v3713_v3, %v9110_v38  ;;  %v3749_v26 = vmul.f32 %v3741_v36, %v9128_v40 }
 0x275   :  { %v3565_v24 = vpop.f32.mrf.mxu1  ;;  %v3777_v50 = vmul.f32 %v3769_v16, %v9133_v49 }
 0x276   :  { %3818 = vst [vmem:[%s9282_s7 + $0x18] sm:$0xff] %v3810_v45  ;;  %v3755_v5 = vadd.f32 %v3747_v18, %v3727_v14  ;;  %v3566_v9 = vadd.f32 %v3565_v24, %v3553_v32  ;;  %v2751_v18 = vld [vmem:[%s9280_s5 + $0x38] sm:$0x7f]  ;;  %v2750_v45 = vld [vmem:[%s9280_s5 + $0x30] sm:$0x7f] }
 0x277   :  { %v2763_v11 = vperm.slane %v2750_v45, 0  ;;  %v3660_v24 = vperm.slane %v2751_v18, 2  ;;  %v3688_v23 = vperm.slane %v2751_v18, 3  ;;  %v3716_v58 = vperm.slane %v2751_v18, 4 }
 0x278   :  { %v3783_v60 = vadd.f32 %v3775_v52, %v3755_v5  ;;  %v3646_v46 = vadd.f32 %v3638_v53, %v3566_v9  ;;  %v2764_v52 = vperm.slane %v2751_v18, 0  ;;  %v3632_v53 = vperm.slane %v2751_v18, 1 }
 0x279   :  { %v2771_v5 = vmul.f32 %v2763_v11, %v9102_v61  ;;  %v3631_v59 = vperm.slane %v2750_v45, 1  ;;  %v3744_v41 = vperm.slane %v2751_v18, 5  ;;  %v3724_v19 = vmul.f32 %v3716_v58, %v9110_v38 }
 0x27a   :  { %v3809_v0 = vadd.f32 %v3793_v44, %v3783_v60  ;;  %v3674_v28 = vadd.f32 %v3666_v39, %v3646_v46  ;;  %v2772_v14 = vmul.f32 %v2764_v52, %v9102_v61  ;;  %v3640_v44 = vmul.f32 %v3632_v53, %v9113_v13 }
 0x27b   :  { %v3539_v8 = vpop.f32.mrf.mxu3  ;;  %v3668_v46 = vmul.f32 %v3660_v24, %v9100_v47  ;;  %v3771_v36 = vperm.slane %v2750_v45, 6 }
 0x27c   :  { %3817 = vst [vmem:[%s9282_s7 + $0x10] sm:$0xff] %v3809_v0  ;;  %v3702_v25 = vadd.f32 %v3694_v35, %v3674_v28  ;;  %v3540_v2 = vadd.f32 %v3539_v8, %v3527_v62  ;;  %v3605_v56 = vadd.f32 %v9096_v34, %v2772_v14  ;;  %v3696_v35 = vmul.f32 %v3688_v23, %v9115_v43 }
 0x27d   :  { %v3567_v57 = vpop.f32.mrf.mxu1  ;;  %v3579_v62 = vadd.f32 %v9098_v20, %v2771_v5  ;;  %v3772_v0 = vperm.slane %v2751_v18, 6  ;;  %v3639_v28 = vmul.f32 %v3631_v59, %v9113_v13  ;;  %v3798_v13 = vperm.slane %v9141_v4, 7 }
 0x27e   :  { %v3730_v6 = vadd.f32 %v3722_v63, %v3702_v25  ;;  %v3645_v31 = vadd.f32 %v3637_v51, %v3540_v2  ;;  %v3659_v63 = vperm.slane %v2750_v45, 2  ;;  %v3687_v51 = vperm.slane %v2750_v45, 3 }
 0x27f   :  { %v3715_v2 = vperm.slane %v2750_v45, 4  ;;  %v3780_v20 = vmul.f32 %v3772_v0, %v9133_v49  ;;  %v3743_v57 = vperm.slane %v2750_v45, 5 }
 0x280   :  { %v3758_v15 = vadd.f32 %v3750_v30, %v3730_v6  ;;  %v3673_v42 = vadd.f32 %v3665_v1, %v3645_v31  ;;  %v3752_v30 = vmul.f32 %v3744_v41, %v9128_v40  ;;  %v3667_v25 = vmul.f32 %v3659_v63, %v9100_v47 }
 0x281   :  { %v3695_v6 = vmul.f32 %v3687_v51, %v9115_v43  ;;  %v3751_v47 = vmul.f32 %v3743_v57, %v9128_v40 }
 0x282   :  { %v3786_v17 = vadd.f32 %v3778_v29, %v3758_v15  ;;  %v3701_v22 = vadd.f32 %v3693_v12, %v3673_v42  ;;  %v3723_v42 = vmul.f32 %v3715_v2, %v9110_v38 }
 0x283   :  { %v3541_v55 = vpop.f32.mrf.mxu3 }
 0x284   :  { %v3812_v27 = vadd.f32 %v3796_v33, %v3786_v17  ;;  %v3729_v54 = vadd.f32 %v3721_v37, %v3701_v22  ;;  %v3779_v22 = vmul.f32 %v3771_v36, %v9133_v49 }
 0x286   :  { %3820 = vst [vmem:[%s9282_s7 + $0x28] sm:$0xff] %v3812_v27  ;;  %v3757_v48 = vadd.f32 %v3749_v26, %v3729_v54  ;;  %v3797_v26 = vperm.slane %v9141_v4, 6 }
 0x288   :  { %v3785_v32 = vadd.f32 %v3777_v50, %v3757_v48 }
 0x28a   :  { %v3811_v7 = vadd.f32 %v3795_v10, %v3785_v32 }
 0x28c   :  { %3819 = vst [vmem:[%s9282_s7 + $0x20] sm:$0xff] %v3811_v7 }
 0x295   :  { %v3617_v9 = vpop.f32.mrf.mxu1 }
 0x296   :  { %v3618_v39 = vadd.f32 %v3617_v9, %v3605_v56 }
 0x298   :  { %v3648_v60 = vadd.f32 %v3640_v44, %v3618_v39 }
 0x29a   :  { %v3676_v34 = vadd.f32 %v3668_v46, %v3648_v60 }
 0x29b   :  { %v3591_v61 = vpop.f32.mrf.mxu3 }
 0x29c   :  { %v3704_v21 = vadd.f32 %v3696_v35, %v3676_v34  ;;  %v3592_v8 = vadd.f32 %v3591_v61, %v3579_v62 }
 0x29d   :  { %v3619_v1 = vpop.f32.mrf.mxu1 }
 0x29e   :  { %v3732_v3 = vadd.f32 %v3724_v19, %v3704_v21  ;;  %v3647_v29 = vadd.f32 %v3639_v28, %v3592_v8 }
 0x2a0   :  { %v3760_v31 = vadd.f32 %v3752_v30, %v3732_v3  ;;  %v3675_v12 = vadd.f32 %v3667_v25, %v3647_v29 }
 0x2a2   :  { %v3788_v33 = vadd.f32 %v3780_v20, %v3760_v31  ;;  %v3703_v15 = vadd.f32 %v3695_v6, %v3675_v12 }
 0x2a3   :  { %v3593_v37 = vpop.f32.mrf.mxu3 }
 0x2a4   :  { %v3814_v16 = vadd.f32 %v3798_v13, %v3788_v33  ;;  %v3731_v17 = vadd.f32 %v3723_v42, %v3703_v15 }
 0x2a6   :  { %3822 = vst [vmem:[%s9282_s7 + $0x38] sm:$0xff] %v3814_v16  ;;  %v3759_v43 = vadd.f32 %v3751_v47, %v3731_v17 }
 0x2a8   :  { %v3787_v55 = vadd.f32 %v3779_v22, %v3759_v43 }
 0x2aa   :  { %v3813_v27 = vadd.f32 %v3797_v26, %v3787_v55 }
 0x2ac   :  { %3821 = vst [vmem:[%s9282_s7 + $0x30] sm:$0xff] %v3813_v27 }

</bundles_post_ra>
